<compile_context>
chip_gen: v6e
topology: v6e:2x2x1
jax: 0.10.0
libtpu: 0.0.40
codegen_flags: <defaults>
</compile_context>

<pallas_src>
import math
import jax
import jax.numpy as jnp
from jax import lax
from jax.experimental import pallas as pl
from jax.experimental.pallas import tpu as pltpu

D_IN = 768 * 2          # 1536  (already a multiple of 128)
H1, H1P = 600, 640      # padded to lane multiple
H2, H2P = 300, 384      # padded to lane multiple
H3 = 128

# constant weight/bias bytes (bf16 matmul weights + f32 biases / w4 row)
_W_BYTES = (D_IN * H1P + H1P * H2P + H2P * H3) * 2 + (H1P + H2P + H3 + H3 + 1) * 4


def _round_up(n, m):
    return ((n + m - 1) // m) * m


def _cdiv(a, b):
    return (a + b - 1) // b


# ----------------------------- Pallas kernel --------------------------------
def dssm_kernel(x_ref, w1_ref, b1_ref, w2_ref, b2_ref, w3_ref, b3_ref,
                w4_ref, b4_ref, o_ref):
    # x: (TILE_B, 1536) f32 block -> cast to bf16 in-kernel (saves a separate
    # wrapper HBM pass); weights bf16 (in, out) layout; biases f32.
    x = x_ref[...].astype(jnp.bfloat16)
    h1 = jnp.tanh(jnp.dot(x, w1_ref[...],
                          preferred_element_type=jnp.float32) + b1_ref[...])
    h2 = jnp.tanh(jnp.dot(h1.astype(jnp.bfloat16), w2_ref[...],
                          preferred_element_type=jnp.float32) + b2_ref[...])
    h3 = jnp.tanh(jnp.dot(h2.astype(jnp.bfloat16), w3_ref[...],
                          preferred_element_type=jnp.float32) + b3_ref[...])
    # Final 128 -> 1 layer emitted lane-dense as a (1, TILE_B) row:
    # contract the hidden dim of (1,128) x (TILE_B,128) -> (1, TILE_B).
    o_ref[...] = (lax.dot_general(w4_ref[...], h3,
                                  dimension_numbers=(((1,), (1,)), ((), ())),
                                  preferred_element_type=jnp.float32)
                  + b4_ref[...])


# ------------------------------- wrapper -------------------------------------
def dssm_forward(x, packed_params, tile_b=512):
    """x: (B, 1536) float32 -> (B,) float32."""
    (w1p, b1p, w2p, b2p, w3p, b3p, w4row, b4s) = packed_params
    B = x.shape[0]

    # Single small tile for small batches (sublane multiple of 16); multi-tile
    # grids use a lane-dense tile (multiple of 128) so the (1, tile_b) output
    # block stays unmasked.  Ragged last x block is handled by Pallas (rows
    # are independent; padded rows only feed outputs we slice off).
    tile_b = max(16, min(tile_b, _round_up(B, 16)))
    if B > tile_b:
        tile_b = _round_up(tile_b, 128)
    n_tiles = _cdiv(B, tile_b)

    const = lambda i: (0, 0)                    # weights resident across tiles
    out = pl.pallas_call(
        dssm_kernel,
        out_shape=jax.ShapeDtypeStruct((1, n_tiles * tile_b), jnp.float32),
        grid=(n_tiles,),
        in_specs=[
            pl.BlockSpec((tile_b, D_IN), lambda i: (i, 0)),   # x tile (f32)
            pl.BlockSpec((D_IN, H1P), const),                 # w1 (bf16)
            pl.BlockSpec((1, H1P), const),                    # b1 (f32)
            pl.BlockSpec((H1P, H2P), const),                  # w2 (bf16)
            pl.BlockSpec((1, H2P), const),                    # b2 (f32)
            pl.BlockSpec((H2P, H3), const),                   # w3 (bf16)
            pl.BlockSpec((1, H3), const),                     # b3 (f32)
            pl.BlockSpec((1, H3), const),                     # w4 row (f32)
            pl.BlockSpec((1, 1), const),                      # b4 (f32)
        ],
        out_specs=pl.BlockSpec((1, tile_b), lambda i: (0, i)),  # lane-dense
        compiler_params=pltpu.CompilerParams(
            dimension_semantics=("parallel",),
            vmem_limit_bytes=48 * 1024 * 1024),
        cost_estimate=pl.CostEstimate(
            flops=2 * B * (D_IN * H1P + H1P * H2P + H2P * H3 + H3),
            transcendentals=B * (H1P + H2P + H3),
            bytes_accessed=B * D_IN * 4 + _W_BYTES + n_tiles * tile_b * 4),
    )(x, w1p, b1p, w2p, b2p, w3p, b3p, w4row, b4s)
    # (1, n_tiles*tile_b) -> (B,); matches torch .squeeze(-1)
    return out.reshape(-1)[:B]


# ------------------------- deterministic parameters --------------------------
def xavier_uniform(key, fan_in, fan_out):
    # matches nn.init.xavier_uniform_ (gain=1); stored as (in, out) layout
    a = math.sqrt(6.0 / (fan_in + fan_out))
    return jax.random.uniform(key, (fan_in, fan_out), jnp.float32, -a, a)


def linear_bias(key, fan_in, fan_out):
    # matches PyTorch Linear default bias init: U(-1/sqrt(fan_in), +1/sqrt(fan_in))
    bound = 1.0 / math.sqrt(fan_in)
    return jax.random.uniform(key, (1, fan_out), jnp.float32, -bound, bound)


def make_params(key):
    dims = [(D_IN, H1), (H1, H2), (H2, H3), (H3, 1)]
    params = []
    for (fi, fo) in dims:
        key, kw, kb = jax.random.split(key, 3)
        params.append((xavier_uniform(kw, fi, fo), linear_bias(kb, fi, fo)))
    return params


def _pad_to(a, shape):
    out = jnp.zeros(shape, a.dtype)
    return out.at[:a.shape[0], :a.shape[1]].set(a)


def prepare_params(params):
    """Pad hidden dims to lane multiples and cast matmul weights to bf16."""
    (w1, b1), (w2, b2), (w3, b3), (w4, b4) = params
    w1p = _pad_to(w1, (D_IN, H1P)).astype(jnp.bfloat16)
    b1p = _pad_to(b1, (1, H1P))
    w2p = _pad_to(w2, (H1P, H2P)).astype(jnp.bfloat16)   # padded rows are zero
    b2p = _pad_to(b2, (1, H2P))
    w3p = _pad_to(w3, (H2P, H3)).astype(jnp.bfloat16)    # padded rows are zero
    b3p = b3                                             # (1, 128) already aligned
    w4row = w4.T                                         # (1, 128) f32
    b4s = b4                                             # (1, 1)   f32
    return (w1p, b1p, w2p, b2p, w3p, b3p, w4row, b4s)


# -------------------------------- reference ----------------------------------
def ref_forward(x, params):
    # Plain-JAX reference with the same bf16 input rounding / f32 accumulation.
    (w1, b1), (w2, b2), (w3, b3), (w4, b4) = params
    c = lambda a: a.astype(jnp.bfloat16)
    h1 = jnp.tanh(jnp.dot(c(x), c(w1), preferred_element_type=jnp.float32) + b1)
    h2 = jnp.tanh(jnp.dot(c(h1), c(w2), preferred_element_type=jnp.float32) + b2)
    h3 = jnp.tanh(jnp.dot(c(h2), c(w3), preferred_element_type=jnp.float32) + b3)
    return (jnp.dot(h3, w4) + b4)[:, 0]


# ----------------------------------- main ------------------------------------
if __name__ == "__main__":
    key = jax.random.PRNGKey(0)
    key, kx = jax.random.split(key)

    # Small demo batch chosen to exercise a multi-tile grid with a ragged
    # last x block (300 = 2*128 + 44).  Production default is tile_b=512.
    B = 300
    x = jax.random.normal(kx, (B, D_IN), jnp.float32)
    params = make_params(key)
    packed = prepare_params(params)

    y = dssm_forward(x, packed, tile_b=128)
    y = jax.block_until_ready(y)

    y_ref = ref_forward(x, params)
    assert y.shape == (B,)
    assert jnp.allclose(y, y_ref, atol=1e-2, rtol=1e-2), (
        float(jnp.max(jnp.abs(y - y_ref))))

    print("KERNEL_OK")
</pallas_src>

<mosaic_0001>
module attributes {stable_mosaic.version = 11 : i64} {
  func.func @dssm_kernel(%arg0: i32, %arg1: memref<128x1536xf32, #tpu.memory_space<vmem>>, %arg2: memref<1536x640xbf16, #tpu.memory_space<vmem>>, %arg3: memref<1x640xf32, #tpu.memory_space<vmem>>, %arg4: memref<640x384xbf16, #tpu.memory_space<vmem>>, %arg5: memref<1x384xf32, #tpu.memory_space<vmem>>, %arg6: memref<384x128xbf16, #tpu.memory_space<vmem>>, %arg7: memref<1x128xf32, #tpu.memory_space<vmem>>, %arg8: memref<1x128xf32, #tpu.memory_space<vmem>>, %arg9: memref<1x1xf32, #tpu.memory_space<vmem>>, %arg10: memref<1x128xf32, #tpu.memory_space<vmem>>) attributes {dimension_semantics = [#tpu.dimension_semantics<parallel>], iteration_bounds = array<i64: 3>, scalar_prefetch = 0 : i64, scratch_operands = 0 : i64, tpu.core_type = #tpu.core_type<tc>, window_params = [{transform_indices = @transform_0, window_bounds = array<i64: 128, 1536>}, {pipeline_mode = #tpu.pipeline_mode<synchronous>, transform_indices = @transform_1, window_bounds = array<i64: 1536, 640>}, {pipeline_mode = #tpu.pipeline_mode<synchronous>, transform_indices = @transform_2, window_bounds = array<i64: 1, 640>}, {pipeline_mode = #tpu.pipeline_mode<synchronous>, transform_indices = @transform_3, window_bounds = array<i64: 640, 384>}, {pipeline_mode = #tpu.pipeline_mode<synchronous>, transform_indices = @transform_4, window_bounds = array<i64: 1, 384>}, {pipeline_mode = #tpu.pipeline_mode<synchronous>, transform_indices = @transform_5, window_bounds = array<i64: 384, 128>}, {pipeline_mode = #tpu.pipeline_mode<synchronous>, transform_indices = @transform_6, window_bounds = array<i64: 1, 128>}, {pipeline_mode = #tpu.pipeline_mode<synchronous>, transform_indices = @transform_7, window_bounds = array<i64: 1, 128>}, {pipeline_mode = #tpu.pipeline_mode<synchronous>, transform_indices = @transform_8, window_bounds = array<i64: 1, 1>}, {transform_indices = @transform_9, window_bounds = array<i64: 1, 128>}]} {
    %c0 = arith.constant 0 : index
    %c0_0 = arith.constant 0 : index
    %0 = vector.load %arg1[%c0, %c0_0] : memref<128x1536xf32, #tpu.memory_space<vmem>>, vector<128x1536xf32>
    %1 = arith.truncf %0 : vector<128x1536xf32> to vector<128x1536xbf16>
    %c0_1 = arith.constant 0 : index
    %c0_2 = arith.constant 0 : index
    %2 = vector.load %arg2[%c0_1, %c0_2] : memref<1536x640xbf16, #tpu.memory_space<vmem>>, vector<1536x640xbf16>
    %cst = arith.constant dense<0.000000e+00> : vector<128x640xf32>
    %3 = tpu.matmul %1, %2, %cst {dimension_numbers = #tpu.dot_dimension_numbers<[1], [0], [0], [1], [0, 0, 1, 1], [], []>} : vector<128x1536xbf16>, vector<1536x640xbf16>, vector<128x640xf32> -> vector<128x640xf32>
    %c0_3 = arith.constant 0 : index
    %c0_4 = arith.constant 0 : index
    %4 = vector.load %arg3[%c0_3, %c0_4] : memref<1x640xf32, #tpu.memory_space<vmem>>, vector<1x640xf32>
    %5 = vector.broadcast %4 : vector<1x640xf32> to vector<128x640xf32>
    %6 = arith.addf %3, %5 : vector<128x640xf32>
    %7 = math.tanh %6 : vector<128x640xf32>
    %8 = arith.truncf %7 : vector<128x640xf32> to vector<128x640xbf16>
    %c0_5 = arith.constant 0 : index
    %c0_6 = arith.constant 0 : index
    %9 = vector.load %arg4[%c0_5, %c0_6] : memref<640x384xbf16, #tpu.memory_space<vmem>>, vector<640x384xbf16>
    %cst_7 = arith.constant dense<0.000000e+00> : vector<128x384xf32>
    %10 = tpu.matmul %8, %9, %cst_7 {dimension_numbers = #tpu.dot_dimension_numbers<[1], [0], [0], [1], [0, 0, 1, 1], [], []>} : vector<128x640xbf16>, vector<640x384xbf16>, vector<128x384xf32> -> vector<128x384xf32>
    %c0_8 = arith.constant 0 : index
    %c0_9 = arith.constant 0 : index
    %11 = vector.load %arg5[%c0_8, %c0_9] : memref<1x384xf32, #tpu.memory_space<vmem>>, vector<1x384xf32>
    %12 = vector.broadcast %11 : vector<1x384xf32> to vector<128x384xf32>
    %13 = arith.addf %10, %12 : vector<128x384xf32>
    %14 = math.tanh %13 : vector<128x384xf32>
    %15 = arith.truncf %14 : vector<128x384xf32> to vector<128x384xbf16>
    %c0_10 = arith.constant 0 : index
    %c0_11 = arith.constant 0 : index
    %16 = vector.load %arg6[%c0_10, %c0_11] : memref<384x128xbf16, #tpu.memory_space<vmem>>, vector<384x128xbf16>
    %cst_12 = arith.constant dense<0.000000e+00> : vector<128x128xf32>
    %17 = tpu.matmul %15, %16, %cst_12 {dimension_numbers = #tpu.dot_dimension_numbers<[1], [0], [0], [1], [0, 0, 1, 1], [], []>} : vector<128x384xbf16>, vector<384x128xbf16>, vector<128x128xf32> -> vector<128x128xf32>
    %c0_13 = arith.constant 0 : index
    %c0_14 = arith.constant 0 : index
    %18 = vector.load %arg7[%c0_13, %c0_14] : memref<1x128xf32, #tpu.memory_space<vmem>>, vector<1x128xf32>
    %19 = vector.broadcast %18 : vector<1x128xf32> to vector<128x128xf32>
    %20 = arith.addf %17, %19 : vector<128x128xf32>
    %21 = math.tanh %20 : vector<128x128xf32>
    %c0_15 = arith.constant 0 : index
    %c0_16 = arith.constant 0 : index
    %22 = vector.load %arg8[%c0_15, %c0_16] : memref<1x128xf32, #tpu.memory_space<vmem>>, vector<1x128xf32>
    %cst_17 = arith.constant dense<0.000000e+00> : vector<1x128xf32>
    %23 = tpu.matmul %22, %21, %cst_17 {dimension_numbers = #tpu.dot_dimension_numbers<[1], [1], [0], [0], [0, 0, 1, 0], [], []>} : vector<1x128xf32>, vector<128x128xf32>, vector<1x128xf32> -> vector<1x128xf32>
    %c0_18 = arith.constant 0 : index
    %c0_19 = arith.constant 0 : index
    %24 = vector.load %arg9[%c0_18, %c0_19] : memref<1x1xf32, #tpu.memory_space<vmem>>, vector<1x1xf32>
    %25 = vector.broadcast %24 : vector<1x1xf32> to vector<1x128xf32>
    %26 = arith.addf %23, %25 : vector<1x128xf32>
    %c0_20 = arith.constant 0 : index
    %c0_21 = arith.constant 0 : index
    %27 = vector.load %arg10[%c0_20, %c0_21] : memref<1x128xf32, #tpu.memory_space<vmem>>, vector<1x128xf32>
    tpu.vector_store %arg10[%c0_20, %c0_21], %26 {strides = array<i32>} : memref<1x128xf32, #tpu.memory_space<vmem>>, vector<1x128xf32>,
    return
  }
  func.func @transform_0(%arg0: i32) -> (i32, i32) {
    %c0_i32 = arith.constant 0 : i32
    %c0_i32_0 = arith.constant 0 : i32
    return %arg0, %c0_i32 : i32, i32
  }
  func.func @transform_1(%arg0: i32) -> (i32, i32) {
    %c0_i32 = arith.constant 0 : i32
    %c0_i32_0 = arith.constant 0 : i32
    %c0_i32_1 = arith.constant 0 : i32
    return %c0_i32, %c0_i32_0 : i32, i32
  }
  func.func @transform_2(%arg0: i32) -> (i32, i32) {
    %c0_i32 = arith.constant 0 : i32
    %c0_i32_0 = arith.constant 0 : i32
    %c0_i32_1 = arith.constant 0 : i32
    return %c0_i32, %c0_i32_0 : i32, i32
  }
  func.func @transform_3(%arg0: i32) -> (i32, i32) {
    %c0_i32 = arith.constant 0 : i32
    %c0_i32_0 = arith.constant 0 : i32
    %c0_i32_1 = arith.constant 0 : i32
    return %c0_i32, %c0_i32_0 : i32, i32
  }
  func.func @transform_4(%arg0: i32) -> (i32, i32) {
    %c0_i32 = arith.constant 0 : i32
    %c0_i32_0 = arith.constant 0 : i32
    %c0_i32_1 = arith.constant 0 : i32
    return %c0_i32, %c0_i32_0 : i32, i32
  }
  func.func @transform_5(%arg0: i32) -> (i32, i32) {
    %c0_i32 = arith.constant 0 : i32
    %c0_i32_0 = arith.constant 0 : i32
    %c0_i32_1 = arith.constant 0 : i32
    return %c0_i32, %c0_i32_0 : i32, i32
  }
  func.func @transform_6(%arg0: i32) -> (i32, i32) {
    %c0_i32 = arith.constant 0 : i32
    %c0_i32_0 = arith.constant 0 : i32
    %c0_i32_1 = arith.constant 0 : i32
    return %c0_i32, %c0_i32_0 : i32, i32
  }
  func.func @transform_7(%arg0: i32) -> (i32, i32) {
    %c0_i32 = arith.constant 0 : i32
    %c0_i32_0 = arith.constant 0 : i32
    %c0_i32_1 = arith.constant 0 : i32
    return %c0_i32, %c0_i32_0 : i32, i32
  }
  func.func @transform_8(%arg0: i32) -> (i32, i32) {
    %c0_i32 = arith.constant 0 : i32
    %c0_i32_0 = arith.constant 0 : i32
    %c0_i32_1 = arith.constant 0 : i32
    return %c0_i32, %c0_i32_0 : i32, i32
  }
  func.func @transform_9(%arg0: i32) -> (i32, i32) {
    %c0_i32 = arith.constant 0 : i32
    %c0_i32_0 = arith.constant 0 : i32
    return %c0_i32, %arg0 : i32, i32
  }
}

</mosaic_0001>

<bundles_post_ra>
// kernel: tpu_custom_call.1
= control target key start
LH: loop header
LB: loop body
LE: loop exit
PB: predicated region body
PF: predicated region fallthrough
CT: control target
= control target key end

     0   :  { %s13193_s0 = inlined_call_operand.hbm [shape: f32[300,1536], index: 0, kind: input, shape index: {}]   ;;  %s13194_s1 = inlined_call_operand.hbm [shape: bf16[1536,640], index: 1, kind: input, shape index: {}]   ;;  %s13195_s2 = inlined_call_operand.hbm [shape: f32[1,640], index: 2, kind: input, shape index: {}]   ;;  %s13196_s3 = inlined_call_operand.hbm [shape: bf16[640,384], index: 3, kind: input, shape index: {}]   ;;  %s13197_s4 = inlined_call_operand.hbm [shape: f32[1,384], index: 4, kind: input, shape index: {}]   ;;  %s13198_s5 = inlined_call_operand.hbm [shape: bf16[384,128], index: 5, kind: input, shape index: {}]   ;;  %s13199_s6 = inlined_call_operand.hbm [shape: f32[1,128], index: 6, kind: input, shape index: {}]   ;;  %s13200_s7 = inlined_call_operand.hbm [shape: f32[1,128], index: 7, kind: input, shape index: {}]   ;;  %s13201_s8 = inlined_call_operand.<no memory space> [shape: f32[1,1], index: 8, kind: input, shape index: {}]   ;;  %s13202_s9 = inlined_call_operand.hbm [shape: f32[1,384], index: 9, kind: output, shape index: {}]  }
   0x1   :  { %v14_v0 = vstv %s13201_s8 }
   0x2   :  { %15 = vst [vmem:[#allocation2] sm:$0x1] %v14_v0 }
   0x3   :  { %16 = vsyncpa [#allocation4], 0 }
   0x4   :  { %18 = vsyncpa [#allocation4 + $0x1], 0 }
   0x5   :  { %19 = vsyncpa [#allocation7], 0 }
   0x6   :  { %20 = vsyncpa [#allocation10], 0 }
   0x7   :  { %21 = vsyncpa [#allocation13], 0 }
   0x8   :  { %22 = vsyncpa [#allocation16], 0 }
   0x9   :  { %23 = vsyncpa [#allocation5], 0 }
   0xa   :  { %25 = vsyncpa [#allocation5 + $0x1], 0  ;;  %s11074_s11 = smov 0   ;;  %s11076_s12 = smov 0  }
   0xb   :  { %s11078_s13 = smov 0   ;;  %s11080_s14 = smov 0  }
   0xc LB: > { %s11095_s8 = sadd.s32 4294967295, %s10999_s14   ;;  %s8062_s15 = sadd.s32 4294967294, %s10999_s14   ;;  %s10999_s14 = sphi %s11080_s14, %s13769_s14   ;;  %s10995_s13 = sphi %s11078_s13, %s13773_s13   ;;  %s10991_s12 = sphi %s11076_s12, %s13772_s12   ;;  %s10987_s11 = sphi %s11074_s11, %s13771_s11  }
   0xd   : > { %s11099_s16 = sadd.s32 1, %s10999_s14   ;;  %s38_s17 = sadd.s32 1, %s10995_s13 }
   0xe   : > { %13392 = sst [smem:[#allocation24_spill]] %s11099_s16  ;;  %s35_s18 = ssub.s32 %s10999_s14, %s11099_s16 }
   0xf   : > { %p45_p0 = scmp.ne.s32.totalorder %s10995_s13, %s10991_s12  ;;  %p36_p1 = scmp.eq.s32.totalorder %s35_s18, 0 }
  0x10   : > { %p46_p2 = scmp.eq.s32.totalorder %s10999_s14, 0  ;;  %p51_p3 = scmp.ne.s32.totalorder %s10991_s12, %s10987_s11 }
  0x11   : > { %p13203_p4 = scmp.eq.s32.totalorder %s11095_s8, 0  ;;  %p243_p7 = scmp.eq.s32.totalorder %s11095_s8, 2 }
  0x12   : > { %s11111_s19 = scalar_select %p36_p1, %s10995_s13, %s38_s17  }
  0x13   : > { %p11113_p5 = por %p46_p2, %p45_p0  ;;  %p11119_p6 = por %p13203_p4, %p51_p3 }
  0x14   : > { %13393 = sst [smem:[#allocation25_spill]] %s11111_s19  ;;  %p249_p8 = scmp.eq.s32.totalorder %s8062_s15, 2 }
  0x15   : > { %s13394_s20 = scalar_select %p11113_p5, 1, 0 }
  0x16   : > { %s13395_s21 = scalar_select %p11119_p6, 1, 0 }
  0x17   : > { %p8063_p9 = scmp.ge.s32.totalorder %s10999_s14, 1  ;;  %p256_p10 = scmp.lt.s32.totalorder %s10999_s14, 4 }
  0x18   : > { %p11126_p11 = por %p243_p7, %p45_p0  ;;  %p11130_p12 = por %p249_p8, %p51_p3 }
  0x19   : > { %p11134_p13 = pnand %p8063_p9, %p256_p10  ;;  %s11001_s25 = smov [#allocation6]  }
  0x1a   : > { %s13396_s22 = scalar_select %p11126_p11, 1, 0 }
  0x1b   : > { %s13397_s23 = scalar_select %p11130_p12, 1, 0 }
  0x1c   : > { %s13399_s24 = scalar_select %p11134_p13, 1, 0 }
  0x1d   : > { %13398 = sst [smem:[#allocation26_spill]] %s13397_s23  ;;  %p9473_p1 = pneg %p11134_p13 }
  0x1e   : > { %s268_s26 = sshll.u32 %s11001_s25, 4  ;;  %s11002_s28 = smov [#allocation9]   ;;  %s269_s26 = int_to_ptr.vmem [resolvable:$true] %s268_s26 }
  0x1f   : > { %p11142_p2 = pnand %p9473_p1, %p13203_p4  ;;  %s292_s29 = sshll.u32 %s11002_s28, 4  ;;  %s293_s29 = int_to_ptr.vmem [resolvable:$true] %s292_s29 }
  0x20   : > { %s10722_s10 = scalar_lea.vmem %s269_s26, 61440  ;;  %p10730_p9 = scmp.lt.s32.totalorder %s269_s26, %s269_s26 }
  0x21   : > { %p11148_p0 = pneg %p11142_p2  ;;  %p10723_p3 = scmp.ne.s32.totalorder %s269_s26, %s10722_s10 }
  0x22   : > { %p10731_p10 = scmp.lt.s32.totalorder %s10722_s10, %s10722_s10 }
  0x23   : > { %p10725_p7 = pnand %p10723_p3, %p11148_p0 }
  0x24   : > { %p10732_p1 = por %p10731_p10, %p10730_p9 }
  0x25   : > { %p10726_p8 = pneg %p10725_p7 }
  0x27   : > { %p10733_p4 = pnand %p10732_p1, %p10726_p8 }
  0x29   : > { %10736 = shalt.err (!%p10733_p4)
}
  0x2a   : > { %s11003_s15 = smov 320   ;;  %s11004_s17 = smov 20  }
  0x2b   : > { %9476 = dma.hbm_to_vmem [thread:$0]  (!%p11142_p2), %s13194_s1, 61440, %s269_s26, [#allocation7], %s11003_s15, %s11003_s15, %s11004_s17  }
  0x2c   : > { %s10748_s28 = scalar_lea.vmem %s293_s29, 15360  ;;  %p10756_p7 = scmp.lt.s32.totalorder %s293_s29, %s293_s29 }
  0x2d   : > { %p10749_p12 = scmp.ne.s32.totalorder %s293_s29, %s10748_s28  ;;  %p10757_p6 = scmp.lt.s32.totalorder %s10748_s28, %s10748_s28 }
  0x2f   : > { %p10751_p11 = pnand %p10749_p12, %p11148_p0  ;;  %p10758_p13 = por %p10757_p6, %p10756_p7 }
  0x31   : > { %p10752_p3 = pneg %p10751_p11 }
  0x33   : > { %p10759_p9 = pnand %p10758_p13, %p10752_p3 }
  0x35   : > { %10762 = shalt.err (!%p10759_p9)
}
  0x36   : > { %s11005_s10 = smov 192   ;;  %s11006_s19 = smov 12  }
  0x37   : > { %9482 = dma.hbm_to_vmem [thread:$0]  (!%p11142_p2), %s13196_s3, 15360, %s293_s29, [#allocation10], %s11005_s10, %s11005_s10, %s11006_s19  }
  0x38   : > { %s11007_s26 = smov [#allocation12]  }
  0x39   : > { %s316_s15 = sshll.u32 %s11007_s26, 4  ;;  %s317_s15 = int_to_ptr.vmem [resolvable:$true] %s316_s15 }
  0x3a   : > { %s10774_s17 = scalar_lea.vmem %s317_s15, 3072  ;;  %p10782_p6 = scmp.lt.s32.totalorder %s317_s15, %s317_s15 }
  0x3b   : > { %p10775_p4 = scmp.ne.s32.totalorder %s317_s15, %s10774_s17  ;;  %p10783_p13 = scmp.lt.s32.totalorder %s10774_s17, %s10774_s17 }
  0x3d   : > { %p10777_p11 = pnand %p10775_p4, %p11148_p0  ;;  %p10784_p8 = por %p10783_p13, %p10782_p6 }
  0x3f   : > { %p10778_p12 = pneg %p10777_p11 }
  0x41   : > { %p10785_p10 = pnand %p10784_p8, %p10778_p12 }
  0x43   : > { %10788 = shalt.err (!%p10785_p10)
}
  0x44   : > { %s11008_s18 = smov 64   ;;  %s11009_s25 = smov 4  }
  0x45   : > { %9488 = dma.hbm_to_vmem [thread:$0]  (!%p11142_p2), %s13198_s5, 3072, %s317_s15, [#allocation13], %s11008_s18, %s11008_s18, %s11009_s25  }
  0x46   : > { %s11010_s23 = smov [#allocation8]   ;;  %s11011_s28 = smov [#allocation11]  }
  0x47   : > { %s282_s29 = sshll.u32 %s11010_s23, 4  ;;  %s306_s10 = sshll.u32 %s11011_s28, 4  ;;  %s283_s29 = int_to_ptr.vmem [resolvable:$true] %s282_s29  ;;  %s307_s10 = int_to_ptr.vmem [resolvable:$true] %s306_s10 }
  0x48   : > { %s10800_s26 = scalar_lea.vmem %s283_s29, 80  ;;  %s10807_s17 = scalar_lea.vmem %s283_s29, 96 }
  0x49   : > { %p10801_p1 = scmp.ne.s32.totalorder %s283_s29, %s10800_s26  ;;  %p10808_p9 = scmp.lt.s32.totalorder %s283_s29, %s283_s29 }
  0x4a   : > { %p10809_p4 = scmp.lt.s32.totalorder %s10807_s17, %s10800_s26 }
  0x4b   : > { %p10803_p3 = pnand %p10801_p1, %p11148_p0 }
  0x4c   : > { %p10810_p11 = por %p10809_p4, %p10808_p9 }
  0x4d   : > { %p10804_p7 = pneg %p10803_p3 }
  0x4f   : > { %p10811_p12 = pnand %p10810_p11, %p10804_p7 }
  0x51   : > { %10814 = shalt.err (!%p10811_p12)
}
  0x52   : > { %9479 = dma.hbm_to_vmem [thread:$0]  (!%p11142_p2), %s13195_s2, 80, %s283_s29, [#allocation7]  }
  0x53   : > { %s10826_s25 = scalar_lea.vmem %s307_s10, 48  ;;  %s10833_s16 = scalar_lea.vmem %s307_s10, 64 }
  0x54   : > { %p10827_p6 = scmp.ne.s32.totalorder %s307_s10, %s10826_s25  ;;  %p10834_p10 = scmp.lt.s32.totalorder %s307_s10, %s307_s10 }
  0x55   : > { %p10835_p1 = scmp.lt.s32.totalorder %s10833_s16, %s10826_s25 }
  0x56   : > { %p10829_p13 = pnand %p10827_p6, %p11148_p0 }
  0x57   : > { %p10836_p3 = por %p10835_p1, %p10834_p10 }
  0x58   : > { %p10830_p8 = pneg %p10829_p13 }
  0x5a   : > { %p10837_p5 = pnand %p10836_p3, %p10830_p8 }
  0x5c   : > { %10840 = shalt.err (!%p10837_p5)
}
  0x5d   : > { %9485 = dma.hbm_to_vmem [thread:$0]  (!%p11142_p2), %s13197_s4, 48, %s307_s10, [#allocation10]  }
  0x5e   : > { %s11012_s28 = smov [#allocation14]   ;;  %s11013_s26 = smov [#allocation15]  }
  0x5f   : > { %s330_s29 = sshll.u32 %s11012_s28, 4  ;;  %s341_s17 = sshll.u32 %s11013_s26, 4  ;;  %s331_s29 = int_to_ptr.vmem [resolvable:$true] %s330_s29  ;;  %s342_s17 = int_to_ptr.vmem [resolvable:$true] %s341_s17 }
  0x60   : > { %s10852_s15 = scalar_lea.vmem %s331_s29, 16  ;;  %s10859_s18 = scalar_lea.vmem %s331_s29, 32 }
  0x61   : > { %p10853_p7 = scmp.ne.s32.totalorder %s331_s29, %s10852_s15  ;;  %p10860_p5 = scmp.lt.s32.totalorder %s331_s29, %s331_s29 }
  0x62   : > { %p10861_p11 = scmp.lt.s32.totalorder %s10859_s18, %s10852_s15 }
  0x63   : > { %p10855_p9 = pnand %p10853_p7, %p11148_p0 }
  0x64   : > { %p10862_p12 = por %p10861_p11, %p10860_p5 }
  0x65   : > { %p10856_p4 = pneg %p10855_p9 }
  0x67   : > { %p10863_p6 = pnand %p10862_p12, %p10856_p4 }
  0x69   : > { %10866 = shalt.err (!%p10863_p6)
}
  0x6a   : > { %9491 = dma.hbm_to_vmem [thread:$0]  (!%p11142_p2), %s13199_s6, 16, %s331_s29, [#allocation13]  }
  0x6b   : > { %s10878_s16 = scalar_lea.vmem %s342_s17, 16  ;;  %s10885_s19 = scalar_lea.vmem %s342_s17, 32 }
  0x6c   : > { %p10879_p13 = scmp.ne.s32.totalorder %s342_s17, %s10878_s16  ;;  %p10886_p1 = scmp.lt.s32.totalorder %s342_s17, %s342_s17 }
  0x6d   : > { %p10887_p3 = scmp.lt.s32.totalorder %s10885_s19, %s10878_s16 }
  0x6e   : > { %p10881_p8 = pnand %p10879_p13, %p11148_p0 }
  0x6f   : > { %p10888_p7 = por %p10887_p3, %p10886_p1 }
  0x70   : > { %p10882_p10 = pneg %p10881_p8 }
  0x72   : > { %p10889_p9 = pnand %p10888_p7, %p10882_p10 }
  0x74   : > { %10892 = shalt.err (!%p10889_p9)
}
  0x75   : > { %9494 = dma.hbm_to_vmem [thread:$0]  (!%p11142_p2), %s13200_s7, 16, %s342_s17, [#allocation16]  }
  0x76   : > { %p8071_p4 = scmp.ge.s32.totalorder %s10999_s14, 3 }
  0x77   : > { %p13402_p5 = scmp.ne.s32.totalorder (!%p8071_p4), %s13394_s20, 0 }
  0x78   : > { %351 = sbr.rel (%p8071_p4) target bundleno = 159 (0x9f), region = 48 }
  0x7d   : > { %354 = sbr.rel (!%p13402_p5) target bundleno = 159 (0x9f), region = 52  ;;  %s355_s30 = sand.u32 (%p13402_p5), 1, %s10995_s13  }
  0x7e   : > { %s8072_s29 = sshll.u32 (%p13402_p5), %s10999_s14, 4  ;;  %s9439_s26 = smul.u32 (%p13402_p5), 1536, %s355_s30 }
  0x7f   : > { %s361_s15 = ssub.s32 (%p13402_p5), 38, %s8072_s29  ;;  %s11209_s10 = scalar_lea.sflag (%p13402_p5), [#allocation4], %s355_s30 }
  0x80   : > { %p362_p0 = scmp.lt.s32.totalorder (%p13402_p5), %s361_s15, 16  ;;  %s359_s17 = scalar_lea.vmem (%p13402_p5), [#allocation3], %s9439_s26 }
  0x82   : > { %s13775_s15 = smov (!%p362_p0, %s361_s15), 16 }
  0x83   : > { %s11206_s18 = smul.u32 1536, %s13775_s15 }
  0x85   : > { %s367_s27 = ssub.s32 24576, %s11206_s18 }
  0x86   : > { %368 = vsyncadd %s11209_s10, %s367_s27  ;;  %p8075_p2 = scmp.ne.s32.totalorder %s11206_s18, 0  ;;  %s9440_s20 = smul.u32 24576, %s10999_s14 }
  0x87   : > { %s374_s25 = sshll.u32 %s359_s17, 4  ;;  %s10897_s26 = scalar_lea.hbm %s13193_s0, 58368  ;;  %s11219_s25 = int_to_ptr.vmem [resolvable:$true] %s374_s25 }
  0x88   : > { %s11217_s23 = scalar_lea.hbm %s13193_s0, %s9440_s20 }
  0x89   : > { %s10893_s28 = scalar_lea.hbm %s11217_s23, %s11206_s18  ;;  %p10898_p13 = scmp.lt.s32.totalorder %s11217_s23, %s13193_s0 }
  0x8a   : > { %p10894_p11 = scmp.ne.s32.totalorder %s11217_s23, %s10893_s28  ;;  %p10899_p8 = scmp.lt.s32.totalorder %s10897_s26, %s10893_s28 }
  0x8c   : > { %p10895_p12 = pnand %p10894_p11, %p8075_p2  ;;  %p10900_p10 = por %p10899_p8, %p10898_p13 }
  0x8e   : > { %p10896_p6 = pneg %p10895_p12 }
  0x90   : > { %p10901_p1 = pnand %p10900_p10, %p10896_p6 }
  0x92   : > { %10904 = shalt.err (!%p10901_p1)
}
  0x93   : > { %s10905_s17 = scalar_lea.vmem %s11219_s25, %s11206_s18  ;;  %s11014_s20 = smov [#allocation3]  }
  0x94   : > { %p10906_p3 = scmp.ne.s32.totalorder %s11219_s25, %s10905_s17  ;;  %s10909_s16 = sshll.u32 %s11014_s20, 4  ;;  %s10910_s16 = int_to_ptr.vmem [resolvable:$false] %s10909_s16 }
  0x95   : > { %s10911_s19 = scalar_lea.vmem %s10910_s16, 49152  ;;  %p10912_p4 = scmp.lt.s32.totalorder %s11219_s25, %s10910_s16 }
  0x96   : > { %p10907_p7 = pnand %p10906_p3, %p8075_p2  ;;  %p10913_p5 = scmp.lt.s32.totalorder %s10911_s19, %s10905_s17 }
  0x98   : > { %p10908_p9 = pneg %p10907_p7  ;;  %p10914_p0 = por %p10913_p5, %p10912_p4 }
  0x9a   : > { %p10915_p11 = pnand %p10914_p0, %p10908_p9 }
  0x9c   : > { %10918 = shalt.err (!%p10915_p11)
}
  0x9d   : > { %s11015_s28 = smov 1536   ;;  %s11016_s30 = smov 96  }
  0x9e   : > { %380 = dma.hbm_to_vmem [thread:$0]  (%p8075_p2), %s11217_s23, %s11206_s18, %s11219_s25, %s11209_s10, %s11015_s28, %s11015_s28, %s11016_s30  }
  0x9f PF: > { %p13403_p12 = scmp.ne.s32.totalorder %s13399_s24, 0 }
  0xa1   : > { %386 = sbr.rel (%p13403_p12) target bundleno = 1806 (0x70e), region = 56 }
  0xa6   : > { %s11248_s29 = sand.u32 1, %s10991_s12   ;;  %p13404_p6 = scmp.ne.s32.totalorder %s13395_s21, 0 }
  0xa7   : > { %s9441_s26 = smul.u32 1536, %s11248_s29  ;;  %s389_s15 = scalar_lea.sflag [#allocation4], %s11248_s29 }
  0xa9   : > { %s11252_s27 = scalar_lea.vmem [#allocation3], %s9441_s26 }
  0xaa   : > { %10962 = dma.done.wait (%p13404_p6), %s389_s15, 24576  }
  0xab   : > { %10964 = vsyncadd (%p13404_p6), %s389_s15, 4294942720  ;;  %p13405_p2 = scmp.eq.s32.totalorder %s11095_s8, 0 }
  0xad   : > { %10966 = dma.done.wait (%p13405_p2), [#allocation7], 61520   ;;  %p13406_p13 = pmov %p13405_p2 }
  0xae   : > { %p13407_p8 = pmov %p13405_p2 }
  0xaf   : > { %10968 = vsyncadd (%p13406_p13), [#allocation7], 4294905776 }
  0xb0   : > { %10970 = dma.done.wait (%p13407_p8), [#allocation10], 15408   ;;  %p13408_p10 = pmov %p13405_p2 }
  0xb1   : > { %p13409_p1 = pmov %p13405_p2 }
  0xb2   : > { %10972 = vsyncadd (%p13408_p10), [#allocation10], 4294951888 }
  0xb3   : > { %10974 = dma.done.wait (%p13409_p1), [#allocation13], 3088   ;;  %p13410_p3 = pmov %p13409_p1 }
  0xb4   : > { %p13411_p7 = pmov %p13409_p1 }
  0xb5   : > { %10976 = vsyncadd (%p13410_p3), [#allocation13], 4294964208 }
  0xb6   : > { %10978 = dma.done.wait (%p13411_p7), [#allocation16], 16   ;;  %p13412_p9 = pmov %p13409_p1 }
  0xb7   : > { %v9565_v1 = vld [vmem:[#allocation6 + $0x11c] ss:$20 sps:$4 sm:$0xff]   ;;  %v9569_v3 = vld [vmem:[#allocation6 + $0x118] ss:$20 sps:$4 sm:$0xff]   ;;  %v9571_v5 = vld [vmem:[#allocation6 + $0xf4] ss:$20 sps:$4 sm:$0xff]  }
  0xb8   : > { %10980 = vsyncadd (%p13412_p9), [#allocation16], 4294967280  ;;  %v9567_v2 = vld [vmem:[#allocation6 + $0x39c] ss:$20 sps:$4 sm:$0xff]   ;;  %3848 = vmatprep.subr.bf16.mxu0 %v9565_v1  ;;  %v9570_v4 = vld [vmem:[#allocation6 + $0x398] ss:$20 sps:$4 sm:$0xff]  }
  0xb9   : > { %3961 = vmatprep.subr.bf16.mxu1 %v9567_v2  ;;  %3849 = vmatpush1.bf16.msra.mxu0 %v9569_v3  ;;  %v9573_v6 = vld [vmem:[#allocation6 + $0x374] ss:$20 sps:$4 sm:$0xff]   ;;  %v9575_v7 = vld [vmem:[#allocation6 + $0xf0] ss:$20 sps:$4 sm:$0xff]   ;;  %v9577_v9 = vld [vmem:[#allocation6 + $0xcc] ss:$20 sps:$4 sm:$0xff]  }
  0xba   : > { %3962 = vmatpush1.bf16.msra.mxu1 %v9570_v4  ;;  %3850 = vmatprep.subr.bf16.mxu0 %v9571_v5  ;;  %v9576_v8 = vld [vmem:[#allocation6 + $0x370] ss:$20 sps:$4 sm:$0xff]   ;;  %v9579_v10 = vld [vmem:[#allocation6 + $0x34c] ss:$20 sps:$4 sm:$0xff]   ;;  %v9581_v11 = vld [vmem:[#allocation6 + $0xc8] ss:$20 sps:$4 sm:$0xff]  }
  0xbb   : > { %3963 = vmatprep.subr.bf16.mxu1 %v9573_v6  ;;  %v9582_v12 = vld [vmem:[#allocation6 + $0x348] ss:$20 sps:$4 sm:$0xff]   ;;  %v9583_v13 = vld [vmem:[#allocation6 + $0xa4] ss:$20 sps:$4 sm:$0xff]   ;;  %v9587_v15 = vld [vmem:[#allocation6 + $0xa0] ss:$20 sps:$4 sm:$0xff]  }
  0xbc   : > { %v9585_v14 = vld [vmem:[#allocation6 + $0x324] ss:$20 sps:$4 sm:$0xff]   ;;  %v9588_v16 = vld [vmem:[#allocation6 + $0x320] ss:$20 sps:$4 sm:$0xff]   ;;  %v9589_v17 = vld [vmem:[#allocation6 + $0x7c] ss:$20 sps:$4 sm:$0xff]  }
  0xbd   : > { %3851 = vmatpush1.bf16.msra.mxu0 %v9575_v7  ;;  %v9591_v18 = vld [vmem:[#allocation6 + $0x2fc] ss:$20 sps:$4 sm:$0xff]   ;;  %v9593_v19 = vld [vmem:[#allocation6 + $0x78] ss:$20 sps:$4 sm:$0xff]   ;;  %v9595_v21 = vld [vmem:[#allocation6 + $0x54] ss:$20 sps:$4 sm:$0xff]  }
  0xbe   : > { %3964 = vmatpush1.bf16.msra.mxu1 %v9576_v8  ;;  %3852 = vmatprep.subr.bf16.mxu0 %v9577_v9  ;;  %v9594_v20 = vld [vmem:[#allocation6 + $0x2f8] ss:$20 sps:$4 sm:$0xff]   ;;  %v9597_v22 = vld [vmem:[#allocation6 + $0x2d4] ss:$20 sps:$4 sm:$0xff]   ;;  %v9599_v23 = vld [vmem:[#allocation6 + $0x50] ss:$20 sps:$4 sm:$0xff]  }
  0xbf   : > { %3965 = vmatprep.subr.bf16.mxu1 %v9579_v10  ;;  %v9600_v24 = vld [vmem:[#allocation6 + $0x2d0] ss:$20 sps:$4 sm:$0xff]   ;;  %v9601_v25 = vld [vmem:[#allocation6 + $0x2c] ss:$20 sps:$4 sm:$0xff]   ;;  %v9605_v27 = vld [vmem:[#allocation6 + $0x28] ss:$20 sps:$4 sm:$0xff]  }
  0xc0   : > { %v9603_v26 = vld [vmem:[#allocation6 + $0x2ac] ss:$20 sps:$4 sm:$0xff]   ;;  %v9606_v28 = vld [vmem:[#allocation6 + $0x2a8] ss:$20 sps:$4 sm:$0xff]   ;;  %v9607_v29 = vld [vmem:[#allocation6 + $0x4] ss:$20 sps:$4 sm:$0xff]  }
  0xc1   : > { %3853 = vmatpush1.bf16.msra.mxu0 %v9581_v11  ;;  %v9609_v30 = vld [vmem:[#allocation6 + $0x284] ss:$20 sps:$4 sm:$0xff]   ;;  %v9611_v31 = vld [vmem:[#allocation6] ss:$20 sps:$4 sm:$0xff]   ;;  %v9613_v33 = vld [vmem:[#allocation6 + $0x25c] ss:$20 sps:$4 sm:$0xff]  }
  0xc2   : > { %3966 = vmatpush1.bf16.msra.mxu1 %v9582_v12  ;;  %3854 = vmatprep.subr.bf16.mxu0 %v9583_v13  ;;  %v9612_v32 = vld [vmem:[#allocation6 + $0x280] ss:$20 sps:$4 sm:$0xff]   ;;  %v9615_v34 = vld [vmem:[#allocation6 + $0x4dc] ss:$20 sps:$4 sm:$0xff]   ;;  %v9617_v35 = vld [vmem:[#allocation6 + $0x258] ss:$20 sps:$4 sm:$0xff]  }
  0xc3   : > { %3967 = vmatprep.subr.bf16.mxu1 %v9585_v14  ;;  %v9618_v36 = vld [vmem:[#allocation6 + $0x4d8] ss:$20 sps:$4 sm:$0xff]   ;;  %v9619_v37 = vld [vmem:[#allocation6 + $0x234] ss:$20 sps:$4 sm:$0xff]   ;;  %v9623_v39 = vld [vmem:[#allocation6 + $0x230] ss:$20 sps:$4 sm:$0xff]  }
  0xc4   : > { %v9621_v38 = vld [vmem:[#allocation6 + $0x4b4] ss:$20 sps:$4 sm:$0xff]   ;;  %v9624_v40 = vld [vmem:[#allocation6 + $0x4b0] ss:$20 sps:$4 sm:$0xff]   ;;  %v9625_v41 = vld [vmem:[#allocation6 + $0x20c] ss:$20 sps:$4 sm:$0xff]  }
  0xc5   : > { %3855 = vmatpush1.bf16.msra.mxu0 %v9587_v15  ;;  %v9627_v42 = vld [vmem:[#allocation6 + $0x48c] ss:$20 sps:$4 sm:$0xff]   ;;  %v9629_v43 = vld [vmem:[#allocation6 + $0x208] ss:$20 sps:$4 sm:$0xff]   ;;  %v9631_v45 = vld [vmem:[#allocation6 + $0x1e4] ss:$20 sps:$4 sm:$0xff]  }
  0xc6   : > { %3968 = vmatpush1.bf16.msra.mxu1 %v9588_v16  ;;  %3856 = vmatprep.subr.bf16.mxu0 %v9589_v17  ;;  %v9630_v44 = vld [vmem:[#allocation6 + $0x488] ss:$20 sps:$4 sm:$0xff]   ;;  %v9633_v46 = vld [vmem:[#allocation6 + $0x464] ss:$20 sps:$4 sm:$0xff]   ;;  %v9635_v51 = vld [vmem:[#allocation6 + $0x1e0] ss:$20 sps:$4 sm:$0xff]  }
  0xc7   : > { %3969 = vmatprep.subr.bf16.mxu1 %v9591_v18  ;;  %v462_v47 = vld [vmem:[%s11252_s27 + $0x8] sm:$0xff]  ;;  %v464_v49 = vld [vmem:[%s11252_s27 + $0x18] sm:$0xff]  ;;  %v9636_v52 = vld [vmem:[#allocation6 + $0x460] ss:$20 sps:$4 sm:$0xff]   ;;  %vm11019_vm0 = vmmov 0   ;;  %s8712_s21 = sshll.u32 %s11095_s8, 4 }
  0xc8   : > { %v474_v48 = vld [vmem:[%s11252_s27 + $0x68] sm:$0xff]  ;;  %v476_v50 = vld [vmem:[%s11252_s27 + $0x78] sm:$0xff]  ;;  %v9647_v61 = vld [vmem:[#allocation6 + $0x190] ss:$20 sps:$4 sm:$0xff]   ;;  %s453_s24 = scalar_lea.vmem [#allocation17], %s11248_s29  ;;  %s13157_s23 = scalar_lea.hbm %s13202_s9, %s8712_s21 }
  0xc9   : > { %3857 = vmatpush1.bf16.msra.mxu0 %v9593_v19  ;;  %v9637_v53 = vld [vmem:[#allocation6 + $0x1bc] ss:$20 sps:$4 sm:$0xff]   ;;  %v11278_v54 = vpack.c.bf16 %v474_v48, %v462_v47  ;;  %v11280_v55 = vpack.c.bf16 %v476_v50, %v464_v49  ;;  %v9641_v57 = vld [vmem:[#allocation6 + $0x1b8] ss:$20 sps:$4 sm:$0xff]   ;;  %v9643_v59 = vld [vmem:[#allocation6 + $0x194] ss:$20 sps:$4 sm:$0xff]  }
  0xca   : > { %3970 = vmatpush1.bf16.msra.mxu1 %v9594_v20  ;;  %3858 = vmatprep.subr.bf16.mxu0 %v9595_v21  ;;  %v9639_v56 = vld [vmem:[#allocation6 + $0x43c] ss:$20 sps:$4 sm:$0xff]   ;;  %v9642_v58 = vld [vmem:[#allocation6 + $0x438] ss:$20 sps:$4 sm:$0xff]   ;;  %v9645_v60 = vld [vmem:[#allocation6 + $0x414] ss:$20 sps:$4 sm:$0xff]  }
  0xcb   : > { %3971 = vmatprep.subr.bf16.mxu1 %v9597_v22  ;;  %13413 = vst [vmem:[#allocation27_spill] sm:$0xff] %v11278_v54  ;;  %13414 = vst [vmem:[#allocation28_spill] sm:$0xff] %v11280_v55  ;;  %3880 = vmatprep.mubr.bf16.mxu0 %v11278_v54  ;;  %v9648_v62 = vld [vmem:[#allocation6 + $0x410] ss:$20 sps:$4 sm:$0xff]   ;;  %v9649_v63 = vld [vmem:[#allocation6 + $0x16c] ss:$20 sps:$4 sm:$0xff]  }
  0xcc   : > { %3993 = vmatprep.mubr.bf16.mxu1 %v11280_v55  ;;  %v9651_v0 = vld [vmem:[#allocation6 + $0x3ec] ss:$20 sps:$4 sm:$0xff]   ;;  %v9653_v1 = vld [vmem:[#allocation6 + $0x168] ss:$20 sps:$4 sm:$0xff]   ;;  %v9655_v3 = vld [vmem:[#allocation6 + $0x144] ss:$20 sps:$4 sm:$0xff]  }
  0xcd   : > { %3859 = vmatpush1.bf16.msra.mxu0 %v9599_v23  ;;  %v9654_v2 = vld [vmem:[#allocation6 + $0x3e8] ss:$20 sps:$4 sm:$0xff]   ;;  %v9657_v4 = vld [vmem:[#allocation6 + $0x3c4] ss:$20 sps:$4 sm:$0xff]   ;;  %v9659_v5 = vld [vmem:[#allocation6 + $0x140] ss:$20 sps:$4 sm:$0xff]  }
  0xce   : > { %3972 = vmatpush1.bf16.msra.mxu1 %v9600_v24  ;;  %3860 = vmatprep.subr.bf16.mxu0 %v9601_v25  ;;  %v9660_v6 = vld [vmem:[#allocation6 + $0x3c0] ss:$20 sps:$4 sm:$0xff]   ;;  %v9663_v11 = vld [vmem:[#allocation6 + $0x61c] ss:$20 sps:$4 sm:$0xff]   ;;  %v9661_v13 = vld [vmem:[#allocation6 + $0x618] ss:$20 sps:$4 sm:$0xff]  }
  0xcf   : > { %3973 = vmatprep.subr.bf16.mxu1 %v9603_v26  ;;  %v461_v7 = vld [vmem:[%s11252_s27] sm:$0xff]  ;;  %v463_v9 = vld [vmem:[%s11252_s27 + $0x10] sm:$0xff]  ;;  %v9664_v14 = vld [vmem:[#allocation6 + $0x898] ss:$20 sps:$4 sm:$0xff]   ;;  %s7929_s18 = sshll.u32 %s453_s24, 4  ;;  %s7917_s17 = scalar_lea.sflag [#allocation5], %s11248_s29  ;;  %s7930_s18 = int_to_ptr.vmem [resolvable:$true] %s7929_s18 }
  0xd0   : > { %v473_v8 = vld [vmem:[%s11252_s27 + $0x60] sm:$0xff]  ;;  %v475_v10 = vld [vmem:[%s11252_s27 + $0x70] sm:$0xff]  ;;  %v486_v15 = vld [vmem:[%s11252_s27 + $0xc8] sm:$0xff]  ;;  %s10919_s20 = scalar_lea.vmem %s7930_s18, 16  ;;  %p13766_p5 = scmp.ne.s32.totalorder %s13396_s22, 0 }
  0xd1   : > { %3861 = vmatpush1.bf16.msra.mxu0 %v9605_v27  ;;  %v9666_v12 = vld [vmem:[#allocation6 + $0x89c] ss:$20 sps:$4 sm:$0xff]   ;;  %v498_v16 = vld [vmem:[%s11252_s27 + $0x128] sm:$0xff]  ;;  %v11290_v17 = vpack.c.bf16 %v473_v8, %v461_v7  ;;  %v11292_v18 = vpack.c.bf16 %v475_v10, %v463_v9  ;;  %v485_v27 = vld [vmem:[%s11252_s27 + $0xc0] sm:$0xff]  ;;  %p10920_p4 = scmp.ne.s32.totalorder %s7930_s18, %s10919_s20  ;;  %s11020_s16 = smov [#allocation17]  }
  0xd2   : > { %3974 = vmatpush1.bf16.msra.mxu1 %v9606_v28  ;;  %3862 = vmatprep.subr.bf16.mxu0 %v9607_v29  ;;  %v488_v19 = vld [vmem:[%s11252_s27 + $0xd8] sm:$0xff]  ;;  %v9669_v21 = vld [vmem:[#allocation6 + $0x5f4] ss:$20 sps:$4 sm:$0xff]   ;;  %v9667_v23 = vld [vmem:[#allocation6 + $0x5f0] ss:$20 sps:$4 sm:$0xff]   ;;  %v11296_v24 = vpack.c.bf16 %v498_v16, %v486_v15  ;;  %s10923_s8 = sshll.u32 %s11020_s16, 4  ;;  %s10924_s8 = int_to_ptr.vmem [resolvable:$false] %s10923_s8 }
  0xd3   : > { %3975 = vmatprep.subr.bf16.mxu1 %v9609_v30  ;;  %13415 = vst [vmem:[#allocation29_spill] sm:$0xff] %v11290_v17  ;;  %13416 = vst [vmem:[#allocation30_spill] sm:$0xff] %v11292_v18  ;;  %v500_v20 = vld [vmem:[%s11252_s27 + $0x138] sm:$0xff]  ;;  %v9672_v22 = vld [vmem:[#allocation6 + $0x874] ss:$20 sps:$4 sm:$0xff]   ;;  %p10921_p0 = pnand %p10920_p4, %p13766_p5  ;;  %s10925_s19 = scalar_lea.vmem %s10924_s8, 32 }
  0xd4   : > { %13417 = vst [vmem:[#allocation31_spill] sm:$0xff] %v11296_v24  ;;  %v11298_v25 = vpack.c.bf16 %v500_v20, %v488_v19  ;;  %v9670_v26 = vld [vmem:[#allocation6 + $0x870] ss:$20 sps:$4 sm:$0xff]   ;;  %v9699_v9 = vld [vmem:[#allocation6 + $0x52c] ss:$20 sps:$4 sm:$0xff]   ;;  %v560_v19 = vld [vmem:[%s11252_s27 + $0x318] sm:$0xff]  ;;  %p10926_p12 = scmp.lt.s32.totalorder %s7930_s18, %s10924_s8  ;;  %p10927_p6 = scmp.lt.s32.totalorder %s10925_s19, %s10919_s20 }
  0xd5   : > { %3863 = vmatpush1.bf16.msra.mxu0 %v9611_v31  ;;  %v497_v28 = vld [vmem:[%s11252_s27 + $0x120] sm:$0xff]  ;;  %v487_v29 = vld [vmem:[%s11252_s27 + $0xd0] sm:$0xff]  ;;  %v572_v20 = vld [vmem:[%s11252_s27 + $0x378] sm:$0xff]  ;;  %p10922_p11 = pneg %p10921_p0 }
  0xd6   : > { %3976 = vmatpush1.bf16.msra.mxu1 %v9612_v32  ;;  %3864 = vmatprep.subr.bf16.mxu0 %v9613_v33  ;;  %13418 = vst [vmem:[#allocation32_spill] sm:$0xff] %v11298_v25  ;;  %v499_v30 = vld [vmem:[%s11252_s27 + $0x130] sm:$0xff]  ;;  %v9675_v31 = vld [vmem:[#allocation6 + $0x5cc] ss:$20 sps:$4 sm:$0xff]   ;;  %v9673_v33 = vld [vmem:[#allocation6 + $0x5c8] ss:$20 sps:$4 sm:$0xff]   ;;  %p10928_p2 = por %p10927_p6, %p10926_p12 }
  0xd7   : > { %3977 = vmatprep.subr.bf16.mxu1 %v9615_v34  ;;  %v9678_v32 = vld [vmem:[#allocation6 + $0x84c] ss:$20 sps:$4 sm:$0xff]   ;;  %v9676_v34 = vld [vmem:[#allocation6 + $0x848] ss:$20 sps:$4 sm:$0xff]   ;;  %v511_v49 = vld [vmem:[%s11252_s27 + $0x190] sm:$0xff] }
  0xd8   : > { %v509_v47 = vld [vmem:[%s11252_s27 + $0x180] sm:$0xff]  ;;  %v523_v50 = vld [vmem:[%s11252_s27 + $0x1f0] sm:$0xff]  ;;  %p10929_p13 = pnand %p10928_p2, %p10922_p11 }
  0xd9   : > { %3865 = vmatpush2.bf16.msra.mxu0 %v9617_v35  ;;  %v510_v35 = vld [vmem:[%s11252_s27 + $0x188] sm:$0xff]  ;;  %v521_v48 = vld [vmem:[%s11252_s27 + $0x1e0] sm:$0xff]  ;;  %v535_v7 = vld [vmem:[%s11252_s27 + $0x250] sm:$0xff] }
  0xda   : > { %3978 = vmatpush2.bf16.msra.mxu1 %v9618_v36  ;;  %3866 = vmatprep.subr.bf16.mxu0 %v9619_v37  ;;  %v522_v36 = vld [vmem:[%s11252_s27 + $0x1e8] sm:$0xff]  ;;  %v11310_v37 = vpack.c.bf16 %v497_v28, %v485_v27  ;;  %v547_v8 = vld [vmem:[%s11252_s27 + $0x2b0] sm:$0xff]  ;;  %v11358_v27 = vpack.c.bf16 %v572_v20, %v560_v19  ;;  %v605_v19 = vld [vmem:[%s11252_s27 + $0x480] sm:$0xff] }
  0xdb   : > { %3979 = vmatprep.subr.bf16.mxu1 %v9621_v38  ;;  %v11312_v38 = vpack.c.bf16 %v499_v30, %v487_v29  ;;  %v9702_v10 = vld [vmem:[#allocation6 + $0x7ac] ss:$20 sps:$4 sm:$0xff]   ;;  %v11352_v16 = vpack.c.bf16 %v547_v8, %v535_v7  ;;  %v608_v7 = vld [vmem:[%s11252_s27 + $0x498] sm:$0xff] }
  0xdc   : > { %13419 = vst [vmem:[#allocation33_spill] sm:$0xff] %v11310_v37  ;;  %13430 = vst [vmem:[#allocation44_spill] sm:$0xff] %v11358_v27  ;;  %v9706_v28 = vld [vmem:[#allocation6 + $0x780] ss:$20 sps:$4 sm:$0xff]   ;;  %v620_v8 = vld [vmem:[%s11252_s27 + $0x4f8] sm:$0xff] }
  0xdd   : > { %3867 = vmatpush2.bf16.msra.mxu0 %v9623_v39  ;;  %13420 = vst [vmem:[#allocation34_spill] sm:$0xff] %v11312_v38  ;;  %v512_v39 = vld [vmem:[%s11252_s27 + $0x198] sm:$0xff]  ;;  %13428 = vst [vmem:[#allocation42_spill] sm:$0xff] %v11352_v16  ;;  %v557_v29 = vld [vmem:[%s11252_s27 + $0x300] sm:$0xff] }
  0xde   : > { %3980 = vmatpush2.bf16.msra.mxu1 %v9624_v40  ;;  %3868 = vmatprep.subr.bf16.mxu0 %v9625_v41  ;;  %v524_v40 = vld [vmem:[%s11252_s27 + $0x1f8] sm:$0xff]  ;;  %v569_v30 = vld [vmem:[%s11252_s27 + $0x360] sm:$0xff] }
  0xdf   : > { %3981 = vmatprep.subr.bf16.mxu1 %v9627_v42  ;;  %v9681_v41 = vld [vmem:[#allocation6 + $0x5a4] ss:$20 sps:$4 sm:$0xff]  }
  0xe0   : > { %v9684_v42 = vld [vmem:[#allocation6 + $0x824] ss:$20 sps:$4 sm:$0xff]  }
  0xe1   : > { %3869 = vmatpush2.bf16.msra.mxu0 %v9629_v43  ;;  %v9679_v43 = vld [vmem:[#allocation6 + $0x5a0] ss:$20 sps:$4 sm:$0xff]  }
  0xe2   : > { %3982 = vmatpush2.bf16.msra.mxu1 %v9630_v44  ;;  %3870 = vmatprep.subr.bf16.mxu0 %v9631_v45  ;;  %v11316_v44 = vpack.c.bf16 %v522_v36, %v510_v35  ;;  %v11318_v45 = vpack.c.bf16 %v524_v40, %v512_v39  ;;  %v9709_v35 = vld [vmem:[#allocation6 + $0x758] ss:$20 sps:$4 sm:$0xff]   ;;  %v617_v20 = vld [vmem:[%s11252_s27 + $0x4e0] sm:$0xff] }
  0xe3   : > { %3983 = vmatprep.subr.bf16.mxu1 %v9633_v46  ;;  %v9682_v46 = vld [vmem:[#allocation6 + $0x820] ss:$20 sps:$4 sm:$0xff]   ;;  %v9712_v36 = vld [vmem:[#allocation6 + $0x9d8] ss:$20 sps:$4 sm:$0xff]  }
  0xe4   : > { %13421 = vst [vmem:[#allocation35_spill] sm:$0xff] %v11316_v44  ;;  %13422 = vst [vmem:[#allocation36_spill] sm:$0xff] %v11318_v45  ;;  %v582_v39 = vld [vmem:[%s11252_s27 + $0x3c8] sm:$0xff] }
  0xe5   : > { %3871 = vmatpush2.bf16.msra.mxu0 %v9635_v51  ;;  %v9687_v51 = vld [vmem:[#allocation6 + $0x57c] ss:$20 sps:$4 sm:$0xff]   ;;  %v594_v40 = vld [vmem:[%s11252_s27 + $0x428] sm:$0xff] }
  0xe6   : > { %3984 = vmatpush2.bf16.msra.mxu1 %v9636_v52  ;;  %3872 = vmatprep.subr.bf16.mxu0 %v9637_v53  ;;  %v9690_v52 = vld [vmem:[#allocation6 + $0x7fc] ss:$20 sps:$4 sm:$0xff]   ;;  %v9685_v53 = vld [vmem:[#allocation6 + $0x578] ss:$20 sps:$4 sm:$0xff]  }
  0xe7   : > { %3985 = vmatprep.subr.bf16.mxu1 %v9639_v56  ;;  %v9688_v56 = vld [vmem:[#allocation6 + $0x7f8] ss:$20 sps:$4 sm:$0xff]  }
  0xe9   : > { %3873 = vmatpush2.bf16.msra.mxu0 %v9641_v57  ;;  %v534_v57 = vld [vmem:[%s11252_s27 + $0x248] sm:$0xff] }
  0xea   : > { %3986 = vmatpush2.bf16.msra.mxu1 %v9642_v58  ;;  %3874 = vmatprep.subr.bf16.mxu0 %v9643_v59  ;;  %v546_v58 = vld [vmem:[%s11252_s27 + $0x2a8] sm:$0xff]  ;;  %v11330_v59 = vpack.c.bf16 %v521_v48, %v509_v47 }
  0xeb   : > { %3987 = vmatprep.subr.bf16.mxu1 %v9645_v60  ;;  %v11332_v60 = vpack.c.bf16 %v523_v50, %v511_v49  ;;  %v9717_v47 = vld [vmem:[#allocation6 + $0x734] ss:$20 sps:$4 sm:$0xff]   ;;  %v9715_v49 = vld [vmem:[#allocation6 + $0x730] ss:$20 sps:$4 sm:$0xff]   ;;  %v11376_v50 = vpack.c.bf16 %v594_v40, %v582_v39 }
  0xec   : > { %13423 = vst [vmem:[#allocation37_spill] sm:$0xff] %v11330_v59  ;;  %v9720_v48 = vld [vmem:[#allocation6 + $0x9b4] ss:$20 sps:$4 sm:$0xff]  }
  0xed   : > { %3875 = vmatpush2.bf16.msra.mxu0 %v9647_v61  ;;  %13424 = vst [vmem:[#allocation38_spill] sm:$0xff] %v11332_v60  ;;  %v536_v61 = vld [vmem:[%s11252_s27 + $0x258] sm:$0xff]  ;;  %13433 = vst [vmem:[#allocation47_spill] sm:$0xff] %v11376_v50  ;;  %v9741_v39 = vld [vmem:[#allocation6 + $0x694] ss:$20 sps:$4 sm:$0xff]  }
  0xee   : > { %3988 = vmatpush2.bf16.msra.mxu1 %v9648_v62  ;;  %3876 = vmatprep.subr.bf16.mxu0 %v9649_v63  ;;  %v548_v62 = vld [vmem:[%s11252_s27 + $0x2b8] sm:$0xff]  ;;  %v9693_v63 = vld [vmem:[#allocation6 + $0x554] ss:$20 sps:$4 sm:$0xff]  }
  0xef   : > { %3989 = vmatprep.subr.bf16.mxu1 %v9651_v0  ;;  %v9696_v0 = vld [vmem:[#allocation6 + $0x7d4] ss:$20 sps:$4 sm:$0xff]  }
  0xf0   : > { %v9744_v40 = vld [vmem:[#allocation6 + $0x914] ss:$20 sps:$4 sm:$0xff]  }
  0xf1   : > { %3877 = vmatpush2.bf16.msra.mxu0 %v9653_v1  ;;  %v9691_v1 = vld [vmem:[#allocation6 + $0x550] ss:$20 sps:$4 sm:$0xff]  }
  0xf2   : > { %3990 = vmatpush2.bf16.msra.mxu1 %v9654_v2  ;;  %3878 = vmatprep.subr.bf16.mxu0 %v9655_v3  ;;  %v11336_v2 = vpack.c.bf16 %v546_v58, %v534_v57  ;;  %v11338_v3 = vpack.c.bf16 %v548_v62, %v536_v61  ;;  %v583_v57 = vld [vmem:[%s11252_s27 + $0x3d0] sm:$0xff]  ;;  %v9723_v61 = vld [vmem:[#allocation6 + $0x70c] ss:$20 sps:$4 sm:$0xff]  }
  0xf3   : > { %3991 = vmatprep.subr.bf16.mxu1 %v9657_v4  ;;  %v9694_v4 = vld [vmem:[#allocation6 + $0x7d0] ss:$20 sps:$4 sm:$0xff]   ;;  %v9726_v62 = vld [vmem:[#allocation6 + $0x98c] ss:$20 sps:$4 sm:$0xff]  }
  0xf4   : > { %13425 = vst [vmem:[#allocation39_spill] sm:$0xff] %v11336_v2  ;;  %13426 = vst [vmem:[#allocation40_spill] sm:$0xff] %v11338_v3  ;;  %v595_v58 = vld [vmem:[%s11252_s27 + $0x430] sm:$0xff] }
  0xf5   : > { %3879 = vmatpush2.bf16.msra.mxu0 %v9659_v5  ;;  %v533_v5 = vld [vmem:[%s11252_s27 + $0x240] sm:$0xff] }
  0xf6   : > { %3992 = vmatpush2.bf16.msra.mxu1 %v9660_v6  ;;  %4074 = vmatprep.subr.bf16.mxu0 %v9663_v11  ;;  %v545_v6 = vld [vmem:[%s11252_s27 + $0x2a0] sm:$0xff]  ;;  %v9697_v11 = vld [vmem:[#allocation6 + $0x528] ss:$20 sps:$4 sm:$0xff]  }
  0xf7   : > { %4187 = vmatprep.subr.bf16.mxu1 %v9666_v12  ;;  %v9700_v12 = vld [vmem:[#allocation6 + $0x7a8] ss:$20 sps:$4 sm:$0xff]   ;;  %v11350_v15 = vpack.c.bf16 %v545_v6, %v533_v5  ;;  %v11392_v6 = vpack.c.bf16 %v595_v58, %v583_v57  ;;  %v9747_v57 = vld [vmem:[#allocation6 + $0x66c] ss:$20 sps:$4 sm:$0xff]  }
  0xf8   : > { %3881 = vmatmul.mubr.bf16.vlgmr.msra.gmra.mxu0 %v11290_v17  ;;  %v9750_v58 = vld [vmem:[#allocation6 + $0x8ec] ss:$20 sps:$4 sm:$0xff]  }
  0xf9   : > { %3994 = vmatmul.mubr.bf16.vlgmr.msra.gmra.mxu1 %v11292_v18  ;;  %4075 = vmatpush1.bf16.msra.mxu0 %v9661_v13  ;;  %v558_v13 = vld [vmem:[%s11252_s27 + $0x308] sm:$0xff]  ;;  %13427 = vst [vmem:[#allocation41_spill] sm:$0xff] %v11350_v15  ;;  %13436 = vst [vmem:[#allocation50_spill] sm:$0xff] %v11392_v6 }
  0xfa   : > { %4188 = vmatpush1.bf16.msra.mxu1 %v9664_v14  ;;  %4076 = vmatprep.subr.bf16.mxu0 %v9669_v21  ;;  %v570_v14 = vld [vmem:[%s11252_s27 + $0x368] sm:$0xff]  ;;  %v9705_v21 = vld [vmem:[#allocation6 + $0x504] ss:$20 sps:$4 sm:$0xff]  }
  0xfb   : > { %4189 = vmatprep.subr.bf16.mxu1 %v9672_v22  ;;  %3890 = vmatprep.mubr.bf16.mxu0 %v11296_v24  ;;  %v9708_v22 = vld [vmem:[#allocation6 + $0x784] ss:$20 sps:$4 sm:$0xff]  }
  0xfc   : > { %4003 = vmatprep.mubr.bf16.mxu1 %v11298_v25 }
  0xfd   : > { %4077 = vmatpush1.bf16.msra.mxu0 %v9667_v23  ;;  %v9703_v23 = vld [vmem:[#allocation6 + $0x500] ss:$20 sps:$4 sm:$0xff]  }
  0xfe   : > { %4190 = vmatpush1.bf16.msra.mxu1 %v9670_v26  ;;  %4078 = vmatprep.subr.bf16.mxu0 %v9675_v31  ;;  %v11356_v26 = vpack.c.bf16 %v570_v14, %v558_v13  ;;  %v559_v31 = vld [vmem:[%s11252_s27 + $0x310] sm:$0xff]  ;;  %v11398_v13 = vpack.c.bf16 %v620_v8, %v608_v7  ;;  %v468_v7 = vld [vmem:[%s11252_s27 + $0x38] sm:$0xff] }
  0xff   : > { %4191 = vmatprep.subr.bf16.mxu1 %v9678_v32  ;;  %v571_v32 = vld [vmem:[%s11252_s27 + $0x370] sm:$0xff]  ;;  %v480_v8 = vld [vmem:[%s11252_s27 + $0x98] sm:$0xff] }
 0x100   : > { %3891 = vmatmul.mubr.bf16.gmra.mxu0 %v11310_v37  ;;  %13429 = vst [vmem:[#allocation43_spill] sm:$0xff] %v11356_v26  ;;  %13438 = vst [vmem:[#allocation52_spill] sm:$0xff] %v11398_v13  ;;  %v9730_v14 = vld [vmem:[#allocation6 + $0x960] ss:$20 sps:$4 sm:$0xff]  }
 0x101   : > { %4004 = vmatmul.mubr.bf16.gmra.mxu1 %v11312_v38  ;;  %4079 = vmatpush1.bf16.msra.mxu0 %v9673_v33  ;;  %v9711_v33 = vld [vmem:[#allocation6 + $0x75c] ss:$20 sps:$4 sm:$0xff]  }
 0x102   : > { %4192 = vmatpush1.bf16.msra.mxu1 %v9676_v34  ;;  %4080 = vmatprep.subr.bf16.mxu0 %v9681_v41  ;;  %v9714_v34 = vld [vmem:[#allocation6 + $0x9dc] ss:$20 sps:$4 sm:$0xff]   ;;  %v11370_v41 = vpack.c.bf16 %v569_v30, %v557_v29  ;;  %v9733_v29 = vld [vmem:[#allocation6 + $0x6b8] ss:$20 sps:$4 sm:$0xff]  }
 0x103   : > { %4193 = vmatprep.subr.bf16.mxu1 %v9684_v42  ;;  %3900 = vmatprep.mubr.bf16.mxu0 %v11316_v44  ;;  %v11372_v42 = vpack.c.bf16 %v571_v32, %v559_v31  ;;  %v9736_v30 = vld [vmem:[#allocation6 + $0x938] ss:$20 sps:$4 sm:$0xff]  }
 0x104   : > { %4013 = vmatprep.mubr.bf16.mxu1 %v11318_v45  ;;  %13431 = vst [vmem:[#allocation45_spill] sm:$0xff] %v11370_v41  ;;  %v630_v31 = vld [vmem:[%s11252_s27 + $0x548] sm:$0xff] }
 0x105   : > { %4081 = vmatpush1.bf16.msra.mxu0 %v9679_v43  ;;  %13432 = vst [vmem:[#allocation46_spill] sm:$0xff] %v11372_v42  ;;  %v584_v43 = vld [vmem:[%s11252_s27 + $0x3d8] sm:$0xff]  ;;  %v642_v32 = vld [vmem:[%s11252_s27 + $0x5a8] sm:$0xff] }
 0x106   : > { %4194 = vmatpush1.bf16.msra.mxu1 %v9682_v46  ;;  %4082 = vmatprep.subr.bf16.mxu0 %v9687_v51  ;;  %v596_v46 = vld [vmem:[%s11252_s27 + $0x438] sm:$0xff] }
 0x107   : > { %4195 = vmatprep.subr.bf16.mxu1 %v9690_v52  ;;  %v11378_v51 = vpack.c.bf16 %v596_v46, %v584_v43  ;;  %v9718_v52 = vld [vmem:[#allocation6 + $0x9b0] ss:$20 sps:$4 sm:$0xff]   ;;  %v11416_v46 = vpack.c.bf16 %v642_v32, %v630_v31  ;;  %v9757_v31 = vld [vmem:[#allocation6 + $0xb18] ss:$20 sps:$4 sm:$0xff]  }
 0x108   : > { %3901 = vmatmul.mubr.bf16.gmra.mxu0 %v11330_v59  ;;  %v9739_v43 = vld [vmem:[#allocation6 + $0x690] ss:$20 sps:$4 sm:$0xff]   ;;  %v9760_v32 = vld [vmem:[#allocation6 + $0xd98] ss:$20 sps:$4 sm:$0xff]  }
 0x109   : > { %4014 = vmatmul.mubr.bf16.gmra.mxu1 %v11332_v60  ;;  %4083 = vmatpush1.bf16.msra.mxu0 %v9685_v53  ;;  %13434 = vst [vmem:[#allocation48_spill] sm:$0xff] %v11378_v51  ;;  %v581_v53 = vld [vmem:[%s11252_s27 + $0x3c0] sm:$0xff]  ;;  %13441 = vst [vmem:[#allocation55_spill] sm:$0xff] %v11416_v46 }
 0x10a   : > { %4196 = vmatpush1.bf16.msra.mxu1 %v9688_v56  ;;  %4084 = vmatprep.subr.bf16.mxu0 %v9693_v63  ;;  %v593_v56 = vld [vmem:[%s11252_s27 + $0x420] sm:$0xff]  ;;  %v9721_v63 = vld [vmem:[#allocation6 + $0x708] ss:$20 sps:$4 sm:$0xff]  }
 0x10b   : > { %4197 = vmatprep.subr.bf16.mxu1 %v9696_v0  ;;  %3910 = vmatprep.mubr.bf16.mxu0 %v11336_v2  ;;  %v9724_v0 = vld [vmem:[#allocation6 + $0x988] ss:$20 sps:$4 sm:$0xff]   ;;  %v11390_v5 = vpack.c.bf16 %v593_v56, %v581_v53  ;;  %v631_v53 = vld [vmem:[%s11252_s27 + $0x550] sm:$0xff] }
 0x10c   : > { %4023 = vmatprep.mubr.bf16.mxu1 %v11338_v3  ;;  %v643_v56 = vld [vmem:[%s11252_s27 + $0x5b0] sm:$0xff] }
 0x10d   : > { %4085 = vmatpush1.bf16.msra.mxu0 %v9691_v1  ;;  %v606_v1 = vld [vmem:[%s11252_s27 + $0x488] sm:$0xff]  ;;  %13435 = vst [vmem:[#allocation49_spill] sm:$0xff] %v11390_v5 }
 0x10e   : > { %4198 = vmatpush1.bf16.msra.mxu1 %v9694_v4  ;;  %4086 = vmatprep.subr.bf16.mxu0 %v9699_v9  ;;  %v618_v4 = vld [vmem:[%s11252_s27 + $0x4e8] sm:$0xff]  ;;  %v9729_v9 = vld [vmem:[#allocation6 + $0x6e4] ss:$20 sps:$4 sm:$0xff]  }
 0x10f   : > { %4199 = vmatprep.subr.bf16.mxu1 %v9702_v10  ;;  %v9732_v10 = vld [vmem:[#allocation6 + $0x964] ss:$20 sps:$4 sm:$0xff]  }
 0x110   : > { %3911 = vmatmul.mubr.bf16.gmra.mxu0 %v11350_v15 }
 0x111   : > { %4024 = vmatmul.mubr.bf16.gmra.mxu1 %v11352_v16  ;;  %4087 = vmatpush1.bf16.msra.mxu0 %v9697_v11  ;;  %v9727_v11 = vld [vmem:[#allocation6 + $0x6e0] ss:$20 sps:$4 sm:$0xff]  }
 0x112   : > { %4200 = vmatpush1.bf16.msra.mxu1 %v9700_v12  ;;  %4088 = vmatprep.subr.bf16.mxu0 %v9705_v21  ;;  %v11396_v12 = vpack.c.bf16 %v618_v4, %v606_v1  ;;  %v607_v21 = vld [vmem:[%s11252_s27 + $0x490] sm:$0xff]  ;;  %v11432_v4 = vpack.c.bf16 %v643_v56, %v631_v53 }
 0x113   : > { %4201 = vmatprep.subr.bf16.mxu1 %v9708_v22  ;;  %3920 = vmatprep.mubr.bf16.mxu0 %v11356_v26  ;;  %v619_v22 = vld [vmem:[%s11252_s27 + $0x4f0] sm:$0xff] }
 0x114   : > { %4033 = vmatprep.mubr.bf16.mxu1 %v11358_v27  ;;  %13437 = vst [vmem:[#allocation51_spill] sm:$0xff] %v11396_v12  ;;  %13444 = vst [vmem:[#allocation58_spill] sm:$0xff] %v11432_v4  ;;  %v9763_v53 = vld [vmem:[#allocation6 + $0xaf0] ss:$20 sps:$4 sm:$0xff]  }
 0x115   : > { %4089 = vmatpush1.bf16.msra.mxu0 %v9703_v23  ;;  %v9735_v23 = vld [vmem:[#allocation6 + $0x6bc] ss:$20 sps:$4 sm:$0xff]  }
 0x116   : > { %4202 = vmatpush1.bf16.msra.mxu1 %v9706_v28  ;;  %4090 = vmatprep.subr.bf16.mxu0 %v9711_v33  ;;  %v9738_v28 = vld [vmem:[#allocation6 + $0x93c] ss:$20 sps:$4 sm:$0xff]   ;;  %v11410_v33 = vpack.c.bf16 %v617_v20, %v605_v19  ;;  %v11438_v19 = vpack.c.bf16 %v480_v8, %v468_v7  ;;  %v9754_v20 = vld [vmem:[#allocation6 + $0x8c0] ss:$20 sps:$4 sm:$0xff]  }
 0x117   : > { %4203 = vmatprep.subr.bf16.mxu1 %v9714_v34  ;;  %v11412_v34 = vpack.c.bf16 %v619_v22, %v607_v21  ;;  %v465_v21 = vld [vmem:[%s11252_s27 + $0x20] sm:$0xff] }
 0x118   : > { %3921 = vmatmul.mubr.bf16.gmra.mxu0 %v11370_v41  ;;  %13439 = vst [vmem:[#allocation53_spill] sm:$0xff] %v11410_v33  ;;  %13446 = vst [vmem:[#allocation60_spill] sm:$0xff] %v11438_v19  ;;  %v477_v22 = vld [vmem:[%s11252_s27 + $0x80] sm:$0xff] }
 0x119   : > { %4034 = vmatmul.mubr.bf16.gmra.mxu1 %v11372_v42  ;;  %4091 = vmatpush2.bf16.msra.mxu0 %v9709_v35  ;;  %13440 = vst [vmem:[#allocation54_spill] sm:$0xff] %v11412_v34  ;;  %v632_v35 = vld [vmem:[%s11252_s27 + $0x558] sm:$0xff]  ;;  %v9771_v7 = vld [vmem:[#allocation6 + $0xacc] ss:$20 sps:$4 sm:$0xff]  }
 0x11a   : > { %4204 = vmatpush2.bf16.msra.mxu1 %v9712_v36  ;;  %4092 = vmatprep.subr.bf16.mxu0 %v9717_v47  ;;  %v644_v36 = vld [vmem:[%s11252_s27 + $0x5b8] sm:$0xff]  ;;  %v9774_v8 = vld [vmem:[#allocation6 + $0xd4c] ss:$20 sps:$4 sm:$0xff]  }
 0x11b   : > { %4205 = vmatprep.subr.bf16.mxu1 %v9720_v48  ;;  %3930 = vmatprep.mubr.bf16.mxu0 %v11376_v50  ;;  %v11418_v47 = vpack.c.bf16 %v644_v36, %v632_v35  ;;  %v9742_v48 = vld [vmem:[#allocation6 + $0x910] ss:$20 sps:$4 sm:$0xff]   ;;  %v490_v35 = vld [vmem:[%s11252_s27 + $0xe8] sm:$0xff] }
 0x11c   : > { %4043 = vmatprep.mubr.bf16.mxu1 %v11378_v51  ;;  %v502_v36 = vld [vmem:[%s11252_s27 + $0x148] sm:$0xff] }
 0x11d   : > { %4093 = vmatpush2.bf16.msra.mxu0 %v9715_v49  ;;  %13442 = vst [vmem:[#allocation56_spill] sm:$0xff] %v11418_v47  ;;  %v629_v49 = vld [vmem:[%s11252_s27 + $0x540] sm:$0xff]  ;;  %v11456_v56 = vpack.c.bf16 %v502_v36, %v490_v35 }
 0x11e   : > { %4206 = vmatpush2.bf16.msra.mxu1 %v9718_v52  ;;  %4094 = vmatprep.subr.bf16.mxu0 %v9723_v61  ;;  %v641_v52 = vld [vmem:[%s11252_s27 + $0x5a0] sm:$0xff]  ;;  %v9745_v61 = vld [vmem:[#allocation6 + $0x668] ss:$20 sps:$4 sm:$0xff]  }
 0x11f   : > { %4207 = vmatprep.subr.bf16.mxu1 %v9726_v62  ;;  %v9748_v62 = vld [vmem:[#allocation6 + $0x8e8] ss:$20 sps:$4 sm:$0xff]   ;;  %v11430_v1 = vpack.c.bf16 %v641_v52, %v629_v49  ;;  %v9778_v36 = vld [vmem:[#allocation6 + $0xd20] ss:$20 sps:$4 sm:$0xff]  }
 0x120   : > { %3931 = vmatmul.mubr.bf16.gmra.mxu0 %v11390_v5  ;;  %v9765_v49 = vld [vmem:[#allocation6 + $0xaf4] ss:$20 sps:$4 sm:$0xff]  }
 0x121   : > { %4044 = vmatmul.mubr.bf16.gmra.mxu1 %v11392_v6  ;;  %4095 = vmatpush2.bf16.msra.mxu0 %v9721_v63  ;;  %v466_v63 = vld [vmem:[%s11252_s27 + $0x28] sm:$0xff]  ;;  %13443 = vst [vmem:[#allocation57_spill] sm:$0xff] %v11430_v1 }
 0x122   : > { %4208 = vmatpush2.bf16.msra.mxu1 %v9724_v0  ;;  %4096 = vmatprep.subr.bf16.mxu0 %v9729_v9  ;;  %v478_v0 = vld [vmem:[%s11252_s27 + $0x88] sm:$0xff]  ;;  %v9753_v9 = vld [vmem:[#allocation6 + $0x644] ss:$20 sps:$4 sm:$0xff]  }
 0x123   : > { %4209 = vmatprep.subr.bf16.mxu1 %v9732_v10  ;;  %3940 = vmatprep.mubr.bf16.mxu0 %v11396_v12  ;;  %v9756_v10 = vld [vmem:[#allocation6 + $0x8c4] ss:$20 sps:$4 sm:$0xff]   ;;  %v9768_v52 = vld [vmem:[#allocation6 + $0xd74] ss:$20 sps:$4 sm:$0xff]  }
 0x124   : > { %4053 = vmatprep.mubr.bf16.mxu1 %v11398_v13 }
 0x125   : > { %4097 = vmatpush2.bf16.msra.mxu0 %v9727_v11  ;;  %v9751_v11 = vld [vmem:[#allocation6 + $0x640] ss:$20 sps:$4 sm:$0xff]  }
 0x126   : > { %4210 = vmatpush2.bf16.msra.mxu1 %v9730_v14  ;;  %4098 = vmatprep.subr.bf16.mxu0 %v9735_v23  ;;  %v11436_v14 = vpack.c.bf16 %v478_v0, %v466_v63  ;;  %v467_v23 = vld [vmem:[%s11252_s27 + $0x30] sm:$0xff] }
 0x127   : > { %4211 = vmatprep.subr.bf16.mxu1 %v9738_v28  ;;  %v479_v28 = vld [vmem:[%s11252_s27 + $0x90] sm:$0xff] }
 0x128   : > { %3941 = vmatmul.mubr.bf16.gmra.mxu0 %v11410_v33  ;;  %13445 = vst [vmem:[#allocation59_spill] sm:$0xff] %v11436_v14  ;;  %v491_v63 = vld [vmem:[%s11252_s27 + $0xf0] sm:$0xff] }
 0x129   : > { %4054 = vmatmul.mubr.bf16.gmra.mxu1 %v11412_v34  ;;  %4099 = vmatpush2.bf16.msra.mxu0 %v9733_v29  ;;  %v9759_v29 = vld [vmem:[#allocation6 + $0xb1c] ss:$20 sps:$4 sm:$0xff]  }
 0x12a   : > { %4212 = vmatpush2.bf16.msra.mxu1 %v9736_v30  ;;  %4100 = vmatprep.subr.bf16.mxu0 %v9741_v39  ;;  %v9762_v30 = vld [vmem:[#allocation6 + $0xd9c] ss:$20 sps:$4 sm:$0xff]   ;;  %v11450_v39 = vpack.c.bf16 %v477_v22, %v465_v21 }
 0x12b   : > { %4213 = vmatprep.subr.bf16.mxu1 %v9744_v40  ;;  %3950 = vmatprep.mubr.bf16.mxu0 %v11416_v46  ;;  %v11452_v40 = vpack.c.bf16 %v479_v28, %v467_v23  ;;  %v503_v0 = vld [vmem:[%s11252_s27 + $0x150] sm:$0xff]  ;;  %v516_v23 = vld [vmem:[%s11252_s27 + $0x1b8] sm:$0xff] }
 0x12c   : > { %4063 = vmatprep.mubr.bf16.mxu1 %v11418_v47  ;;  %v11472_v22 = vpack.c.bf16 %v503_v0, %v491_v63  ;;  %v528_v28 = vld [vmem:[%s11252_s27 + $0x218] sm:$0xff]  ;;  %v538_v63 = vld [vmem:[%s11252_s27 + $0x268] sm:$0xff] }
 0x12d   : > { %4101 = vmatpush2.bf16.msra.mxu0 %v9739_v43  ;;  %v492_v43 = vld [vmem:[%s11252_s27 + $0xf8] sm:$0xff]  ;;  %v11478_v35 = vpack.c.bf16 %v528_v28, %v516_v23  ;;  %v550_v0 = vld [vmem:[%s11252_s27 + $0x2c8] sm:$0xff]  ;;  %v9787_v23 = vld [vmem:[#allocation6 + $0xa50] ss:$20 sps:$4 sm:$0xff]  }
 0x12e   : > { %4214 = vmatpush2.bf16.msra.mxu1 %v9742_v48  ;;  %4102 = vmatprep.subr.bf16.mxu0 %v9747_v57  ;;  %v504_v48 = vld [vmem:[%s11252_s27 + $0x158] sm:$0xff]  ;;  %v11496_v28 = vpack.c.bf16 %v550_v0, %v538_v63  ;;  %v562_v63 = vld [vmem:[%s11252_s27 + $0x328] sm:$0xff] }
 0x12f   : > { %4215 = vmatprep.subr.bf16.mxu1 %v9750_v58  ;;  %v11458_v57 = vpack.c.bf16 %v504_v48, %v492_v43  ;;  %v9766_v58 = vld [vmem:[#allocation6 + $0xd70] ss:$20 sps:$4 sm:$0xff]   ;;  %13448 = vst [vmem:[#allocation62_spill] sm:$0xff] %v11478_v35  ;;  %v574_v0 = vld [vmem:[%s11252_s27 + $0x388] sm:$0xff] }
 0x130   : > { %3951 = vmatmul.mubr.bf16.gmra.mxu0 %v11430_v1  ;;  %v513_v43 = vld [vmem:[%s11252_s27 + $0x1a0] sm:$0xff]  ;;  %13451 = vst [vmem:[#allocation65_spill] sm:$0xff] %v11496_v28 }
 0x131   : > { %4064 = vmatmul.mubr.bf16.gmra.mxu1 %v11432_v4  ;;  %4103 = vmatpush2.bf16.msra.mxu0 %v9745_v61  ;;  %v489_v61 = vld [vmem:[%s11252_s27 + $0xe0] sm:$0xff] }
 0x132   : > { %4216 = vmatpush2.bf16.msra.mxu1 %v9748_v62  ;;  %4104 = vmatprep.subr.bf16.mxu0 %v9753_v9  ;;  %v501_v62 = vld [vmem:[%s11252_s27 + $0x140] sm:$0xff]  ;;  %v9769_v9 = vld [vmem:[#allocation6 + $0xac8] ss:$20 sps:$4 sm:$0xff]  }
 0x133   : > { %4217 = vmatprep.subr.bf16.mxu1 %v9756_v10  ;;  %4106 = vmatprep.mubr.bf16.mxu0 %v11436_v14  ;;  %v9772_v10 = vld [vmem:[#allocation6 + $0xd48] ss:$20 sps:$4 sm:$0xff]   ;;  %v11470_v21 = vpack.c.bf16 %v501_v62, %v489_v61  ;;  %v525_v48 = vld [vmem:[%s11252_s27 + $0x200] sm:$0xff]  ;;  %v9781_v61 = vld [vmem:[#allocation6 + $0xa78] ss:$20 sps:$4 sm:$0xff]  }
 0x134   : > { %4219 = vmatprep.mubr.bf16.mxu1 %v11438_v19  ;;  %v9784_v62 = vld [vmem:[#allocation6 + $0xcf8] ss:$20 sps:$4 sm:$0xff]  }
 0x135   : > { %4105 = vmatpush2.bf16.msra.mxu0 %v9751_v11  ;;  %v514_v11 = vld [vmem:[%s11252_s27 + $0x1a8] sm:$0xff] }
 0x136   : > { %4218 = vmatpush2.bf16.msra.mxu1 %v9754_v20  ;;  %4300 = vmatprep.subr.bf16.mxu0 %v9759_v29  ;;  %v526_v20 = vld [vmem:[%s11252_s27 + $0x208] sm:$0xff]  ;;  %v9777_v29 = vld [vmem:[#allocation6 + $0xaa4] ss:$20 sps:$4 sm:$0xff]  }
 0x137   : > { %4413 = vmatprep.subr.bf16.mxu1 %v9762_v30  ;;  %v9780_v30 = vld [vmem:[#allocation6 + $0xd24] ss:$20 sps:$4 sm:$0xff]  }
 0x138   : > { %4107 = vmatmul.mubr.bf16.vlgmr.msra.gmra.mxu0 %v11450_v39 }
 0x139   : > { %4220 = vmatmul.mubr.bf16.vlgmr.msra.gmra.mxu1 %v11452_v40  ;;  %4301 = vmatpush1.bf16.msra.mxu0 %v9757_v31  ;;  %v9775_v31 = vld [vmem:[#allocation6 + $0xaa0] ss:$20 sps:$4 sm:$0xff]  }
 0x13a   : > { %4414 = vmatpush1.bf16.msra.mxu1 %v9760_v32  ;;  %4302 = vmatprep.subr.bf16.mxu0 %v9765_v49  ;;  %v11476_v32 = vpack.c.bf16 %v526_v20, %v514_v11  ;;  %v515_v49 = vld [vmem:[%s11252_s27 + $0x1b0] sm:$0xff] }
 0x13b   : > { %4415 = vmatprep.subr.bf16.mxu1 %v9768_v52  ;;  %4116 = vmatprep.mubr.bf16.mxu0 %v11456_v56  ;;  %v527_v52 = vld [vmem:[%s11252_s27 + $0x210] sm:$0xff] }
 0x13c   : > { %4229 = vmatprep.mubr.bf16.mxu1 %v11458_v57  ;;  %13447 = vst [vmem:[#allocation61_spill] sm:$0xff] %v11476_v32  ;;  %v9789_v11 = vld [vmem:[#allocation6 + $0xa54] ss:$20 sps:$4 sm:$0xff]  }
 0x13d   : > { %4303 = vmatpush1.bf16.msra.mxu0 %v9763_v53  ;;  %v9783_v53 = vld [vmem:[#allocation6 + $0xa7c] ss:$20 sps:$4 sm:$0xff]   ;;  %v9792_v20 = vld [vmem:[#allocation6 + $0xcd4] ss:$20 sps:$4 sm:$0xff]  }
 0x13e   : > { %4416 = vmatpush1.bf16.msra.mxu1 %v9766_v58  ;;  %4304 = vmatprep.subr.bf16.mxu0 %v9771_v7  ;;  %v9786_v58 = vld [vmem:[#allocation6 + $0xcfc] ss:$20 sps:$4 sm:$0xff]   ;;  %v11490_v7 = vpack.c.bf16 %v525_v48, %v513_v43  ;;  %v549_v43 = vld [vmem:[%s11252_s27 + $0x2c0] sm:$0xff] }
 0x13f   : > { %4417 = vmatprep.subr.bf16.mxu1 %v9774_v8  ;;  %v11492_v8 = vpack.c.bf16 %v527_v52, %v515_v49  ;;  %v551_v48 = vld [vmem:[%s11252_s27 + $0x2d0] sm:$0xff]  ;;  %v9795_v49 = vld [vmem:[#allocation6 + $0xa2c] ss:$20 sps:$4 sm:$0xff]  }
 0x140   : > { %4117 = vmatmul.mubr.bf16.gmra.mxu0 %v11470_v21  ;;  %13449 = vst [vmem:[#allocation63_spill] sm:$0xff] %v11490_v7  ;;  %v9798_v52 = vld [vmem:[#allocation6 + $0xcac] ss:$20 sps:$4 sm:$0xff]  }
 0x141   : > { %4230 = vmatmul.mubr.bf16.gmra.mxu1 %v11472_v22  ;;  %4305 = vmatpush1.bf16.msra.mxu0 %v9769_v9  ;;  %13450 = vst [vmem:[#allocation64_spill] sm:$0xff] %v11492_v8  ;;  %v540_v9 = vld [vmem:[%s11252_s27 + $0x278] sm:$0xff] }
 0x142   : > { %4418 = vmatpush1.bf16.msra.mxu1 %v9772_v10  ;;  %4306 = vmatprep.subr.bf16.mxu0 %v9777_v29  ;;  %v552_v10 = vld [vmem:[%s11252_s27 + $0x2d8] sm:$0xff] }
 0x143   : > { %4419 = vmatprep.subr.bf16.mxu1 %v9780_v30  ;;  %4126 = vmatprep.mubr.bf16.mxu0 %v11476_v32  ;;  %v11498_v29 = vpack.c.bf16 %v552_v10, %v540_v9  ;;  %v9790_v30 = vld [vmem:[#allocation6 + $0xcd0] ss:$20 sps:$4 sm:$0xff]   ;;  %v576_v10 = vld [vmem:[%s11252_s27 + $0x398] sm:$0xff] }
 0x144   : > { %4239 = vmatprep.mubr.bf16.mxu1 %v11478_v35 }
 0x145   : > { %4307 = vmatpush1.bf16.msra.mxu0 %v9775_v31  ;;  %13452 = vst [vmem:[#allocation66_spill] sm:$0xff] %v11498_v29  ;;  %v537_v31 = vld [vmem:[%s11252_s27 + $0x260] sm:$0xff] }
 0x146   : > { %4420 = vmatpush1.bf16.msra.mxu1 %v9778_v36  ;;  %4308 = vmatprep.subr.bf16.mxu0 %v9783_v53  ;;  %v539_v36 = vld [vmem:[%s11252_s27 + $0x270] sm:$0xff]  ;;  %v9793_v53 = vld [vmem:[#allocation6 + $0xa28] ss:$20 sps:$4 sm:$0xff]   ;;  %v11510_v9 = vpack.c.bf16 %v549_v43, %v537_v31  ;;  %v573_v43 = vld [vmem:[%s11252_s27 + $0x380] sm:$0xff] }
 0x147   : > { %4421 = vmatprep.subr.bf16.mxu1 %v9786_v58  ;;  %v9796_v58 = vld [vmem:[#allocation6 + $0xca8] ss:$20 sps:$4 sm:$0xff]   ;;  %v9802_v31 = vld [vmem:[#allocation6 + $0xc80] ss:$20 sps:$4 sm:$0xff]  }
 0x148   : > { %4127 = vmatmul.mubr.bf16.gmra.mxu0 %v11490_v7  ;;  %13453 = vst [vmem:[#allocation67_spill] sm:$0xff] %v11510_v9 }
 0x149   : > { %4240 = vmatmul.mubr.bf16.gmra.mxu1 %v11492_v8  ;;  %4309 = vmatpush1.bf16.msra.mxu0 %v9781_v61  ;;  %v11512_v61 = vpack.c.bf16 %v551_v48, %v539_v36  ;;  %v575_v36 = vld [vmem:[%s11252_s27 + $0x390] sm:$0xff] }
 0x14a   : > { %4422 = vmatpush1.bf16.msra.mxu1 %v9784_v62  ;;  %4310 = vmatprep.subr.bf16.mxu0 %v9789_v11  ;;  %v564_v62 = vld [vmem:[%s11252_s27 + $0x338] sm:$0xff] }
 0x14b   : > { %4423 = vmatprep.subr.bf16.mxu1 %v9792_v20  ;;  %4136 = vmatprep.mubr.bf16.mxu0 %v11496_v28  ;;  %13454 = vst [vmem:[#allocation68_spill] sm:$0xff] %v11512_v61  ;;  %v9801_v11 = vld [vmem:[#allocation6 + $0xa04] ss:$20 sps:$4 sm:$0xff]   ;;  %v11516_v28 = vpack.c.bf16 %v574_v0, %v562_v63  ;;  %v11518_v8 = vpack.c.bf16 %v576_v10, %v564_v62  ;;  %v9807_v48 = vld [vmem:[#allocation6 + $0xc5c] ss:$20 sps:$4 sm:$0xff]   ;;  %v586_v0 = vld [vmem:[%s11252_s27 + $0x3e8] sm:$0xff] }
 0x14c   : > { %4249 = vmatprep.mubr.bf16.mxu1 %v11498_v29  ;;  %v9804_v20 = vld [vmem:[#allocation6 + $0xc84] ss:$20 sps:$4 sm:$0xff]   ;;  %v9799_v29 = vld [vmem:[#allocation6 + $0xa00] ss:$20 sps:$4 sm:$0xff]   ;;  %v598_v62 = vld [vmem:[%s11252_s27 + $0x448] sm:$0xff] }
 0x14d   : > { %4311 = vmatpush1.bf16.msra.mxu0 %v9787_v23  ;;  %13455 = vst [vmem:[#allocation69_spill] sm:$0xff] %v11516_v28  ;;  %13456 = vst [vmem:[#allocation70_spill] sm:$0xff] %v11518_v8  ;;  %v561_v23 = vld [vmem:[%s11252_s27 + $0x320] sm:$0xff]  ;;  %v9808_v63 = vld [vmem:[#allocation6 + $0xed8] ss:$20 sps:$4 sm:$0xff]  }
 0x14e   : > { %4424 = vmatpush1.bf16.msra.mxu1 %v9790_v30  ;;  %4312 = vmatprep.subr.bf16.mxu0 %v9795_v49  ;;  %v563_v30 = vld [vmem:[%s11252_s27 + $0x330] sm:$0xff]  ;;  %v11530_v10 = vpack.c.bf16 %v573_v43, %v561_v23  ;;  %v597_v43 = vld [vmem:[%s11252_s27 + $0x440] sm:$0xff] }
 0x14f   : > { %4425 = vmatprep.subr.bf16.mxu1 %v9798_v52  ;;  %v9810_v49 = vld [vmem:[#allocation6 + $0xedc] ss:$20 sps:$4 sm:$0xff]   ;;  %v9805_v52 = vld [vmem:[#allocation6 + $0xc58] ss:$20 sps:$4 sm:$0xff]  }
 0x150   : > { %4137 = vmatmul.mubr.bf16.gmra.mxu0 %v11510_v9  ;;  %13457 = vst [vmem:[#allocation71_spill] sm:$0xff] %v11530_v10  ;;  %v9814_v23 = vld [vmem:[#allocation6 + $0xeb0] ss:$20 sps:$4 sm:$0xff]  }
 0x151   : > { %4250 = vmatmul.mubr.bf16.gmra.mxu1 %v11512_v61  ;;  %4313 = vmatpush1.bf16.msra.mxu0 %v9793_v53  ;;  %v11532_v53 = vpack.c.bf16 %v575_v36, %v563_v30  ;;  %v600_v61 = vld [vmem:[%s11252_s27 + $0x458] sm:$0xff]  ;;  %v599_v30 = vld [vmem:[%s11252_s27 + $0x450] sm:$0xff]  ;;  %v9819_v36 = vld [vmem:[#allocation6 + $0xc0c] ss:$20 sps:$4 sm:$0xff]  }
 0x152   : > { %4426 = vmatpush1.bf16.msra.mxu1 %v9796_v58  ;;  %4314 = vmatprep.subr.bf16.mxu0 %v9801_v11  ;;  %v588_v58 = vld [vmem:[%s11252_s27 + $0x3f8] sm:$0xff]  ;;  %v9813_v11 = vld [vmem:[#allocation6 + $0xc34] ss:$20 sps:$4 sm:$0xff]  }
 0x153   : > { %4427 = vmatprep.subr.bf16.mxu1 %v9804_v20  ;;  %4146 = vmatprep.mubr.bf16.mxu0 %v11516_v28  ;;  %13458 = vst [vmem:[#allocation72_spill] sm:$0xff] %v11532_v53  ;;  %v9816_v20 = vld [vmem:[#allocation6 + $0xeb4] ss:$20 sps:$4 sm:$0xff]   ;;  %v11536_v28 = vpack.c.bf16 %v598_v62, %v586_v0  ;;  %v11538_v9 = vpack.c.bf16 %v600_v61, %v588_v58  ;;  %v9822_v61 = vld [vmem:[#allocation6 + $0xe8c] ss:$20 sps:$4 sm:$0xff]  }
 0x154   : > { %4259 = vmatprep.mubr.bf16.mxu1 %v11518_v8  ;;  %v9811_v8 = vld [vmem:[#allocation6 + $0xc30] ss:$20 sps:$4 sm:$0xff]   ;;  %v610_v0 = vld [vmem:[%s11252_s27 + $0x4a8] sm:$0xff] }
 0x155   : > { %4315 = vmatpush1.bf16.msra.mxu0 %v9799_v29  ;;  %13459 = vst [vmem:[#allocation73_spill] sm:$0xff] %v11536_v28  ;;  %13460 = vst [vmem:[#allocation74_spill] sm:$0xff] %v11538_v9  ;;  %v585_v29 = vld [vmem:[%s11252_s27 + $0x3e0] sm:$0xff]  ;;  %v622_v62 = vld [vmem:[%s11252_s27 + $0x508] sm:$0xff] }
 0x156   : > { %4428 = vmatpush1.bf16.msra.mxu1 %v9802_v31  ;;  %4316 = vmatprep.subr.bf16.mxu0 %v9807_v48  ;;  %v587_v31 = vld [vmem:[%s11252_s27 + $0x3f0] sm:$0xff]  ;;  %v9817_v48 = vld [vmem:[#allocation6 + $0xc08] ss:$20 sps:$4 sm:$0xff]   ;;  %v11550_v58 = vpack.c.bf16 %v597_v43, %v585_v29  ;;  %v621_v43 = vld [vmem:[%s11252_s27 + $0x500] sm:$0xff] }
 0x157   : > { %4429 = vmatprep.subr.bf16.mxu1 %v9810_v49  ;;  %v9820_v49 = vld [vmem:[#allocation6 + $0xe88] ss:$20 sps:$4 sm:$0xff]   ;;  %v9826_v29 = vld [vmem:[#allocation6 + $0xe60] ss:$20 sps:$4 sm:$0xff]  }
 0x158   : > { %4147 = vmatmul.mubr.bf16.gmra.mxu0 %v11530_v10  ;;  %13461 = vst [vmem:[#allocation75_spill] sm:$0xff] %v11550_v58 }
 0x159   : > { %4260 = vmatmul.mubr.bf16.gmra.mxu1 %v11532_v53  ;;  %4317 = vmatpush2.bf16.msra.mxu0 %v9805_v52  ;;  %v11552_v52 = vpack.c.bf16 %v599_v30, %v587_v31  ;;  %v624_v53 = vld [vmem:[%s11252_s27 + $0x518] sm:$0xff]  ;;  %v623_v31 = vld [vmem:[%s11252_s27 + $0x510] sm:$0xff] }
 0x15a   : > { %4430 = vmatpush2.bf16.msra.mxu1 %v9808_v63  ;;  %4318 = vmatprep.subr.bf16.mxu0 %v9813_v11  ;;  %v612_v63 = vld [vmem:[%s11252_s27 + $0x4b8] sm:$0xff] }
 0x15b   : > { %4431 = vmatprep.subr.bf16.mxu1 %v9816_v20  ;;  %4156 = vmatprep.mubr.bf16.mxu0 %v11536_v28  ;;  %13462 = vst [vmem:[#allocation76_spill] sm:$0xff] %v11552_v52  ;;  %v9825_v11 = vld [vmem:[#allocation6 + $0xbe4] ss:$20 sps:$4 sm:$0xff]   ;;  %v11556_v28 = vpack.c.bf16 %v622_v62, %v610_v0  ;;  %v11558_v10 = vpack.c.bf16 %v624_v53, %v612_v63  ;;  %v9831_v30 = vld [vmem:[#allocation6 + $0xbbc] ss:$20 sps:$4 sm:$0xff]   ;;  %v634_v0 = vld [vmem:[%s11252_s27 + $0x568] sm:$0xff] }
 0x15c   : > { %4269 = vmatprep.mubr.bf16.mxu1 %v11538_v9  ;;  %v9828_v20 = vld [vmem:[#allocation6 + $0xe64] ss:$20 sps:$4 sm:$0xff]   ;;  %v9823_v9 = vld [vmem:[#allocation6 + $0xbe0] ss:$20 sps:$4 sm:$0xff]   ;;  %v9834_v53 = vld [vmem:[#allocation6 + $0xe3c] ss:$20 sps:$4 sm:$0xff]  }
 0x15d   : > { %4319 = vmatpush2.bf16.msra.mxu0 %v9811_v8  ;;  %13463 = vst [vmem:[#allocation77_spill] sm:$0xff] %v11556_v28  ;;  %13464 = vst [vmem:[#allocation78_spill] sm:$0xff] %v11558_v10  ;;  %v609_v8 = vld [vmem:[%s11252_s27 + $0x4a0] sm:$0xff]  ;;  %v646_v62 = vld [vmem:[%s11252_s27 + $0x5c8] sm:$0xff] }
 0x15e   : > { %4432 = vmatpush2.bf16.msra.mxu1 %v9814_v23  ;;  %4320 = vmatprep.subr.bf16.mxu0 %v9819_v36  ;;  %v611_v23 = vld [vmem:[%s11252_s27 + $0x4b0] sm:$0xff]  ;;  %v9829_v36 = vld [vmem:[#allocation6 + $0xbb8] ss:$20 sps:$4 sm:$0xff]   ;;  %v11570_v63 = vpack.c.bf16 %v621_v43, %v609_v8  ;;  %v645_v43 = vld [vmem:[%s11252_s27 + $0x5c0] sm:$0xff] }
 0x15f   : > { %4433 = vmatprep.subr.bf16.mxu1 %v9822_v61  ;;  %v9832_v61 = vld [vmem:[#allocation6 + $0xe38] ss:$20 sps:$4 sm:$0xff]   ;;  %v9838_v8 = vld [vmem:[#allocation6 + $0xe10] ss:$20 sps:$4 sm:$0xff]  }
 0x160   : > { %4157 = vmatmul.mubr.bf16.gmra.mxu0 %v11550_v58  ;;  %13465 = vst [vmem:[#allocation79_spill] sm:$0xff] %v11570_v63 }
 0x161   : > { %4270 = vmatmul.mubr.bf16.gmra.mxu1 %v11552_v52  ;;  %4321 = vmatpush2.bf16.msra.mxu0 %v9817_v48  ;;  %v11572_v48 = vpack.c.bf16 %v623_v31, %v611_v23  ;;  %v648_v52 = vld [vmem:[%s11252_s27 + $0x5d8] sm:$0xff]  ;;  %v647_v23 = vld [vmem:[%s11252_s27 + $0x5d0] sm:$0xff]  ;;  %v9843_v31 = vld [vmem:[#allocation6 + $0xb6c] ss:$20 sps:$4 sm:$0xff]  }
 0x162   : > { %4434 = vmatpush2.bf16.msra.mxu1 %v9820_v49  ;;  %4322 = vmatprep.subr.bf16.mxu0 %v9825_v11  ;;  %v636_v49 = vld [vmem:[%s11252_s27 + $0x578] sm:$0xff]  ;;  %v9837_v11 = vld [vmem:[#allocation6 + $0xb94] ss:$20 sps:$4 sm:$0xff]  }
 0x163   : > { %4435 = vmatprep.subr.bf16.mxu1 %v9828_v20  ;;  %4166 = vmatprep.mubr.bf16.mxu0 %v11556_v28  ;;  %13466 = vst [vmem:[#allocation80_spill] sm:$0xff] %v11572_v48  ;;  %v9840_v20 = vld [vmem:[#allocation6 + $0xe14] ss:$20 sps:$4 sm:$0xff]   ;;  %v11576_v28 = vpack.c.bf16 %v646_v62, %v634_v0  ;;  %v11578_v58 = vpack.c.bf16 %v648_v52, %v636_v49  ;;  %v9846_v52 = vld [vmem:[#allocation6 + $0xdec] ss:$20 sps:$4 sm:$0xff]  }
 0x164   : > { %4279 = vmatprep.mubr.bf16.mxu1 %v11558_v10  ;;  %v9835_v10 = vld [vmem:[#allocation6 + $0xb90] ss:$20 sps:$4 sm:$0xff]   ;;  %v470_v0 = vld [vmem:[%s11252_s27 + $0x48] sm:$0xff] }
 0x165   : > { %4323 = vmatpush2.bf16.msra.mxu0 %v9823_v9  ;;  %13467 = vst [vmem:[#allocation81_spill] sm:$0xff] %v11576_v28  ;;  %13468 = vst [vmem:[#allocation82_spill] sm:$0xff] %v11578_v58  ;;  %v633_v9 = vld [vmem:[%s11252_s27 + $0x560] sm:$0xff]  ;;  %v482_v62 = vld [vmem:[%s11252_s27 + $0xa8] sm:$0xff] }
 0x166   : > { %4436 = vmatpush2.bf16.msra.mxu1 %v9826_v29  ;;  %4324 = vmatprep.subr.bf16.mxu0 %v9831_v30  ;;  %v635_v29 = vld [vmem:[%s11252_s27 + $0x570] sm:$0xff]  ;;  %v9841_v30 = vld [vmem:[#allocation6 + $0xb68] ss:$20 sps:$4 sm:$0xff]   ;;  %v11590_v49 = vpack.c.bf16 %v645_v43, %v633_v9  ;;  %v481_v43 = vld [vmem:[%s11252_s27 + $0xa0] sm:$0xff] }
 0x167   : > { %4437 = vmatprep.subr.bf16.mxu1 %v9834_v53  ;;  %v9844_v53 = vld [vmem:[#allocation6 + $0xde8] ss:$20 sps:$4 sm:$0xff]   ;;  %v9850_v9 = vld [vmem:[#allocation6 + $0xdc0] ss:$20 sps:$4 sm:$0xff]  }
 0x168   : > { %4167 = vmatmul.mubr.bf16.gmra.mxu0 %v11570_v63  ;;  %13469 = vst [vmem:[#allocation83_spill] sm:$0xff] %v11590_v49 }
 0x169   : > { %4280 = vmatmul.mubr.bf16.gmra.mxu1 %v11572_v48  ;;  %4325 = vmatpush2.bf16.msra.mxu0 %v9829_v36  ;;  %v11592_v36 = vpack.c.bf16 %v647_v23, %v635_v29  ;;  %v484_v48 = vld [vmem:[%s11252_s27 + $0xb8] sm:$0xff]  ;;  %v483_v29 = vld [vmem:[%s11252_s27 + $0xb0] sm:$0xff] }
 0x16a   : > { %4438 = vmatpush2.bf16.msra.mxu1 %v9832_v61  ;;  %4326 = vmatprep.subr.bf16.mxu0 %v9837_v11  ;;  %v472_v61 = vld [vmem:[%s11252_s27 + $0x58] sm:$0xff] }
 0x16b   : > { %4439 = vmatprep.subr.bf16.mxu1 %v9840_v20  ;;  %4176 = vmatprep.mubr.bf16.mxu0 %v11576_v28  ;;  %13470 = vst [vmem:[#allocation84_spill] sm:$0xff] %v11592_v36  ;;  %v9849_v11 = vld [vmem:[#allocation6 + $0xb44] ss:$20 sps:$4 sm:$0xff]   ;;  %v11596_v28 = vpack.c.bf16 %v482_v62, %v470_v0  ;;  %v11598_v63 = vpack.c.bf16 %v484_v48, %v472_v61  ;;  %v494_v0 = vld [vmem:[%s11252_s27 + $0x108] sm:$0xff] }
 0x16c   : > { %4289 = vmatprep.mubr.bf16.mxu1 %v11578_v58  ;;  %v9852_v20 = vld [vmem:[#allocation6 + $0xdc4] ss:$20 sps:$4 sm:$0xff]   ;;  %v9847_v58 = vld [vmem:[#allocation6 + $0xb40] ss:$20 sps:$4 sm:$0xff]   ;;  %v506_v62 = vld [vmem:[%s11252_s27 + $0x168] sm:$0xff] }
 0x16d   : > { %4327 = vmatpush2.bf16.msra.mxu0 %v9835_v10  ;;  %13471 = vst [vmem:[#allocation85_spill] sm:$0xff] %v11596_v28  ;;  %13472 = vst [vmem:[#allocation86_spill] sm:$0xff] %v11598_v63  ;;  %v469_v10 = vld [vmem:[%s11252_s27 + $0x40] sm:$0xff] }
 0x16e   : > { %4440 = vmatpush2.bf16.msra.mxu1 %v9838_v8  ;;  %4328 = vmatprep.subr.bf16.mxu0 %v9843_v31  ;;  %v471_v8 = vld [vmem:[%s11252_s27 + $0x50] sm:$0xff]  ;;  %v9855_v23 = vld [vmem:[#allocation6 + $0x124] ss:$20 sps:$4 sm:$0xff]   ;;  %v11610_v61 = vpack.c.bf16 %v481_v43, %v469_v10 }
 0x16f   : > { %4441 = vmatprep.subr.bf16.mxu1 %v9846_v52  ;;  %v9858_v48 = vld [vmem:[#allocation6 + $0x3a4] ss:$20 sps:$4 sm:$0xff]   ;;  %v9853_v31 = vld [vmem:[#allocation6 + $0x120] ss:$20 sps:$4 sm:$0xff]  }
 0x170   : > { %4177 = vmatmul.mubr.bf16.gmra.mxu0 %v11590_v49  ;;  %v9856_v52 = vld [vmem:[#allocation6 + $0x3a0] ss:$20 sps:$4 sm:$0xff]   ;;  %13473 = vst [vmem:[#allocation87_spill] sm:$0xff] %v11610_v61  ;;  %v9862_v10 = vld [vmem:[#allocation6 + $0x378] ss:$20 sps:$4 sm:$0xff]  }
 0x171   : > { %4290 = vmatmul.mubr.bf16.gmra.mxu1 %v11592_v36  ;;  %4329 = vmatpush2.bf16.msra.mxu0 %v9841_v30  ;;  %v11612_v30 = vpack.c.bf16 %v483_v29, %v471_v8  ;;  %v508_v36 = vld [vmem:[%s11252_s27 + $0x178] sm:$0xff]  ;;  %v505_v43 = vld [vmem:[%s11252_s27 + $0x160] sm:$0xff]  ;;  %v507_v8 = vld [vmem:[%s11252_s27 + $0x170] sm:$0xff] }
 0x172   : > { %4442 = vmatpush2.bf16.msra.mxu1 %v9844_v53  ;;  %4330 = vmatprep.subr.bf16.mxu0 %v9849_v11  ;;  %v496_v53 = vld [vmem:[%s11252_s27 + $0x118] sm:$0xff]  ;;  %v9867_v29 = vld [vmem:[#allocation6 + $0xd4] ss:$20 sps:$4 sm:$0xff]  }
 0x173   : > { %4443 = vmatprep.subr.bf16.mxu1 %v9852_v20  ;;  %4332 = vmatprep.mubr.bf16.mxu0 %v11596_v28  ;;  %13474 = vst [vmem:[#allocation88_spill] sm:$0xff] %v11612_v30  ;;  %v9861_v11 = vld [vmem:[#allocation6 + $0xfc] ss:$20 sps:$4 sm:$0xff]   ;;  %v11616_v28 = vpack.c.bf16 %v506_v62, %v494_v0  ;;  %v11618_v49 = vpack.c.bf16 %v508_v36, %v496_v53  ;;  %v9870_v36 = vld [vmem:[#allocation6 + $0x354] ss:$20 sps:$4 sm:$0xff]  }
 0x174   : > { %4445 = vmatprep.mubr.bf16.mxu1 %v11598_v63  ;;  %v9864_v20 = vld [vmem:[#allocation6 + $0x37c] ss:$20 sps:$4 sm:$0xff]   ;;  %v9859_v63 = vld [vmem:[#allocation6 + $0xf8] ss:$20 sps:$4 sm:$0xff]  }
 0x175   : > { %4331 = vmatpush2.bf16.msra.mxu0 %v9847_v58  ;;  %13475 = vst [vmem:[#allocation89_spill] sm:$0xff] %v11616_v28  ;;  %13476 = vst [vmem:[#allocation90_spill] sm:$0xff] %v11618_v49  ;;  %v493_v58 = vld [vmem:[%s11252_s27 + $0x100] sm:$0xff]  ;;  %v518_v0 = vld [vmem:[%s11252_s27 + $0x1c8] sm:$0xff] }
 0x176   : > { %4444 = vmatpush2.bf16.msra.mxu1 %v9850_v9  ;;  %4526 = vmatprep.subr.bf16.mxu0 %v9855_v23  ;;  %v495_v9 = vld [vmem:[%s11252_s27 + $0x110] sm:$0xff]  ;;  %v530_v62 = vld [vmem:[%s11252_s27 + $0x228] sm:$0xff]  ;;  %v11630_v53 = vpack.c.bf16 %v505_v43, %v493_v58  ;;  %v529_v43 = vld [vmem:[%s11252_s27 + $0x220] sm:$0xff] }
 0x177   : > { %4639 = vmatprep.subr.bf16.mxu1 %v9858_v48  ;;  %v9865_v23 = vld [vmem:[#allocation6 + $0xd0] ss:$20 sps:$4 sm:$0xff]   ;;  %v9874_v58 = vld [vmem:[#allocation6 + $0x328] ss:$20 sps:$4 sm:$0xff]  }
 0x178   : > { %4333 = vmatmul.mubr.bf16.vlgmr.msra.gmra.mxu0 %v11610_v61  ;;  %v9868_v48 = vld [vmem:[#allocation6 + $0x350] ss:$20 sps:$4 sm:$0xff]   ;;  %13477 = vst [vmem:[#allocation91_spill] sm:$0xff] %v11630_v53 }
 0x179   : > { %4446 = vmatmul.mubr.bf16.vlgmr.msra.gmra.mxu1 %v11612_v30  ;;  %4527 = vmatpush1.bf16.msra.mxu0 %v9853_v31  ;;  %v11632_v31 = vpack.c.bf16 %v507_v8, %v495_v9  ;;  %v532_v30 = vld [vmem:[%s11252_s27 + $0x238] sm:$0xff]  ;;  %v531_v9 = vld [vmem:[%s11252_s27 + $0x230] sm:$0xff] }
 0x17a   : > { %4640 = vmatpush1.bf16.msra.mxu1 %v9856_v52  ;;  %4528 = vmatprep.subr.bf16.mxu0 %v9861_v11  ;;  %v520_v52 = vld [vmem:[%s11252_s27 + $0x1d8] sm:$0xff]  ;;  %v9873_v11 = vld [vmem:[#allocation6 + $0xac] ss:$20 sps:$4 sm:$0xff]  }
 0x17b   : > { %4641 = vmatprep.subr.bf16.mxu1 %v9864_v20  ;;  %4342 = vmatprep.mubr.bf16.mxu0 %v11616_v28  ;;  %13478 = vst [vmem:[#allocation92_spill] sm:$0xff] %v11632_v31  ;;  %v9876_v20 = vld [vmem:[#allocation6 + $0x32c] ss:$20 sps:$4 sm:$0xff]   ;;  %v11636_v28 = vpack.c.bf16 %v530_v62, %v518_v0  ;;  %v11638_v61 = vpack.c.bf16 %v532_v30, %v520_v52  ;;  %v9879_v8 = vld [vmem:[#allocation6 + $0x84] ss:$20 sps:$4 sm:$0xff]  }
 0x17c   : > { %4455 = vmatprep.mubr.bf16.mxu1 %v11618_v49  ;;  %v9871_v49 = vld [vmem:[#allocation6 + $0xa8] ss:$20 sps:$4 sm:$0xff]   ;;  %v9882_v30 = vld [vmem:[#allocation6 + $0x304] ss:$20 sps:$4 sm:$0xff]  }
 0x17d   : > { %4529 = vmatpush1.bf16.msra.mxu0 %v9859_v63  ;;  %13479 = vst [vmem:[#allocation93_spill] sm:$0xff] %v11636_v28  ;;  %13480 = vst [vmem:[#allocation94_spill] sm:$0xff] %v11638_v61  ;;  %v517_v63 = vld [vmem:[%s11252_s27 + $0x1c0] sm:$0xff]  ;;  %v542_v0 = vld [vmem:[%s11252_s27 + $0x288] sm:$0xff] }
 0x17e   : > { %4642 = vmatpush1.bf16.msra.mxu1 %v9862_v10  ;;  %4530 = vmatprep.subr.bf16.mxu0 %v9867_v29  ;;  %v519_v10 = vld [vmem:[%s11252_s27 + $0x1d0] sm:$0xff]  ;;  %v554_v62 = vld [vmem:[%s11252_s27 + $0x2e8] sm:$0xff]  ;;  %v11650_v52 = vpack.c.bf16 %v529_v43, %v517_v63  ;;  %v553_v43 = vld [vmem:[%s11252_s27 + $0x2e0] sm:$0xff] }
 0x17f   : > { %4643 = vmatprep.subr.bf16.mxu1 %v9870_v36  ;;  %v9877_v29 = vld [vmem:[#allocation6 + $0x80] ss:$20 sps:$4 sm:$0xff]   ;;  %v9886_v63 = vld [vmem:[#allocation6 + $0x2d8] ss:$20 sps:$4 sm:$0xff]  }
 0x180   : > { %4343 = vmatmul.mubr.bf16.gmra.mxu0 %v11630_v53  ;;  %v9880_v36 = vld [vmem:[#allocation6 + $0x300] ss:$20 sps:$4 sm:$0xff]   ;;  %13481 = vst [vmem:[#allocation95_spill] sm:$0xff] %v11650_v52 }
 0x181   : > { %4456 = vmatmul.mubr.bf16.gmra.mxu1 %v11632_v31  ;;  %4531 = vmatpush1.bf16.msra.mxu0 %v9865_v23  ;;  %v11652_v23 = vpack.c.bf16 %v531_v9, %v519_v10  ;;  %v556_v31 = vld [vmem:[%s11252_s27 + $0x2f8] sm:$0xff]  ;;  %v555_v10 = vld [vmem:[%s11252_s27 + $0x2f0] sm:$0xff] }
 0x182   : > { %4644 = vmatpush1.bf16.msra.mxu1 %v9868_v48  ;;  %4532 = vmatprep.subr.bf16.mxu0 %v9873_v11  ;;  %v544_v48 = vld [vmem:[%s11252_s27 + $0x298] sm:$0xff]  ;;  %v9891_v9 = vld [vmem:[#allocation6 + $0x34] ss:$20 sps:$4 sm:$0xff]  }
 0x183   : > { %4645 = vmatprep.subr.bf16.mxu1 %v9876_v20  ;;  %4352 = vmatprep.mubr.bf16.mxu0 %v11636_v28  ;;  %13482 = vst [vmem:[#allocation96_spill] sm:$0xff] %v11652_v23  ;;  %v9885_v11 = vld [vmem:[#allocation6 + $0x5c] ss:$20 sps:$4 sm:$0xff]   ;;  %v11656_v28 = vpack.c.bf16 %v554_v62, %v542_v0  ;;  %v11658_v53 = vpack.c.bf16 %v556_v31, %v544_v48  ;;  %v9894_v31 = vld [vmem:[#allocation6 + $0x2b4] ss:$20 sps:$4 sm:$0xff]  }
 0x184   : > { %4465 = vmatprep.mubr.bf16.mxu1 %v11638_v61  ;;  %v9888_v20 = vld [vmem:[#allocation6 + $0x2dc] ss:$20 sps:$4 sm:$0xff]   ;;  %v9883_v61 = vld [vmem:[#allocation6 + $0x58] ss:$20 sps:$4 sm:$0xff]  }
 0x185   : > { %4533 = vmatpush1.bf16.msra.mxu0 %v9871_v49  ;;  %13483 = vst [vmem:[#allocation97_spill] sm:$0xff] %v11656_v28  ;;  %13484 = vst [vmem:[#allocation98_spill] sm:$0xff] %v11658_v53  ;;  %v541_v49 = vld [vmem:[%s11252_s27 + $0x280] sm:$0xff]  ;;  %v566_v0 = vld [vmem:[%s11252_s27 + $0x348] sm:$0xff] }
 0x186   : > { %4646 = vmatpush1.bf16.msra.mxu1 %v9874_v58  ;;  %4534 = vmatprep.subr.bf16.mxu0 %v9879_v8  ;;  %v543_v58 = vld [vmem:[%s11252_s27 + $0x290] sm:$0xff]  ;;  %v578_v62 = vld [vmem:[%s11252_s27 + $0x3a8] sm:$0xff]  ;;  %v11670_v48 = vpack.c.bf16 %v553_v43, %v541_v49  ;;  %v577_v43 = vld [vmem:[%s11252_s27 + $0x3a0] sm:$0xff] }
 0x187   : > { %4647 = vmatprep.subr.bf16.mxu1 %v9882_v30  ;;  %v9889_v8 = vld [vmem:[#allocation6 + $0x30] ss:$20 sps:$4 sm:$0xff]   ;;  %v9898_v49 = vld [vmem:[#allocation6 + $0x288] ss:$20 sps:$4 sm:$0xff]  }
 0x188   : > { %4353 = vmatmul.mubr.bf16.gmra.mxu0 %v11650_v52  ;;  %v9892_v30 = vld [vmem:[#allocation6 + $0x2b0] ss:$20 sps:$4 sm:$0xff]   ;;  %13485 = vst [vmem:[#allocation99_spill] sm:$0xff] %v11670_v48 }
 0x189   : > { %4466 = vmatmul.mubr.bf16.gmra.mxu1 %v11652_v23  ;;  %4535 = vmatpush1.bf16.msra.mxu0 %v9877_v29  ;;  %v11672_v29 = vpack.c.bf16 %v555_v10, %v543_v58  ;;  %v580_v23 = vld [vmem:[%s11252_s27 + $0x3b8] sm:$0xff]  ;;  %v579_v58 = vld [vmem:[%s11252_s27 + $0x3b0] sm:$0xff] }
 0x18a   : > { %4648 = vmatpush1.bf16.msra.mxu1 %v9880_v36  ;;  %4536 = vmatprep.subr.bf16.mxu0 %v9885_v11  ;;  %v568_v36 = vld [vmem:[%s11252_s27 + $0x358] sm:$0xff]  ;;  %v9897_v11 = vld [vmem:[#allocation6 + $0xc] ss:$20 sps:$4 sm:$0xff]  }
 0x18b   : > { %4649 = vmatprep.subr.bf16.mxu1 %v9888_v20  ;;  %4362 = vmatprep.mubr.bf16.mxu0 %v11656_v28  ;;  %13486 = vst [vmem:[#allocation100_spill] sm:$0xff] %v11672_v29  ;;  %v9900_v20 = vld [vmem:[#allocation6 + $0x28c] ss:$20 sps:$4 sm:$0xff]   ;;  %v11676_v28 = vpack.c.bf16 %v578_v62, %v566_v0  ;;  %v11678_v52 = vpack.c.bf16 %v580_v23, %v568_v36  ;;  %v9903_v10 = vld [vmem:[#allocation6 + $0x264] ss:$20 sps:$4 sm:$0xff]  }
 0x18c   : > { %4475 = vmatprep.mubr.bf16.mxu1 %v11658_v53  ;;  %v9895_v53 = vld [vmem:[#allocation6 + $0x8] ss:$20 sps:$4 sm:$0xff]   ;;  %v9906_v23 = vld [vmem:[#allocation6 + $0x4e4] ss:$20 sps:$4 sm:$0xff]  }
 0x18d   : > { %4537 = vmatpush1.bf16.msra.mxu0 %v9883_v61  ;;  %13487 = vst [vmem:[#allocation101_spill] sm:$0xff] %v11676_v28  ;;  %13488 = vst [vmem:[#allocation102_spill] sm:$0xff] %v11678_v52  ;;  %v565_v61 = vld [vmem:[%s11252_s27 + $0x340] sm:$0xff]  ;;  %v590_v0 = vld [vmem:[%s11252_s27 + $0x408] sm:$0xff] }
 0x18e   : > { %4650 = vmatpush1.bf16.msra.mxu1 %v9886_v63  ;;  %4538 = vmatprep.subr.bf16.mxu0 %v9891_v9  ;;  %v567_v63 = vld [vmem:[%s11252_s27 + $0x350] sm:$0xff]  ;;  %v602_v62 = vld [vmem:[%s11252_s27 + $0x468] sm:$0xff]  ;;  %v11690_v36 = vpack.c.bf16 %v577_v43, %v565_v61  ;;  %v601_v43 = vld [vmem:[%s11252_s27 + $0x460] sm:$0xff] }
 0x18f   : > { %4651 = vmatprep.subr.bf16.mxu1 %v9894_v31  ;;  %v9901_v9 = vld [vmem:[#allocation6 + $0x260] ss:$20 sps:$4 sm:$0xff]   ;;  %v9910_v61 = vld [vmem:[#allocation6 + $0x4b8] ss:$20 sps:$4 sm:$0xff]  }
 0x190   : > { %4363 = vmatmul.mubr.bf16.gmra.mxu0 %v11670_v48  ;;  %v9904_v31 = vld [vmem:[#allocation6 + $0x4e0] ss:$20 sps:$4 sm:$0xff]   ;;  %13489 = vst [vmem:[#allocation103_spill] sm:$0xff] %v11690_v36 }
 0x191   : > { %4476 = vmatmul.mubr.bf16.gmra.mxu1 %v11672_v29  ;;  %4539 = vmatpush1.bf16.msra.mxu0 %v9889_v8  ;;  %v11692_v8 = vpack.c.bf16 %v579_v58, %v567_v63  ;;  %v604_v29 = vld [vmem:[%s11252_s27 + $0x478] sm:$0xff]  ;;  %v603_v63 = vld [vmem:[%s11252_s27 + $0x470] sm:$0xff] }
 0x192   : > { %4652 = vmatpush1.bf16.msra.mxu1 %v9892_v30  ;;  %4540 = vmatprep.subr.bf16.mxu0 %v9897_v11  ;;  %v592_v30 = vld [vmem:[%s11252_s27 + $0x418] sm:$0xff]  ;;  %v9915_v58 = vld [vmem:[#allocation6 + $0x214] ss:$20 sps:$4 sm:$0xff]  }
 0x193   : > { %4653 = vmatprep.subr.bf16.mxu1 %v9900_v20  ;;  %4372 = vmatprep.mubr.bf16.mxu0 %v11676_v28  ;;  %13490 = vst [vmem:[#allocation104_spill] sm:$0xff] %v11692_v8  ;;  %v9909_v11 = vld [vmem:[#allocation6 + $0x23c] ss:$20 sps:$4 sm:$0xff]   ;;  %v11696_v28 = vpack.c.bf16 %v602_v62, %v590_v0  ;;  %v11698_v48 = vpack.c.bf16 %v604_v29, %v592_v30  ;;  %v9918_v29 = vld [vmem:[#allocation6 + $0x494] ss:$20 sps:$4 sm:$0xff]  }
 0x194   : > { %4485 = vmatprep.mubr.bf16.mxu1 %v11678_v52  ;;  %v9912_v20 = vld [vmem:[#allocation6 + $0x4bc] ss:$20 sps:$4 sm:$0xff]   ;;  %v9907_v52 = vld [vmem:[#allocation6 + $0x238] ss:$20 sps:$4 sm:$0xff]  }
 0x195   : > { %4541 = vmatpush1.bf16.msra.mxu0 %v9895_v53  ;;  %13491 = vst [vmem:[#allocation105_spill] sm:$0xff] %v11696_v28  ;;  %13492 = vst [vmem:[#allocation106_spill] sm:$0xff] %v11698_v48  ;;  %v589_v53 = vld [vmem:[%s11252_s27 + $0x400] sm:$0xff]  ;;  %v614_v0 = vld [vmem:[%s11252_s27 + $0x4c8] sm:$0xff] }
 0x196   : > { %4654 = vmatpush1.bf16.msra.mxu1 %v9898_v49  ;;  %4542 = vmatprep.subr.bf16.mxu0 %v9903_v10  ;;  %v591_v49 = vld [vmem:[%s11252_s27 + $0x410] sm:$0xff]  ;;  %v626_v62 = vld [vmem:[%s11252_s27 + $0x528] sm:$0xff]  ;;  %v616_v30 = vld [vmem:[%s11252_s27 + $0x4d8] sm:$0xff] }
 0x197   : > { %4655 = vmatprep.subr.bf16.mxu1 %v9906_v23  ;;  %v9913_v10 = vld [vmem:[#allocation6 + $0x210] ss:$20 sps:$4 sm:$0xff]  }
 0x198   : > { %4373 = vmatmul.mubr.bf16.gmra.mxu0 %v11690_v36  ;;  %v9916_v23 = vld [vmem:[#allocation6 + $0x490] ss:$20 sps:$4 sm:$0xff]   ;;  %v11716_v36 = vpack.c.bf16 %v626_v62, %v614_v0  ;;  %v640_v0 = vld [vmem:[%s11252_s27 + $0x598] sm:$0xff] }
 0x199   : > { %4486 = vmatmul.mubr.bf16.gmra.mxu1 %v11692_v8  ;;  %4543 = vmatpush2.bf16.msra.mxu0 %v9901_v9  ;;  %v11710_v9 = vpack.c.bf16 %v601_v43, %v589_v53  ;;  %v628_v8 = vld [vmem:[%s11252_s27 + $0x538] sm:$0xff]  ;;  %v613_v53 = vld [vmem:[%s11252_s27 + $0x4c0] sm:$0xff] }
 0x19a   : > { %4656 = vmatpush2.bf16.msra.mxu1 %v9904_v31  ;;  %4544 = vmatprep.subr.bf16.mxu0 %v9909_v11  ;;  %v11712_v31 = vpack.c.bf16 %v603_v63, %v591_v49  ;;  %v9921_v11 = vld [vmem:[#allocation6 + $0x1ec] ss:$20 sps:$4 sm:$0xff]   ;;  %13495 = vst [vmem:[#allocation109_spill] sm:$0xff] %v11716_v36  ;;  %v11718_v7 = vpack.c.bf16 %v628_v8, %v616_v30  ;;  %v615_v49 = vld [vmem:[%s11252_s27 + $0x4d0] sm:$0xff]  ;;  %v9930_v63 = vld [vmem:[#allocation6 + $0x444] ss:$20 sps:$4 sm:$0xff]  }
 0x19b   : > { %4657 = vmatprep.subr.bf16.mxu1 %v9912_v20  ;;  %4382 = vmatprep.mubr.bf16.mxu0 %v11696_v28  ;;  %13493 = vst [vmem:[#allocation107_spill] sm:$0xff] %v11710_v9  ;;  %v9924_v20 = vld [vmem:[#allocation6 + $0x46c] ss:$20 sps:$4 sm:$0xff]   ;;  %v9922_v28 = vld [vmem:[#allocation6 + $0x468] ss:$20 sps:$4 sm:$0xff]  }
 0x19c   : > { %4495 = vmatprep.mubr.bf16.mxu1 %v11698_v48  ;;  %13494 = vst [vmem:[#allocation108_spill] sm:$0xff] %v11712_v31  ;;  %v9919_v48 = vld [vmem:[#allocation6 + $0x1e8] ss:$20 sps:$4 sm:$0xff]   ;;  %13496 = vst [vmem:[#allocation110_spill] sm:$0xff] %v11718_v7  ;;  %v625_v43 = vld [vmem:[%s11252_s27 + $0x520] sm:$0xff] }
 0x19d   : > { %4545 = vmatpush2.bf16.msra.mxu0 %v9907_v52  ;;  %v627_v52 = vld [vmem:[%s11252_s27 + $0x530] sm:$0xff]  ;;  %v11731_v62 = vpack.c.bf16 %v625_v43, %v613_v53  ;;  %v637_v53 = vld [vmem:[%s11252_s27 + $0x580] sm:$0xff] }
 0x19e   : > { %4658 = vmatpush2.bf16.msra.mxu1 %v9910_v61  ;;  %4546 = vmatprep.subr.bf16.mxu0 %v9915_v58  ;;  %v9927_v61 = vld [vmem:[#allocation6 + $0x1c4] ss:$20 sps:$4 sm:$0xff]   ;;  %v638_v58 = vld [vmem:[%s11252_s27 + $0x588] sm:$0xff]  ;;  %v9925_v8 = vld [vmem:[#allocation6 + $0x1c0] ss:$20 sps:$4 sm:$0xff]   ;;  %v11733_v30 = vpack.c.bf16 %v627_v52, %v615_v49  ;;  %v1327_v49 = vlaneseq }
 0x19f   : > { %4659 = vmatprep.subr.bf16.mxu1 %v9918_v29  ;;  %v650_v29 = vld [vmem:[%s11252_s27 + $0x5e8] sm:$0xff]  ;;  %13497 = vst [vmem:[#allocation111_spill] sm:$0xff] %v11731_v62  ;;  %v649_v43 = vld [vmem:[%s11252_s27 + $0x5e0] sm:$0xff] }
 0x1a0   : > { %4383 = vmatmul.mubr.bf16.gmra.mxu0 %v11710_v9  ;;  %13498 = vst [vmem:[#allocation112_spill] sm:$0xff] %v11733_v30  ;;  %v9939_v52 = vld [vmem:[#allocation6 + $0x174] ss:$20 sps:$4 sm:$0xff]  }
 0x1a1   : > { %4496 = vmatmul.mubr.bf16.gmra.mxu1 %v11712_v31  ;;  %4547 = vmatpush2.bf16.msra.mxu0 %v9913_v10  ;;  %v652_v10 = vld [vmem:[%s11252_s27 + $0x5f8] sm:$0xff]  ;;  %v11736_v31 = vpack.c.bf16 %v650_v29, %v638_v58  ;;  %v9937_v29 = vld [vmem:[#allocation6 + $0x170] ss:$20 sps:$4 sm:$0xff]  }
 0x1a2   : > { %4660 = vmatpush2.bf16.msra.mxu1 %v9916_v23  ;;  %4548 = vmatprep.subr.bf16.mxu0 %v9921_v11  ;;  %v9928_v23 = vld [vmem:[#allocation6 + $0x440] ss:$20 sps:$4 sm:$0xff]   ;;  %v9933_v11 = vld [vmem:[#allocation6 + $0x19c] ss:$20 sps:$4 sm:$0xff]   ;;  %v11738_v9 = vpack.c.bf16 %v652_v10, %v640_v0 }
 0x1a3   : > { %4661 = vmatprep.subr.bf16.mxu1 %v9924_v20  ;;  %4392 = vmatprep.mubr.bf16.mxu0 %v11716_v36  ;;  %v9936_v20 = vld [vmem:[#allocation6 + $0x41c] ss:$20 sps:$4 sm:$0xff]   ;;  %v9934_v36 = vld [vmem:[#allocation6 + $0x418] ss:$20 sps:$4 sm:$0xff]   ;;  %13499 = vst [vmem:[#allocation113_spill] sm:$0xff] %v11736_v31 }
 0x1a4   : > { %4505 = vmatprep.mubr.bf16.mxu1 %v11718_v7  ;;  %v9931_v7 = vld [vmem:[#allocation6 + $0x198] ss:$20 sps:$4 sm:$0xff]   ;;  %13500 = vst [vmem:[#allocation114_spill] sm:$0xff] %v11738_v9  ;;  %v9940_v0 = vld [vmem:[#allocation6 + $0x3f0] ss:$20 sps:$4 sm:$0xff]  }
 0x1a5   : > { %4549 = vmatpush2.bf16.msra.mxu0 %v9919_v48  ;;  %v639_v48 = vld [vmem:[%s11252_s27 + $0x590] sm:$0xff]  ;;  %v9945_v10 = vld [vmem:[#allocation6 + $0x14c] ss:$20 sps:$4 sm:$0xff]  }
 0x1a6   : > { %4662 = vmatpush2.bf16.msra.mxu1 %v9922_v28  ;;  %4550 = vmatprep.subr.bf16.mxu0 %v9927_v61  ;;  %v651_v28 = vld [vmem:[%s11252_s27 + $0x5f0] sm:$0xff] }
 0x1a7   : > { %4663 = vmatprep.subr.bf16.mxu1 %v9930_v63  ;;  %v9942_v61 = vld [vmem:[#allocation6 + $0x3f4] ss:$20 sps:$4 sm:$0xff]   ;;  %v11748_v63 = vpack.c.bf16 %v649_v43, %v637_v53  ;;  %v11750_v58 = vpack.c.bf16 %v651_v28, %v639_v48  ;;  %v1325_v53 = vld [vmem:[#allocation8] sm:$0x1f] }
 0x1a8   : > { %4393 = vmatmul.mubr.bf16.gmra.mxu0 %v11731_v62  ;;  %v9949_v28 = vld [vmem:[#allocation6 + $0x620] ss:$20 sps:$4 sm:$0xff]  }
 0x1a9   : > { %4506 = vmatmul.mubr.bf16.gmra.mxu1 %v11733_v30  ;;  %4551 = vmatpush2.bf16.msra.mxu0 %v9925_v8  ;;  %13501 = vst [vmem:[#allocation115_spill] sm:$0xff] %v11748_v63  ;;  %13502 = vst [vmem:[#allocation116_spill] sm:$0xff] %v11750_v58  ;;  %v11752_v8 = vshrl.u32 %v1327_v49, 7 }
 0x1aa   : > { %4664 = vmatpush2.bf16.msra.mxu1 %v9928_v23  ;;  %4552 = vmatprep.subr.bf16.mxu0 %v9933_v11  ;;  %v9948_v23 = vld [vmem:[#allocation6 + $0x3cc] ss:$20 sps:$4 sm:$0xff]   ;;  %v9943_v11 = vld [vmem:[#allocation6 + $0x148] ss:$20 sps:$4 sm:$0xff]  }
 0x1ab   : > { %4665 = vmatprep.subr.bf16.mxu1 %v9936_v20  ;;  %4402 = vmatprep.mubr.bf16.mxu0 %v11736_v31  ;;  %13503 = vst [vmem:[#allocation117_spill] sm:$0xff] %v11752_v8  ;;  %v9946_v20 = vld [vmem:[#allocation6 + $0x3c8] ss:$20 sps:$4 sm:$0xff]   ;;  %v11757_v43 = vsub.s32 0, %v11752_v8  ;;  %v13310_v48 = vsub.s32 1, %v11752_v8 }
 0x1ac   : > { %4515 = vmatprep.mubr.bf16.mxu1 %v11738_v9 }
 0x1ad   : > { %4553 = vmatpush2.bf16.msra.mxu0 %v9931_v7  ;;  %13504 = vst [vmem:[#allocation118_spill] sm:$0xff] %v11757_v43  ;;  %v9951_v7 = vld [vmem:[#allocation6 + $0x624] ss:$20 sps:$4 sm:$0xff]   ;;  %v11763_v49 = vrot.slane %v1325_v53, %v11757_v43 }
 0x1ae   : > { %4666 = vmatpush2.bf16.msra.mxu1 %v9934_v36  ;;  %4554 = vmatprep.subr.bf16.mxu0 %v9939_v52  ;;  %v9954_v36 = vld [vmem:[#allocation6 + $0x8a4] ss:$20 sps:$4 sm:$0xff]   ;;  %v9952_v52 = vld [vmem:[#allocation6 + $0x8a0] ss:$20 sps:$4 sm:$0xff]  }
 0x1af   : > { %4667 = vmatprep.subr.bf16.mxu1 %v9942_v61  ;;  %v9957_v61 = vld [vmem:[#allocation6 + $0x5fc] ss:$20 sps:$4 sm:$0xff]   ;;  %v9958_v43 = vld [vmem:[#allocation6 + $0x878] ss:$20 sps:$4 sm:$0xff]  }
 0x1b0   : > { %4403 = vmatmul.mubr.bf16.gmra.mxu0 %v11748_v63 }
 0x1b1   : > { %4516 = vmatmul.mubr.bf16.gmra.mxu1 %v11750_v58  ;;  %4555 = vmatpush2.bf16.msra.mxu0 %v9937_v29  ;;  %v9960_v29 = vld [vmem:[#allocation6 + $0x87c] ss:$20 sps:$4 sm:$0xff]  }
 0x1b2   : > { %4668 = vmatpush2.bf16.msra.mxu1 %v9940_v0  ;;  %4556 = vmatprep.subr.bf16.mxu0 %v9945_v10  ;;  %v11767_v0 = vrot.slane %v1325_v53, %v13310_v48 }
 0x1b3   : > { %4669 = vmatprep.subr.bf16.mxu1 %v9948_v23  ;;  %4558 = vmatprep.mubr.bf16.mxu0 %v11278_v54  ;;  %v9966_v54 = vld [vmem:[#allocation6 + $0x854] ss:$20 sps:$4 sm:$0xff]  }
 0x1b4   : > { %4671 = vmatprep.mubr.bf16.mxu1 %v11280_v55  ;;  %v9963_v55 = vld [vmem:[#allocation6 + $0x5d4] ss:$20 sps:$4 sm:$0xff]  }
 0x1b5   : > { %4557 = vmatpush2.bf16.msra.mxu0 %v9943_v11  ;;  %v9955_v11 = vld [vmem:[#allocation6 + $0x5f8] ss:$20 sps:$4 sm:$0xff]  }
 0x1b6   : > { %4670 = vmatpush2.bf16.msra.mxu1 %v9946_v20  ;;  %4752 = vmatprep.subr.bf16.mxu0 %v9951_v7 }
 0x1b7   : > { %4865 = vmatprep.subr.bf16.mxu1 %v9954_v36 }
 0x1b8   : > { %v3882_v10 = vpop.f32.mrf.mxu0  ;;  %4559 = vmatmul.mubr.bf16.vlgmr.msra.gmra.mxu0 %v11290_v17 }
 0x1b9   : > { %v3995_v23 = vpop.f32.mrf.mxu1  ;;  %4672 = vmatmul.mubr.bf16.vlgmr.msra.gmra.mxu1 %v11292_v18  ;;  %v3883_v20 = vadd.f32 %v3882_v10, %v11763_v49  ;;  %4753 = vmatpush1.bf16.msra.mxu0 %v9949_v28  ;;  %v9961_v10 = vld [vmem:[#allocation6 + $0x5d0] ss:$20 sps:$4 sm:$0xff]  }
 0x1ba   : > { %4866 = vmatpush1.bf16.msra.mxu1 %v9952_v52  ;;  %v3884_v7 = vpop.f32.mrf.mxu0  ;;  %4754 = vmatprep.subr.bf16.mxu0 %v9957_v61  ;;  %v9964_v61 = vld [vmem:[#allocation6 + $0x850] ss:$20 sps:$4 sm:$0xff]  }
 0x1bb   : > { %v3997_v36 = vpop.f32.mrf.mxu1  ;;  %4867 = vmatprep.subr.bf16.mxu1 %v9960_v29  ;;  %v11772_v53 = vadd.f32 %v3995_v23, %v3883_v20  ;;  %v3885_v48 = vadd.f32 %v3884_v7, %v11767_v0  ;;  %4568 = vmatprep.mubr.bf16.mxu0 %v11296_v24  ;;  %v9969_v23 = vld [vmem:[#allocation6 + $0x5ac] ss:$20 sps:$4 sm:$0xff]  }
 0x1bc   : > { %4681 = vmatprep.mubr.bf16.mxu1 %v11298_v25  ;;  %v3886_v18 = vpop.f32.mrf.mxu0  ;;  %v9972_v20 = vld [vmem:[#allocation6 + $0x82c] ss:$20 sps:$4 sm:$0xff]  }
 0x1bd   : > { %v3999_v17 = vpop.f32.mrf.mxu1  ;;  %v11777_v28 = vadd.f32 %v3997_v36, %v3885_v48  ;;  %v3887_v52 = vadd.f32 %v3886_v18, %v11763_v49  ;;  %4755 = vmatpush1.bf16.msra.mxu0 %v9955_v11  ;;  %v9967_v18 = vld [vmem:[#allocation6 + $0x5a8] ss:$20 sps:$4 sm:$0xff]   ;;  %v9978_v36 = vld [vmem:[#allocation6 + $0x804] ss:$20 sps:$4 sm:$0xff]  }
 0x1be   : > { %4868 = vmatpush1.bf16.msra.mxu1 %v9958_v43  ;;  %v3888_v29 = vpop.f32.mrf.mxu0  ;;  %4756 = vmatprep.subr.bf16.mxu0 %v9963_v55 }
 0x1bf   : > { %v4001_v58 = vpop.f32.mrf.mxu1  ;;  %4869 = vmatprep.subr.bf16.mxu1 %v9966_v54  ;;  %v11780_v7 = vadd.f32 %v3999_v17, %v3887_v52  ;;  %v3889_v25 = vadd.f32 %v3888_v29, %v11767_v0  ;;  %v9970_v54 = vld [vmem:[#allocation6 + $0x828] ss:$20 sps:$4 sm:$0xff]   ;;  %v9975_v17 = vld [vmem:[#allocation6 + $0x584] ss:$20 sps:$4 sm:$0xff]  }
 0x1c0   : > { %v3892_v24 = vpop.f32.mrf.mxu0  ;;  %4569 = vmatmul.mubr.bf16.gmra.mxu0 %v11310_v37 }
 0x1c1   : > { %v4005_v63 = vpop.f32.mrf.mxu1  ;;  %4682 = vmatmul.mubr.bf16.gmra.mxu1 %v11312_v38  ;;  %v11785_v48 = vadd.f32 %v4001_v58, %v3889_v25  ;;  %v3893_v43 = vadd.f32 %v3892_v24, %v11763_v49  ;;  %4757 = vmatpush1.bf16.msra.mxu0 %v9961_v10  ;;  %v9973_v24 = vld [vmem:[#allocation6 + $0x580] ss:$20 sps:$4 sm:$0xff]  }
 0x1c2   : > { %4870 = vmatpush1.bf16.msra.mxu1 %v9964_v61  ;;  %v3894_v55 = vpop.f32.mrf.mxu0  ;;  %4758 = vmatprep.subr.bf16.mxu0 %v9969_v23  ;;  %v9976_v23 = vld [vmem:[#allocation6 + $0x800] ss:$20 sps:$4 sm:$0xff]  }
 0x1c3   : > { %v4007_v11 = vpop.f32.mrf.mxu1  ;;  %4871 = vmatprep.subr.bf16.mxu1 %v9972_v20  ;;  %v11788_v52 = vadd.f32 %v4005_v63, %v3893_v43  ;;  %v3895_v29 = vadd.f32 %v3894_v55, %v11767_v0  ;;  %4578 = vmatprep.mubr.bf16.mxu0 %v11316_v44  ;;  %v9981_v63 = vld [vmem:[#allocation6 + $0x55c] ss:$20 sps:$4 sm:$0xff]  }
 0x1c4   : > { %4691 = vmatprep.mubr.bf16.mxu1 %v11318_v45  ;;  %v3896_v25 = vpop.f32.mrf.mxu0  ;;  %v9984_v43 = vld [vmem:[#allocation6 + $0x7dc] ss:$20 sps:$4 sm:$0xff]  }
 0x1c5   : > { %v4009_v58 = vpop.f32.mrf.mxu1  ;;  %v11793_v10 = vadd.f32 %v4007_v11, %v3895_v29  ;;  %v3897_v61 = vadd.f32 %v3896_v25, %v11763_v49  ;;  %4759 = vmatpush1.bf16.msra.mxu0 %v9967_v18  ;;  %v9979_v11 = vld [vmem:[#allocation6 + $0x558] ss:$20 sps:$4 sm:$0xff]   ;;  %v9987_v25 = vld [vmem:[#allocation6 + $0x534] ss:$20 sps:$4 sm:$0xff]  }
 0x1c6   : > { %4872 = vmatpush1.bf16.msra.mxu1 %v9970_v54  ;;  %v3898_v20 = vpop.f32.mrf.mxu0  ;;  %4760 = vmatprep.subr.bf16.mxu0 %v9975_v17  ;;  %v9982_v17 = vld [vmem:[#allocation6 + $0x7d8] ss:$20 sps:$4 sm:$0xff]  }
 0x1c7   : > { %v4011_v38 = vpop.f32.mrf.mxu1  ;;  %4873 = vmatprep.subr.bf16.mxu1 %v9978_v36  ;;  %v11796_v55 = vadd.f32 %v4009_v58, %v3897_v61  ;;  %v3899_v45 = vadd.f32 %v3898_v20, %v11767_v0  ;;  %v9990_v58 = vld [vmem:[#allocation6 + $0x7b4] ss:$20 sps:$4 sm:$0xff]  }
 0x1c8   : > { %v3902_v44 = vpop.f32.mrf.mxu0  ;;  %4579 = vmatmul.mubr.bf16.gmra.mxu0 %v11330_v59 }
 0x1c9   : > { %v4015_v37 = vpop.f32.mrf.mxu1  ;;  %4692 = vmatmul.mubr.bf16.gmra.mxu1 %v11332_v60  ;;  %v11801_v18 = vadd.f32 %v4011_v38, %v3899_v45  ;;  %v3903_v54 = vadd.f32 %v3902_v44, %v11763_v49  ;;  %4761 = vmatpush1.bf16.msra.mxu0 %v9973_v24  ;;  %v9985_v44 = vld [vmem:[#allocation6 + $0x530] ss:$20 sps:$4 sm:$0xff]  }
 0x1ca   : > { %4874 = vmatpush1.bf16.msra.mxu1 %v9976_v23  ;;  %v3904_v36 = vpop.f32.mrf.mxu0  ;;  %4762 = vmatprep.subr.bf16.mxu0 %v9981_v63  ;;  %v9988_v63 = vld [vmem:[#allocation6 + $0x7b0] ss:$20 sps:$4 sm:$0xff]  }
 0x1cb   : > { %v4017_v29 = vpop.f32.mrf.mxu1  ;;  %4875 = vmatprep.subr.bf16.mxu1 %v9984_v43  ;;  %v11804_v61 = vadd.f32 %v4015_v37, %v3903_v54  ;;  %v3905_v20 = vadd.f32 %v3904_v36, %v11767_v0  ;;  %4588 = vmatprep.mubr.bf16.mxu0 %v11336_v2  ;;  %v9993_v37 = vld [vmem:[#allocation6 + $0x50c] ss:$20 sps:$4 sm:$0xff]  }
 0x1cc   : > { %4701 = vmatprep.mubr.bf16.mxu1 %v11338_v3  ;;  %v3906_v38 = vpop.f32.mrf.mxu0  ;;  %v9996_v54 = vld [vmem:[#allocation6 + $0x78c] ss:$20 sps:$4 sm:$0xff]  }
 0x1cd   : > { %v4019_v45 = vpop.f32.mrf.mxu1  ;;  %v11809_v24 = vadd.f32 %v4017_v29, %v3905_v20  ;;  %v3907_v23 = vadd.f32 %v3906_v38, %v11763_v49  ;;  %4763 = vmatpush1.bf16.msra.mxu0 %v9979_v11  ;;  %v9991_v29 = vld [vmem:[#allocation6 + $0x508] ss:$20 sps:$4 sm:$0xff]   ;;  %v9999_v38 = vld [vmem:[#allocation6 + $0x764] ss:$20 sps:$4 sm:$0xff]  }
 0x1ce   : > { %4876 = vmatpush1.bf16.msra.mxu1 %v9982_v17  ;;  %v3908_v43 = vpop.f32.mrf.mxu0  ;;  %4764 = vmatprep.subr.bf16.mxu0 %v9987_v25  ;;  %v9994_v25 = vld [vmem:[#allocation6 + $0x788] ss:$20 sps:$4 sm:$0xff]  }
 0x1cf   : > { %v4021_v60 = vpop.f32.mrf.mxu1  ;;  %4877 = vmatprep.subr.bf16.mxu1 %v9990_v58  ;;  %v11812_v36 = vadd.f32 %v4019_v45, %v3907_v23  ;;  %v3909_v3 = vadd.f32 %v3908_v43, %v11767_v0  ;;  %v10002_v45 = vld [vmem:[#allocation6 + $0x9e4] ss:$20 sps:$4 sm:$0xff]  }
 0x1d0   : > { %v3912_v2 = vpop.f32.mrf.mxu0  ;;  %4589 = vmatmul.mubr.bf16.gmra.mxu0 %v11350_v15 }
 0x1d1   : > { %v4025_v59 = vpop.f32.mrf.mxu1  ;;  %4702 = vmatmul.mubr.bf16.gmra.mxu1 %v11352_v16  ;;  %v11817_v11 = vadd.f32 %v4021_v60, %v3909_v3  ;;  %v3913_v17 = vadd.f32 %v3912_v2, %v11763_v49  ;;  %4765 = vmatpush1.bf16.msra.mxu0 %v9985_v44  ;;  %v9997_v2 = vld [vmem:[#allocation6 + $0x760] ss:$20 sps:$4 sm:$0xff]  }
 0x1d2   : > { %4878 = vmatpush1.bf16.msra.mxu1 %v9988_v63  ;;  %v3914_v58 = vpop.f32.mrf.mxu0  ;;  %4766 = vmatprep.subr.bf16.mxu0 %v9993_v37  ;;  %v10000_v37 = vld [vmem:[#allocation6 + $0x9e0] ss:$20 sps:$4 sm:$0xff]  }
 0x1d3   : > { %v4027_v20 = vpop.f32.mrf.mxu1  ;;  %4879 = vmatprep.subr.bf16.mxu1 %v9996_v54  ;;  %v11820_v23 = vadd.f32 %v4025_v59, %v3913_v17  ;;  %v3915_v43 = vadd.f32 %v3914_v58, %v11767_v0  ;;  %4598 = vmatprep.mubr.bf16.mxu0 %v11356_v26  ;;  %v10005_v59 = vld [vmem:[#allocation6 + $0x73c] ss:$20 sps:$4 sm:$0xff]  }
 0x1d4   : > { %4711 = vmatprep.mubr.bf16.mxu1 %v11358_v27  ;;  %v3916_v60 = vpop.f32.mrf.mxu0  ;;  %v10008_v17 = vld [vmem:[#allocation6 + $0x9bc] ss:$20 sps:$4 sm:$0xff]  }
 0x1d5   : > { %v4029_v3 = vpop.f32.mrf.mxu1  ;;  %v11825_v44 = vadd.f32 %v4027_v20, %v3915_v43  ;;  %v3917_v63 = vadd.f32 %v3916_v60, %v11763_v49  ;;  %4767 = vmatpush1.bf16.msra.mxu0 %v9991_v29  ;;  %v10003_v20 = vld [vmem:[#allocation6 + $0x738] ss:$20 sps:$4 sm:$0xff]   ;;  %v10011_v60 = vld [vmem:[#allocation6 + $0x714] ss:$20 sps:$4 sm:$0xff]  }
 0x1d6   : > { %4880 = vmatpush1.bf16.msra.mxu1 %v9994_v25  ;;  %v3918_v54 = vpop.f32.mrf.mxu0  ;;  %4768 = vmatprep.subr.bf16.mxu0 %v9999_v38  ;;  %v10006_v38 = vld [vmem:[#allocation6 + $0x9b8] ss:$20 sps:$4 sm:$0xff]  }
 0x1d7   : > { %v4031_v16 = vpop.f32.mrf.mxu1  ;;  %4881 = vmatprep.subr.bf16.mxu1 %v10002_v45  ;;  %v11828_v58 = vadd.f32 %v4029_v3, %v3917_v63  ;;  %v3919_v27 = vadd.f32 %v3918_v54, %v11767_v0  ;;  %v10014_v3 = vld [vmem:[#allocation6 + $0x994] ss:$20 sps:$4 sm:$0xff]  }
 0x1d8   : > { %v3922_v26 = vpop.f32.mrf.mxu0  ;;  %4599 = vmatmul.mubr.bf16.gmra.mxu0 %v11370_v41 }
 0x1d9   : > { %v4035_v15 = vpop.f32.mrf.mxu1  ;;  %4712 = vmatmul.mubr.bf16.gmra.mxu1 %v11372_v42  ;;  %v11833_v29 = vadd.f32 %v4031_v16, %v3919_v27  ;;  %v3923_v25 = vadd.f32 %v3922_v26, %v11763_v49  ;;  %4769 = vmatpush2.bf16.msra.mxu0 %v9997_v2  ;;  %v10009_v26 = vld [vmem:[#allocation6 + $0x710] ss:$20 sps:$4 sm:$0xff]  }
 0x1da   : > { %4882 = vmatpush2.bf16.msra.mxu1 %v10000_v37  ;;  %v3924_v45 = vpop.f32.mrf.mxu0  ;;  %4770 = vmatprep.subr.bf16.mxu0 %v10005_v59  ;;  %v10012_v59 = vld [vmem:[#allocation6 + $0x990] ss:$20 sps:$4 sm:$0xff]  }
 0x1db   : > { %v4037_v43 = vpop.f32.mrf.mxu1  ;;  %4883 = vmatprep.subr.bf16.mxu1 %v10008_v17  ;;  %v11836_v63 = vadd.f32 %v4035_v15, %v3923_v25  ;;  %v3925_v54 = vadd.f32 %v3924_v45, %v11767_v0  ;;  %4608 = vmatprep.mubr.bf16.mxu0 %v11376_v50  ;;  %v10017_v15 = vld [vmem:[#allocation6 + $0x6ec] ss:$20 sps:$4 sm:$0xff]  }
 0x1dc   : > { %4721 = vmatprep.mubr.bf16.mxu1 %v11378_v51  ;;  %v3926_v16 = vpop.f32.mrf.mxu0  ;;  %v10020_v25 = vld [vmem:[#allocation6 + $0x96c] ss:$20 sps:$4 sm:$0xff]  }
 0x1dd   : > { %v4039_v27 = vpop.f32.mrf.mxu1  ;;  %v11841_v2 = vadd.f32 %v4037_v43, %v3925_v54  ;;  %v3927_v37 = vadd.f32 %v3926_v16, %v11763_v49  ;;  %4771 = vmatpush2.bf16.msra.mxu0 %v10003_v20  ;;  %v10015_v43 = vld [vmem:[#allocation6 + $0x6e8] ss:$20 sps:$4 sm:$0xff]   ;;  %v10023_v16 = vld [vmem:[#allocation6 + $0x6c4] ss:$20 sps:$4 sm:$0xff]  }
 0x1de   : > { %4884 = vmatpush2.bf16.msra.mxu1 %v10006_v38  ;;  %v3928_v17 = vpop.f32.mrf.mxu0  ;;  %4772 = vmatprep.subr.bf16.mxu0 %v10011_v60  ;;  %v10018_v60 = vld [vmem:[#allocation6 + $0x968] ss:$20 sps:$4 sm:$0xff]  }
 0x1df   : > { %v4041_v42 = vpop.f32.mrf.mxu1  ;;  %4885 = vmatprep.subr.bf16.mxu1 %v10014_v3  ;;  %v11844_v45 = vadd.f32 %v4039_v27, %v3927_v37  ;;  %v3929_v51 = vadd.f32 %v3928_v17, %v11767_v0  ;;  %v10026_v27 = vld [vmem:[#allocation6 + $0x944] ss:$20 sps:$4 sm:$0xff]  }
 0x1e0   : > { %v3932_v50 = vpop.f32.mrf.mxu0  ;;  %4609 = vmatmul.mubr.bf16.gmra.mxu0 %v11390_v5 }
 0x1e1   : > { %v4045_v41 = vpop.f32.mrf.mxu1  ;;  %4722 = vmatmul.mubr.bf16.gmra.mxu1 %v11392_v6  ;;  %v11849_v20 = vadd.f32 %v4041_v42, %v3929_v51  ;;  %v3933_v38 = vadd.f32 %v3932_v50, %v11763_v49  ;;  %4773 = vmatpush2.bf16.msra.mxu0 %v10009_v26  ;;  %v10021_v50 = vld [vmem:[#allocation6 + $0x6c0] ss:$20 sps:$4 sm:$0xff]  }
 0x1e2   : > { %4886 = vmatpush2.bf16.msra.mxu1 %v10012_v59  ;;  %v3934_v3 = vpop.f32.mrf.mxu0  ;;  %4774 = vmatprep.subr.bf16.mxu0 %v10017_v15  ;;  %v10024_v15 = vld [vmem:[#allocation6 + $0x940] ss:$20 sps:$4 sm:$0xff]  }
 0x1e3   : > { %v4047_v54 = vpop.f32.mrf.mxu1  ;;  %4887 = vmatprep.subr.bf16.mxu1 %v10020_v25  ;;  %v11852_v37 = vadd.f32 %v4045_v41, %v3933_v38  ;;  %v3935_v17 = vadd.f32 %v3934_v3, %v11767_v0  ;;  %4618 = vmatprep.mubr.bf16.mxu0 %v11396_v12  ;;  %v10029_v41 = vld [vmem:[#allocation6 + $0x69c] ss:$20 sps:$4 sm:$0xff]  }
 0x1e4   : > { %4731 = vmatprep.mubr.bf16.mxu1 %v11398_v13  ;;  %v3936_v42 = vpop.f32.mrf.mxu0  ;;  %v10032_v38 = vld [vmem:[#allocation6 + $0x91c] ss:$20 sps:$4 sm:$0xff]  }
 0x1e5   : > { %v4049_v51 = vpop.f32.mrf.mxu1  ;;  %v11857_v26 = vadd.f32 %v4047_v54, %v3935_v17  ;;  %v3937_v59 = vadd.f32 %v3936_v42, %v11763_v49  ;;  %4775 = vmatpush2.bf16.msra.mxu0 %v10015_v43  ;;  %v10027_v54 = vld [vmem:[#allocation6 + $0x698] ss:$20 sps:$4 sm:$0xff]   ;;  %v10035_v42 = vld [vmem:[#allocation6 + $0x674] ss:$20 sps:$4 sm:$0xff]  }
 0x1e6   : > { %4888 = vmatpush2.bf16.msra.mxu1 %v10018_v60  ;;  %v3938_v25 = vpop.f32.mrf.mxu0  ;;  %4776 = vmatprep.subr.bf16.mxu0 %v10023_v16  ;;  %v10030_v16 = vld [vmem:[#allocation6 + $0x918] ss:$20 sps:$4 sm:$0xff]  }
 0x1e7   : > { %v4051_v6 = vpop.f32.mrf.mxu1  ;;  %4889 = vmatprep.subr.bf16.mxu1 %v10026_v27  ;;  %v11860_v3 = vadd.f32 %v4049_v51, %v3937_v59  ;;  %v3939_v13 = vadd.f32 %v3938_v25, %v11767_v0  ;;  %v10038_v51 = vld [vmem:[#allocation6 + $0x8f4] ss:$20 sps:$4 sm:$0xff]  }
 0x1e8   : > { %v3942_v12 = vpop.f32.mrf.mxu0  ;;  %4619 = vmatmul.mubr.bf16.gmra.mxu0 %v11410_v33 }
 0x1e9   : > { %v4055_v5 = vpop.f32.mrf.mxu1  ;;  %4732 = vmatmul.mubr.bf16.gmra.mxu1 %v11412_v34  ;;  %v11865_v43 = vadd.f32 %v4051_v6, %v3939_v13  ;;  %v3943_v60 = vadd.f32 %v3942_v12, %v11763_v49  ;;  %4777 = vmatpush2.bf16.msra.mxu0 %v10021_v50  ;;  %v10033_v12 = vld [vmem:[#allocation6 + $0x670] ss:$20 sps:$4 sm:$0xff]  }
 0x1ea   : > { %4890 = vmatpush2.bf16.msra.mxu1 %v10024_v15  ;;  %v3944_v27 = vpop.f32.mrf.mxu0  ;;  %4778 = vmatprep.subr.bf16.mxu0 %v10029_v41  ;;  %v10036_v41 = vld [vmem:[#allocation6 + $0x8f0] ss:$20 sps:$4 sm:$0xff]  }
 0x1eb   : > { %v4057_v17 = vpop.f32.mrf.mxu1  ;;  %4891 = vmatprep.subr.bf16.mxu1 %v10032_v38  ;;  %v11868_v59 = vadd.f32 %v4055_v5, %v3943_v60  ;;  %v3945_v25 = vadd.f32 %v3944_v27, %v11767_v0  ;;  %4628 = vmatprep.mubr.bf16.mxu0 %v11416_v46  ;;  %v10041_v5 = vld [vmem:[#allocation6 + $0x64c] ss:$20 sps:$4 sm:$0xff]  }
 0x1ec   : > { %4741 = vmatprep.mubr.bf16.mxu1 %v11418_v47  ;;  %v3946_v6 = vpop.f32.mrf.mxu0  ;;  %v10044_v60 = vld [vmem:[#allocation6 + $0x8cc] ss:$20 sps:$4 sm:$0xff]  }
 0x1ed   : > { %v4059_v13 = vpop.f32.mrf.mxu1  ;;  %v11873_v50 = vadd.f32 %v4057_v17, %v3945_v25  ;;  %v3947_v15 = vadd.f32 %v3946_v6, %v11763_v49  ;;  %4779 = vmatpush2.bf16.msra.mxu0 %v10027_v54  ;;  %v10039_v17 = vld [vmem:[#allocation6 + $0x648] ss:$20 sps:$4 sm:$0xff]   ;;  %v10047_v6 = vld [vmem:[#allocation6 + $0xb24] ss:$20 sps:$4 sm:$0xff]  }
 0x1ee   : > { %4892 = vmatpush2.bf16.msra.mxu1 %v10030_v16  ;;  %v3948_v38 = vpop.f32.mrf.mxu0  ;;  %4780 = vmatprep.subr.bf16.mxu0 %v10035_v42  ;;  %v10042_v42 = vld [vmem:[#allocation6 + $0x8c8] ss:$20 sps:$4 sm:$0xff]  }
 0x1ef   : > { %v4061_v34 = vpop.f32.mrf.mxu1  ;;  %4893 = vmatprep.subr.bf16.mxu1 %v10038_v51  ;;  %v11876_v27 = vadd.f32 %v4059_v13, %v3947_v15  ;;  %v3949_v47 = vadd.f32 %v3948_v38, %v11767_v0  ;;  %v10050_v13 = vld [vmem:[#allocation6 + $0xda4] ss:$20 sps:$4 sm:$0xff]  }
 0x1f0   : > { %v3952_v46 = vpop.f32.mrf.mxu0  ;;  %4629 = vmatmul.mubr.bf16.gmra.mxu0 %v11430_v1 }
 0x1f1   : > { %v4065_v33 = vpop.f32.mrf.mxu1  ;;  %4742 = vmatmul.mubr.bf16.gmra.mxu1 %v11432_v4  ;;  %v11881_v54 = vadd.f32 %v4061_v34, %v3949_v47  ;;  %v3953_v16 = vadd.f32 %v3952_v46, %v11763_v49  ;;  %4781 = vmatpush2.bf16.msra.mxu0 %v10033_v12  ;;  %v10045_v34 = vld [vmem:[#allocation6 + $0xb20] ss:$20 sps:$4 sm:$0xff]  }
 0x1f2   : > { %4894 = vmatpush2.bf16.msra.mxu1 %v10036_v41  ;;  %v3954_v51 = vpop.f32.mrf.mxu0  ;;  %4782 = vmatprep.subr.bf16.mxu0 %v10041_v5  ;;  %v10048_v12 = vld [vmem:[#allocation6 + $0xda0] ss:$20 sps:$4 sm:$0xff]   ;;  %v10053_v5 = vld [vmem:[#allocation6 + $0xafc] ss:$20 sps:$4 sm:$0xff]  }
 0x1f3   : > { %v4067_v25 = vpop.f32.mrf.mxu1  ;;  %4895 = vmatprep.subr.bf16.mxu1 %v10044_v60  ;;  %v11884_v15 = vadd.f32 %v4065_v33, %v3953_v16  ;;  %v3955_v38 = vadd.f32 %v3954_v51, %v11767_v0  ;;  %4784 = vmatprep.mubr.bf16.mxu0 %v11436_v14  ;;  %v10056_v16 = vld [vmem:[#allocation6 + $0xd7c] ss:$20 sps:$4 sm:$0xff]   ;;  %v10051_v14 = vld [vmem:[#allocation6 + $0xaf8] ss:$20 sps:$4 sm:$0xff]  }
 0x1f4   : > { %4897 = vmatprep.mubr.bf16.mxu1 %v11438_v19  ;;  %v3956_v47 = vpop.f32.mrf.mxu0 }
 0x1f5   : > { %v4069_v46 = vpop.f32.mrf.mxu1  ;;  %v11889_v41 = vadd.f32 %v4067_v25, %v3955_v38  ;;  %v3957_v4 = vadd.f32 %v3956_v47, %v11763_v49  ;;  %4783 = vmatpush2.bf16.msra.mxu0 %v10039_v17  ;;  %v10054_v49 = vld [vmem:[#allocation6 + $0xd78] ss:$20 sps:$4 sm:$0xff]   ;;  %v10059_v25 = vld [vmem:[#allocation6 + $0xad4] ss:$20 sps:$4 sm:$0xff]  }
 0x1f6   : > { %4896 = vmatpush2.bf16.msra.mxu1 %v10042_v42  ;;  %v3958_v60 = vpop.f32.mrf.mxu0  ;;  %4978 = vmatprep.subr.bf16.mxu0 %v10047_v6 }
 0x1f7   : > { %v4071_v33 = vpop.f32.mrf.mxu1  ;;  %5091 = vmatprep.subr.bf16.mxu1 %v10050_v13  ;;  %v11892_v51 = vadd.f32 %v4069_v46, %v3957_v4  ;;  %v3959_v19 = vadd.f32 %v3958_v60, %v11767_v0  ;;  %v10062_v0 = vld [vmem:[#allocation6 + $0xd54] ss:$20 sps:$4 sm:$0xff]  }
 0x1f8   : > { %v4108_v1 = vpop.f32.mrf.mxu0  ;;  %4785 = vmatmul.mubr.bf16.vlgmr.msra.gmra.mxu0 %v11450_v39 }
 0x1f9   : > { %v4221_v8 = vpop.f32.mrf.mxu1  ;;  %4898 = vmatmul.mubr.bf16.vlgmr.msra.gmra.mxu1 %v11452_v40  ;;  %v11897_v17 = vadd.f32 %v4071_v33, %v3959_v19  ;;  %v4109_v42 = vadd.f32 %v4108_v1, %v11772_v53  ;;  %4979 = vmatpush1.bf16.msra.mxu0 %v10045_v34  ;;  %v10057_v19 = vld [vmem:[#allocation6 + $0xad0] ss:$20 sps:$4 sm:$0xff]  }
 0x1fa   : > { %5092 = vmatpush1.bf16.msra.mxu1 %v10048_v12  ;;  %v4110_v6 = vpop.f32.mrf.mxu0  ;;  %4980 = vmatprep.subr.bf16.mxu0 %v10053_v5  ;;  %v10060_v1 = vld [vmem:[#allocation6 + $0xd50] ss:$20 sps:$4 sm:$0xff]   ;;  %v10065_v12 = vld [vmem:[#allocation6 + $0xaac] ss:$20 sps:$4 sm:$0xff]  }
 0x1fb   : > { %v4223_v4 = vpop.f32.mrf.mxu1  ;;  %5093 = vmatprep.subr.bf16.mxu1 %v10056_v16  ;;  %v11900_v13 = vadd.f32 %v4221_v8, %v4109_v42  ;;  %v4111_v38 = vadd.f32 %v4110_v6, %v11777_v28  ;;  %4794 = vmatprep.mubr.bf16.mxu0 %v11456_v56  ;;  %v10068_v28 = vld [vmem:[#allocation6 + $0xd2c] ss:$20 sps:$4 sm:$0xff]   ;;  %v10063_v16 = vld [vmem:[#allocation6 + $0xaa8] ss:$20 sps:$4 sm:$0xff]  }
 0x1fc   : > { %4907 = vmatprep.mubr.bf16.mxu1 %v11458_v57  ;;  %v4112_v47 = vpop.f32.mrf.mxu0 }
 0x1fd   : > { %v4225_v46 = vpop.f32.mrf.mxu1  ;;  %v11905_v53 = vadd.f32 %v4223_v4, %v4111_v38  ;;  %v4113_v34 = vadd.f32 %v4112_v47, %v11780_v7  ;;  %4981 = vmatpush1.bf16.msra.mxu0 %v10051_v14  ;;  %v10066_v7 = vld [vmem:[#allocation6 + $0xd28] ss:$20 sps:$4 sm:$0xff]  }
 0x1fe   : > { %5094 = vmatpush1.bf16.msra.mxu1 %v10054_v49  ;;  %v4114_v5 = vpop.f32.mrf.mxu0  ;;  %4982 = vmatprep.subr.bf16.mxu0 %v10059_v25  ;;  %v10071_v25 = vld [vmem:[#allocation6 + $0xa84] ss:$20 sps:$4 sm:$0xff]  }
 0x1ff   : > { %v4227_v8 = vpop.f32.mrf.mxu1  ;;  %5095 = vmatprep.subr.bf16.mxu1 %v10062_v0  ;;  %v11908_v60 = vadd.f32 %v4225_v46, %v4113_v34  ;;  %v4115_v33 = vadd.f32 %v4114_v5, %v11785_v48  ;;  %v10074_v48 = vld [vmem:[#allocation6 + $0xd04] ss:$20 sps:$4 sm:$0xff]   ;;  %v10069_v46 = vld [vmem:[#allocation6 + $0xa80] ss:$20 sps:$4 sm:$0xff]  }
 0x200   : > { %v4118_v42 = vpop.f32.mrf.mxu0  ;;  %4795 = vmatmul.mubr.bf16.gmra.mxu0 %v11470_v21 }
 0x201   : > { %v4231_v6 = vpop.f32.mrf.mxu1  ;;  %4908 = vmatmul.mubr.bf16.gmra.mxu1 %v11472_v22  ;;  %v11913_v14 = vadd.f32 %v4227_v8, %v4115_v33  ;;  %v4119_v49 = vadd.f32 %v4118_v42, %v11788_v52  ;;  %4983 = vmatpush1.bf16.msra.mxu0 %v10057_v19  ;;  %v10072_v52 = vld [vmem:[#allocation6 + $0xd00] ss:$20 sps:$4 sm:$0xff]  }
 0x202   : > { %5096 = vmatpush1.bf16.msra.mxu1 %v10060_v1  ;;  %v4120_v4 = vpop.f32.mrf.mxu0  ;;  %4984 = vmatprep.subr.bf16.mxu0 %v10065_v12  ;;  %v10077_v12 = vld [vmem:[#allocation6 + $0xa5c] ss:$20 sps:$4 sm:$0xff]  }
 0x203   : > { %v4233_v0 = vpop.f32.mrf.mxu1  ;;  %5097 = vmatprep.subr.bf16.mxu1 %v10068_v28  ;;  %v11916_v38 = vadd.f32 %v4231_v6, %v4119_v49  ;;  %v4121_v47 = vadd.f32 %v4120_v4, %v11793_v10  ;;  %4804 = vmatprep.mubr.bf16.mxu0 %v11476_v32  ;;  %v10080_v10 = vld [vmem:[#allocation6 + $0xcdc] ss:$20 sps:$4 sm:$0xff]   ;;  %v10075_v6 = vld [vmem:[#allocation6 + $0xa58] ss:$20 sps:$4 sm:$0xff]  }
 0x204   : > { %4917 = vmatprep.mubr.bf16.mxu1 %v11478_v35  ;;  %v4122_v34 = vpop.f32.mrf.mxu0  ;;  %v13505_v35 = vld [vmem:[#allocation63_spill] sm:$0xff]  ;;  %v10150_v32 = vld [vmem:[#allocation6 + $0xd8] ss:$20 sps:$4 sm:$0xff]  }
 0x205   : > { %v4235_v5 = vpop.f32.mrf.mxu1  ;;  %v11921_v19 = vadd.f32 %v4233_v0, %v4121_v47  ;;  %v4123_v1 = vadd.f32 %v4122_v34, %v11796_v55  ;;  %4985 = vmatpush1.bf16.msra.mxu0 %v10063_v16  ;;  %v13506_v0 = vld [vmem:[#allocation64_spill] sm:$0xff] }
 0x206   : > { %5098 = vmatpush1.bf16.msra.mxu1 %v10066_v7  ;;  %v4124_v8 = vpop.f32.mrf.mxu0  ;;  %4986 = vmatprep.subr.bf16.mxu0 %v10071_v25  ;;  %v10078_v55 = vld [vmem:[#allocation6 + $0xcd8] ss:$20 sps:$4 sm:$0xff]   ;;  %v10083_v25 = vld [vmem:[#allocation6 + $0xa34] ss:$20 sps:$4 sm:$0xff]  }
 0x207   : > { %v4237_v28 = vpop.f32.mrf.mxu1  ;;  %5099 = vmatprep.subr.bf16.mxu1 %v10074_v48  ;;  %v11924_v33 = vadd.f32 %v4235_v5, %v4123_v1  ;;  %v4125_v42 = vadd.f32 %v4124_v8, %v11801_v18  ;;  %v10086_v18 = vld [vmem:[#allocation6 + $0xcb4] ss:$20 sps:$4 sm:$0xff]   ;;  %v13507_v1 = vld [vmem:[#allocation65_spill] sm:$0xff] }
 0x208   : > { %v4128_v49 = vpop.f32.mrf.mxu0  ;;  %4805 = vmatmul.mubr.bf16.gmra.mxu0 %v13505_v35  ;;  %v13508_v8 = vld [vmem:[#allocation66_spill] sm:$0xff]  ;;  %v13509_v35 = vld [vmem:[#allocation67_spill] sm:$0xff] }
 0x209   : > { %v4241_v4 = vpop.f32.mrf.mxu1  ;;  %4918 = vmatmul.mubr.bf16.gmra.mxu1 %v13506_v0  ;;  %v11929_v16 = vadd.f32 %v4237_v28, %v4125_v42  ;;  %v4129_v7 = vadd.f32 %v4128_v49, %v11804_v61  ;;  %4987 = vmatpush1.bf16.msra.mxu0 %v10069_v46  ;;  %v10081_v28 = vld [vmem:[#allocation6 + $0xa30] ss:$20 sps:$4 sm:$0xff]  }
 0x20a   : > { %5100 = vmatpush1.bf16.msra.mxu1 %v10072_v52  ;;  %v4130_v48 = vpop.f32.mrf.mxu0  ;;  %4988 = vmatprep.subr.bf16.mxu0 %v10077_v12  ;;  %v10084_v61 = vld [vmem:[#allocation6 + $0xcb0] ss:$20 sps:$4 sm:$0xff]   ;;  %v10089_v12 = vld [vmem:[#allocation6 + $0xa0c] ss:$20 sps:$4 sm:$0xff]  }
 0x20b   : > { %v4243_v47 = vpop.f32.mrf.mxu1  ;;  %5101 = vmatprep.subr.bf16.mxu1 %v10080_v10  ;;  %v11932_v34 = vadd.f32 %v4241_v4, %v4129_v7  ;;  %v4131_v5 = vadd.f32 %v4130_v48, %v11809_v24  ;;  %4814 = vmatprep.mubr.bf16.mxu0 %v13507_v1  ;;  %v10092_v24 = vld [vmem:[#allocation6 + $0xc8c] ss:$20 sps:$4 sm:$0xff]   ;;  %v10087_v48 = vld [vmem:[#allocation6 + $0xa08] ss:$20 sps:$4 sm:$0xff]  }
 0x20c   : > { %4927 = vmatprep.mubr.bf16.mxu1 %v13508_v8  ;;  %v4132_v42 = vpop.f32.mrf.mxu0 }
 0x20d   : > { %v4245_v0 = vpop.f32.mrf.mxu1  ;;  %v11937_v46 = vadd.f32 %v4243_v47, %v4131_v5  ;;  %v4133_v52 = vadd.f32 %v4132_v42, %v11812_v36  ;;  %4989 = vmatpush1.bf16.msra.mxu0 %v10075_v6  ;;  %v13510_v47 = vld [vmem:[#allocation68_spill] sm:$0xff] }
 0x20e   : > { %5102 = vmatpush1.bf16.msra.mxu1 %v10078_v55  ;;  %v4134_v10 = vpop.f32.mrf.mxu0  ;;  %4990 = vmatprep.subr.bf16.mxu0 %v10083_v25  ;;  %v10090_v36 = vld [vmem:[#allocation6 + $0xc88] ss:$20 sps:$4 sm:$0xff]   ;;  %v10095_v25 = vld [vmem:[#allocation6 + $0xc64] ss:$20 sps:$4 sm:$0xff]  }
 0x20f   : > { %v4247_v49 = vpop.f32.mrf.mxu1  ;;  %5103 = vmatprep.subr.bf16.mxu1 %v10086_v18  ;;  %v11940_v4 = vadd.f32 %v4245_v0, %v4133_v52  ;;  %v4135_v7 = vadd.f32 %v4134_v10, %v11817_v11  ;;  %v10098_v11 = vld [vmem:[#allocation6 + $0xee4] ss:$20 sps:$4 sm:$0xff]   ;;  %v13512_v10 = vld [vmem:[#allocation70_spill] sm:$0xff] }
 0x210   : > { %v4138_v8 = vpop.f32.mrf.mxu0  ;;  %4815 = vmatmul.mubr.bf16.gmra.mxu0 %v13509_v35  ;;  %v13511_v52 = vld [vmem:[#allocation69_spill] sm:$0xff]  ;;  %v13517_v35 = vld [vmem:[#allocation75_spill] sm:$0xff] }
 0x211   : > { %v4251_v1 = vpop.f32.mrf.mxu1  ;;  %4928 = vmatmul.mubr.bf16.gmra.mxu1 %v13510_v47  ;;  %v11945_v6 = vadd.f32 %v4247_v49, %v4135_v7  ;;  %v4139_v55 = vadd.f32 %v4138_v8, %v11820_v23  ;;  %4991 = vmatpush1.bf16.msra.mxu0 %v10081_v28  ;;  %v10093_v47 = vld [vmem:[#allocation6 + $0xc60] ss:$20 sps:$4 sm:$0xff]  }
 0x212   : > { %5104 = vmatpush1.bf16.msra.mxu1 %v10084_v61  ;;  %v4140_v18 = vpop.f32.mrf.mxu0  ;;  %4992 = vmatprep.subr.bf16.mxu0 %v10089_v12  ;;  %v10096_v28 = vld [vmem:[#allocation6 + $0xee0] ss:$20 sps:$4 sm:$0xff]   ;;  %v10101_v61 = vld [vmem:[#allocation6 + $0xc3c] ss:$20 sps:$4 sm:$0xff]  }
 0x213   : > { %v4253_v0 = vpop.f32.mrf.mxu1  ;;  %5105 = vmatprep.subr.bf16.mxu1 %v10092_v24  ;;  %v11948_v5 = vadd.f32 %v4251_v1, %v4139_v55  ;;  %v4141_v42 = vadd.f32 %v4140_v18, %v11825_v44  ;;  %4824 = vmatprep.mubr.bf16.mxu0 %v13511_v52  ;;  %v10104_v44 = vld [vmem:[#allocation6 + $0xebc] ss:$20 sps:$4 sm:$0xff]   ;;  %v10099_v18 = vld [vmem:[#allocation6 + $0xc38] ss:$20 sps:$4 sm:$0xff]  }
 0x214   : > { %4937 = vmatprep.mubr.bf16.mxu1 %v13512_v10  ;;  %v4142_v49 = vpop.f32.mrf.mxu0 }
 0x215   : > { %v4255_v7 = vpop.f32.mrf.mxu1  ;;  %v11953_v23 = vadd.f32 %v4253_v0, %v4141_v42  ;;  %v4143_v8 = vadd.f32 %v4142_v49, %v11828_v58  ;;  %4993 = vmatpush1.bf16.msra.mxu0 %v10087_v48  ;;  %v13513_v0 = vld [vmem:[#allocation71_spill] sm:$0xff]  ;;  %v13514_v42 = vld [vmem:[#allocation72_spill] sm:$0xff] }
 0x216   : > { %5106 = vmatpush1.bf16.msra.mxu1 %v10090_v36  ;;  %v4144_v12 = vpop.f32.mrf.mxu0  ;;  %4994 = vmatprep.subr.bf16.mxu0 %v10095_v25  ;;  %v10102_v58 = vld [vmem:[#allocation6 + $0xeb8] ss:$20 sps:$4 sm:$0xff]   ;;  %v10107_v25 = vld [vmem:[#allocation6 + $0xc14] ss:$20 sps:$4 sm:$0xff]  }
 0x217   : > { %v4257_v1 = vpop.f32.mrf.mxu1  ;;  %5107 = vmatprep.subr.bf16.mxu1 %v10098_v11  ;;  %v11956_v24 = vadd.f32 %v4255_v7, %v4143_v8  ;;  %v4145_v55 = vadd.f32 %v4144_v12, %v11833_v29  ;;  %v10110_v29 = vld [vmem:[#allocation6 + $0xe94] ss:$20 sps:$4 sm:$0xff]   ;;  %v13515_v12 = vld [vmem:[#allocation73_spill] sm:$0xff] }
 0x218   : > { %v4148_v10 = vpop.f32.mrf.mxu0  ;;  %4825 = vmatmul.mubr.bf16.gmra.mxu0 %v13513_v0 }
 0x219   : > { %v4261_v52 = vpop.f32.mrf.mxu1  ;;  %4938 = vmatmul.mubr.bf16.gmra.mxu1 %v13514_v42  ;;  %v11961_v48 = vadd.f32 %v4257_v1, %v4145_v55  ;;  %v4149_v36 = vadd.f32 %v4148_v10, %v11836_v63  ;;  %4995 = vmatpush2.bf16.msra.mxu0 %v10093_v47  ;;  %v13516_v42 = vld [vmem:[#allocation74_spill] sm:$0xff]  ;;  %v10105_v1 = vld [vmem:[#allocation6 + $0xc10] ss:$20 sps:$4 sm:$0xff]  }
 0x21a   : > { %5108 = vmatpush2.bf16.msra.mxu1 %v10096_v28  ;;  %v4150_v11 = vpop.f32.mrf.mxu0  ;;  %4996 = vmatprep.subr.bf16.mxu0 %v10101_v61  ;;  %v10108_v63 = vld [vmem:[#allocation6 + $0xe90] ss:$20 sps:$4 sm:$0xff]   ;;  %v10113_v28 = vld [vmem:[#allocation6 + $0xbec] ss:$20 sps:$4 sm:$0xff]  }
 0x21b   : > { %v4263_v49 = vpop.f32.mrf.mxu1  ;;  %5109 = vmatprep.subr.bf16.mxu1 %v10104_v44  ;;  %v11964_v7 = vadd.f32 %v4261_v52, %v4149_v36  ;;  %v4151_v8 = vadd.f32 %v4150_v11, %v11841_v2  ;;  %4834 = vmatprep.mubr.bf16.mxu0 %v13515_v12  ;;  %v10116_v2 = vld [vmem:[#allocation6 + $0xe6c] ss:$20 sps:$4 sm:$0xff]   ;;  %v10111_v11 = vld [vmem:[#allocation6 + $0xbe8] ss:$20 sps:$4 sm:$0xff]  }
 0x21c   : > { %4947 = vmatprep.mubr.bf16.mxu1 %v13516_v42  ;;  %v4152_v55 = vpop.f32.mrf.mxu0 }
 0x21d   : > { %v4265_v0 = vpop.f32.mrf.mxu1  ;;  %v11969_v47 = vadd.f32 %v4263_v49, %v4151_v8  ;;  %v4153_v10 = vadd.f32 %v4152_v55, %v11844_v45  ;;  %4997 = vmatpush2.bf16.msra.mxu0 %v10099_v18  ;;  %v13518_v49 = vld [vmem:[#allocation76_spill] sm:$0xff] }
 0x21e   : > { %5110 = vmatpush2.bf16.msra.mxu1 %v10102_v58  ;;  %v4154_v61 = vpop.f32.mrf.mxu0  ;;  %4998 = vmatprep.subr.bf16.mxu0 %v10107_v25  ;;  %v10114_v45 = vld [vmem:[#allocation6 + $0xe68] ss:$20 sps:$4 sm:$0xff]   ;;  %v10119_v25 = vld [vmem:[#allocation6 + $0xbc4] ss:$20 sps:$4 sm:$0xff]  }
 0x21f   : > { %v4267_v52 = vpop.f32.mrf.mxu1  ;;  %5111 = vmatprep.subr.bf16.mxu1 %v10110_v29  ;;  %v11972_v44 = vadd.f32 %v4265_v0, %v4153_v10  ;;  %v4155_v36 = vadd.f32 %v4154_v61, %v11849_v20  ;;  %v10122_v20 = vld [vmem:[#allocation6 + $0xe44] ss:$20 sps:$4 sm:$0xff]   ;;  %v13520_v61 = vld [vmem:[#allocation78_spill] sm:$0xff] }
 0x220   : > { %v4158_v42 = vpop.f32.mrf.mxu0  ;;  %4835 = vmatmul.mubr.bf16.gmra.mxu0 %v13517_v35  ;;  %v13519_v10 = vld [vmem:[#allocation77_spill] sm:$0xff]  ;;  %v13521_v35 = vld [vmem:[#allocation79_spill] sm:$0xff] }
 0x221   : > { %v4271_v12 = vpop.f32.mrf.mxu1  ;;  %4948 = vmatmul.mubr.bf16.gmra.mxu1 %v13518_v49  ;;  %v11977_v18 = vadd.f32 %v4267_v52, %v4155_v36  ;;  %v4159_v58 = vadd.f32 %v4158_v42, %v11852_v37  ;;  %4999 = vmatpush2.bf16.msra.mxu0 %v10105_v1  ;;  %v10117_v52 = vld [vmem:[#allocation6 + $0xbc0] ss:$20 sps:$4 sm:$0xff]  }
 0x222   : > { %5112 = vmatpush2.bf16.msra.mxu1 %v10108_v63  ;;  %v4160_v29 = vpop.f32.mrf.mxu0  ;;  %5000 = vmatprep.subr.bf16.mxu0 %v10113_v28  ;;  %v10120_v37 = vld [vmem:[#allocation6 + $0xe40] ss:$20 sps:$4 sm:$0xff]   ;;  %v10125_v63 = vld [vmem:[#allocation6 + $0xb9c] ss:$20 sps:$4 sm:$0xff]  }
 0x223   : > { %v4273_v0 = vpop.f32.mrf.mxu1  ;;  %5113 = vmatprep.subr.bf16.mxu1 %v10116_v2  ;;  %v11980_v8 = vadd.f32 %v4271_v12, %v4159_v58  ;;  %v4161_v55 = vadd.f32 %v4160_v29, %v11857_v26  ;;  %4844 = vmatprep.mubr.bf16.mxu0 %v13519_v10  ;;  %v10128_v26 = vld [vmem:[#allocation6 + $0xe1c] ss:$20 sps:$4 sm:$0xff]   ;;  %v10123_v29 = vld [vmem:[#allocation6 + $0xb98] ss:$20 sps:$4 sm:$0xff]  }
 0x224   : > { %4957 = vmatprep.mubr.bf16.mxu1 %v13520_v61  ;;  %v4162_v36 = vpop.f32.mrf.mxu0 }
 0x225   : > { %v4275_v49 = vpop.f32.mrf.mxu1  ;;  %v11985_v42 = vadd.f32 %v4273_v0, %v4161_v55  ;;  %v4163_v1 = vadd.f32 %v4162_v36, %v11860_v3  ;;  %5001 = vmatpush2.bf16.msra.mxu0 %v10111_v11  ;;  %v13522_v0 = vld [vmem:[#allocation80_spill] sm:$0xff] }
 0x226   : > { %5114 = vmatpush2.bf16.msra.mxu1 %v10114_v45  ;;  %v4164_v28 = vpop.f32.mrf.mxu0  ;;  %5002 = vmatprep.subr.bf16.mxu0 %v10119_v25  ;;  %v10126_v3 = vld [vmem:[#allocation6 + $0xe18] ss:$20 sps:$4 sm:$0xff]   ;;  %v10131_v25 = vld [vmem:[#allocation6 + $0xb74] ss:$20 sps:$4 sm:$0xff]  }
 0x227   : > { %v4277_v12 = vpop.f32.mrf.mxu1  ;;  %5115 = vmatprep.subr.bf16.mxu1 %v10122_v20  ;;  %v11988_v2 = vadd.f32 %v4275_v49, %v4163_v1  ;;  %v4165_v58 = vadd.f32 %v4164_v28, %v11865_v43  ;;  %v10134_v43 = vld [vmem:[#allocation6 + $0xdf4] ss:$20 sps:$4 sm:$0xff]   ;;  %v13523_v1 = vld [vmem:[#allocation81_spill] sm:$0xff] }
 0x228   : > { %v4168_v61 = vpop.f32.mrf.mxu0  ;;  %4845 = vmatmul.mubr.bf16.gmra.mxu0 %v13521_v35  ;;  %v13524_v28 = vld [vmem:[#allocation82_spill] sm:$0xff]  ;;  %v13525_v35 = vld [vmem:[#allocation83_spill] sm:$0xff] }
 0x229   : > { %v4281_v10 = vpop.f32.mrf.mxu1  ;;  %4958 = vmatmul.mubr.bf16.gmra.mxu1 %v13522_v0  ;;  %v11993_v11 = vadd.f32 %v4277_v12, %v4165_v58  ;;  %v4169_v45 = vadd.f32 %v4168_v61, %v11868_v59  ;;  %5003 = vmatpush2.bf16.msra.mxu0 %v10117_v52  ;;  %v10129_v12 = vld [vmem:[#allocation6 + $0xb70] ss:$20 sps:$4 sm:$0xff]  }
 0x22a   : > { %5116 = vmatpush2.bf16.msra.mxu1 %v10120_v37  ;;  %v4170_v20 = vpop.f32.mrf.mxu0  ;;  %5004 = vmatprep.subr.bf16.mxu0 %v10125_v63  ;;  %v10132_v59 = vld [vmem:[#allocation6 + $0xdf0] ss:$20 sps:$4 sm:$0xff]   ;;  %v10137_v37 = vld [vmem:[#allocation6 + $0xb4c] ss:$20 sps:$4 sm:$0xff]  }
 0x22b   : > { %v4283_v49 = vpop.f32.mrf.mxu1  ;;  %5117 = vmatprep.subr.bf16.mxu1 %v10128_v26  ;;  %v11996_v55 = vadd.f32 %v4281_v10, %v4169_v45  ;;  %v4171_v36 = vadd.f32 %v4170_v20, %v11873_v50  ;;  %4854 = vmatprep.mubr.bf16.mxu0 %v13523_v1  ;;  %v10140_v50 = vld [vmem:[#allocation6 + $0xdcc] ss:$20 sps:$4 sm:$0xff]   ;;  %v10135_v20 = vld [vmem:[#allocation6 + $0xb48] ss:$20 sps:$4 sm:$0xff]  }
 0x22c   : > { %4967 = vmatprep.mubr.bf16.mxu1 %v13524_v28  ;;  %v4172_v58 = vpop.f32.mrf.mxu0 }
 0x22d   : > { %v4285_v0 = vpop.f32.mrf.mxu1  ;;  %v12001_v61 = vadd.f32 %v4283_v49, %v4171_v36  ;;  %v4173_v52 = vadd.f32 %v4172_v58, %v11876_v27  ;;  %5005 = vmatpush2.bf16.msra.mxu0 %v10123_v29  ;;  %v13526_v49 = vld [vmem:[#allocation84_spill] sm:$0xff] }
 0x22e   : > { %5118 = vmatpush2.bf16.msra.mxu1 %v10126_v3  ;;  %v4174_v63 = vpop.f32.mrf.mxu0  ;;  %5006 = vmatprep.subr.bf16.mxu0 %v10131_v25  ;;  %v10138_v27 = vld [vmem:[#allocation6 + $0xdc8] ss:$20 sps:$4 sm:$0xff]  }
 0x22f   : > { %v4287_v10 = vpop.f32.mrf.mxu1  ;;  %5119 = vmatprep.subr.bf16.mxu1 %v10134_v43  ;;  %v12004_v26 = vadd.f32 %v4285_v0, %v4173_v52  ;;  %v4175_v45 = vadd.f32 %v4174_v63, %v11881_v54  ;;  %v10141_v25 = vld [vmem:[#allocation6 + $0x268] ss:$20 sps:$4 sm:$0xff]   ;;  %v13527_v52 = vld [vmem:[#allocation85_spill] sm:$0xff] }
 0x230   : > { %v4178_v28 = vpop.f32.mrf.mxu0  ;;  %4855 = vmatmul.mubr.bf16.gmra.mxu0 %v13525_v35  ;;  %v10143_v54 = vld [vmem:[#allocation6 + $0x4e8] ss:$20 sps:$4 sm:$0xff]  }
 0x231   : > { %v4291_v1 = vpop.f32.mrf.mxu1  ;;  %4968 = vmatmul.mubr.bf16.gmra.mxu1 %v13526_v49  ;;  %v12009_v29 = vadd.f32 %v4287_v10, %v4175_v45  ;;  %v4179_v3 = vadd.f32 %v4178_v28, %v11884_v15  ;;  %5007 = vmatpush2.bf16.msra.mxu0 %v10129_v12  ;;  %v13528_v63 = vld [vmem:[#allocation86_spill] sm:$0xff] }
 0x232   : > { %5120 = vmatpush2.bf16.msra.mxu1 %v10132_v59  ;;  %v4180_v43 = vpop.f32.mrf.mxu0  ;;  %5008 = vmatprep.subr.bf16.mxu0 %v10137_v37  ;;  %v10142_v10 = vld [vmem:[#allocation6 + $0x128] ss:$20 sps:$4 sm:$0xff]   ;;  %v10145_v59 = vld [vmem:[#allocation6 + $0x240] ss:$20 sps:$4 sm:$0xff]  }
 0x233   : > { %v4293_v0 = vpop.f32.mrf.mxu1  ;;  %5121 = vmatprep.subr.bf16.mxu1 %v10140_v50  ;;  %v12012_v36 = vadd.f32 %v4291_v1, %v4179_v3  ;;  %v4181_v58 = vadd.f32 %v4180_v43, %v11889_v41  ;;  %5010 = vmatprep.mubr.bf16.mxu0 %v13527_v52  ;;  %v10144_v15 = vld [vmem:[#allocation6 + $0x3a8] ss:$20 sps:$4 sm:$0xff]   ;;  %v10147_v37 = vld [vmem:[#allocation6 + $0x4c0] ss:$20 sps:$4 sm:$0xff]  }
 0x234   : > { %5123 = vmatprep.mubr.bf16.mxu1 %v13528_v63  ;;  %v4182_v45 = vpop.f32.mrf.mxu0  ;;  %v10146_v43 = vld [vmem:[#allocation6 + $0x100] ss:$20 sps:$4 sm:$0xff]  }
 0x235   : > { %v4295_v49 = vpop.f32.mrf.mxu1  ;;  %v12017_v28 = vadd.f32 %v4293_v0, %v4181_v58  ;;  %v4183_v12 = vadd.f32 %v4182_v45, %v11892_v51  ;;  %5009 = vmatpush2.bf16.msra.mxu0 %v10135_v20  ;;  %v10148_v63 = vld [vmem:[#allocation6 + $0x380] ss:$20 sps:$4 sm:$0xff]   ;;  %v13530_v58 = vld [vmem:[#allocation88_spill] sm:$0xff] }
 0x236   : > { %5122 = vmatpush2.bf16.msra.mxu1 %v10138_v27  ;;  %v4184_v1 = vpop.f32.mrf.mxu0  ;;  %8715 = vmatprep.subr.bf16.mxu0 %v10141_v25  ;;  %v13529_v0 = vld [vmem:[#allocation87_spill] sm:$0xff]  ;;  %v10149_v51 = vld [vmem:[#allocation6 + $0x218] ss:$20 sps:$4 sm:$0xff]  }
 0x237   : > { %v4297_v50 = vpop.f32.mrf.mxu1  ;;  %8779 = vmatprep.subr.bf16.mxu1 %v10143_v54  ;;  %v12020_v41 = vadd.f32 %v4295_v49, %v4183_v12  ;;  %v4185_v3 = vadd.f32 %v4184_v1, %v11897_v17  ;;  %v10151_v20 = vld [vmem:[#allocation6 + $0x498] ss:$20 sps:$4 sm:$0xff]   ;;  %v13531_v54 = vld [vmem:[#allocation89_spill] sm:$0xff] }
 0x238   : > { %v4334_v52 = vpop.f32.mrf.mxu0  ;;  %5011 = vmatmul.mubr.bf16.vlgmr.msra.gmra.mxu0 %v13529_v0  ;;  %v13532_v17 = vld [vmem:[#allocation90_spill] sm:$0xff] }
 0x239   : > { %v4447_v35 = vpop.f32.mrf.mxu1  ;;  %5124 = vmatmul.mubr.bf16.vlgmr.msra.gmra.mxu1 %v13530_v58  ;;  %v12025_v27 = vadd.f32 %v4297_v50, %v4185_v3  ;;  %v4335_v45 = vadd.f32 %v4334_v52, %v11900_v13  ;;  %8716 = vmatpush3.bf16.msra.mxu0 %v10142_v10  ;;  %v10152_v50 = vld [vmem:[#allocation6 + $0x358] ss:$20 sps:$4 sm:$0xff]   ;;  %v10153_v52 = vld [vmem:[#allocation6 + $0x1f0] ss:$20 sps:$4 sm:$0xff]  }
 0x23a   : > { %8780 = vmatpush3.bf16.msra.mxu1 %v10144_v15  ;;  %v4336_v49 = vpop.f32.mrf.mxu0  ;;  %5020 = vmatprep.mubr.bf16.mxu0 %v13531_v54  ;;  %v10155_v10 = vld [vmem:[#allocation6 + $0x470] ss:$20 sps:$4 sm:$0xff]  }
 0x23b   : > { %v4449_v25 = vpop.f32.mrf.mxu1  ;;  %5133 = vmatprep.mubr.bf16.mxu1 %v13532_v17  ;;  %v4448_v12 = vadd.f32 %v4447_v35, %v4335_v45  ;;  %v4337_v1 = vadd.f32 %v4336_v49, %v11905_v53  ;;  %8717 = vmatprep.subr.bf16.mxu0 %v10145_v59  ;;  %v13533_v45 = vld [vmem:[#allocation91_spill] sm:$0xff]  ;;  %v13534_v49 = vld [vmem:[#allocation92_spill] sm:$0xff] }
 0x23c   : > { %8781 = vmatprep.subr.bf16.mxu1 %v10147_v37  ;;  %v4338_v58 = vpop.f32.mrf.mxu0 }
 0x23d   : > { %v4451_v0 = vpop.f32.mrf.mxu1  ;;  %v4450_v3 = vadd.f32 %v4449_v25, %v4337_v1  ;;  %v4339_v13 = vadd.f32 %v4338_v58, %v11908_v60  ;;  %8718 = vmatpush3.bf16.msra.mxu0 %v10146_v43  ;;  %10421 = vtanh.f32 %v4448_v12  ;;  %v10154_v25 = vld [vmem:[#allocation6 + $0xb0] ss:$20 sps:$4 sm:$0xff]   ;;  %v10157_v1 = vld [vmem:[#allocation6 + $0x1c8] ss:$20 sps:$4 sm:$0xff]  }
 0x23e   : > { %8782 = vmatpush3.bf16.msra.mxu1 %v10148_v63  ;;  %v4340_v15 = vpop.f32.mrf.mxu0  ;;  %8719 = vmatprep.subr.bf16.mxu0 %v10149_v51  ;;  %v10156_v60 = vld [vmem:[#allocation6 + $0x330] ss:$20 sps:$4 sm:$0xff]   ;;  %v13536_v51 = vld [vmem:[#allocation94_spill] sm:$0xff] }
 0x23f   : > { %v4453_v54 = vpop.f32.mrf.mxu1  ;;  %8783 = vmatprep.subr.bf16.mxu1 %v10151_v20  ;;  %v4452_v35 = vadd.f32 %v4451_v0, %v4339_v13  ;;  %v4341_v53 = vadd.f32 %v4340_v15, %v11913_v14  ;;  %v13535_v58 = vld [vmem:[#allocation93_spill] sm:$0xff]  ;;  %v10159_v13 = vld [vmem:[#allocation6 + $0x448] ss:$20 sps:$4 sm:$0xff]  }
 0x240   : > { %v4344_v59 = vpop.f32.mrf.mxu0  ;;  %5021 = vmatmul.mubr.bf16.gmra.mxu0 %v13533_v45 }
 0x241   : > { %v4457_v37 = vpop.f32.mrf.mxu1  ;;  %5134 = vmatmul.mubr.bf16.gmra.mxu1 %v13534_v49  ;;  %10423 = vtanh.f32 %v4452_v35  ;;  %v4454_v63 = vadd.f32 %v4453_v54, %v4341_v53  ;;  %v4345_v43 = vadd.f32 %v4344_v59, %v11916_v38  ;;  %5030 = vmatprep.mubr.bf16.mxu0 %v13535_v58  ;;  %v10158_v38 = vld [vmem:[#allocation6 + $0x88] ss:$20 sps:$4 sm:$0xff]  }
 0x242   : > { %5143 = vmatprep.mubr.bf16.mxu1 %v13536_v51  ;;  %10425 = vtanh.f32 %v4450_v3  ;;  %v4346_v0 = vpop.f32.mrf.mxu0  ;;  %8720 = vmatpush3.bf16.msra.mxu0 %v10150_v32  ;;  %v10160_v35 = vld [vmem:[#allocation6 + $0x308] ss:$20 sps:$4 sm:$0xff]   ;;  %v10161_v3 = vld [vmem:[#allocation6 + $0x1a0] ss:$20 sps:$4 sm:$0xff]  }
 0x243   : > { %v4459_v14 = vpop.f32.mrf.mxu1  ;;  %8784 = vmatpush3.bf16.msra.mxu1 %v10152_v50  ;;  %10427 = vtanh.f32 %v4454_v63  ;;  %v4458_v20 = vadd.f32 %v4457_v37, %v4345_v43  ;;  %v4347_v12 = vadd.f32 %v4346_v0, %v11921_v19  ;;  %8721 = vmatprep.subr.bf16.mxu0 %v10153_v52  ;;  %v10163_v51 = vld [vmem:[#allocation6 + $0x420] ss:$20 sps:$4 sm:$0xff]   ;;  %v13538_v63 = vld [vmem:[#allocation96_spill] sm:$0xff] }
 0x244   : > { %8785 = vmatprep.subr.bf16.mxu1 %v10155_v10  ;;  %v4348_v54 = vpop.f32.mrf.mxu0  ;;  %v13537_v37 = vld [vmem:[#allocation95_spill] sm:$0xff] }
 0x245   : > { %v4461_v15 = vpop.f32.mrf.mxu1  ;;  %v4460_v53 = vadd.f32 %v4459_v14, %v4347_v12  ;;  %v4349_v59 = vadd.f32 %v4348_v54, %v11924_v33  ;;  %10429 = vtanh.f32 %v4458_v20  ;;  %v10162_v43 = vld [vmem:[#allocation6 + $0x60] ss:$20 sps:$4 sm:$0xff]  }
 0x246   : > { %v4350_v58 = vpop.f32.mrf.mxu0  ;;  %8722 = vmatpush3.bf16.msra.mxu0 %v10154_v25  ;;  %v10164_v33 = vld [vmem:[#allocation6 + $0x2e0] ss:$20 sps:$4 sm:$0xff]  }
 0x247   : > { %v4463_v32 = vpop.f32.mrf.mxu1  ;;  %8786 = vmatpush3.bf16.msra.mxu1 %v10156_v60  ;;  %v4462_v50 = vadd.f32 %v4461_v15, %v4349_v59  ;;  %v4351_v19 = vadd.f32 %v4350_v58, %v11929_v16  ;;  %8723 = vmatprep.subr.bf16.mxu0 %v10157_v1  ;;  %v13539_v25 = vld [vmem:[#allocation97_spill] sm:$0xff]  ;;  %v13540_v60 = vld [vmem:[#allocation98_spill] sm:$0xff] }
 0x248   : > { %8787 = vmatprep.subr.bf16.mxu1 %v10159_v13  ;;  %v4354_v52 = vpop.f32.mrf.mxu0  ;;  %5031 = vmatmul.mubr.bf16.gmra.mxu0 %v13537_v37  ;;  %v10165_v1 = vld [vmem:[#allocation6 + $0x178] ss:$20 sps:$4 sm:$0xff]  }
 0x249   : > { %v4467_v10 = vpop.f32.mrf.mxu1  ;;  %5144 = vmatmul.mubr.bf16.gmra.mxu1 %v13538_v63  ;;  %10431 = vtanh.f32 %v4462_v50  ;;  %v4464_v0 = vadd.f32 %v4463_v32, %v4351_v19  ;;  %v4355_v14 = vadd.f32 %v4354_v52, %v11932_v34  ;;  %5040 = vmatprep.mubr.bf16.mxu0 %v13539_v25  ;;  %v10167_v13 = vld [vmem:[#allocation6 + $0x3f8] ss:$20 sps:$4 sm:$0xff]   ;;  %v10169_v19 = vld [vmem:[#allocation6 + $0x150] ss:$20 sps:$4 sm:$0xff]  }
 0x24a   : > { %5153 = vmatprep.mubr.bf16.mxu1 %v13540_v60  ;;  %10433 = vtanh.f32 %v4460_v53  ;;  %v4356_v16 = vpop.f32.mrf.mxu0  ;;  %8724 = vmatpush3.bf16.msra.mxu0 %v10158_v38  ;;  %v10166_v34 = vld [vmem:[#allocation6 + $0x38] ss:$20 sps:$4 sm:$0xff]   ;;  %v10422_v32 = vpop.eup %10421  ;;  %v10171_v52 = vld [vmem:[#allocation6 + $0x3d0] ss:$20 sps:$4 sm:$0xff]  }
 0x24b   : > { %v4469_v58 = vpop.f32.mrf.mxu1  ;;  %8788 = vmatpush3.bf16.msra.mxu1 %v10160_v35  ;;  %10435 = vtanh.f32 %v4464_v0  ;;  %v4468_v20 = vadd.f32 %v4467_v10, %v4355_v14  ;;  %v4357_v12 = vadd.f32 %v4356_v16, %v11937_v46  ;;  %8725 = vmatprep.subr.bf16.mxu0 %v10161_v3  ;;  %v10168_v59 = vld [vmem:[#allocation6 + $0x2b8] ss:$20 sps:$4 sm:$0xff]   ;;  %v10172_v60 = vld [vmem:[#allocation6 + $0x290] ss:$20 sps:$4 sm:$0xff]  }
 0x24c   : > { %8789 = vmatprep.subr.bf16.mxu1 %v10163_v51  ;;  %v4358_v54 = vpop.f32.mrf.mxu0 }
 0x24d   : > { %v4471_v15 = vpop.f32.mrf.mxu1  ;;  %v4470_v50 = vadd.f32 %v4469_v58, %v4357_v12  ;;  %v4359_v53 = vadd.f32 %v4358_v54, %v11940_v4  ;;  %10437 = vtanh.f32 %v4468_v20  ;;  %v13542_v4 = vld [vmem:[#allocation99_spill] sm:$0xff]  ;;  %v13543_v12 = vld [vmem:[#allocation100_spill] sm:$0xff] }
 0x24e   : > { %v10424_v38 = vpop.eup %10423  ;;  %v4360_v35 = vpop.f32.mrf.mxu0  ;;  %8726 = vmatpush3.bf16.msra.mxu0 %v10162_v43  ;;  %v10170_v54 = vld [vmem:[#allocation6 + $0x10] ss:$20 sps:$4 sm:$0xff]  }
 0x24f   : > { %v4473_v0 = vpop.f32.mrf.mxu1  ;;  %8790 = vmatpush3.bf16.msra.mxu1 %v10164_v33  ;;  %v10426_v46 = vpop.eup %10425  ;;  %v12048_v3 = vpack.c.bf16 %v10424_v38, %v10422_v32  ;;  %v4472_v51 = vadd.f32 %v4471_v15, %v4359_v53  ;;  %v4361_v10 = vadd.f32 %v4360_v35, %v11945_v6  ;;  %8727 = vmatprep.subr.bf16.mxu0 %v10165_v1  ;;  %v13544_v32 = vld [vmem:[#allocation101_spill] sm:$0xff]  ;;  %v13545_v15 = vld [vmem:[#allocation102_spill] sm:$0xff] }
 0x250   : > { %8791 = vmatprep.subr.bf16.mxu1 %v10167_v13  ;;  %v10428_v14 = vpop.eup %10427  ;;  %v4364_v16 = vpop.f32.mrf.mxu0  ;;  %5041 = vmatmul.mubr.bf16.gmra.mxu0 %v13542_v4  ;;  %v10173_v38 = vld [vmem:[#allocation6 + $0x768] ss:$20 sps:$4 sm:$0xff]  }
 0x251   : > { %13541 = vst [vmem:[#allocation90_spill] sm:$0xff] %v12048_v3  ;;  %v4477_v58 = vpop.f32.mrf.mxu1  ;;  %5154 = vmatmul.mubr.bf16.gmra.mxu1 %v13543_v12  ;;  %10439 = vtanh.f32 %v4472_v51  ;;  %v4474_v43 = vadd.f32 %v4473_v0, %v4361_v10  ;;  %v4365_v33 = vadd.f32 %v4364_v16, %v11948_v5  ;;  %5050 = vmatprep.mubr.bf16.mxu0 %v13544_v32  ;;  %v10175_v35 = vld [vmem:[#allocation6 + $0x9e8] ss:$20 sps:$4 sm:$0xff]  }
 0x252   : > { %5163 = vmatprep.mubr.bf16.mxu1 %v13545_v15  ;;  %v12056_v6 = vpack.c.bf16 %v10428_v14, %v10426_v46  ;;  %10441 = vtanh.f32 %v4470_v50  ;;  %v4366_v20 = vpop.f32.mrf.mxu0  ;;  %8728 = vmatpush3.bf16.msra.mxu0 %v10166_v34  ;;  %v10430_v51 = vpop.eup %10429 }
 0x253   : > { %v4479_v1 = vpop.f32.mrf.mxu1  ;;  %8792 = vmatpush3.bf16.msra.mxu1 %v10168_v59  ;;  %10443 = vtanh.f32 %v4474_v43  ;;  %v4478_v13 = vadd.f32 %v4477_v58, %v4365_v33  ;;  %v4367_v53 = vadd.f32 %v4366_v20, %v11953_v23  ;;  %8729 = vmatprep.subr.bf16.mxu0 %v10169_v19  ;;  %v13548_v33 = vld [vmem:[#allocation103_spill] sm:$0xff] }
 0x254   : > { %13546 = vst [vmem:[#allocation91_spill] sm:$0xff] %v12056_v6  ;;  %8793 = vmatprep.subr.bf16.mxu1 %v10171_v52  ;;  %v4368_v5 = vpop.f32.mrf.mxu0 }
 0x255   : > { %v4481_v0 = vpop.f32.mrf.mxu1  ;;  %v4480_v10 = vadd.f32 %v4479_v1, %v4367_v53  ;;  %v4369_v46 = vadd.f32 %v4368_v5, %v11956_v24  ;;  %10445 = vtanh.f32 %v4478_v13  ;;  %v13549_v24 = vld [vmem:[#allocation104_spill] sm:$0xff]  ;;  %v13551_v1 = vld [vmem:[#allocation106_spill] sm:$0xff] }
 0x256   : > { %v10432_v14 = vpop.eup %10431  ;;  %v4370_v50 = vpop.f32.mrf.mxu0  ;;  %8730 = vmatpush3.bf16.msra.mxu0 %v10170_v54  ;;  %v13550_v54 = vld [vmem:[#allocation105_spill] sm:$0xff] }
 0x257   : > { %v4483_v16 = vpop.f32.mrf.mxu1  ;;  %8794 = vmatpush3.bf16.msra.mxu1 %v10172_v60  ;;  %v10434_v34 = vpop.eup %10433  ;;  %v4482_v59 = vadd.f32 %v4481_v0, %v4369_v46  ;;  %v4371_v58 = vadd.f32 %v4370_v50, %v11961_v48  ;;  %8843 = vmatprep.subr.bf16.mxu0 %v10173_v38  ;;  %v12061_v23 = vpack.c.bf16 %v10432_v14, %v10430_v51 }
 0x258   : > { %8907 = vmatprep.subr.bf16.mxu1 %v10175_v35  ;;  %v10436_v19 = vpop.eup %10435  ;;  %v4374_v52 = vpop.f32.mrf.mxu0  ;;  %5051 = vmatmul.mubr.bf16.gmra.mxu0 %v13548_v33  ;;  %v10211_v33 = vld [vmem:[#allocation6 + $0xec0] ss:$20 sps:$4 sm:$0xff]  }
 0x259   : > { %13547 = vst [vmem:[#allocation92_spill] sm:$0xff] %v12061_v23  ;;  %v4487_v43 = vpop.f32.mrf.mxu1  ;;  %5164 = vmatmul.mubr.bf16.gmra.mxu1 %v13549_v24  ;;  %10447 = vtanh.f32 %v4482_v59  ;;  %v4484_v20 = vadd.f32 %v4483_v16, %v4371_v58  ;;  %v4375_v60 = vadd.f32 %v4374_v52, %v11964_v7  ;;  %5060 = vmatprep.mubr.bf16.mxu0 %v13550_v54  ;;  %v13581_v23 = vld [vmem:[#allocation37_spill] sm:$0xff] }
 0x25a   : > { %5173 = vmatprep.mubr.bf16.mxu1 %v13551_v1  ;;  %v12068_v48 = vpack.c.bf16 %v10436_v19, %v10434_v34  ;;  %10449 = vtanh.f32 %v4480_v10  ;;  %v4376_v53 = vpop.f32.mrf.mxu0  ;;  %v10438_v51 = vpop.eup %10437 }
 0x25b   : > { %v4489_v38 = vpop.f32.mrf.mxu1  ;;  %10451 = vtanh.f32 %v4484_v20  ;;  %v4488_v13 = vadd.f32 %v4487_v43, %v4375_v60  ;;  %v4377_v35 = vadd.f32 %v4376_v53, %v11969_v47  ;;  %v13554_v47 = vld [vmem:[#allocation107_spill] sm:$0xff]  ;;  %v13555_v20 = vld [vmem:[#allocation108_spill] sm:$0xff]  ;;  %v13556_v53 = vld [vmem:[#allocation109_spill] sm:$0xff] }
 0x25c   : > { %13552 = vst [vmem:[#allocation95_spill] sm:$0xff] %v12068_v48  ;;  %v4378_v5 = vpop.f32.mrf.mxu0 }
 0x25d   : > { %v4491_v0 = vpop.f32.mrf.mxu1  ;;  %v4490_v46 = vadd.f32 %v4489_v38, %v4377_v35  ;;  %v4379_v14 = vadd.f32 %v4378_v5, %v11972_v44  ;;  %10453 = vtanh.f32 %v4488_v13  ;;  %v13557_v38 = vld [vmem:[#allocation110_spill] sm:$0xff] }
 0x25e   : > { %v10440_v7 = vpop.eup %10439  ;;  %v4380_v50 = vpop.f32.mrf.mxu0 }
 0x25f   : > { %v4493_v16 = vpop.f32.mrf.mxu1  ;;  %v10442_v59 = vpop.eup %10441  ;;  %v4492_v58 = vadd.f32 %v4491_v0, %v4379_v14  ;;  %v4381_v34 = vadd.f32 %v4380_v50, %v11977_v18  ;;  %v12073_v10 = vpack.c.bf16 %v10440_v7, %v10438_v51 }
 0x260   : > { %v10444_v19 = vpop.eup %10443  ;;  %v4384_v52 = vpop.f32.mrf.mxu0  ;;  %5061 = vmatmul.mubr.bf16.gmra.mxu0 %v13554_v47 }
 0x261   : > { %13553 = vst [vmem:[#allocation96_spill] sm:$0xff] %v12073_v10  ;;  %v4497_v43 = vpop.f32.mrf.mxu1  ;;  %5174 = vmatmul.mubr.bf16.gmra.mxu1 %v13555_v20  ;;  %10455 = vtanh.f32 %v4492_v58  ;;  %v4494_v60 = vadd.f32 %v4493_v16, %v4381_v34  ;;  %v4385_v44 = vadd.f32 %v4384_v52, %v11980_v8  ;;  %5070 = vmatprep.mubr.bf16.mxu0 %v13556_v53  ;;  %v13602_v20 = vld [vmem:[#allocation57_spill] sm:$0xff] }
 0x262   : > { %5183 = vmatprep.mubr.bf16.mxu1 %v13557_v38  ;;  %v12080_v35 = vpack.c.bf16 %v10444_v19, %v10442_v59  ;;  %10457 = vtanh.f32 %v4490_v46  ;;  %v4386_v18 = vpop.f32.mrf.mxu0  ;;  %v10446_v7 = vpop.eup %10445 }
 0x263   : > { %v4499_v5 = vpop.f32.mrf.mxu1  ;;  %10459 = vtanh.f32 %v4494_v60  ;;  %v4498_v13 = vadd.f32 %v4497_v43, %v4385_v44  ;;  %v4387_v0 = vadd.f32 %v4386_v18, %v11985_v42 }
 0x264   : > { %13558 = vst [vmem:[#allocation97_spill] sm:$0xff] %v12080_v35  ;;  %v4388_v51 = vpop.f32.mrf.mxu0 }
 0x265   : > { %v4501_v14 = vpop.f32.mrf.mxu1  ;;  %v4500_v50 = vadd.f32 %v4499_v5, %v4387_v0  ;;  %v4389_v16 = vadd.f32 %v4388_v51, %v11988_v2  ;;  %10461 = vtanh.f32 %v4498_v13 }
 0x266   : > { %v10448_v8 = vpop.eup %10447  ;;  %v4390_v58 = vpop.f32.mrf.mxu0 }
 0x267   : > { %v4503_v34 = vpop.f32.mrf.mxu1  ;;  %v10450_v52 = vpop.eup %10449  ;;  %v4502_v10 = vadd.f32 %v4501_v14, %v4389_v16  ;;  %v4391_v59 = vadd.f32 %v4390_v58, %v11993_v11  ;;  %v12085_v46 = vpack.c.bf16 %v10448_v8, %v10446_v7 }
 0x268   : > { %v10452_v19 = vpop.eup %10451  ;;  %v4394_v43 = vpop.f32.mrf.mxu0  ;;  %5071 = vmatmul.mubr.bf16.gmra.mxu0 %v11731_v62 }
 0x269   : > { %13559 = vst [vmem:[#allocation99_spill] sm:$0xff] %v12085_v46  ;;  %v4507_v60 = vpop.f32.mrf.mxu1  ;;  %5184 = vmatmul.mubr.bf16.gmra.mxu1 %v11733_v30  ;;  %10463 = vtanh.f32 %v4502_v10  ;;  %v4504_v42 = vadd.f32 %v4503_v34, %v4391_v59  ;;  %v4395_v2 = vadd.f32 %v4394_v43, %v11996_v55  ;;  %5080 = vmatprep.mubr.bf16.mxu0 %v11736_v31  ;;  %v13561_v55 = vld [vmem:[#allocation117_spill] sm:$0xff] }
 0x26a   : > { %5193 = vmatprep.mubr.bf16.mxu1 %v11738_v9  ;;  %v12092_v44 = vpack.c.bf16 %v10452_v19, %v10450_v52  ;;  %10465 = vtanh.f32 %v4500_v50  ;;  %v4396_v11 = vpop.f32.mrf.mxu0  ;;  %v10454_v14 = vpop.eup %10453  ;;  %v13354_v16 = vsub.s32 2, %v13561_v55  ;;  %v13569_v46 = vld [vmem:[#allocation29_spill] sm:$0xff] }
 0x26b   : > { %v4509_v18 = vpop.f32.mrf.mxu1  ;;  %10467 = vtanh.f32 %v4504_v42  ;;  %v4508_v5 = vadd.f32 %v4507_v60, %v4395_v2  ;;  %v4397_v13 = vadd.f32 %v4396_v11, %v12001_v61  ;;  %v13563_v42 = vld [vmem:[#allocation115_spill] sm:$0xff]  ;;  %v13564_v2 = vld [vmem:[#allocation116_spill] sm:$0xff]  ;;  %v13598_v30 = vld [vmem:[#allocation53_spill] sm:$0xff] }
 0x26c   : > { %13560 = vst [vmem:[#allocation100_spill] sm:$0xff] %v12092_v44  ;;  %v4398_v0 = vpop.f32.mrf.mxu0  ;;  %v13570_v44 = vld [vmem:[#allocation30_spill] sm:$0xff] }
 0x26d   : > { %v4511_v51 = vpop.f32.mrf.mxu1  ;;  %v4510_v10 = vadd.f32 %v4509_v18, %v4397_v13  ;;  %v4399_v7 = vadd.f32 %v4398_v0, %v12004_v26  ;;  %10469 = vtanh.f32 %v4508_v5  ;;  %v13565_v18 = vld [vmem:[#allocation27_spill] sm:$0xff]  ;;  %v13566_v13 = vld [vmem:[#allocation28_spill] sm:$0xff]  ;;  %v1341_v5 = vsub.s32 3, %v13561_v55 }
 0x26e   : > { %v10456_v8 = vpop.eup %10455  ;;  %v4400_v58 = vpop.f32.mrf.mxu0 }
 0x26f   : > { %v4513_v34 = vpop.f32.mrf.mxu1  ;;  %v10458_v52 = vpop.eup %10457  ;;  %v4512_v59 = vadd.f32 %v4511_v51, %v4399_v7  ;;  %v4401_v50 = vadd.f32 %v4400_v58, %v12009_v29  ;;  %v12098_v19 = vpack.c.bf16 %v10456_v8, %v10454_v14  ;;  %v10174_v8 = vld [vmem:[#allocation6 + $0x628] ss:$20 sps:$4 sm:$0xff]  }
 0x270   : > { %v10460_v43 = vpop.eup %10459  ;;  %v4404_v61 = vpop.f32.mrf.mxu0  ;;  %5081 = vmatmul.mubr.bf16.gmra.mxu0 %v13563_v42  ;;  %v10176_v58 = vld [vmem:[#allocation6 + $0x8a8] ss:$20 sps:$4 sm:$0xff]  }
 0x271   : > { %13562 = vst [vmem:[#allocation101_spill] sm:$0xff] %v12098_v19  ;;  %v4517_v60 = vpop.f32.mrf.mxu1  ;;  %5194 = vmatmul.mubr.bf16.gmra.mxu1 %v13564_v2  ;;  %10471 = vtanh.f32 %v4512_v59  ;;  %v4514_v26 = vadd.f32 %v4513_v34, %v4401_v50  ;;  %v4405_v11 = vadd.f32 %v4404_v61, %v12012_v36  ;;  %5236 = vmatprep.mubr.bf16.mxu0 %v13565_v18  ;;  %v10709_v18 = vld [vmem:[#allocation8] sm:$0x1f] }
 0x272   : > { %5333 = vmatprep.mubr.bf16.mxu1 %v13566_v13  ;;  %v12105_v0 = vpack.c.bf16 %v10460_v43, %v10458_v52  ;;  %10473 = vtanh.f32 %v4510_v10  ;;  %v4406_v29 = vpop.f32.mrf.mxu0  ;;  %v10462_v36 = vpop.eup %10461  ;;  %v12112_v10 = vrot.slane %v10709_v18, %v13354_v16  ;;  %v10178_v19 = vld [vmem:[#allocation6 + $0x600] ss:$20 sps:$4 sm:$0xff]  }
 0x273   : > { %v4519_v51 = vpop.f32.mrf.mxu1  ;;  %10475 = vtanh.f32 %v4514_v26  ;;  %v4518_v14 = vadd.f32 %v4517_v60, %v4405_v11  ;;  %v4407_v7 = vadd.f32 %v4406_v29, %v12017_v28  ;;  %v10177_v26 = vld [vmem:[#allocation6 + $0x740] ss:$20 sps:$4 sm:$0xff]   ;;  %v12115_v29 = vrot.slane %v10709_v18, %v1341_v5  ;;  %v10181_v18 = vld [vmem:[#allocation6 + $0x718] ss:$20 sps:$4 sm:$0xff]  }
 0x274   : > { %13567 = vst [vmem:[#allocation102_spill] sm:$0xff] %v12105_v0  ;;  %v4408_v34 = vpop.f32.mrf.mxu0  ;;  %v10179_v0 = vld [vmem:[#allocation6 + $0x9c0] ss:$20 sps:$4 sm:$0xff]  }
 0x275   : > { %v4521_v59 = vpop.f32.mrf.mxu1  ;;  %v4520_v50 = vadd.f32 %v4519_v51, %v4407_v7  ;;  %v4409_v61 = vadd.f32 %v4408_v34, %v12020_v41  ;;  %v10180_v51 = vld [vmem:[#allocation6 + $0x880] ss:$20 sps:$4 sm:$0xff]   ;;  %10477 = vtanh.f32 %v4518_v14  ;;  %v13573_v14 = vld [vmem:[#allocation32_spill] sm:$0xff] }
 0x276   : > { %v10464_v52 = vpop.eup %10463  ;;  %v4410_v43 = vpop.f32.mrf.mxu0  ;;  %v13594_v2 = vld [vmem:[#allocation49_spill] sm:$0xff] }
 0x277   : > { %v4523_v13 = vpop.f32.mrf.mxu1  ;;  %v10466_v60 = vpop.eup %10465  ;;  %v4522_v11 = vadd.f32 %v4521_v59, %v4409_v61  ;;  %v4411_v28 = vadd.f32 %v4410_v43, %v12025_v27  ;;  %v12117_v7 = vpack.c.bf16 %v10464_v52, %v10462_v36  ;;  %v13572_v61 = vld [vmem:[#allocation31_spill] sm:$0xff]  ;;  %v10183_v52 = vld [vmem:[#allocation6 + $0x998] ss:$20 sps:$4 sm:$0xff]  }
 0x278   : > { %v10468_v41 = vpop.eup %10467  ;;  %v4560_v34 = vpop.f32.mrf.mxu0  ;;  %5237 = vmatmul.mubr.bf16.vlgmr.msra.gmra.mxu0 %v13569_v46 }
 0x279   : > { %13568 = vst [vmem:[#allocation27_spill] sm:$0xff] %v12117_v7  ;;  %v4673_v16 = vpop.f32.mrf.mxu1  ;;  %5334 = vmatmul.mubr.bf16.vlgmr.msra.gmra.mxu1 %v13570_v44  ;;  %10479 = vtanh.f32 %v4522_v11  ;;  %v4524_v35 = vadd.f32 %v4523_v13, %v4411_v28  ;;  %v4561_v59 = vadd.f32 %v4560_v34, %v12112_v10  ;;  %8844 = vmatpush3.bf16.msra.mxu0 %v10174_v8  ;;  %v10195_v7 = vld [vmem:[#allocation6 + $0x920] ss:$20 sps:$4 sm:$0xff]  }
 0x27a   : > { %8908 = vmatpush3.bf16.msra.mxu1 %v10176_v58  ;;  %v12122_v27 = vpack.c.bf16 %v10468_v41, %v10466_v60  ;;  %10481 = vtanh.f32 %v4520_v50  ;;  %v4562_v5 = vpop.f32.mrf.mxu0  ;;  %5244 = vmatprep.mubr.bf16.mxu0 %v13572_v61  ;;  %v10470_v43 = vpop.eup %10469 }
 0x27b   : > { %v4675_v36 = vpop.f32.mrf.mxu1  ;;  %5341 = vmatprep.mubr.bf16.mxu1 %v13573_v14  ;;  %10483 = vtanh.f32 %v4524_v35  ;;  %v12126_v46 = vadd.f32 %v4673_v16, %v4561_v59  ;;  %v4563_v44 = vadd.f32 %v4562_v5, %v12115_v29  ;;  %8845 = vmatprep.subr.bf16.mxu0 %v10177_v26  ;;  %v10182_v35 = vld [vmem:[#allocation6 + $0x5d8] ss:$20 sps:$4 sm:$0xff]   ;;  %v10185_v26 = vld [vmem:[#allocation6 + $0x6f0] ss:$20 sps:$4 sm:$0xff]  }
 0x27c   : > { %13571 = vst [vmem:[#allocation28_spill] sm:$0xff] %v12122_v27  ;;  %8909 = vmatprep.subr.bf16.mxu1 %v10179_v0  ;;  %v4564_v8 = vpop.f32.mrf.mxu0  ;;  %v10184_v16 = vld [vmem:[#allocation6 + $0x858] ss:$20 sps:$4 sm:$0xff]   ;;  %v10187_v59 = vld [vmem:[#allocation6 + $0x970] ss:$20 sps:$4 sm:$0xff]  }
 0x27d   : > { %v4677_v58 = vpop.f32.mrf.mxu1  ;;  %v12129_v13 = vadd.f32 %v4675_v36, %v4563_v44  ;;  %v4565_v50 = vadd.f32 %v4564_v8, %v12112_v10  ;;  %8846 = vmatpush3.bf16.msra.mxu0 %v10178_v19  ;;  %v13576_v14 = vld [vmem:[#allocation34_spill] sm:$0xff]  ;;  %v13577_v44 = vld [vmem:[#allocation35_spill] sm:$0xff]  ;;  %v13578_v8 = vld [vmem:[#allocation36_spill] sm:$0xff] }
 0x27e   : > { %8910 = vmatpush3.bf16.msra.mxu1 %v10180_v51  ;;  %v10472_v60 = vpop.eup %10471  ;;  %v4566_v11 = vpop.f32.mrf.mxu0  ;;  %8847 = vmatprep.subr.bf16.mxu0 %v10181_v18  ;;  %v13575_v51 = vld [vmem:[#allocation33_spill] sm:$0xff] }
 0x27f   : > { %v4679_v28 = vpop.f32.mrf.mxu1  ;;  %8911 = vmatprep.subr.bf16.mxu1 %v10183_v52  ;;  %v10474_v41 = vpop.eup %10473  ;;  %v12132_v34 = vadd.f32 %v4677_v58, %v4565_v50  ;;  %v4567_v0 = vadd.f32 %v4566_v11, %v12115_v29  ;;  %v12135_v5 = vpack.c.bf16 %v10472_v60, %v10470_v43  ;;  %v10186_v60 = vld [vmem:[#allocation6 + $0x5b0] ss:$20 sps:$4 sm:$0xff]  }
 0x280   : > { %v10476_v36 = vpop.eup %10475  ;;  %v4570_v61 = vpop.f32.mrf.mxu0  ;;  %5245 = vmatmul.mubr.bf16.gmra.mxu0 %v13575_v51  ;;  %v10188_v11 = vld [vmem:[#allocation6 + $0x830] ss:$20 sps:$4 sm:$0xff]  }
 0x281   : > { %13574 = vst [vmem:[#allocation29_spill] sm:$0xff] %v12135_v5  ;;  %v4683_v19 = vpop.f32.mrf.mxu1  ;;  %5342 = vmatmul.mubr.bf16.gmra.mxu1 %v13576_v14  ;;  %v12139_v18 = vadd.f32 %v4679_v28, %v4567_v0  ;;  %v4571_v52 = vadd.f32 %v4570_v61, %v12112_v10  ;;  %5252 = vmatprep.mubr.bf16.mxu0 %v13577_v44  ;;  %v10189_v28 = vld [vmem:[#allocation6 + $0x6c8] ss:$20 sps:$4 sm:$0xff]  }
 0x282   : > { %5349 = vmatprep.mubr.bf16.mxu1 %v13578_v8  ;;  %v12144_v58 = vpack.c.bf16 %v10476_v36, %v10474_v41  ;;  %v4572_v50 = vpop.f32.mrf.mxu0  ;;  %8848 = vmatpush3.bf16.msra.mxu0 %v10182_v35  ;;  %v10191_v0 = vld [vmem:[#allocation6 + $0x948] ss:$20 sps:$4 sm:$0xff]   ;;  %v10478_v44 = vpop.eup %10477 }
 0x283   : > { %v4685_v43 = vpop.f32.mrf.mxu1  ;;  %8912 = vmatpush3.bf16.msra.mxu1 %v10184_v16  ;;  %v12146_v5 = vadd.f32 %v4683_v19, %v4571_v52  ;;  %v4573_v51 = vadd.f32 %v4572_v50, %v12115_v29  ;;  %8849 = vmatprep.subr.bf16.mxu0 %v10185_v26  ;;  %v10190_v19 = vld [vmem:[#allocation6 + $0x588] ss:$20 sps:$4 sm:$0xff]  }
 0x284   : > { %13579 = vst [vmem:[#allocation30_spill] sm:$0xff] %v12144_v58  ;;  %8913 = vmatprep.subr.bf16.mxu1 %v10187_v59  ;;  %v4574_v61 = vpop.f32.mrf.mxu0  ;;  %v10192_v52 = vld [vmem:[#allocation6 + $0x808] ss:$20 sps:$4 sm:$0xff]   ;;  %v10193_v59 = vld [vmem:[#allocation6 + $0x6a0] ss:$20 sps:$4 sm:$0xff]  }
 0x285   : > { %v4687_v14 = vpop.f32.mrf.mxu1  ;;  %v12149_v8 = vadd.f32 %v4685_v43, %v4573_v51  ;;  %v4575_v41 = vadd.f32 %v4574_v61, %v12112_v10 }
 0x286   : > { %v10480_v36 = vpop.eup %10479  ;;  %v4576_v35 = vpop.f32.mrf.mxu0  ;;  %8850 = vmatpush3.bf16.msra.mxu0 %v10186_v60  ;;  %v13582_v60 = vld [vmem:[#allocation38_spill] sm:$0xff] }
 0x287   : > { %v4689_v16 = vpop.f32.mrf.mxu1  ;;  %8914 = vmatpush3.bf16.msra.mxu1 %v10188_v11  ;;  %v10482_v58 = vpop.eup %10481  ;;  %v12152_v50 = vadd.f32 %v4687_v14, %v4575_v41  ;;  %v4577_v26 = vadd.f32 %v4576_v35, %v12115_v29  ;;  %8851 = vmatprep.subr.bf16.mxu0 %v10189_v28  ;;  %v12155_v43 = vpack.c.bf16 %v10480_v36, %v10478_v44  ;;  %v13583_v41 = vld [vmem:[#allocation39_spill] sm:$0xff]  ;;  %v13584_v35 = vld [vmem:[#allocation40_spill] sm:$0xff] }
 0x288   : > { %8915 = vmatprep.subr.bf16.mxu1 %v10191_v0  ;;  %v10484_v51 = vpop.eup %10483  ;;  %v4580_v61 = vpop.f32.mrf.mxu0  ;;  %5253 = vmatmul.mubr.bf16.gmra.mxu0 %v13581_v23  ;;  %v10194_v36 = vld [vmem:[#allocation6 + $0x560] ss:$20 sps:$4 sm:$0xff]  }
 0x289   : > { %13580 = vst [vmem:[#allocation31_spill] sm:$0xff] %v12155_v43  ;;  %v4693_v27 = vpop.f32.mrf.mxu1  ;;  %5350 = vmatmul.mubr.bf16.gmra.mxu1 %v13582_v60  ;;  %v12159_v11 = vadd.f32 %v4689_v16, %v4577_v26  ;;  %v4581_v14 = vadd.f32 %v4580_v61, %v12112_v10  ;;  %5260 = vmatprep.mubr.bf16.mxu0 %v13583_v41  ;;  %v10196_v43 = vld [vmem:[#allocation6 + $0x7e0] ss:$20 sps:$4 sm:$0xff]   ;;  %v10197_v16 = vld [vmem:[#allocation6 + $0x678] ss:$20 sps:$4 sm:$0xff]  }
 0x28a   : > { %5357 = vmatprep.mubr.bf16.mxu1 %v13584_v35  ;;  %v12164_v28 = vpack.c.bf16 %v10484_v51, %v10482_v58  ;;  %v4582_v0 = vpop.f32.mrf.mxu0  ;;  %8852 = vmatpush3.bf16.msra.mxu0 %v10190_v19  ;;  %v10199_v26 = vld [vmem:[#allocation6 + $0x8f8] ss:$20 sps:$4 sm:$0xff]  }
 0x28b   : > { %v4695_v44 = vpop.f32.mrf.mxu1  ;;  %8916 = vmatpush3.bf16.msra.mxu1 %v10192_v52  ;;  %v12166_v48 = vadd.f32 %v4693_v27, %v4581_v14  ;;  %v4583_v23 = vadd.f32 %v4582_v0, %v12115_v29  ;;  %8853 = vmatprep.subr.bf16.mxu0 %v10193_v59  ;;  %v10198_v19 = vld [vmem:[#allocation6 + $0x538] ss:$20 sps:$4 sm:$0xff]   ;;  %v10203_v59 = vld [vmem:[#allocation6 + $0x8d0] ss:$20 sps:$4 sm:$0xff]  }
 0x28c   : > { %13585 = vst [vmem:[#allocation32_spill] sm:$0xff] %v12164_v28  ;;  %8917 = vmatprep.subr.bf16.mxu1 %v10195_v7  ;;  %v4584_v61 = vpop.f32.mrf.mxu0  ;;  %v10200_v52 = vld [vmem:[#allocation6 + $0x7b8] ss:$20 sps:$4 sm:$0xff]   ;;  %v10201_v7 = vld [vmem:[#allocation6 + $0x650] ss:$20 sps:$4 sm:$0xff]  }
 0x28d   : > { %v4697_v60 = vpop.f32.mrf.mxu1  ;;  %v12169_v41 = vadd.f32 %v4695_v44, %v4583_v23  ;;  %v4585_v58 = vadd.f32 %v4584_v61, %v12112_v10  ;;  %v13586_v44 = vld [vmem:[#allocation41_spill] sm:$0xff]  ;;  %v13587_v23 = vld [vmem:[#allocation42_spill] sm:$0xff] }
 0x28e   : > { %v4586_v51 = vpop.f32.mrf.mxu0  ;;  %8854 = vmatpush3.bf16.msra.mxu0 %v10194_v36  ;;  %v13588_v36 = vld [vmem:[#allocation43_spill] sm:$0xff] }
 0x28f   : > { %v4699_v35 = vpop.f32.mrf.mxu1  ;;  %8918 = vmatpush3.bf16.msra.mxu1 %v10196_v43  ;;  %v12172_v27 = vadd.f32 %v4697_v60, %v4585_v58  ;;  %v4587_v14 = vadd.f32 %v4586_v51, %v12115_v29  ;;  %8855 = vmatprep.subr.bf16.mxu0 %v10197_v16  ;;  %v13589_v60 = vld [vmem:[#allocation44_spill] sm:$0xff]  ;;  %v10202_v16 = vld [vmem:[#allocation6 + $0x510] ss:$20 sps:$4 sm:$0xff]  }
 0x290   : > { %8919 = vmatprep.subr.bf16.mxu1 %v10199_v26  ;;  %v4590_v0 = vpop.f32.mrf.mxu0  ;;  %5261 = vmatmul.mubr.bf16.gmra.mxu0 %v13586_v44  ;;  %v10204_v26 = vld [vmem:[#allocation6 + $0x790] ss:$20 sps:$4 sm:$0xff]  }
 0x291   : > { %v4703_v28 = vpop.f32.mrf.mxu1  ;;  %5358 = vmatmul.mubr.bf16.gmra.mxu1 %v13587_v23  ;;  %v12177_v61 = vadd.f32 %v4699_v35, %v4587_v14  ;;  %v4591_v43 = vadd.f32 %v4590_v0, %v12112_v10  ;;  %5268 = vmatprep.mubr.bf16.mxu0 %v13588_v36  ;;  %v10205_v35 = vld [vmem:[#allocation6 + $0xc68] ss:$20 sps:$4 sm:$0xff]  }
 0x292   : > { %5365 = vmatprep.mubr.bf16.mxu1 %v13589_v60  ;;  %v4592_v58 = vpop.f32.mrf.mxu0  ;;  %8856 = vmatpush3.bf16.msra.mxu0 %v10198_v19  ;;  %v10207_v14 = vld [vmem:[#allocation6 + $0xee8] ss:$20 sps:$4 sm:$0xff]  }
 0x293   : > { %v4705_v51 = vpop.f32.mrf.mxu1  ;;  %8920 = vmatpush3.bf16.msra.mxu1 %v10200_v52  ;;  %v12182_v3 = vadd.f32 %v4703_v28, %v4591_v43  ;;  %v4593_v44 = vadd.f32 %v4592_v58, %v12115_v29  ;;  %8857 = vmatprep.subr.bf16.mxu0 %v10201_v7  ;;  %v13591_v43 = vld [vmem:[#allocation46_spill] sm:$0xff] }
 0x294   : > { %8921 = vmatprep.subr.bf16.mxu1 %v10203_v59  ;;  %v4594_v23 = vpop.f32.mrf.mxu0  ;;  %v13590_v59 = vld [vmem:[#allocation45_spill] sm:$0xff] }
 0x295   : > { %v4707_v0 = vpop.f32.mrf.mxu1  ;;  %v12185_v55 = vadd.f32 %v4705_v51, %v4593_v44  ;;  %v4595_v36 = vadd.f32 %v4594_v23, %v12112_v10  ;;  %v13592_v44 = vld [vmem:[#allocation47_spill] sm:$0xff] }
 0x296   : > { %v4596_v60 = vpop.f32.mrf.mxu0  ;;  %8858 = vmatpush3.bf16.msra.mxu0 %v10202_v16  ;;  %v13593_v16 = vld [vmem:[#allocation48_spill] sm:$0xff] }
 0x297   : > { %v4709_v6 = vpop.f32.mrf.mxu1  ;;  %8922 = vmatpush3.bf16.msra.mxu1 %v10204_v26  ;;  %v12188_v19 = vadd.f32 %v4707_v0, %v4595_v36  ;;  %v4597_v28 = vadd.f32 %v4596_v60, %v12115_v29  ;;  %8971 = vmatprep.subr.bf16.mxu0 %v10205_v35 }
 0x298   : > { %9035 = vmatprep.subr.bf16.mxu1 %v10207_v14  ;;  %v4600_v52 = vpop.f32.mrf.mxu0  ;;  %5269 = vmatmul.mubr.bf16.gmra.mxu0 %v13590_v59 }
 0x299   : > { %v4713_v7 = vpop.f32.mrf.mxu1  ;;  %5366 = vmatmul.mubr.bf16.gmra.mxu1 %v13591_v43  ;;  %v12193_v58 = vadd.f32 %v4709_v6, %v4597_v28  ;;  %v4601_v51 = vadd.f32 %v4600_v52, %v12112_v10  ;;  %5276 = vmatprep.mubr.bf16.mxu0 %v13592_v44 }
 0x29a   : > { %5373 = vmatprep.mubr.bf16.mxu1 %v13593_v16  ;;  %v4602_v26 = vpop.f32.mrf.mxu0 }
 0x29b   : > { %v4715_v23 = vpop.f32.mrf.mxu1  ;;  %v12198_v0 = vadd.f32 %v4713_v7, %v4601_v51  ;;  %v4603_v35 = vadd.f32 %v4602_v26, %v12115_v29  ;;  %v13595_v7 = vld [vmem:[#allocation50_spill] sm:$0xff] }
 0x29c   : > { %v4604_v14 = vpop.f32.mrf.mxu0 }
 0x29d   : > { %v4717_v36 = vpop.f32.mrf.mxu1  ;;  %v12201_v60 = vadd.f32 %v4715_v23, %v4603_v35  ;;  %v4605_v59 = vadd.f32 %v4604_v14, %v12112_v10  ;;  %v13596_v23 = vld [vmem:[#allocation51_spill] sm:$0xff]  ;;  %v13597_v35 = vld [vmem:[#allocation52_spill] sm:$0xff] }
 0x29e   : > { %v4606_v6 = vpop.f32.mrf.mxu0 }
 0x29f   : > { %v4719_v28 = vpop.f32.mrf.mxu1  ;;  %v12204_v43 = vadd.f32 %v4717_v36, %v4605_v59  ;;  %v4607_v52 = vadd.f32 %v4606_v6, %v12115_v29 }
 0x2a0   : > { %v4610_v44 = vpop.f32.mrf.mxu0  ;;  %5277 = vmatmul.mubr.bf16.gmra.mxu0 %v13594_v2 }
 0x2a1   : > { %v4723_v16 = vpop.f32.mrf.mxu1  ;;  %5374 = vmatmul.mubr.bf16.gmra.mxu1 %v13595_v7  ;;  %v12209_v51 = vadd.f32 %v4719_v28, %v4607_v52  ;;  %v4611_v26 = vadd.f32 %v4610_v44, %v12112_v10  ;;  %5284 = vmatprep.mubr.bf16.mxu0 %v13596_v23 }
 0x2a2   : > { %5381 = vmatprep.mubr.bf16.mxu1 %v13597_v35  ;;  %v4612_v14 = vpop.f32.mrf.mxu0 }
 0x2a3   : > { %v4725_v42 = vpop.f32.mrf.mxu1  ;;  %v12214_v36 = vadd.f32 %v4723_v16, %v4611_v26  ;;  %v4613_v59 = vadd.f32 %v4612_v14, %v12115_v29  ;;  %v13599_v16 = vld [vmem:[#allocation54_spill] sm:$0xff] }
 0x2a4   : > { %v4614_v6 = vpop.f32.mrf.mxu0 }
 0x2a5   : > { %v4727_v9 = vpop.f32.mrf.mxu1  ;;  %v12217_v31 = vadd.f32 %v4725_v42, %v4613_v59  ;;  %v4615_v2 = vadd.f32 %v4614_v6, %v12112_v10  ;;  %v13600_v42 = vld [vmem:[#allocation55_spill] sm:$0xff]  ;;  %v13601_v59 = vld [vmem:[#allocation56_spill] sm:$0xff] }
 0x2a6   : > { %v4616_v28 = vpop.f32.mrf.mxu0 }
 0x2a7   : > { %v4729_v52 = vpop.f32.mrf.mxu1  ;;  %v12220_v7 = vadd.f32 %v4727_v9, %v4615_v2  ;;  %v4617_v44 = vadd.f32 %v4616_v28, %v12115_v29 }
 0x2a8   : > { %v4620_v23 = vpop.f32.mrf.mxu0  ;;  %5285 = vmatmul.mubr.bf16.gmra.mxu0 %v13598_v30 }
 0x2a9   : > { %v4733_v35 = vpop.f32.mrf.mxu1  ;;  %5382 = vmatmul.mubr.bf16.gmra.mxu1 %v13599_v16  ;;  %v12225_v26 = vadd.f32 %v4729_v52, %v4617_v44  ;;  %v4621_v14 = vadd.f32 %v4620_v23, %v12112_v10  ;;  %5292 = vmatprep.mubr.bf16.mxu0 %v13600_v42 }
 0x2aa   : > { %5389 = vmatprep.mubr.bf16.mxu1 %v13601_v59  ;;  %v4622_v6 = vpop.f32.mrf.mxu0 }
 0x2ab   : > { %v4735_v62 = vpop.f32.mrf.mxu1  ;;  %v12230_v9 = vadd.f32 %v4733_v35, %v4621_v14  ;;  %v4623_v2 = vadd.f32 %v4622_v6, %v12115_v29  ;;  %v13603_v35 = vld [vmem:[#allocation58_spill] sm:$0xff] }
 0x2ac   : > { %v4624_v28 = vpop.f32.mrf.mxu0 }
 0x2ad   : > { %v4737_v38 = vpop.f32.mrf.mxu1  ;;  %v12233_v53 = vadd.f32 %v4735_v62, %v4623_v2  ;;  %v4625_v30 = vadd.f32 %v4624_v28, %v12112_v10  ;;  %v13604_v62 = vld [vmem:[#allocation59_spill] sm:$0xff]  ;;  %v13605_v2 = vld [vmem:[#allocation60_spill] sm:$0xff] }
 0x2ae   : > { %v4626_v52 = vpop.f32.mrf.mxu0 }
 0x2af   : > { %v4739_v44 = vpop.f32.mrf.mxu1  ;;  %v12236_v16 = vadd.f32 %v4737_v38, %v4625_v30  ;;  %v4627_v23 = vadd.f32 %v4626_v52, %v12115_v29 }
 0x2b0   : > { %v4630_v42 = vpop.f32.mrf.mxu0  ;;  %5293 = vmatmul.mubr.bf16.gmra.mxu0 %v13602_v20 }
 0x2b1   : > { %v4743_v59 = vpop.f32.mrf.mxu1  ;;  %5390 = vmatmul.mubr.bf16.gmra.mxu1 %v13603_v35  ;;  %v12241_v14 = vadd.f32 %v4739_v44, %v4627_v23  ;;  %v4631_v6 = vadd.f32 %v4630_v42, %v12112_v10  ;;  %5430 = vmatprep.mubr.bf16.mxu0 %v13604_v62  ;;  %v10206_v44 = vld [vmem:[#allocation6 + $0xb28] ss:$20 sps:$4 sm:$0xff]  }
 0x2b2   : > { %5527 = vmatprep.mubr.bf16.mxu1 %v13605_v2  ;;  %v4632_v28 = vpop.f32.mrf.mxu0  ;;  %v10208_v23 = vld [vmem:[#allocation6 + $0xda8] ss:$20 sps:$4 sm:$0xff]   ;;  %v10209_v2 = vld [vmem:[#allocation6 + $0xc40] ss:$20 sps:$4 sm:$0xff]  }
 0x2b3   : > { %v4745_v47 = vpop.f32.mrf.mxu1  ;;  %v12246_v38 = vadd.f32 %v4743_v59, %v4631_v6  ;;  %v4633_v30 = vadd.f32 %v4632_v28, %v12115_v29  ;;  %v10210_v28 = vld [vmem:[#allocation6 + $0xb00] ss:$20 sps:$4 sm:$0xff]  }
 0x2b4   : > { %v4634_v52 = vpop.f32.mrf.mxu0 }
 0x2b5   : > { %v4747_v1 = vpop.f32.mrf.mxu1  ;;  %v12249_v54 = vadd.f32 %v4745_v47, %v4633_v30  ;;  %v4635_v20 = vadd.f32 %v4634_v52, %v12112_v10  ;;  %v10212_v30 = vld [vmem:[#allocation6 + $0xd80] ss:$20 sps:$4 sm:$0xff]  }
 0x2b6   : > { %v4636_v35 = vpop.f32.mrf.mxu0 }
 0x2b7   : > { %v4749_v42 = vpop.f32.mrf.mxu1  ;;  %v12252_v24 = vadd.f32 %v4747_v1, %v4635_v20  ;;  %v4637_v62 = vadd.f32 %v4636_v35, %v12115_v29  ;;  %v10213_v29 = vld [vmem:[#allocation6 + $0xc18] ss:$20 sps:$4 sm:$0xff]  }
 0x2b8   : > { %v4786_v59 = vpop.f32.mrf.mxu0  ;;  %5431 = vmatmul.mubr.bf16.vlgmr.msra.gmra.mxu0 %v11450_v39  ;;  %v10215_v20 = vld [vmem:[#allocation6 + $0xe98] ss:$20 sps:$4 sm:$0xff]  }
 0x2b9   : > { %v4899_v6 = vpop.f32.mrf.mxu1  ;;  %5528 = vmatmul.mubr.bf16.vlgmr.msra.gmra.mxu1 %v11452_v40  ;;  %v12257_v47 = vadd.f32 %v4749_v42, %v4637_v62  ;;  %v4787_v10 = vadd.f32 %v4786_v59, %v12126_v46  ;;  %8972 = vmatpush3.bf16.msra.mxu0 %v10206_v44  ;;  %v10216_v62 = vld [vmem:[#allocation6 + $0xd58] ss:$20 sps:$4 sm:$0xff]  }
 0x2ba   : > { %9036 = vmatpush3.bf16.msra.mxu1 %v10208_v23  ;;  %v4788_v1 = vpop.f32.mrf.mxu0  ;;  %5438 = vmatprep.mubr.bf16.mxu0 %v11456_v56 }
 0x2bb   : > { %v4901_v52 = vpop.f32.mrf.mxu1  ;;  %5535 = vmatprep.mubr.bf16.mxu1 %v11458_v57  ;;  %v12262_v35 = vadd.f32 %v4899_v6, %v4787_v10  ;;  %v4789_v39 = vadd.f32 %v4788_v1, %v12129_v13  ;;  %8973 = vmatprep.subr.bf16.mxu0 %v10209_v2  ;;  %v10214_v57 = vld [vmem:[#allocation6 + $0xad8] ss:$20 sps:$4 sm:$0xff]   ;;  %v10217_v2 = vld [vmem:[#allocation6 + $0xbf0] ss:$20 sps:$4 sm:$0xff]  }
 0x2bc   : > { %9037 = vmatprep.subr.bf16.mxu1 %v10211_v33  ;;  %v4790_v40 = vpop.f32.mrf.mxu0  ;;  %v10219_v33 = vld [vmem:[#allocation6 + $0xe70] ss:$20 sps:$4 sm:$0xff]   ;;  %v13607_v1 = vld [vmem:[#allocation62_spill] sm:$0xff] }
 0x2bd   : > { %v4903_v46 = vpop.f32.mrf.mxu1  ;;  %v12265_v44 = vadd.f32 %v4901_v52, %v4789_v39  ;;  %v4791_v23 = vadd.f32 %v4790_v40, %v12132_v34  ;;  %8974 = vmatpush3.bf16.msra.mxu0 %v10210_v28  ;;  %v10223_v40 = vld [vmem:[#allocation6 + $0xe48] ss:$20 sps:$4 sm:$0xff]  }
 0x2be   : > { %9038 = vmatpush3.bf16.msra.mxu1 %v10212_v30  ;;  %v4792_v42 = vpop.f32.mrf.mxu0  ;;  %8975 = vmatprep.subr.bf16.mxu0 %v10213_v29  ;;  %v13606_v30 = vld [vmem:[#allocation61_spill] sm:$0xff] }
 0x2bf   : > { %v4905_v56 = vpop.f32.mrf.mxu1  ;;  %9039 = vmatprep.subr.bf16.mxu1 %v10215_v20  ;;  %v12268_v59 = vadd.f32 %v4903_v46, %v4791_v23  ;;  %v4793_v13 = vadd.f32 %v4792_v42, %v12139_v18  ;;  %v10218_v18 = vld [vmem:[#allocation6 + $0xab0] ss:$20 sps:$4 sm:$0xff]  }
 0x2c0   : > { %v4796_v6 = vpop.f32.mrf.mxu0  ;;  %5439 = vmatmul.mubr.bf16.gmra.mxu0 %v11470_v21  ;;  %v10220_v20 = vld [vmem:[#allocation6 + $0xd30] ss:$20 sps:$4 sm:$0xff]  }
 0x2c1   : > { %v4909_v10 = vpop.f32.mrf.mxu1  ;;  %5536 = vmatmul.mubr.bf16.gmra.mxu1 %v11472_v22  ;;  %v12273_v34 = vadd.f32 %v4905_v56, %v4793_v13  ;;  %v4797_v28 = vadd.f32 %v4796_v6, %v12146_v5  ;;  %5446 = vmatprep.mubr.bf16.mxu0 %v13606_v30  ;;  %v10221_v22 = vld [vmem:[#allocation6 + $0xbc8] ss:$20 sps:$4 sm:$0xff]   ;;  %v13608_v30 = vld [vmem:[#allocation63_spill] sm:$0xff] }
 0x2c2   : > { %5543 = vmatprep.mubr.bf16.mxu1 %v13607_v1  ;;  %v4798_v52 = vpop.f32.mrf.mxu0  ;;  %8976 = vmatpush3.bf16.msra.mxu0 %v10214_v57  ;;  %v10222_v57 = vld [vmem:[#allocation6 + $0xa88] ss:$20 sps:$4 sm:$0xff]  }
 0x2c3   : > { %v4911_v29 = vpop.f32.mrf.mxu1  ;;  %9040 = vmatpush3.bf16.msra.mxu1 %v10216_v62  ;;  %v12278_v39 = vadd.f32 %v4909_v10, %v4797_v28  ;;  %v4799_v21 = vadd.f32 %v4798_v52, %v12149_v8  ;;  %8977 = vmatprep.subr.bf16.mxu0 %v10217_v2  ;;  %v10224_v62 = vld [vmem:[#allocation6 + $0xd08] ss:$20 sps:$4 sm:$0xff]   ;;  %v10225_v2 = vld [vmem:[#allocation6 + $0xba0] ss:$20 sps:$4 sm:$0xff]  }
 0x2c4   : > { %9041 = vmatprep.subr.bf16.mxu1 %v10219_v33  ;;  %v4800_v46 = vpop.f32.mrf.mxu0  ;;  %v10227_v33 = vld [vmem:[#allocation6 + $0xe20] ss:$20 sps:$4 sm:$0xff]   ;;  %v13609_v1 = vld [vmem:[#allocation64_spill] sm:$0xff] }
 0x2c5   : > { %v4913_v5 = vpop.f32.mrf.mxu1  ;;  %v12281_v23 = vadd.f32 %v4911_v29, %v4799_v21  ;;  %v4801_v42 = vadd.f32 %v4800_v46, %v12152_v50  ;;  %v13610_v29 = vld [vmem:[#allocation65_spill] sm:$0xff] }
 0x2c6   : > { %v4802_v56 = vpop.f32.mrf.mxu0  ;;  %8978 = vmatpush3.bf16.msra.mxu0 %v10218_v18  ;;  %v13611_v18 = vld [vmem:[#allocation66_spill] sm:$0xff]  ;;  %v10226_v21 = vld [vmem:[#allocation6 + $0xa60] ss:$20 sps:$4 sm:$0xff]  }
 0x2c7   : > { %v4915_v13 = vpop.f32.mrf.mxu1  ;;  %9042 = vmatpush3.bf16.msra.mxu1 %v10220_v20  ;;  %v12284_v6 = vadd.f32 %v4913_v5, %v4801_v42  ;;  %v4803_v8 = vadd.f32 %v4802_v56, %v12159_v11  ;;  %8979 = vmatprep.subr.bf16.mxu0 %v10221_v22  ;;  %v10228_v22 = vld [vmem:[#allocation6 + $0xce0] ss:$20 sps:$4 sm:$0xff]   ;;  %v10229_v5 = vld [vmem:[#allocation6 + $0xb78] ss:$20 sps:$4 sm:$0xff]  }
 0x2c8   : > { %9043 = vmatprep.subr.bf16.mxu1 %v10223_v40  ;;  %v4806_v10 = vpop.f32.mrf.mxu0  ;;  %5447 = vmatmul.mubr.bf16.gmra.mxu0 %v13608_v30  ;;  %v10231_v42 = vld [vmem:[#allocation6 + $0xdf8] ss:$20 sps:$4 sm:$0xff]  }
 0x2c9   : > { %v4919_v28 = vpop.f32.mrf.mxu1  ;;  %5544 = vmatmul.mubr.bf16.gmra.mxu1 %v13609_v1  ;;  %v12289_v50 = vadd.f32 %v4915_v13, %v4803_v8  ;;  %v4807_v52 = vadd.f32 %v4806_v10, %v12166_v48  ;;  %5454 = vmatprep.mubr.bf16.mxu0 %v13610_v29  ;;  %v13612_v29 = vld [vmem:[#allocation67_spill] sm:$0xff] }
 0x2ca   : > { %5551 = vmatprep.mubr.bf16.mxu1 %v13611_v18  ;;  %v4808_v20 = vpop.f32.mrf.mxu0  ;;  %8980 = vmatpush3.bf16.msra.mxu0 %v10222_v57  ;;  %v10230_v57 = vld [vmem:[#allocation6 + $0xa38] ss:$20 sps:$4 sm:$0xff]  }
 0x2cb   : > { %v4921_v11 = vpop.f32.mrf.mxu1  ;;  %9044 = vmatpush3.bf16.msra.mxu1 %v10224_v62  ;;  %v12294_v40 = vadd.f32 %v4919_v28, %v4807_v52  ;;  %v4809_v46 = vadd.f32 %v4808_v20, %v12169_v41  ;;  %8981 = vmatprep.subr.bf16.mxu0 %v10225_v2  ;;  %v10232_v62 = vld [vmem:[#allocation6 + $0xcb8] ss:$20 sps:$4 sm:$0xff]   ;;  %v10233_v2 = vld [vmem:[#allocation6 + $0xb50] ss:$20 sps:$4 sm:$0xff]  }
 0x2cc   : > { %9045 = vmatprep.subr.bf16.mxu1 %v10227_v33  ;;  %v4810_v56 = vpop.f32.mrf.mxu0  ;;  %v10235_v33 = vld [vmem:[#allocation6 + $0xdd0] ss:$20 sps:$4 sm:$0xff]   ;;  %v13613_v18 = vld [vmem:[#allocation68_spill] sm:$0xff] }
 0x2cd   : > { %v4923_v48 = vpop.f32.mrf.mxu1  ;;  %v12297_v13 = vadd.f32 %v4921_v11, %v4809_v46  ;;  %v4811_v8 = vadd.f32 %v4810_v56, %v12172_v27  ;;  %v13614_v11 = vld [vmem:[#allocation69_spill] sm:$0xff] }
 0x2ce   : > { %v4812_v10 = vpop.f32.mrf.mxu0  ;;  %8982 = vmatpush3.bf16.msra.mxu0 %v10226_v21  ;;  %v13615_v21 = vld [vmem:[#allocation70_spill] sm:$0xff]  ;;  %v10234_v46 = vld [vmem:[#allocation6 + $0xa10] ss:$20 sps:$4 sm:$0xff]  }
 0x2cf   : > { %v4925_v30 = vpop.f32.mrf.mxu1  ;;  %9046 = vmatpush3.bf16.msra.mxu1 %v10228_v22  ;;  %v12300_v28 = vadd.f32 %v4923_v48, %v4811_v8  ;;  %v4813_v41 = vadd.f32 %v4812_v10, %v12177_v61  ;;  %8983 = vmatprep.subr.bf16.mxu0 %v10229_v5  ;;  %v10236_v5 = vld [vmem:[#allocation6 + $0xc90] ss:$20 sps:$4 sm:$0xff]  }
 0x2d0   : > { %9047 = vmatprep.subr.bf16.mxu1 %v10231_v42  ;;  %v4816_v1 = vpop.f32.mrf.mxu0  ;;  %5455 = vmatmul.mubr.bf16.gmra.mxu0 %v13612_v29  ;;  %v10239_v48 = vld [vmem:[#allocation9 + $0xac] ss:$12 sps:$4 sm:$0xff]  }
 0x2d1   : > { %v4929_v52 = vpop.f32.mrf.mxu1  ;;  %5552 = vmatmul.mubr.bf16.gmra.mxu1 %v13613_v18  ;;  %v12305_v27 = vadd.f32 %v4925_v30, %v4813_v41  ;;  %v4817_v20 = vadd.f32 %v4816_v1, %v12182_v3  ;;  %5462 = vmatprep.mubr.bf16.mxu0 %v13614_v11  ;;  %v10242_v8 = vld [vmem:[#allocation9 + $0x22c] ss:$12 sps:$4 sm:$0xff]   ;;  %v13619_v11 = vld [vmem:[#allocation74_spill] sm:$0xff] }
 0x2d2   : > { %5559 = vmatprep.mubr.bf16.mxu1 %v13615_v21  ;;  %v4818_v22 = vpop.f32.mrf.mxu0  ;;  %8984 = vmatpush3.bf16.msra.mxu0 %v10230_v57 }
 0x2d3   : > { %v4931_v61 = vpop.f32.mrf.mxu1  ;;  %9048 = vmatpush3.bf16.msra.mxu1 %v10232_v62  ;;  %v12310_v42 = vadd.f32 %v4929_v52, %v4817_v20  ;;  %v4819_v56 = vadd.f32 %v4818_v22, %v12185_v55  ;;  %8985 = vmatprep.subr.bf16.mxu0 %v10233_v2  ;;  %v13617_v52 = vld [vmem:[#allocation72_spill] sm:$0xff]  ;;  %v13618_v20 = vld [vmem:[#allocation73_spill] sm:$0xff] }
 0x2d4   : > { %9049 = vmatprep.subr.bf16.mxu1 %v10235_v33  ;;  %v4820_v10 = vpop.f32.mrf.mxu0  ;;  %v13616_v33 = vld [vmem:[#allocation71_spill] sm:$0xff] }
 0x2d5   : > { %v4933_v3 = vpop.f32.mrf.mxu1  ;;  %v12313_v30 = vadd.f32 %v4931_v61, %v4819_v56  ;;  %v4821_v41 = vadd.f32 %v4820_v10, %v12188_v19 }
 0x2d6   : > { %v4822_v1 = vpop.f32.mrf.mxu0  ;;  %8986 = vmatpush3.bf16.msra.mxu0 %v10234_v46 }
 0x2d7   : > { %v4935_v29 = vpop.f32.mrf.mxu1  ;;  %9050 = vmatpush3.bf16.msra.mxu1 %v10236_v5  ;;  %v12316_v57 = vadd.f32 %v4933_v3, %v4821_v41  ;;  %v4823_v62 = vadd.f32 %v4822_v1, %v12193_v58  ;;  %6723 = vmatprep.subr.bf16.mxu0 %v10239_v48 }
 0x2d8   : > { %6836 = vmatprep.subr.bf16.mxu1 %v10242_v8  ;;  %v4826_v55 = vpop.f32.mrf.mxu0  ;;  %5463 = vmatmul.mubr.bf16.gmra.mxu0 %v13616_v33  ;;  %v13623_v33 = vld [vmem:[#allocation78_spill] sm:$0xff] }
 0x2d9   : > { %v4939_v2 = vpop.f32.mrf.mxu1  ;;  %5560 = vmatmul.mubr.bf16.gmra.mxu1 %v13617_v52  ;;  %v12321_v18 = vadd.f32 %v4935_v29, %v4823_v62  ;;  %v4827_v19 = vadd.f32 %v4826_v55, %v12198_v0  ;;  %5470 = vmatprep.mubr.bf16.mxu0 %v13618_v20  ;;  %v13620_v29 = vld [vmem:[#allocation75_spill] sm:$0xff]  ;;  %v13621_v62 = vld [vmem:[#allocation76_spill] sm:$0xff] }
 0x2da   : > { %5567 = vmatprep.mubr.bf16.mxu1 %v13619_v11  ;;  %v4828_v21 = vpop.f32.mrf.mxu0 }
 0x2db   : > { %v4941_v22 = vpop.f32.mrf.mxu1  ;;  %v12326_v61 = vadd.f32 %v4939_v2, %v4827_v19  ;;  %v4829_v58 = vadd.f32 %v4828_v21, %v12201_v60  ;;  %v13622_v2 = vld [vmem:[#allocation77_spill] sm:$0xff] }
 0x2dc   : > { %v4830_v46 = vpop.f32.mrf.mxu0 }
 0x2dd   : > { %v4943_v5 = vpop.f32.mrf.mxu1  ;;  %v12329_v56 = vadd.f32 %v4941_v22, %v4829_v58  ;;  %v4831_v48 = vadd.f32 %v4830_v46, %v12204_v43 }
 0x2de   : > { %v4832_v8 = vpop.f32.mrf.mxu0 }
 0x2df   : > { %v4945_v10 = vpop.f32.mrf.mxu1  ;;  %v12332_v3 = vadd.f32 %v4943_v5, %v4831_v48  ;;  %v4833_v0 = vadd.f32 %v4832_v8, %v12209_v51 }
 0x2e0   : > { %v4836_v41 = vpop.f32.mrf.mxu0  ;;  %5471 = vmatmul.mubr.bf16.gmra.mxu0 %v13620_v29  ;;  %v13627_v29 = vld [vmem:[#allocation82_spill] sm:$0xff] }
 0x2e1   : > { %v4949_v1 = vpop.f32.mrf.mxu1  ;;  %5568 = vmatmul.mubr.bf16.gmra.mxu1 %v13621_v62  ;;  %v12337_v55 = vadd.f32 %v4945_v10, %v4833_v0  ;;  %v4837_v60 = vadd.f32 %v4836_v41, %v12214_v36  ;;  %5478 = vmatprep.mubr.bf16.mxu0 %v13622_v2  ;;  %v13624_v10 = vld [vmem:[#allocation79_spill] sm:$0xff]  ;;  %v13625_v0 = vld [vmem:[#allocation80_spill] sm:$0xff] }
 0x2e2   : > { %5575 = vmatprep.mubr.bf16.mxu1 %v13623_v33  ;;  %v4838_v43 = vpop.f32.mrf.mxu0 }
 0x2e3   : > { %v4951_v52 = vpop.f32.mrf.mxu1  ;;  %v12342_v19 = vadd.f32 %v4949_v1, %v4837_v60  ;;  %v4839_v51 = vadd.f32 %v4838_v43, %v12217_v31  ;;  %v13626_v1 = vld [vmem:[#allocation81_spill] sm:$0xff] }
 0x2e4   : > { %v4840_v20 = vpop.f32.mrf.mxu0 }
 0x2e5   : > { %v4953_v11 = vpop.f32.mrf.mxu1  ;;  %v12345_v21 = vadd.f32 %v4951_v52, %v4839_v51  ;;  %v4841_v22 = vadd.f32 %v4840_v20, %v12220_v7 }
 0x2e6   : > { %v4842_v58 = vpop.f32.mrf.mxu0 }
 0x2e7   : > { %v4955_v46 = vpop.f32.mrf.mxu1  ;;  %v12348_v5 = vadd.f32 %v4953_v11, %v4841_v22  ;;  %v4843_v36 = vadd.f32 %v4842_v58, %v12225_v26 }
 0x2e8   : > { %v4846_v48 = vpop.f32.mrf.mxu0  ;;  %5479 = vmatmul.mubr.bf16.gmra.mxu0 %v13624_v10  ;;  %v13631_v10 = vld [vmem:[#allocation86_spill] sm:$0xff] }
 0x2e9   : > { %v4959_v8 = vpop.f32.mrf.mxu1  ;;  %5576 = vmatmul.mubr.bf16.gmra.mxu1 %v13625_v0  ;;  %v12353_v41 = vadd.f32 %v4955_v46, %v4843_v36  ;;  %v4847_v31 = vadd.f32 %v4846_v48, %v12230_v9  ;;  %5486 = vmatprep.mubr.bf16.mxu0 %v13626_v1  ;;  %v13628_v46 = vld [vmem:[#allocation83_spill] sm:$0xff]  ;;  %v13629_v36 = vld [vmem:[#allocation84_spill] sm:$0xff] }
 0x2ea   : > { %5583 = vmatprep.mubr.bf16.mxu1 %v13627_v29  ;;  %v4848_v7 = vpop.f32.mrf.mxu0 }
 0x2eb   : > { %v4961_v62 = vpop.f32.mrf.mxu1  ;;  %v12358_v60 = vadd.f32 %v4959_v8, %v4847_v31  ;;  %v4849_v26 = vadd.f32 %v4848_v7, %v12233_v53  ;;  %v13630_v8 = vld [vmem:[#allocation85_spill] sm:$0xff] }
 0x2ec   : > { %v4850_v2 = vpop.f32.mrf.mxu0 }
 0x2ed   : > { %v4963_v33 = vpop.f32.mrf.mxu1  ;;  %v12361_v43 = vadd.f32 %v4961_v62, %v4849_v26  ;;  %v4851_v52 = vadd.f32 %v4850_v2, %v12236_v16  ;;  %v10237_v26 = vld [vmem:[#allocation9 + $0xa8] ss:$12 sps:$4 sm:$0xff]  }
 0x2ee   : > { %v4852_v51 = vpop.f32.mrf.mxu0  ;;  %v10240_v2 = vld [vmem:[#allocation9 + $0x228] ss:$12 sps:$4 sm:$0xff]  }
 0x2ef   : > { %v4965_v20 = vpop.f32.mrf.mxu1  ;;  %v12364_v11 = vadd.f32 %v4963_v33, %v4851_v52  ;;  %v4853_v9 = vadd.f32 %v4852_v51, %v12241_v14  ;;  %v10245_v52 = vld [vmem:[#allocation9 + $0x94] ss:$12 sps:$4 sm:$0xff]  }
 0x2f0   : > { %v4856_v22 = vpop.f32.mrf.mxu0  ;;  %5487 = vmatmul.mubr.bf16.gmra.mxu0 %v13628_v46  ;;  %v10248_v51 = vld [vmem:[#allocation9 + $0x214] ss:$12 sps:$4 sm:$0xff]   ;;  %v13632_v46 = vld [vmem:[#allocation87_spill] sm:$0xff] }
 0x2f1   : > { %v4969_v58 = vpop.f32.mrf.mxu1  ;;  %5584 = vmatmul.mubr.bf16.gmra.mxu1 %v13629_v36  ;;  %v12369_v48 = vadd.f32 %v4965_v20, %v4853_v9  ;;  %v4857_v53 = vadd.f32 %v4856_v22, %v12246_v38  ;;  %5624 = vmatprep.mubr.bf16.mxu0 %v13630_v8  ;;  %v10246_v8 = vld [vmem:[#allocation9 + $0x210] ss:$12 sps:$4 sm:$0xff]  }
 0x2f2   : > { %5721 = vmatprep.mubr.bf16.mxu1 %v13631_v10  ;;  %v4858_v16 = vpop.f32.mrf.mxu0 }
 0x2f3   : > { %v4971_v0 = vpop.f32.mrf.mxu1  ;;  %v12374_v31 = vadd.f32 %v4969_v58, %v4857_v53  ;;  %v4859_v14 = vadd.f32 %v4858_v16, %v12249_v54  ;;  %v13633_v54 = vld [vmem:[#allocation88_spill] sm:$0xff] }
 0x2f4   : > { %v4860_v1 = vpop.f32.mrf.mxu0  ;;  %v10243_v53 = vld [vmem:[#allocation9 + $0x90] ss:$12 sps:$4 sm:$0xff]  }
 0x2f5   : > { %v4973_v29 = vpop.f32.mrf.mxu1  ;;  %v12377_v7 = vadd.f32 %v4971_v0, %v4859_v14  ;;  %v4861_v62 = vadd.f32 %v4860_v1, %v12252_v24  ;;  %v10251_v0 = vld [vmem:[#allocation9 + $0x7c] ss:$12 sps:$4 sm:$0xff]  }
 0x2f6   : > { %v4862_v33 = vpop.f32.mrf.mxu0  ;;  %v13634_v1 = vld [vmem:[#allocation89_spill] sm:$0xff] }
 0x2f7   : > { %v4975_v38 = vpop.f32.mrf.mxu1  ;;  %v12380_v20 = vadd.f32 %v4973_v29, %v4861_v62  ;;  %v4863_v9 = vadd.f32 %v4862_v33, %v12257_v47  ;;  %v10254_v47 = vld [vmem:[#allocation9 + $0x1fc] ss:$12 sps:$4 sm:$0xff]  }
 0x2f8   : > { %v5012_v22 = vpop.f32.mrf.mxu0  ;;  %5625 = vmatmul.mubr.bf16.vlgmr.msra.gmra.mxu0 %v13632_v46 }
 0x2f9   : > { %v5125_v58 = vpop.f32.mrf.mxu1  ;;  %5722 = vmatmul.mubr.bf16.vlgmr.msra.gmra.mxu1 %v13633_v54  ;;  %v12385_v36 = vadd.f32 %v4975_v38, %v4863_v9  ;;  %v5013_v24 = vadd.f32 %v5012_v22, %v12262_v35  ;;  %6724 = vmatpush1.bf16.msra.mxu0 %v10237_v26  ;;  %v10249_v26 = vld [vmem:[#allocation9 + $0x78] ss:$12 sps:$4 sm:$0xff]  }
 0x2fa   : > { %6837 = vmatpush1.bf16.msra.mxu1 %v10240_v2  ;;  %v5014_v10 = vpop.f32.mrf.mxu0  ;;  %6725 = vmatprep.subr.bf16.mxu0 %v10245_v52  ;;  %v10252_v2 = vld [vmem:[#allocation9 + $0x1f8] ss:$12 sps:$4 sm:$0xff]  }
 0x2fb   : > { %v5127_v16 = vpop.f32.mrf.mxu1  ;;  %6838 = vmatprep.subr.bf16.mxu1 %v10248_v51  ;;  %v5015_v14 = vadd.f32 %v5014_v10, %v12265_v44  ;;  %5632 = vmatprep.mubr.bf16.mxu0 %v13634_v1  ;;  %v5126_v29 = vadd.f32 %v5125_v58, %v5013_v24  ;;  %v10257_v9 = vld [vmem:[#allocation9 + $0x64] ss:$12 sps:$4 sm:$0xff]   ;;  %v10255_v24 = vld [vmem:[#allocation9 + $0x60] ss:$12 sps:$4 sm:$0xff]  }
 0x2fc   : > { %5729 = vmatprep.mubr.bf16.mxu1 %v13532_v17  ;;  %v5016_v62 = vpop.f32.mrf.mxu0  ;;  %v10260_v44 = vld [vmem:[#allocation9 + $0x1e4] ss:$12 sps:$4 sm:$0xff]  }
 0x2fd   : > { %v5129_v33 = vpop.f32.mrf.mxu1  ;;  %v5017_v35 = vadd.f32 %v5016_v62, %v12268_v59  ;;  %6726 = vmatpush1.bf16.msra.mxu0 %v10243_v53  ;;  %v5128_v38 = vadd.f32 %v5127_v16, %v5015_v14  ;;  %10485 = vtanh.f32 %v5126_v29  ;;  %v10258_v53 = vld [vmem:[#allocation9 + $0x1e0] ss:$12 sps:$4 sm:$0xff]   ;;  %v10261_v29 = vld [vmem:[#allocation9 + $0x48] ss:$12 sps:$4 sm:$0xff]  }
 0x2fe   : > { %6839 = vmatpush1.bf16.msra.mxu1 %v10246_v8  ;;  %v5018_v52 = vpop.f32.mrf.mxu0  ;;  %6727 = vmatprep.subr.bf16.mxu0 %v10251_v0  ;;  %v10266_v16 = vld [vmem:[#allocation9 + $0x1cc] ss:$12 sps:$4 sm:$0xff]   ;;  %v10264_v62 = vld [vmem:[#allocation9 + $0x1c8] ss:$12 sps:$4 sm:$0xff]  }
 0x2ff   : > { %v5131_v51 = vpop.f32.mrf.mxu1  ;;  %6840 = vmatprep.subr.bf16.mxu1 %v10254_v47  ;;  %v5130_v22 = vadd.f32 %v5129_v33, %v5017_v35  ;;  %v5019_v46 = vadd.f32 %v5018_v52, %v12273_v34  ;;  %v10263_v34 = vld [vmem:[#allocation9 + $0x4c] ss:$12 sps:$4 sm:$0xff]  }
 0x300   : > { %v5022_v17 = vpop.f32.mrf.mxu0  ;;  %5633 = vmatmul.mubr.bf16.gmra.mxu0 %v13533_v45  ;;  %v13635_v0 = vld [vmem:[#allocation93_spill] sm:$0xff] }
 0x301   : > { %v5135_v58 = vpop.f32.mrf.mxu1  ;;  %5730 = vmatmul.mubr.bf16.gmra.mxu1 %v13534_v49  ;;  %10487 = vtanh.f32 %v5130_v22  ;;  %v5132_v59 = vadd.f32 %v5131_v51, %v5019_v46  ;;  %v5023_v54 = vadd.f32 %v5022_v17, %v12278_v39  ;;  %6728 = vmatpush1.bf16.msra.mxu0 %v10249_v26  ;;  %v13636_v49 = vld [vmem:[#allocation94_spill] sm:$0xff]  ;;  %v10267_v22 = vld [vmem:[#allocation9 + $0x30] ss:$12 sps:$4 sm:$0xff]  }
 0x302   : > { %6841 = vmatpush1.bf16.msra.mxu1 %v10252_v2  ;;  %10489 = vtanh.f32 %v5128_v38  ;;  %v5024_v8 = vpop.f32.mrf.mxu0  ;;  %6729 = vmatprep.subr.bf16.mxu0 %v10257_v9  ;;  %v10269_v2 = vld [vmem:[#allocation9 + $0x34] ss:$12 sps:$4 sm:$0xff]   ;;  %v10270_v46 = vld [vmem:[#allocation9 + $0x1b0] ss:$12 sps:$4 sm:$0xff]  }
 0x303   : > { %v5137_v10 = vpop.f32.mrf.mxu1  ;;  %6842 = vmatprep.subr.bf16.mxu1 %v10260_v44  ;;  %10491 = vtanh.f32 %v5132_v59  ;;  %v5025_v45 = vadd.f32 %v5024_v8, %v12281_v23  ;;  %5640 = vmatprep.mubr.bf16.mxu0 %v13635_v0  ;;  %v5136_v47 = vadd.f32 %v5135_v58, %v5023_v54  ;;  %v10272_v23 = vld [vmem:[#allocation9 + $0x1b4] ss:$12 sps:$4 sm:$0xff]   ;;  %v10278_v59 = vld [vmem:[#allocation9 + $0x19c] ss:$12 sps:$4 sm:$0xff]  }
 0x304   : > { %5737 = vmatprep.mubr.bf16.mxu1 %v13636_v49  ;;  %v5026_v39 = vpop.f32.mrf.mxu0 }
 0x305   : > { %v5139_v14 = vpop.f32.mrf.mxu1  ;;  %v5027_v1 = vadd.f32 %v5026_v39, %v12284_v6  ;;  %6730 = vmatpush1.bf16.msra.mxu0 %v10255_v24  ;;  %v5138_v33 = vadd.f32 %v5137_v10, %v5025_v45  ;;  %10493 = vtanh.f32 %v5136_v47  ;;  %v10273_v10 = vld [vmem:[#allocation9 + $0x18] ss:$12 sps:$4 sm:$0xff]  }
 0x306   : > { %6843 = vmatpush1.bf16.msra.mxu1 %v10258_v53  ;;  %v5028_v35 = vpop.f32.mrf.mxu0  ;;  %6731 = vmatprep.subr.bf16.mxu0 %v10263_v34  ;;  %v10276_v34 = vld [vmem:[#allocation9 + $0x198] ss:$12 sps:$4 sm:$0xff]  }
 0x307   : > { %v5141_v26 = vpop.f32.mrf.mxu1  ;;  %6844 = vmatprep.subr.bf16.mxu1 %v10266_v16  ;;  %v5140_v38 = vadd.f32 %v5139_v14, %v5027_v1  ;;  %v5029_v52 = vadd.f32 %v5028_v35, %v12289_v50  ;;  %v10275_v50 = vld [vmem:[#allocation9 + $0x1c] ss:$12 sps:$4 sm:$0xff]  }
 0x308   : > { %v5032_v51 = vpop.f32.mrf.mxu0  ;;  %5641 = vmatmul.mubr.bf16.gmra.mxu0 %v13537_v37 }
 0x309   : > { %v5145_v9 = vpop.f32.mrf.mxu1  ;;  %5738 = vmatmul.mubr.bf16.gmra.mxu1 %v13538_v63  ;;  %10495 = vtanh.f32 %v5140_v38  ;;  %v5142_v6 = vadd.f32 %v5141_v26, %v5029_v52  ;;  %v5033_v44 = vadd.f32 %v5032_v51, %v12294_v40  ;;  %6732 = vmatpush1.bf16.msra.mxu0 %v10261_v29  ;;  %v13637_v63 = vld [vmem:[#allocation98_spill] sm:$0xff]  ;;  %v10287_v52 = vld [vmem:[#allocation9 + $0x16c] ss:$12 sps:$4 sm:$0xff]  }
 0x30a   : > { %6845 = vmatpush1.bf16.msra.mxu1 %v10264_v62  ;;  %10497 = vtanh.f32 %v5138_v33  ;;  %v5034_v17 = vpop.f32.mrf.mxu0  ;;  %6733 = vmatprep.subr.bf16.mxu0 %v10269_v2  ;;  %v10486_v53 = vpop.eup %10485  ;;  %v10279_v26 = vld [vmem:[#allocation9] ss:$12 sps:$4 sm:$0xff]  }
 0x30b   : > { %v5147_v58 = vpop.f32.mrf.mxu1  ;;  %6846 = vmatprep.subr.bf16.mxu1 %v10272_v23  ;;  %10499 = vtanh.f32 %v5142_v6  ;;  %v5035_v37 = vadd.f32 %v5034_v17, %v12297_v13  ;;  %5648 = vmatprep.mubr.bf16.mxu0 %v13539_v25  ;;  %v5146_v54 = vadd.f32 %v5145_v9, %v5033_v44  ;;  %v10281_v13 = vld [vmem:[#allocation9 + $0x4] ss:$12 sps:$4 sm:$0xff]   ;;  %v10282_v2 = vld [vmem:[#allocation9 + $0x180] ss:$12 sps:$4 sm:$0xff]  }
 0x30c   : > { %5745 = vmatprep.mubr.bf16.mxu1 %v13637_v63  ;;  %v5036_v40 = vpop.f32.mrf.mxu0  ;;  %v10284_v25 = vld [vmem:[#allocation9 + $0x184] ss:$12 sps:$4 sm:$0xff]   ;;  %v10290_v51 = vld [vmem:[#allocation9 + $0x2ec] ss:$12 sps:$4 sm:$0xff]  }
 0x30d   : > { %v5149_v24 = vpop.f32.mrf.mxu1  ;;  %v5037_v8 = vadd.f32 %v5036_v40, %v12300_v28  ;;  %6734 = vmatpush1.bf16.msra.mxu0 %v10267_v22  ;;  %v5148_v45 = vadd.f32 %v5147_v58, %v5035_v37  ;;  %10501 = vtanh.f32 %v5146_v54  ;;  %v10285_v22 = vld [vmem:[#allocation9 + $0x168] ss:$12 sps:$4 sm:$0xff]  }
 0x30e   : > { %6847 = vmatpush1.bf16.msra.mxu1 %v10270_v46  ;;  %v10488_v16 = vpop.eup %10487  ;;  %v5038_v0 = vpop.f32.mrf.mxu0  ;;  %6735 = vmatprep.subr.bf16.mxu0 %v10275_v50  ;;  %v10288_v46 = vld [vmem:[#allocation9 + $0x2e8] ss:$12 sps:$4 sm:$0xff]  }
 0x30f   : > { %v5151_v49 = vpop.f32.mrf.mxu1  ;;  %6848 = vmatprep.subr.bf16.mxu1 %v10278_v59  ;;  %v10490_v47 = vpop.eup %10489  ;;  %v12408_v39 = vpack.c.bf16 %v10488_v16, %v10486_v53  ;;  %v5150_v14 = vadd.f32 %v5149_v24, %v5037_v8  ;;  %v5039_v1 = vadd.f32 %v5038_v0, %v12305_v27  ;;  %v13641_v53 = vld [vmem:[#allocation103_spill] sm:$0xff]  ;;  %v13642_v8 = vld [vmem:[#allocation104_spill] sm:$0xff] }
 0x310   : > { %v10492_v29 = vpop.eup %10491  ;;  %v5042_v28 = vpop.f32.mrf.mxu0  ;;  %5649 = vmatmul.mubr.bf16.gmra.mxu0 %v13542_v4  ;;  %v10291_v16 = vld [vmem:[#allocation9 + $0x150] ss:$12 sps:$4 sm:$0xff]  }
 0x311   : > { %13638 = vst [vmem:[#allocation33_spill] sm:$0xff] %v12408_v39  ;;  %v5155_v62 = vpop.f32.mrf.mxu1  ;;  %5746 = vmatmul.mubr.bf16.gmra.mxu1 %v13543_v12  ;;  %10503 = vtanh.f32 %v5150_v14  ;;  %v5152_v33 = vadd.f32 %v5151_v49, %v5039_v1  ;;  %v5043_v35 = vadd.f32 %v5042_v28, %v12310_v42  ;;  %6736 = vmatpush1.bf16.msra.mxu0 %v10273_v10  ;;  %v13644_v14 = vld [vmem:[#allocation105_spill] sm:$0xff]  ;;  %v13645_v1 = vld [vmem:[#allocation106_spill] sm:$0xff] }
 0x312   : > { %6849 = vmatpush1.bf16.msra.mxu1 %v10276_v34  ;;  %v12414_v23 = vpack.c.bf16 %v10492_v29, %v10490_v47  ;;  %10505 = vtanh.f32 %v5148_v45  ;;  %v5044_v27 = vpop.f32.mrf.mxu0  ;;  %6737 = vmatprep.subr.bf16.mxu0 %v10281_v13  ;;  %v10494_v6 = vpop.eup %10493  ;;  %v10294_v45 = vld [vmem:[#allocation9 + $0x2d0] ss:$12 sps:$4 sm:$0xff]  }
 0x313   : > { %v5157_v38 = vpop.f32.mrf.mxu1  ;;  %6850 = vmatprep.subr.bf16.mxu1 %v10284_v25  ;;  %10507 = vtanh.f32 %v5152_v33  ;;  %v5045_v4 = vadd.f32 %v5044_v27, %v12313_v30  ;;  %5656 = vmatprep.mubr.bf16.mxu0 %v13544_v32  ;;  %v5156_v12 = vadd.f32 %v5155_v62, %v5043_v35  ;;  %v10293_v30 = vld [vmem:[#allocation9 + $0x154] ss:$12 sps:$4 sm:$0xff]   ;;  %v10299_v13 = vld [vmem:[#allocation9 + $0x13c] ss:$12 sps:$4 sm:$0xff]   ;;  %v10297_v35 = vld [vmem:[#allocation9 + $0x138] ss:$12 sps:$4 sm:$0xff]  }
 0x314   : > { %13639 = vst [vmem:[#allocation34_spill] sm:$0xff] %v12414_v23  ;;  %5753 = vmatprep.mubr.bf16.mxu1 %v13545_v15  ;;  %v5046_v42 = vpop.f32.mrf.mxu0  ;;  %v10296_v32 = vld [vmem:[#allocation9 + $0x2d4] ss:$12 sps:$4 sm:$0xff]   ;;  %v10302_v25 = vld [vmem:[#allocation9 + $0x2bc] ss:$12 sps:$4 sm:$0xff]  }
 0x315   : > { %v5159_v9 = vpop.f32.mrf.mxu1  ;;  %v5047_v44 = vadd.f32 %v5046_v42, %v12316_v57  ;;  %6738 = vmatpush1.bf16.msra.mxu0 %v10279_v26  ;;  %v5158_v58 = vadd.f32 %v5157_v38, %v5045_v4  ;;  %10509 = vtanh.f32 %v5156_v12  ;;  %v10300_v26 = vld [vmem:[#allocation9 + $0x2b8] ss:$12 sps:$4 sm:$0xff]  }
 0x316   : > { %6851 = vmatpush1.bf16.msra.mxu1 %v10282_v2  ;;  %v10496_v17 = vpop.eup %10495  ;;  %v5048_v50 = vpop.f32.mrf.mxu0  ;;  %6739 = vmatprep.subr.bf16.mxu0 %v10287_v52 }
 0x317   : > { %v5161_v59 = vpop.f32.mrf.mxu1  ;;  %6852 = vmatprep.subr.bf16.mxu1 %v10290_v51  ;;  %v10498_v37 = vpop.eup %10497  ;;  %v5160_v15 = vadd.f32 %v5159_v9, %v5047_v44  ;;  %v5049_v63 = vadd.f32 %v5048_v50, %v12321_v18  ;;  %v12421_v54 = vpack.c.bf16 %v10496_v17, %v10494_v6  ;;  %v10308_v51 = vld [vmem:[#allocation9 + $0x2a4] ss:$12 sps:$4 sm:$0xff]   ;;  %v10303_v50 = vld [vmem:[#allocation9 + $0x120] ss:$12 sps:$4 sm:$0xff]  }
 0x318   : > { %v10500_v40 = vpop.eup %10499  ;;  %v5052_v57 = vpop.f32.mrf.mxu0  ;;  %5657 = vmatmul.mubr.bf16.gmra.mxu0 %v13641_v53 }
 0x319   : > { %13640 = vst [vmem:[#allocation35_spill] sm:$0xff] %v12421_v54  ;;  %v5165_v24 = vpop.f32.mrf.mxu1  ;;  %5754 = vmatmul.mubr.bf16.gmra.mxu1 %v13642_v8  ;;  %10511 = vtanh.f32 %v5160_v15  ;;  %v5162_v10 = vadd.f32 %v5161_v59, %v5049_v63  ;;  %v5053_v34 = vadd.f32 %v5052_v57, %v12326_v61  ;;  %6740 = vmatpush2.bf16.msra.mxu0 %v10285_v22  ;;  %v13647_v22 = vld [vmem:[#allocation107_spill] sm:$0xff]  ;;  %v13651_v57 = vld [vmem:[#allocation110_spill] sm:$0xff] }
 0x31a   : > { %6853 = vmatpush2.bf16.msra.mxu1 %v10288_v46  ;;  %v12426_v0 = vpack.c.bf16 %v10500_v40, %v10498_v37  ;;  %10513 = vtanh.f32 %v5158_v58  ;;  %v5054_v18 = vpop.f32.mrf.mxu0  ;;  %6741 = vmatprep.subr.bf16.mxu0 %v10293_v30  ;;  %v10502_v62 = vpop.eup %10501  ;;  %v13648_v46 = vld [vmem:[#allocation108_spill] sm:$0xff]  ;;  %v10306_v59 = vld [vmem:[#allocation9 + $0x2a0] ss:$12 sps:$4 sm:$0xff]  }
 0x31b   : > { %v5167_v49 = vpop.f32.mrf.mxu1  ;;  %6854 = vmatprep.subr.bf16.mxu1 %v10296_v32  ;;  %10515 = vtanh.f32 %v5162_v10  ;;  %v5055_v47 = vadd.f32 %v5054_v18, %v12329_v56  ;;  %5664 = vmatprep.mubr.bf16.mxu0 %v13644_v14  ;;  %v5166_v61 = vadd.f32 %v5165_v24, %v5053_v34  ;;  %v10305_v56 = vld [vmem:[#allocation9 + $0x124] ss:$12 sps:$4 sm:$0xff]   ;;  %v10311_v37 = vld [vmem:[#allocation9 + $0x10c] ss:$12 sps:$4 sm:$0xff]   ;;  %v10309_v34 = vld [vmem:[#allocation9 + $0x108] ss:$12 sps:$4 sm:$0xff]  }
 0x31c   : > { %13643 = vst [vmem:[#allocation36_spill] sm:$0xff] %v12426_v0  ;;  %5761 = vmatprep.mubr.bf16.mxu1 %v13645_v1  ;;  %v5056_v29 = vpop.f32.mrf.mxu0  ;;  %v10314_v15 = vld [vmem:[#allocation9 + $0x28c] ss:$12 sps:$4 sm:$0xff]  }
 0x31d   : > { %v5169_v28 = vpop.f32.mrf.mxu1  ;;  %v5057_v33 = vadd.f32 %v5056_v29, %v12332_v3  ;;  %6742 = vmatpush2.bf16.msra.mxu0 %v10291_v16  ;;  %v5168_v27 = vadd.f32 %v5167_v49, %v5055_v47  ;;  %10517 = vtanh.f32 %v5166_v61  ;;  %v13650_v40 = vld [vmem:[#allocation109_spill] sm:$0xff]  ;;  %v10312_v16 = vld [vmem:[#allocation9 + $0x288] ss:$12 sps:$4 sm:$0xff]  }
 0x31e   : > { %6855 = vmatpush2.bf16.msra.mxu1 %v10294_v45  ;;  %v10504_v2 = vpop.eup %10503  ;;  %v5058_v38 = vpop.f32.mrf.mxu0  ;;  %6743 = vmatprep.subr.bf16.mxu0 %v10299_v13 }
 0x31f   : > { %v5171_v52 = vpop.f32.mrf.mxu1  ;;  %6856 = vmatprep.subr.bf16.mxu1 %v10302_v25  ;;  %v10506_v4 = vpop.eup %10505  ;;  %v5170_v12 = vadd.f32 %v5169_v28, %v5057_v33  ;;  %v5059_v42 = vadd.f32 %v5058_v38, %v12337_v55  ;;  %v12433_v9 = vpack.c.bf16 %v10504_v2, %v10502_v62  ;;  %v10320_v25 = vld [vmem:[#allocation9 + $0x274] ss:$12 sps:$4 sm:$0xff]   ;;  %v13653_v62 = vld [vmem:[#allocation111_spill] sm:$0xff] }
 0x320   : > { %v10508_v6 = vpop.eup %10507  ;;  %v5062_v3 = vpop.f32.mrf.mxu0  ;;  %5665 = vmatmul.mubr.bf16.gmra.mxu0 %v13647_v22  ;;  %v13654_v33 = vld [vmem:[#allocation112_spill] sm:$0xff] }
 0x321   : > { %13646 = vst [vmem:[#allocation37_spill] sm:$0xff] %v12433_v9  ;;  %v5175_v44 = vpop.f32.mrf.mxu1  ;;  %5762 = vmatmul.mubr.bf16.gmra.mxu1 %v13648_v46  ;;  %10519 = vtanh.f32 %v5170_v12  ;;  %v5172_v17 = vadd.f32 %v5171_v52, %v5059_v42  ;;  %v5063_v58 = vadd.f32 %v5062_v3, %v12342_v19  ;;  %6744 = vmatpush2.bf16.msra.mxu0 %v10297_v35  ;;  %v10315_v2 = vld [vmem:[#allocation9 + $0xf0] ss:$12 sps:$4 sm:$0xff]   ;;  %v13657_v42 = vld [vmem:[#allocation114_spill] sm:$0xff] }
 0x322   : > { %6857 = vmatpush2.bf16.msra.mxu1 %v10300_v26  ;;  %v12438_v30 = vpack.c.bf16 %v10508_v6, %v10506_v4  ;;  %10521 = vtanh.f32 %v5168_v27  ;;  %v5064_v55 = vpop.f32.mrf.mxu0  ;;  %6745 = vmatprep.subr.bf16.mxu0 %v10305_v56  ;;  %v10510_v8 = vpop.eup %10509  ;;  %v10318_v27 = vld [vmem:[#allocation9 + $0x270] ss:$12 sps:$4 sm:$0xff]   ;;  %v10321_v46 = vld [vmem:[#allocation9 + $0xd8] ss:$12 sps:$4 sm:$0xff]  }
 0x323   : > { %v5177_v32 = vpop.f32.mrf.mxu1  ;;  %6858 = vmatprep.subr.bf16.mxu1 %v10308_v51  ;;  %10523 = vtanh.f32 %v5172_v17  ;;  %v5065_v63 = vadd.f32 %v5064_v55, %v12345_v21  ;;  %5672 = vmatprep.mubr.bf16.mxu0 %v13650_v40  ;;  %v5176_v19 = vadd.f32 %v5175_v44, %v5063_v58  ;;  %v10317_v21 = vld [vmem:[#allocation9 + $0xf4] ss:$12 sps:$4 sm:$0xff]   ;;  %v10323_v56 = vld [vmem:[#allocation9 + $0xdc] ss:$12 sps:$4 sm:$0xff]   ;;  %v10324_v55 = vld [vmem:[#allocation9 + $0x258] ss:$12 sps:$4 sm:$0xff]  }
 0x324   : > { %13649 = vst [vmem:[#allocation38_spill] sm:$0xff] %v12438_v30  ;;  %5769 = vmatprep.mubr.bf16.mxu1 %v13651_v57  ;;  %v5066_v24 = vpop.f32.mrf.mxu0  ;;  %v10326_v51 = vld [vmem:[#allocation9 + $0x25c] ss:$12 sps:$4 sm:$0xff]  }
 0x325   : > { %v5179_v53 = vpop.f32.mrf.mxu1  ;;  %v5067_v10 = vadd.f32 %v5066_v24, %v12348_v5  ;;  %6746 = vmatpush2.bf16.msra.mxu0 %v10303_v50  ;;  %v5178_v18 = vadd.f32 %v5177_v32, %v5065_v63  ;;  %10525 = vtanh.f32 %v5176_v19  ;;  %v13656_v12 = vld [vmem:[#allocation113_spill] sm:$0xff]  ;;  %v10332_v63 = vld [vmem:[#allocation9 + $0x244] ss:$12 sps:$4 sm:$0xff]  }
 0x326   : > { %6859 = vmatpush2.bf16.msra.mxu1 %v10306_v59  ;;  %v10512_v45 = vpop.eup %10511  ;;  %v5068_v49 = vpop.f32.mrf.mxu0  ;;  %6747 = vmatprep.subr.bf16.mxu0 %v10311_v37  ;;  %v13659_v24 = vld [vmem:[#allocation115_spill] sm:$0xff] }
 0x327   : > { %v5181_v13 = vpop.f32.mrf.mxu1  ;;  %6860 = vmatprep.subr.bf16.mxu1 %v10314_v15  ;;  %v10514_v47 = vpop.eup %10513  ;;  %v5180_v14 = vadd.f32 %v5179_v53, %v5067_v10  ;;  %v5069_v1 = vadd.f32 %v5068_v49, %v12353_v41  ;;  %v12445_v61 = vpack.c.bf16 %v10512_v45, %v10510_v8  ;;  %v10329_v15 = vld [vmem:[#allocation9 + $0xc4] ss:$12 sps:$4 sm:$0xff]   ;;  %v10330_v49 = vld [vmem:[#allocation9 + $0x240] ss:$12 sps:$4 sm:$0xff]  }
 0x328   : > { %v10516_v29 = vpop.eup %10515  ;;  %v5072_v5 = vpop.f32.mrf.mxu0  ;;  %5673 = vmatmul.mubr.bf16.gmra.mxu0 %v13653_v62  ;;  %v13660_v53 = vld [vmem:[#allocation116_spill] sm:$0xff] }
 0x329   : > { %13652 = vst [vmem:[#allocation39_spill] sm:$0xff] %v12445_v61  ;;  %v5185_v28 = vpop.f32.mrf.mxu1  ;;  %5770 = vmatmul.mubr.bf16.gmra.mxu1 %v13654_v33  ;;  %10527 = vtanh.f32 %v5180_v14  ;;  %v5182_v35 = vadd.f32 %v5181_v13, %v5069_v1  ;;  %v5073_v26 = vadd.f32 %v5072_v5, %v12358_v60  ;;  %6748 = vmatpush2.bf16.msra.mxu0 %v10309_v34  ;;  %v13661_v34 = vld [vmem:[#allocation91_spill] sm:$0xff]  ;;  %v13663_v5 = vld [vmem:[#allocation117_spill] sm:$0xff] }
 0x32a   : > { %6861 = vmatpush2.bf16.msra.mxu1 %v10312_v16  ;;  %v12450_v38 = vpack.c.bf16 %v10516_v29, %v10514_v47  ;;  %10529 = vtanh.f32 %v5178_v18  ;;  %v5074_v41 = vpop.f32.mrf.mxu0  ;;  %6749 = vmatprep.subr.bf16.mxu0 %v10317_v21  ;;  %v10518_v44 = vpop.eup %10517  ;;  %v10351_v13 = vld [vmem:[#allocation9 + $0x3ac] ss:$12 sps:$4 sm:$0xff]  }
 0x32b   : > { %v5187_v52 = vpop.f32.mrf.mxu1  ;;  %6862 = vmatprep.subr.bf16.mxu1 %v10320_v25  ;;  %10531 = vtanh.f32 %v5182_v35  ;;  %v5075_v4 = vadd.f32 %v5074_v41, %v12361_v43  ;;  %5680 = vmatprep.mubr.bf16.mxu0 %v13656_v12  ;;  %v5186_v60 = vadd.f32 %v5185_v28, %v5073_v26  ;;  %v1345_v28 = vsub.s32 4, %v13663_v5  ;;  %v13684_v5 = vld [vmem:[#allocation31_spill] sm:$0xff] }
 0x32c   : > { %13655 = vst [vmem:[#allocation40_spill] sm:$0xff] %v12450_v38  ;;  %5777 = vmatprep.mubr.bf16.mxu1 %v13657_v42  ;;  %v5076_v6 = vpop.f32.mrf.mxu0  ;;  %v13665_v42 = vld [vmem:[#allocation90_spill] sm:$0xff] }
 0x32d   : > { %v5189_v3 = vpop.f32.mrf.mxu1  ;;  %v5077_v22 = vadd.f32 %v5076_v6, %v12364_v11  ;;  %6750 = vmatpush2.bf16.msra.mxu0 %v10315_v2  ;;  %v5188_v58 = vadd.f32 %v5187_v52, %v5075_v4  ;;  %10533 = vtanh.f32 %v5186_v60  ;;  %v10334_v2 = vld [vmem:[#allocation9 + $0xb0] ss:$12 sps:$4 sm:$0xff]   ;;  %v10335_v52 = vld [vmem:[#allocation9 + $0x158] ss:$12 sps:$4 sm:$0xff]   ;;  %v10354_v60 = vld [vmem:[#allocation9 + $0x394] ss:$12 sps:$4 sm:$0xff]  }
 0x32e   : > { %6863 = vmatpush2.bf16.msra.mxu1 %v10318_v27  ;;  %v10520_v17 = vpop.eup %10519  ;;  %v5078_v50 = vpop.f32.mrf.mxu0  ;;  %6751 = vmatprep.subr.bf16.mxu0 %v10323_v56 }
 0x32f   : > { %v5191_v59 = vpop.f32.mrf.mxu1  ;;  %6864 = vmatprep.subr.bf16.mxu1 %v10326_v51  ;;  %v10522_v43 = vpop.eup %10521  ;;  %v5190_v32 = vadd.f32 %v5189_v3, %v5077_v22  ;;  %v5079_v37 = vadd.f32 %v5078_v50, %v12369_v48  ;;  %v12457_v40 = vpack.c.bf16 %v10520_v17, %v10518_v44  ;;  %v10327_v48 = vld [vmem:[#allocation9 + $0xc0] ss:$12 sps:$4 sm:$0xff]   ;;  %v10349_v51 = vld [vmem:[#allocation9 + $0x3a8] ss:$12 sps:$4 sm:$0xff]   ;;  %v10710_v44 = vld [vmem:[#allocation8] sm:$0x1f] }
 0x330   : > { %v10524_v57 = vpop.eup %10523  ;;  %v5082_v11 = vpop.f32.mrf.mxu0  ;;  %5681 = vmatmul.mubr.bf16.gmra.mxu0 %v13659_v24  ;;  %v13666_v3 = vld [vmem:[#allocation95_spill] sm:$0xff] }
 0x331   : > { %13658 = vst [vmem:[#allocation41_spill] sm:$0xff] %v12457_v40  ;;  %v5195_v19 = vpop.f32.mrf.mxu1  ;;  %5778 = vmatmul.mubr.bf16.gmra.mxu1 %v13660_v53  ;;  %10535 = vtanh.f32 %v5190_v32  ;;  %v5192_v8 = vadd.f32 %v5191_v59, %v5079_v37  ;;  %v5083_v10 = vadd.f32 %v5082_v11, %v12374_v31  ;;  %6752 = vmatpush2.bf16.msra.mxu0 %v10321_v46  ;;  %v10333_v31 = vld [vmem:[#allocation9 + $0x170] ss:$12 sps:$4 sm:$0xff]  }
 0x332   : > { %6755 = vmatprep.mubr.bf16.mxu0 %v13661_v34  ;;  %v12463_v16 = vpack.c.bf16 %v10524_v57, %v10522_v43  ;;  %10537 = vtanh.f32 %v5188_v58  ;;  %6865 = vmatpush2.bf16.msra.mxu1 %v10324_v55  ;;  %v5084_v45 = vpop.f32.mrf.mxu0  ;;  %v10526_v1 = vpop.eup %10525  ;;  %v10336_v58 = vld [vmem:[#allocation9 + $0x98] ss:$12 sps:$4 sm:$0xff]   ;;  %v10337_v55 = vld [vmem:[#allocation9 + $0x140] ss:$12 sps:$4 sm:$0xff]  }
 0x333   : > { %6868 = vmatprep.mubr.bf16.mxu1 %v12414_v23  ;;  %v5197_v18 = vpop.f32.mrf.mxu1  ;;  %10539 = vtanh.f32 %v5192_v8  ;;  %v5085_v21 = vadd.f32 %v5084_v45, %v12377_v7  ;;  %6753 = vmatprep.subr.bf16.mxu0 %v10329_v15  ;;  %v5196_v25 = vadd.f32 %v5195_v19, %v5083_v10  ;;  %v10338_v19 = vld [vmem:[#allocation9 + $0x80] ss:$12 sps:$4 sm:$0xff]  }
 0x334   : > { %13662 = vst [vmem:[#allocation42_spill] sm:$0xff] %v12463_v16  ;;  %6866 = vmatprep.subr.bf16.mxu1 %v10332_v63  ;;  %v5086_v47 = vpop.f32.mrf.mxu0 }
 0x335   : > { %v5199_v14 = vpop.f32.mrf.mxu1  ;;  %v5087_v29 = vadd.f32 %v5086_v47, %v12380_v20  ;;  %6754 = vmatpush2.bf16.msra.mxu0 %v10327_v48  ;;  %v5198_v33 = vadd.f32 %v5197_v18, %v5085_v21  ;;  %10541 = vtanh.f32 %v5196_v25  ;;  %v10339_v48 = vld [vmem:[#allocation9 + $0x128] ss:$12 sps:$4 sm:$0xff]   ;;  %v10352_v18 = vld [vmem:[#allocation9 + $0x390] ss:$12 sps:$4 sm:$0xff]  }
 0x336   : > { %v10528_v62 = vpop.eup %10527  ;;  %6867 = vmatpush2.bf16.msra.mxu1 %v10330_v49  ;;  %v5088_v35 = vpop.f32.mrf.mxu0  ;;  %6949 = vmatprep.subr.bf16.mxu0 %v10351_v13  ;;  %v10357_v25 = vld [vmem:[#allocation9 + $0x37c] ss:$12 sps:$4 sm:$0xff]  }
 0x337   : > { %v5201_v26 = vpop.f32.mrf.mxu1  ;;  %v10530_v7 = vpop.eup %10529  ;;  %v5200_v27 = vadd.f32 %v5199_v14, %v5087_v29  ;;  %v5089_v41 = vadd.f32 %v5088_v35, %v12385_v36  ;;  %9099 = vmatprep.subr.bf16.mxu1 %v10333_v31  ;;  %v12470_v56 = vpack.c.bf16 %v10528_v62, %v10526_v1  ;;  %v12475_v36 = vrot.slane %v10710_v44, %v1345_v28  ;;  %v13669_v31 = vld [vmem:[#allocation92_spill] sm:$0xff]  ;;  %v13670_v14 = vld [vmem:[#allocation97_spill] sm:$0xff] }
 0x338   : > { %v10532_v20 = vpop.eup %10531  ;;  %v8731_v4 = vpop.f32.mrf.mxu0  ;;  %6756 = vmatmul.mubr.bf16.vlgmr.msra.gmra.mxu0 %v13665_v42  ;;  %v10340_v62 = vld [vmem:[#allocation9 + $0x68] ss:$12 sps:$4 sm:$0xff]  }
 0x339   : > { %13664 = vst [vmem:[#allocation43_spill] sm:$0xff] %v12470_v56  ;;  %v8795_v12 = vpop.f32.mrf.mxu1  ;;  %10543 = vtanh.f32 %v5200_v27  ;;  %v5202_v6 = vadd.f32 %v5201_v26, %v5089_v41  ;;  %6869 = vmatmul.mubr.bf16.vlgmr.msra.gmra.mxu1 %v12408_v39  ;;  %6765 = vmatprep.mubr.bf16.mxu0 %v13666_v3  ;;  %v12477_v22 = vpack.c.bf16 %v10532_v20, %v10530_v7 }
 0x33a   : > { %10545 = vtanh.f32 %v5198_v33  ;;  %6878 = vmatprep.mubr.bf16.mxu1 %v12426_v0  ;;  %v8732_v46 = vpop.f32.mrf.mxu0  ;;  %9100 = vmatpush3.bf16.msra.mxu1 %v10334_v2  ;;  %v10534_v37 = vpop.eup %10533  ;;  %v10341_v2 = vld [vmem:[#allocation9 + $0x110] ss:$12 sps:$4 sm:$0xff]  }
 0x33b   : > { %13667 = vst [vmem:[#allocation44_spill] sm:$0xff] %v12477_v22  ;;  %v8796_v17 = vpop.f32.mrf.mxu1  ;;  %10547 = vtanh.f32 %v5202_v6  ;;  %v8733_v50 = vadd.f32 %v8732_v46, %v8731_v4  ;;  %9101 = vmatprep.subr.bf16.mxu1 %v10335_v52  ;;  %6950 = vmatpush1.bf16.msra.mxu0 %v10349_v51 }
 0x33c   : > { %v8797_v59 = vadd.f32 %v8796_v17, %v8795_v12  ;;  %v8734_v43 = vpop.f32.mrf.mxu0  ;;  %6951 = vmatprep.subr.bf16.mxu0 %v10354_v60  ;;  %v10342_v12 = vld [vmem:[#allocation9 + $0x50] ss:$12 sps:$4 sm:$0xff]   ;;  %v10343_v17 = vld [vmem:[#allocation9 + $0xf8] ss:$12 sps:$4 sm:$0xff]  }
 0x33d   : > { %v8798_v32 = vpop.f32.mrf.mxu1  ;;  %v5239_v15 = vadd.f32 %v8733_v50, %v12475_v36  ;;  %v10355_v50 = vld [vmem:[#allocation9 + $0x378] ss:$12 sps:$4 sm:$0xff]  }
 0x33e   : > { %v10536_v63 = vpop.eup %10535  ;;  %v8735_v57 = vpop.f32.mrf.mxu0  ;;  %9102 = vmatpush3.bf16.msra.mxu1 %v10336_v58 }
 0x33f   : > { %v8799_v11 = vpop.f32.mrf.mxu1  ;;  %v10538_v24 = vpop.eup %10537  ;;  %v12481_v53 = vadd.f32 %v8797_v59, %v5239_v15  ;;  %v8736_v8 = vadd.f32 %v8735_v57, %v8734_v43  ;;  %9103 = vmatprep.subr.bf16.mxu1 %v10337_v55  ;;  %v12483_v45 = vpack.c.bf16 %v10536_v63, %v10534_v37  ;;  %6952 = vmatpush1.bf16.msra.mxu0 %v10352_v18  ;;  %v10360_v37 = vld [vmem:[#allocation9 + $0x364] ss:$12 sps:$4 sm:$0xff]   ;;  %v10345_v18 = vld [vmem:[#allocation9 + $0xe0] ss:$12 sps:$4 sm:$0xff]  }
 0x340   : > { %v8800_v10 = vadd.f32 %v8799_v11, %v8798_v32  ;;  %v10540_v49 = vpop.eup %10539  ;;  %v8737_v13 = vpop.f32.mrf.mxu0  ;;  %6766 = vmatmul.mubr.bf16.gmra.mxu0 %v13669_v31  ;;  %6953 = vmatprep.subr.bf16.mxu0 %v10357_v25  ;;  %v13673_v32 = vld [vmem:[#allocation96_spill] sm:$0xff] }
 0x341   : > { %13668 = vst [vmem:[#allocation45_spill] sm:$0xff] %v12483_v45  ;;  %v8801_v21 = vpop.f32.mrf.mxu1  ;;  %v5242_v47 = vadd.f32 %v8736_v8, %v12475_v36  ;;  %6879 = vmatmul.mubr.bf16.gmra.mxu1 %v12421_v54  ;;  %6775 = vmatprep.mubr.bf16.mxu0 %v13670_v14  ;;  %v12489_v1 = vpack.c.bf16 %v10540_v49, %v10538_v24  ;;  %v13674_v63 = vld [vmem:[#allocation100_spill] sm:$0xff]  ;;  %v10358_v49 = vld [vmem:[#allocation9 + $0x360] ss:$12 sps:$4 sm:$0xff]  }
 0x342   : > { %6888 = vmatprep.mubr.bf16.mxu1 %v12438_v30  ;;  %v8738_v29 = vpop.f32.mrf.mxu0  ;;  %9104 = vmatpush3.bf16.msra.mxu1 %v10338_v19  ;;  %v10542_v41 = vpop.eup %10541  ;;  %v10344_v24 = vld [vmem:[#allocation9 + $0x38] ss:$12 sps:$4 sm:$0xff]  }
 0x343   : > { %13671 = vst [vmem:[#allocation46_spill] sm:$0xff] %v12489_v1  ;;  %v8802_v28 = vpop.f32.mrf.mxu1  ;;  %v12492_v33 = vadd.f32 %v8800_v10, %v5242_v47  ;;  %v8739_v35 = vadd.f32 %v8738_v29, %v8737_v13  ;;  %9105 = vmatprep.subr.bf16.mxu1 %v10339_v48  ;;  %6954 = vmatpush1.bf16.msra.mxu0 %v10355_v50  ;;  %v10363_v25 = vld [vmem:[#allocation9 + $0x34c] ss:$12 sps:$4 sm:$0xff]  }
 0x344   : > { %v8803_v26 = vadd.f32 %v8802_v28, %v8801_v21  ;;  %v8740_v7 = vpop.f32.mrf.mxu0  ;;  %6955 = vmatprep.subr.bf16.mxu0 %v10360_v37 }
 0x345   : > { %v8804_v27 = vpop.f32.mrf.mxu1  ;;  %v5247_v52 = vadd.f32 %v8739_v35, %v12475_v36 }
 0x346   : > { %v10544_v51 = vpop.eup %10543  ;;  %v8741_v20 = vpop.f32.mrf.mxu0  ;;  %9106 = vmatpush3.bf16.msra.mxu1 %v10340_v62  ;;  %v10346_v62 = vld [vmem:[#allocation9 + $0x20] ss:$12 sps:$4 sm:$0xff]  }
 0x347   : > { %v8805_v4 = vpop.f32.mrf.mxu1  ;;  %v10546_v60 = vpop.eup %10545  ;;  %v12495_v6 = vadd.f32 %v8803_v26, %v5247_v52  ;;  %v8742_v44 = vadd.f32 %v8741_v20, %v8740_v7  ;;  %9107 = vmatprep.subr.bf16.mxu1 %v10341_v2  ;;  %v12497_v58 = vpack.c.bf16 %v10544_v51, %v10542_v41  ;;  %v10347_v7 = vld [vmem:[#allocation9 + $0xc8] ss:$12 sps:$4 sm:$0xff]   ;;  %6956 = vmatpush1.bf16.msra.mxu0 %v10358_v49 }
 0x348   : > { %v8806_v46 = vadd.f32 %v8805_v4, %v8804_v27  ;;  %v10548_v59 = vpop.eup %10547  ;;  %v8743_v55 = vpop.f32.mrf.mxu0  ;;  %6776 = vmatmul.mubr.bf16.gmra.mxu0 %v13673_v32  ;;  %v10361_v27 = vld [vmem:[#allocation9 + $0x348] ss:$12 sps:$4 sm:$0xff]   ;;  %6957 = vmatprep.subr.bf16.mxu0 %v10363_v25 }
 0x349   : > { %13672 = vst [vmem:[#allocation47_spill] sm:$0xff] %v12497_v58  ;;  %v8807_v43 = vpop.f32.mrf.mxu1  ;;  %v5250_v15 = vadd.f32 %v8742_v44, %v12475_v36  ;;  %6889 = vmatmul.mubr.bf16.gmra.mxu1 %v12433_v9  ;;  %6785 = vmatprep.mubr.bf16.mxu0 %v13674_v63  ;;  %v12503_v57 = vpack.c.bf16 %v10548_v59, %v10546_v60  ;;  %v13676_v51 = vld [vmem:[#allocation99_spill] sm:$0xff]  ;;  %v10366_v20 = vld [vmem:[#allocation9 + $0x334] ss:$12 sps:$4 sm:$0xff]  }
 0x34a   : > { %6898 = vmatprep.mubr.bf16.mxu1 %v12450_v38  ;;  %v8744_v11 = vpop.f32.mrf.mxu0  ;;  %9108 = vmatpush3.bf16.msra.mxu1 %v10342_v12  ;;  %v13677_v12 = vld [vmem:[#allocation102_spill] sm:$0xff] }
 0x34b   : > { %13675 = vst [vmem:[#allocation48_spill] sm:$0xff] %v12503_v57  ;;  %v8808_v19 = vpop.f32.mrf.mxu1  ;;  %v12506_v8 = vadd.f32 %v8806_v46, %v5250_v15  ;;  %v8745_v10 = vadd.f32 %v8744_v11, %v8743_v55  ;;  %9109 = vmatprep.subr.bf16.mxu1 %v10343_v17  ;;  %v10348_v46 = vld [vmem:[#allocation9 + $0x8] ss:$12 sps:$4 sm:$0xff]   ;;  %6958 = vmatpush1.bf16.msra.mxu0 %v10361_v27  ;;  %v10364_v55 = vld [vmem:[#allocation9 + $0x330] ss:$12 sps:$4 sm:$0xff]  }
 0x34c   : > { %v8809_v48 = vadd.f32 %v8808_v19, %v8807_v43  ;;  %v8746_v13 = vpop.f32.mrf.mxu0  ;;  %v12518_v43 = vld [vmem:[#allocation9 + $0x3b0] ss:$12 sps:$4 sm:$0xff]   ;;  %6959 = vmatprep.subr.bf16.mxu0 %v10366_v20  ;;  %v10374_v20 = vld [vmem:[#allocation9 + $0x300] ss:$12 sps:$4 sm:$0xff]  }
 0x34d   : > { %v8810_v21 = vpop.f32.mrf.mxu1  ;;  %v5255_v47 = vadd.f32 %v8745_v10, %v12475_v36  ;;  %v10371_v11 = vld [vmem:[#allocation9 + $0x31c] ss:$12 sps:$4 sm:$0xff]  }
 0x34e   : > { %v8747_v29 = vpop.f32.mrf.mxu0  ;;  %9110 = vmatpush3.bf16.msra.mxu1 %v10344_v24  ;;  %v13373_v24 = vmov 0  }
 0x34f   : > { %v8811_v28 = vpop.f32.mrf.mxu1  ;;  %v12509_v35 = vadd.f32 %v8809_v48, %v5255_v47  ;;  %v8748_v26 = vadd.f32 %v8747_v29, %v8746_v13  ;;  %9111 = vmatprep.subr.bf16.mxu1 %v10345_v18  ;;  %9564 = vset.pattern.permute.xlu0 %v13373_v24  ;;  %v13678_v29 = vld [vmem:[#allocation101_spill] sm:$0xff] }
 0x350   : > { %v8812_v2 = vadd.f32 %v8811_v28, %v8810_v21  ;;  %v8749_v41 = vpop.f32.mrf.mxu0  ;;  %6786 = vmatmul.mubr.bf16.gmra.mxu0 %v13676_v51  ;;  %v10369_v21 = vld [vmem:[#allocation9 + $0x318] ss:$12 sps:$4 sm:$0xff]  }
 0x351   : > { %v8813_v52 = vpop.f32.mrf.mxu1  ;;  %v5258_v4 = vadd.f32 %v8748_v26, %v12475_v36  ;;  %6899 = vmatmul.mubr.bf16.gmra.mxu1 %v12445_v61  ;;  %6795 = vmatprep.mubr.bf16.mxu0 %v13677_v12  ;;  %v10376_v28 = vld [vmem:[#allocation9 + $0x304] ss:$12 sps:$4 sm:$0xff]  }
 0x352   : > { %6908 = vmatprep.mubr.bf16.mxu1 %v12463_v16  ;;  %v8750_v60 = vpop.f32.mrf.mxu0  ;;  %9112 = vmatpush3.bf16.msra.mxu1 %v10346_v62  ;;  %v13679_v26 = vld [vmem:[#allocation28_spill] sm:$0xff] }
 0x353   : > { %v8814_v44 = vpop.f32.mrf.mxu1  ;;  %v12516_v17 = vadd.f32 %v8812_v2, %v5258_v4  ;;  %v8751_v50 = vadd.f32 %v8750_v60, %v8749_v41  ;;  %9113 = vmatprep.subr.bf16.mxu1 %v10347_v7  ;;  %6960 = vmatpush1.bf16.msra.mxu0 %v10364_v55 }
 0x354   : > { %v8815_v59 = vadd.f32 %v8814_v44, %v8813_v52  ;;  %v8752_v37 = vpop.f32.mrf.mxu0  ;;  %6961 = vmatprep.subr.bf16.mxu0 %v10371_v11  ;;  %v10379_v44 = vld [vmem:[#allocation9 + $0x2f0] ss:$12 sps:$4 sm:$0xff]  }
 0x355   : > { %v8816_v15 = vpop.f32.mrf.mxu1  ;;  %v5263_v19 = vadd.f32 %v8751_v50, %v12475_v36 }
 0x356   : > { %v8753_v10 = vpop.f32.mrf.mxu0  ;;  %9114 = vmatpush3.bf16.msra.mxu1 %v10348_v46 }
 0x357   : > { %v8817_v48 = vpop.f32.mrf.mxu1  ;;  %v12522_v18 = vadd.f32 %v8815_v59, %v5263_v19  ;;  %v8754_v49 = vadd.f32 %v8753_v10, %v8752_v37  ;;  %9340 = vmatprep.subr.bf16.mxu1 %v12518_v43  ;;  %6962 = vmatpush1.bf16.msra.mxu0 %v10369_v21  ;;  %v13680_v10 = vld [vmem:[#allocation27_spill] sm:$0xff] }
 0x358   : > { %v8818_v13 = vadd.f32 %v8817_v48, %v8816_v15  ;;  %v8755_v25 = vpop.f32.mrf.mxu0  ;;  %6796 = vmatmul.mubr.bf16.gmra.mxu0 %v13678_v29  ;;  %6963 = vmatprep.subr.bf16.mxu0 %v10376_v28 }
 0x359   : > { %v8819_v47 = vpop.f32.mrf.mxu1  ;;  %v5266_v62 = vadd.f32 %v8754_v49, %v12475_v36  ;;  %6909 = vmatmul.mubr.bf16.gmra.mxu1 %v12457_v40  ;;  %6805 = vmatprep.mubr.bf16.mxu0 %v13679_v26  ;;  %v13681_v49 = vld [vmem:[#allocation30_spill] sm:$0xff] }
 0x35a   : > { %6918 = vmatprep.mubr.bf16.mxu1 %v12477_v22  ;;  %v8756_v2 = vpop.f32.mrf.mxu0 }
 0x35b   : > { %v8820_v7 = vpop.f32.mrf.mxu1  ;;  %v12530_v27 = vadd.f32 %v8818_v13, %v5266_v62  ;;  %v8757_v41 = vadd.f32 %v8756_v2, %v8755_v25  ;;  %6964 = vmatpush1.bf16.msra.mxu0 %v10374_v20 }
 0x35c   : > { %v8821_v52 = vadd.f32 %v8820_v7, %v8819_v47  ;;  %v8758_v4 = vpop.f32.mrf.mxu0  ;;  %9163 = vmatprep.subr.bf16.mxu0 %v10379_v44 }
 0x35d   : > { %v8822_v60 = vpop.f32.mrf.mxu1  ;;  %v5271_v46 = vadd.f32 %v8757_v41, %v12475_v36 }
 0x35e   : > { %v8759_v50 = vpop.f32.mrf.mxu0 }
 0x35f   : > { %v8823_v59 = vpop.f32.mrf.mxu1  ;;  %v12533_v55 = vadd.f32 %v8821_v52, %v5271_v46  ;;  %v8760_v37 = vadd.f32 %v8759_v50, %v8758_v4  ;;  %v13682_v50 = vld [vmem:[#allocation29_spill] sm:$0xff] }
 0x360   : > { %v8824_v15 = vadd.f32 %v8823_v59, %v8822_v60  ;;  %v8761_v11 = vpop.f32.mrf.mxu0  ;;  %6806 = vmatmul.mubr.bf16.gmra.mxu0 %v13680_v10 }
 0x361   : > { %v8825_v19 = vpop.f32.mrf.mxu1  ;;  %v5274_v48 = vadd.f32 %v8760_v37, %v12475_v36  ;;  %6919 = vmatmul.mubr.bf16.gmra.mxu1 %v12470_v56  ;;  %6815 = vmatprep.mubr.bf16.mxu0 %v13681_v49  ;;  %v13683_v37 = vld [vmem:[#allocation32_spill] sm:$0xff] }
 0x362   : > { %6928 = vmatprep.mubr.bf16.mxu1 %v12489_v1  ;;  %v8762_v13 = vpop.f32.mrf.mxu0 }
 0x363   : > { %v8826_v21 = vpop.f32.mrf.mxu1  ;;  %v12540_v25 = vadd.f32 %v8824_v15, %v5274_v48  ;;  %v8763_v47 = vadd.f32 %v8762_v13, %v8761_v11 }
 0x364   : > { %v8827_v28 = vadd.f32 %v8826_v21, %v8825_v19  ;;  %v8764_v62 = vpop.f32.mrf.mxu0 }
 0x365   : > { %v8828_v2 = vpop.f32.mrf.mxu1  ;;  %v5279_v7 = vadd.f32 %v8763_v47, %v12475_v36 }
 0x366   : > { %v8765_v41 = vpop.f32.mrf.mxu0 }
 0x367   : > { %v8829_v52 = vpop.f32.mrf.mxu1  ;;  %v12543_v20 = vadd.f32 %v8827_v28, %v5279_v7  ;;  %v8766_v4 = vadd.f32 %v8765_v41, %v8764_v62 }
 0x368   : > { %v8830_v60 = vadd.f32 %v8829_v52, %v8828_v2  ;;  %v8767_v44 = vpop.f32.mrf.mxu0  ;;  %6816 = vmatmul.mubr.bf16.gmra.mxu0 %v13682_v50 }
 0x369   : > { %v8831_v46 = vpop.f32.mrf.mxu1  ;;  %v5282_v59 = vadd.f32 %v8766_v4, %v12475_v36  ;;  %6929 = vmatmul.mubr.bf16.gmra.mxu1 %v12483_v45  ;;  %6825 = vmatprep.mubr.bf16.mxu0 %v13683_v37 }
 0x36a   : > { %6938 = vmatprep.mubr.bf16.mxu1 %v12503_v57  ;;  %v8768_v15 = vpop.f32.mrf.mxu0 }
 0x36b   : > { %v8832_v11 = vpop.f32.mrf.mxu1  ;;  %v12550_v19 = vadd.f32 %v8830_v60, %v5282_v59  ;;  %v8769_v48 = vadd.f32 %v8768_v15, %v8767_v44  ;;  %v13685_v60 = vmov 0  }
 0x36c   : > { %v8833_v13 = vadd.f32 %v8832_v11, %v8831_v46  ;;  %v8770_v21 = vpop.f32.mrf.mxu0 }
 0x36d   : > { %v8834_v47 = vpop.f32.mrf.mxu1  ;;  %v5287_v28 = vadd.f32 %v8769_v48, %v12475_v36 }
 0x36e   : > { %v8771_v62 = vpop.f32.mrf.mxu0 }
 0x36f   : > { %v8835_v2 = vpop.f32.mrf.mxu1  ;;  %v12553_v7 = vadd.f32 %v8833_v13, %v5287_v28  ;;  %v8772_v41 = vadd.f32 %v8771_v62, %v8770_v21 }
 0x370   : > { %v8836_v52 = vadd.f32 %v8835_v2, %v8834_v47  ;;  %v8773_v4 = vpop.f32.mrf.mxu0  ;;  %6826 = vmatmul.mubr.bf16.gmra.mxu0 %v13684_v5 }
 0x371   : > { %v8837_v24 = vpop.f32.mrf.mxu1  ;;  %v5290_v57 = vadd.f32 %v8772_v41, %v12475_v36  ;;  %6939 = vmatmul.mubr.bf16.gmra.mxu1 %v12497_v58  ;;  %6981 = vmatprep.mubr.bf16.mxu0 %v13685_v60  ;;  %v10368_v58 = vld [vmem:[#allocation9 + $0x398] ss:$12 sps:$4 sm:$0xff]  }
 0x372   : > { %7094 = vmatprep.mubr.bf16.mxu1 %v13661_v34  ;;  %v8774_v44 = vpop.f32.mrf.mxu0 }
 0x373   : > { %v8838_v46 = vpop.f32.mrf.mxu1  ;;  %v12560_v59 = vadd.f32 %v8836_v52, %v5290_v57  ;;  %v8775_v15 = vadd.f32 %v8774_v44, %v8773_v4 }
 0x374   : > { %v8839_v11 = vadd.f32 %v8838_v46, %v8837_v24  ;;  %v8776_v48 = vpop.f32.mrf.mxu0  ;;  %v10372_v46 = vld [vmem:[#allocation9 + $0x380] ss:$12 sps:$4 sm:$0xff]  }
 0x375   : > { %v8840_v13 = vpop.f32.mrf.mxu1  ;;  %v5295_v21 = vadd.f32 %v8775_v15, %v12475_v36 }
 0x376   : > { %v8777_v47 = vpop.f32.mrf.mxu0 }
 0x377   : > { %v8841_v28 = vpop.f32.mrf.mxu1  ;;  %v12563_v62 = vadd.f32 %v8839_v11, %v5295_v21  ;;  %v8778_v2 = vadd.f32 %v8777_v47, %v8776_v48 }
 0x378   : > { %v8842_v41 = vadd.f32 %v8841_v28, %v8840_v13  ;;  %v8859_v45 = vpop.f32.mrf.mxu0  ;;  %v10377_v28 = vld [vmem:[#allocation9 + $0x350] ss:$12 sps:$4 sm:$0xff]  }
 0x379   : > { %v8923_v1 = vpop.f32.mrf.mxu1  ;;  %v5298_v34 = vadd.f32 %v8778_v2, %v12475_v36  ;;  %7095 = vmatmul.mubr.bf16.vlgmr.msra.gmra.mxu1 %v13665_v42 }
 0x37a   : > { %7102 = vmatprep.mubr.bf16.mxu1 %v13666_v3  ;;  %v8860_v57 = vpop.f32.mrf.mxu0  ;;  %9341 = vmatpush3.bf16.msra.mxu1 %v12518_v43  ;;  %v10373_v43 = vld [vmem:[#allocation9 + $0x368] ss:$12 sps:$4 sm:$0xff]  }
 0x37b   : > { %v8924_v24 = vpop.f32.mrf.mxu1  ;;  %v12569_v52 = vadd.f32 %v8842_v41, %v5298_v34  ;;  %v8861_v4 = vadd.f32 %v8860_v57, %v8859_v45  ;;  %9342 = vmatprep.subr.bf16.mxu1 %v10368_v58 }
 0x37c   : > { %v8925_v44 = vadd.f32 %v8924_v24, %v8923_v1  ;;  %v12571_v15 = vpop.f32.mrf.mxu0 }
 0x37d   : > { %13686 = vst [vmem:[#allocation49_spill] sm:$0xff] %v12569_v52  ;;  %v12573_v11 = vpop.f32.mrf.mxu1  ;;  %v5433_v36 = vadd.f32 %v8861_v4, %v12481_v53 }
 0x37e   : > { %v12576_v48 = vpop.f32.mrf.mxu0  ;;  %9343 = vmatpush3.bf16.msra.mxu1 %v10368_v58 }
 0x37f   : > { %v12578_v42 = vpop.f32.mrf.mxu1  ;;  %v12580_v3 = vadd.f32 %v8925_v44, %v5433_v36  ;;  %9344 = vmatprep.subr.bf16.mxu1 %v10372_v46 }
 0x380   : > { %v8865_v13 = vpop.f32.mrf.mxu0 }
 0x381   : > { %v8929_v45 = vpop.f32.mrf.mxu1  ;;  %7103 = vmatmul.mubr.bf16.gmra.mxu1 %v13669_v31 }
 0x382   : > { %7110 = vmatprep.mubr.bf16.mxu1 %v13670_v14  ;;  %v8866_v1 = vpop.f32.mrf.mxu0  ;;  %9345 = vmatpush3.bf16.msra.mxu1 %v10372_v46  ;;  %v10378_v14 = vld [vmem:[#allocation9 + $0x338] ss:$12 sps:$4 sm:$0xff]  }
 0x383   : > { %v8930_v21 = vpop.f32.mrf.mxu1  ;;  %v8867_v47 = vadd.f32 %v8866_v1, %v8865_v13  ;;  %9346 = vmatprep.subr.bf16.mxu1 %v10373_v43  ;;  %v10380_v13 = vld [vmem:[#allocation9 + $0x320] ss:$12 sps:$4 sm:$0xff]  }
 0x384   : > { %v8931_v53 = vadd.f32 %v8930_v21, %v8929_v45  ;;  %v12584_v2 = vpop.f32.mrf.mxu0 }
 0x385   : > { %v12586_v58 = vpop.f32.mrf.mxu1  ;;  %v5441_v41 = vadd.f32 %v8867_v47, %v12495_v6 }
 0x386   : > { %v12589_v34 = vpop.f32.mrf.mxu0  ;;  %9347 = vmatpush3.bf16.msra.mxu1 %v10373_v43 }
 0x387   : > { %v12591_v57 = vpop.f32.mrf.mxu1  ;;  %v12593_v31 = vadd.f32 %v8931_v53, %v5441_v41  ;;  %9348 = vmatprep.subr.bf16.mxu1 %v10377_v28 }
 0x388   : > { %v8871_v24 = vpop.f32.mrf.mxu0 }
 0x389   : > { %v8935_v4 = vpop.f32.mrf.mxu1  ;;  %7111 = vmatmul.mubr.bf16.gmra.mxu1 %v13673_v32 }
 0x38a   : > { %7118 = vmatprep.mubr.bf16.mxu1 %v13674_v63  ;;  %v8872_v44 = vpop.f32.mrf.mxu0  ;;  %9349 = vmatpush3.bf16.msra.mxu1 %v10377_v28  ;;  %v10382_v63 = vld [vmem:[#allocation9 + $0x308] ss:$12 sps:$4 sm:$0xff]  }
 0x38b   : > { %v8936_v46 = vpop.f32.mrf.mxu1  ;;  %v8873_v36 = vadd.f32 %v8872_v44, %v8871_v24  ;;  %9350 = vmatprep.subr.bf16.mxu1 %v10378_v14 }
 0x38c   : > { %v8937_v6 = vadd.f32 %v8936_v46, %v8935_v4  ;;  %v12597_v45 = vpop.f32.mrf.mxu0 }
 0x38d   : > { %v12599_v43 = vpop.f32.mrf.mxu1  ;;  %v5449_v1 = vadd.f32 %v8873_v36, %v12509_v35 }
 0x38e   : > { %v12602_v21 = vpop.f32.mrf.mxu0  ;;  %9351 = vmatpush3.bf16.msra.mxu1 %v10378_v14 }
 0x38f   : > { %v12604_v47 = vpop.f32.mrf.mxu1  ;;  %v12606_v32 = vadd.f32 %v8937_v6, %v5449_v1  ;;  %9352 = vmatprep.subr.bf16.mxu1 %v10380_v13 }
 0x390   : > { %v8877_v53 = vpop.f32.mrf.mxu0 }
 0x391   : > { %v8941_v28 = vpop.f32.mrf.mxu1  ;;  %7119 = vmatmul.mubr.bf16.gmra.mxu1 %v13676_v51 }
 0x392   : > { %7126 = vmatprep.mubr.bf16.mxu1 %v13677_v12  ;;  %v8878_v41 = vpop.f32.mrf.mxu0  ;;  %9353 = vmatpush3.bf16.msra.mxu1 %v10380_v13 }
 0x393   : > { %v8942_v24 = vpop.f32.mrf.mxu1  ;;  %v8879_v4 = vadd.f32 %v8878_v41, %v8877_v53  ;;  %9354 = vmatprep.subr.bf16.mxu1 %v10382_v63 }
 0x394   : > { %v8943_v35 = vadd.f32 %v8942_v24, %v8941_v28  ;;  %v12610_v44 = vpop.f32.mrf.mxu0 }
 0x395   : > { %v12612_v46 = vpop.f32.mrf.mxu1  ;;  %v5457_v14 = vadd.f32 %v8879_v4, %v12522_v18 }
 0x396   : > { %v12615_v36 = vpop.f32.mrf.mxu0  ;;  %9355 = vmatpush3.bf16.msra.mxu1 %v10382_v63 }
 0x397   : > { %v12617_v6 = vpop.f32.mrf.mxu1  ;;  %v12619_v51 = vadd.f32 %v8943_v35, %v5457_v14 }
 0x398   : > { %v8883_v12 = vpop.f32.mrf.mxu0 }
 0x399   : > { %v8947_v1 = vpop.f32.mrf.mxu1  ;;  %7127 = vmatmul.mubr.bf16.gmra.mxu1 %v13678_v29 }
 0x39a   : > { %7134 = vmatprep.mubr.bf16.mxu1 %v13679_v26  ;;  %v8884_v13 = vpop.f32.mrf.mxu0 }
 0x39b   : > { %v8948_v53 = vpop.f32.mrf.mxu1  ;;  %v8885_v28 = vadd.f32 %v8884_v13, %v8883_v12 }
 0x39c   : > { %v8949_v41 = vadd.f32 %v8948_v53, %v8947_v1  ;;  %v12623_v24 = vpop.f32.mrf.mxu0 }
 0x39d   : > { %v12625_v18 = vpop.f32.mrf.mxu1  ;;  %v5465_v4 = vadd.f32 %v8885_v28, %v12533_v55 }
 0x39e   : > { %v12628_v56 = vpop.f32.mrf.mxu0 }
 0x39f   : > { %v12630_v63 = vpop.f32.mrf.mxu1  ;;  %v12632_v35 = vadd.f32 %v8949_v41, %v5465_v4 }
 0x3a0   : > { %v8889_v14 = vpop.f32.mrf.mxu0 }
 0x3a1   : > { %v8953_v29 = vpop.f32.mrf.mxu1  ;;  %7135 = vmatmul.mubr.bf16.gmra.mxu1 %v13680_v10 }
 0x3a2   : > { %7142 = vmatprep.mubr.bf16.mxu1 %v13681_v49  ;;  %v8890_v26 = vpop.f32.mrf.mxu0 }
 0x3a3   : > { %v8954_v12 = vpop.f32.mrf.mxu1  ;;  %v8891_v1 = vadd.f32 %v8890_v26, %v8889_v14 }
 0x3a4   : > { %v8955_v13 = vadd.f32 %v8954_v12, %v8953_v29  ;;  %v12636_v53 = vpop.f32.mrf.mxu0 }
 0x3a5   : > { %v12638_v22 = vpop.f32.mrf.mxu1  ;;  %v5473_v55 = vadd.f32 %v8891_v1, %v12543_v20 }
 0x3a6   : > { %v12641_v28 = vpop.f32.mrf.mxu0 }
 0x3a7   : > { %v12643_v41 = vpop.f32.mrf.mxu1  ;;  %v12645_v4 = vadd.f32 %v8955_v13, %v5473_v55 }
 0x3a8   : > { %v8895_v40 = vpop.f32.mrf.mxu0 }
 0x3a9   : > { %v8959_v10 = vpop.f32.mrf.mxu1  ;;  %7143 = vmatmul.mubr.bf16.gmra.mxu1 %v13682_v50 }
 0x3aa   : > { %7150 = vmatprep.mubr.bf16.mxu1 %v13683_v37  ;;  %v8896_v49 = vpop.f32.mrf.mxu0 }
 0x3ab   : > { %v8960_v14 = vpop.f32.mrf.mxu1  ;;  %v8897_v29 = vadd.f32 %v8896_v49, %v8895_v40 }
 0x3ac   : > { %v8961_v26 = vadd.f32 %v8960_v14, %v8959_v10  ;;  %v12649_v12 = vpop.f32.mrf.mxu0 }
 0x3ad   : > { %v12651_v16 = vpop.f32.mrf.mxu1  ;;  %v5481_v20 = vadd.f32 %v8897_v29, %v12553_v7 }
 0x3ae   : > { %v12654_v1 = vpop.f32.mrf.mxu0 }
 0x3af   : > { %v12656_v13 = vpop.f32.mrf.mxu1  ;;  %v12658_v55 = vadd.f32 %v8961_v26, %v5481_v20  ;;  %v8864_v26 = vadd.f32 %v12576_v48, %v12571_v15  ;;  %v8870_v48 = vadd.f32 %v12589_v34, %v12584_v2 }
 0x3b0   : > { %v8901_v61 = vpop.f32.mrf.mxu0 }
 0x3b1   : > { %v8965_v50 = vpop.f32.mrf.mxu1  ;;  %7151 = vmatmul.mubr.bf16.gmra.mxu1 %v13684_v5  ;;  %v5444_v52 = vadd.f32 %v8870_v48, %v12506_v8 }
 0x3b2   : > { %v8902_v37 = vpop.f32.mrf.mxu0 }
 0x3b3   : > { %v8966_v38 = vpop.f32.mrf.mxu1  ;;  %v8903_v40 = vadd.f32 %v8902_v37, %v8901_v61 }
 0x3b4   : > { %v8967_v10 = vadd.f32 %v8966_v38, %v8965_v50  ;;  %v12661_v49 = vpop.f32.mrf.mxu0  ;;  %v5436_v38 = vadd.f32 %v8864_v26, %v12492_v33 }
 0x3b5   : > { %v12663_v14 = vpop.f32.mrf.mxu1  ;;  %v5489_v7 = vadd.f32 %v8903_v40, %v12563_v62  ;;  %v8928_v62 = vadd.f32 %v12578_v42, %v12573_v11 }
 0x3b6   : > { %13687 = vst [vmem:[#allocation50_spill] sm:$0xff] %v12663_v14  ;;  %v12666_v29 = vpop.f32.mrf.mxu0 }
 0x3b7   : > { %v12668_v9 = vpop.f32.mrf.mxu1  ;;  %v12672_v20 = vadd.f32 %v8967_v10, %v5489_v7  ;;  %v5533_v15 = vadd.f32 %v8928_v62, %v5436_v38 }
 0x3b8   : > { %13688 = vst [vmem:[#allocation51_spill] sm:$0xff] %v12668_v9  ;;  %v8987_v5 = vpop.f32.mrf.mxu0 }
 0x3b9   : > { %13689 = vst [vmem:[#allocation52_spill] sm:$0xff] %v12672_v20  ;;  %v9051_v30 = vpop.f32.mrf.mxu1 }
 0x3ba   : > { %v8988_v54 = vpop.f32.mrf.mxu0 }
 0x3bb   : > { %v9052_v61 = vpop.f32.mrf.mxu1  ;;  %v8989_v50 = vadd.f32 %v8988_v54, %v8987_v5 }
 0x3bc   : > { %v8990_v37 = vpop.f32.mrf.mxu0  ;;  %v9053_v39 = vadd.f32 %v9052_v61, %v9051_v30  ;;  %v8934_v61 = vadd.f32 %v12591_v57, %v12586_v58 }
 0x3bd   : > { %v9054_v0 = vpop.f32.mrf.mxu1  ;;  %v5627_v40 = vadd.f32 %v8989_v50, %v12580_v3 }
 0x3be   : > { %v8991_v23 = vpop.f32.mrf.mxu0  ;;  %v5541_v38 = vadd.f32 %v8934_v61, %v5444_v52  ;;  %v8940_v52 = vadd.f32 %v12604_v47, %v12599_v43  ;;  %v10381_v47 = vld [vmem:[#allocation9 + $0x230] ss:$12 sps:$4 sm:$0xff]  }
 0x3bf   : > { %v9055_v9 = vpop.f32.mrf.mxu1  ;;  %v8992_v10 = vadd.f32 %v8991_v23, %v8990_v37  ;;  %v5724_v7 = vadd.f32 %v9053_v39, %v5627_v40 }
 0x3c0   : > { %v8993_v20 = vpop.f32.mrf.mxu0  ;;  %v9056_v54 = vadd.f32 %v9055_v9, %v9054_v0  ;;  %v8876_v0 = vadd.f32 %v12602_v21, %v12597_v45 }
 0x3c1   : > { %v9057_v14 = vpop.f32.mrf.mxu1  ;;  %v5630_v33 = vadd.f32 %v8992_v10, %v5533_v15  ;;  %10549 = vtanh.f32 %v5724_v7 }
 0x3c2   : > { %v8994_v26 = vpop.f32.mrf.mxu0  ;;  %v5452_v58 = vadd.f32 %v8876_v0, %v12516_v17 }
 0x3c3   : > { %v9058_v5 = vpop.f32.mrf.mxu1  ;;  %v5727_v11 = vadd.f32 %v9056_v54, %v5630_v33  ;;  %v8995_v42 = vadd.f32 %v8994_v26, %v8993_v20  ;;  %v8882_v54 = vadd.f32 %v12615_v36, %v12610_v44  ;;  %v8946_v36 = vadd.f32 %v12617_v6, %v12612_v46 }
 0x3c4   : > { %v8996_v30 = vpop.f32.mrf.mxu0  ;;  %v9059_v39 = vadd.f32 %v9058_v5, %v9057_v14  ;;  %v5549_v33 = vadd.f32 %v8940_v52, %v5452_v58 }
 0x3c5   : > { %v9060_v3 = vpop.f32.mrf.mxu1  ;;  %10551 = vtanh.f32 %v5727_v11  ;;  %v5635_v23 = vadd.f32 %v8995_v42, %v12593_v31 }
 0x3c6   : > { %v8997_v2 = vpop.f32.mrf.mxu0 }
 0x3c7   : > { %v9061_v34 = vpop.f32.mrf.mxu1  ;;  %v8998_v9 = vadd.f32 %v8997_v2, %v8996_v30  ;;  %v5732_v8 = vadd.f32 %v9059_v39, %v5635_v23 }
 0x3c8   : > { %v8999_v50 = vpop.f32.mrf.mxu0  ;;  %v9062_v62 = vadd.f32 %v9061_v34, %v9060_v3 }
 0x3c9   : > { %v9063_v20 = vpop.f32.mrf.mxu1  ;;  %v5638_v37 = vadd.f32 %v8998_v9, %v5541_v38  ;;  %10553 = vtanh.f32 %v5732_v8  ;;  %v10383_v38 = vld [vmem:[#allocation9 + $0x2d8] ss:$12 sps:$4 sm:$0xff]  }
 0x3ca   : > { %v9000_v40 = vpop.f32.mrf.mxu0 }
 0x3cb   : > { %v9064_v15 = vpop.f32.mrf.mxu1  ;;  %v5735_v57 = vadd.f32 %v9062_v62, %v5638_v37  ;;  %v9001_v48 = vadd.f32 %v9000_v40, %v8999_v50  ;;  %v8888_v62 = vadd.f32 %v12628_v56, %v12623_v24  ;;  %v10387_v56 = vld [vmem:[#allocation9 + $0x2a8] ss:$12 sps:$4 sm:$0xff]  }
 0x3cc   : > { %v9002_v31 = vpop.f32.mrf.mxu0  ;;  %v9065_v21 = vadd.f32 %v9064_v15, %v9063_v20  ;;  %v10385_v15 = vld [vmem:[#allocation9 + $0x2c0] ss:$12 sps:$4 sm:$0xff]  }
 0x3cd   : > { %v9066_v14 = vpop.f32.mrf.mxu1  ;;  %10555 = vtanh.f32 %v5735_v57  ;;  %v5643_v45 = vadd.f32 %v9001_v48, %v12606_v32  ;;  %v5460_v32 = vadd.f32 %v8882_v54, %v12530_v27  ;;  %v10384_v27 = vld [vmem:[#allocation9 + $0x218] ss:$12 sps:$4 sm:$0xff]  }
 0x3ce   : > { %v9003_v10 = vpop.f32.mrf.mxu0  ;;  %v10550_v42 = vpop.eup %10549 }
 0x3cf   : > { %v9067_v7 = vpop.f32.mrf.mxu1  ;;  %v9004_v26 = vadd.f32 %v9003_v10, %v9002_v31  ;;  %v5740_v17 = vadd.f32 %v9065_v21, %v5643_v45  ;;  %v5557_v37 = vadd.f32 %v8946_v36, %v5460_v32  ;;  %v10386_v45 = vld [vmem:[#allocation9 + $0x200] ss:$12 sps:$4 sm:$0xff]   ;;  %v5468_v21 = vadd.f32 %v8888_v62, %v12540_v25  ;;  %v10388_v25 = vld [vmem:[#allocation9 + $0x1e8] ss:$12 sps:$4 sm:$0xff]  }
 0x3d0   : > { %v9005_v5 = vpop.f32.mrf.mxu0  ;;  %v9068_v3 = vadd.f32 %v9067_v7, %v9066_v14 }
 0x3d1   : > { %v9069_v11 = vpop.f32.mrf.mxu1  ;;  %v5646_v30 = vadd.f32 %v9004_v26, %v5549_v33  ;;  %10557 = vtanh.f32 %v5740_v17  ;;  %v8952_v26 = vadd.f32 %v12630_v63, %v12625_v18 }
 0x3d2   : > { %v10552_v61 = vpop.eup %10551  ;;  %v9006_v23 = vpop.f32.mrf.mxu0 }
 0x3d3   : > { %v9070_v43 = vpop.f32.mrf.mxu1  ;;  %v5743_v39 = vadd.f32 %v9068_v3, %v5646_v30  ;;  %v9007_v2 = vadd.f32 %v9006_v23, %v9005_v5  ;;  %v5870_v34 = vpack.c.bf16 %v10552_v61, %v10550_v42  ;;  %v5565_v30 = vadd.f32 %v8952_v26, %v5468_v21  ;;  %v10389_v23 = vld [vmem:[#allocation9 + $0x290] ss:$12 sps:$4 sm:$0xff]  }
 0x3d4   : > { %v9008_v0 = vpop.f32.mrf.mxu0  ;;  %v9071_v8 = vadd.f32 %v9070_v43, %v9069_v11  ;;  %v8894_v3 = vadd.f32 %v12641_v28, %v12636_v53  ;;  %v10391_v53 = vld [vmem:[#allocation9 + $0x278] ss:$12 sps:$4 sm:$0xff]  }
 0x3d5   : > { %v9072_v44 = vpop.f32.mrf.mxu1  ;;  %10559 = vtanh.f32 %v5743_v39  ;;  %v5651_v9 = vadd.f32 %v9007_v2, %v12619_v51  ;;  %6982 = vmatmul.mubr.bf16.vlgmr.msra.gmra.mxu0 %v5870_v34  ;;  %9356 = vmatprep.mubr.bf16.mxu1 %v5870_v34 }
 0x3d6   : > { %v9009_v50 = vpop.f32.mrf.mxu0  ;;  %9164 = vmatpush3.bf16.msra.mxu0 %v10381_v47  ;;  %6991 = vmatprep.mubr.bf16.mxu0 %v13685_v60  ;;  %v10554_v51 = vpop.eup %10553 }
 0x3d7   : > { %v9073_v20 = vpop.f32.mrf.mxu1  ;;  %v9010_v40 = vadd.f32 %v9009_v50, %v9008_v0  ;;  %9165 = vmatprep.subr.bf16.mxu0 %v10383_v38  ;;  %v5748_v46 = vadd.f32 %v9071_v8, %v5651_v9  ;;  %v10390_v38 = vld [vmem:[#allocation9 + $0x1d0] ss:$12 sps:$4 sm:$0xff]   ;;  %v5476_v0 = vadd.f32 %v8894_v3, %v12550_v19  ;;  %v8958_v50 = vadd.f32 %v12643_v41, %v12638_v22  ;;  %v10392_v19 = vld [vmem:[#allocation9 + $0x1b8] ss:$12 sps:$4 sm:$0xff]  }
 0x3d8   : > { %v9011_v6 = vpop.f32.mrf.mxu0  ;;  %v9074_v48 = vadd.f32 %v9073_v20, %v9072_v44 }
 0x3d9   : > { %v9075_v58 = vpop.f32.mrf.mxu1  ;;  %v5654_v57 = vadd.f32 %v9010_v40, %v5557_v37  ;;  %10561 = vtanh.f32 %v5748_v46  ;;  %v5573_v40 = vadd.f32 %v8958_v50, %v5476_v0  ;;  %v13694_v0 = vld [vmem:[#allocation52_spill] sm:$0xff] }
 0x3da   : > { %v10556_v31 = vpop.eup %10555  ;;  %v9012_v14 = vpop.f32.mrf.mxu0  ;;  %9166 = vmatpush3.bf16.msra.mxu0 %v10384_v27 }
 0x3db   : > { %v9076_v52 = vpop.f32.mrf.mxu1  ;;  %v5751_v10 = vadd.f32 %v9074_v48, %v5654_v57  ;;  %v9013_v7 = vadd.f32 %v9012_v14, %v9011_v6  ;;  %v5875_v33 = vpack.c.bf16 %v10556_v31, %v10554_v51  ;;  %9167 = vmatprep.subr.bf16.mxu0 %v10385_v15  ;;  %v8900_v15 = vadd.f32 %v12654_v1, %v12649_v12  ;;  %v10393_v6 = vld [vmem:[#allocation9 + $0x260] ss:$12 sps:$4 sm:$0xff]   ;;  %v10395_v12 = vld [vmem:[#allocation9 + $0x248] ss:$12 sps:$4 sm:$0xff]  }
 0x3dc   : > { %v9014_v24 = vpop.f32.mrf.mxu0  ;;  %v9077_v5 = vadd.f32 %v9076_v52, %v9075_v58  ;;  %v10394_v52 = vld [vmem:[#allocation9 + $0x1a0] ss:$12 sps:$4 sm:$0xff]  }
 0x3dd   : > { %v9078_v54 = vpop.f32.mrf.mxu1  ;;  %10563 = vtanh.f32 %v5751_v10  ;;  %v5659_v17 = vadd.f32 %v9013_v7, %v12632_v35  ;;  %6992 = vmatmul.mubr.bf16.gmra.mxu0 %v5875_v33  ;;  %9357 = vmatmul.mubr.bf16.vlgmr.msra.gmra.mxu1 %v5875_v33 }
 0x3de   : > { %v9015_v11 = vpop.f32.mrf.mxu0  ;;  %7001 = vmatprep.mubr.bf16.mxu0 %v13685_v60  ;;  %9168 = vmatpush3.bf16.msra.mxu0 %v10386_v45  ;;  %v10558_v35 = vpop.eup %10557  ;;  %v5484_v45 = vadd.f32 %v8900_v15, %v12560_v59  ;;  %v10396_v59 = vld [vmem:[#allocation9 + $0x188] ss:$12 sps:$4 sm:$0xff]  }
 0x3df   : > { %v9079_v42 = vpop.f32.mrf.mxu1  ;;  %v9016_v61 = vadd.f32 %v9015_v11, %v9014_v24  ;;  %9169 = vmatprep.subr.bf16.mxu0 %v10387_v56  ;;  %v5756_v18 = vadd.f32 %v9077_v5, %v5659_v17  ;;  %v8964_v56 = vadd.f32 %v12656_v13, %v12651_v16  ;;  %v8906_v11 = vadd.f32 %v12666_v29, %v12661_v49 }
 0x3e0   : > { %v9017_v63 = vpop.f32.mrf.mxu0  ;;  %v9080_v32 = vadd.f32 %v9079_v42, %v9078_v54 }
 0x3e1   : > { %v9081_v43 = vpop.f32.mrf.mxu1  ;;  %v5662_v47 = vadd.f32 %v9016_v61, %v5565_v30  ;;  %10565 = vtanh.f32 %v5756_v18  ;;  %v5581_v5 = vadd.f32 %v8964_v56, %v5484_v45 }
 0x3e2   : > { %v10560_v39 = vpop.eup %10559  ;;  %v9018_v2 = vpop.f32.mrf.mxu0  ;;  %9170 = vmatpush3.bf16.msra.mxu0 %v10388_v25 }
 0x3e3   : > { %v9082_v34 = vpop.f32.mrf.mxu1  ;;  %v5759_v44 = vadd.f32 %v9080_v32, %v5662_v47  ;;  %v9019_v36 = vadd.f32 %v9018_v2, %v9017_v63  ;;  %v5880_v9 = vpack.c.bf16 %v10560_v39, %v10558_v35  ;;  %9171 = vmatprep.subr.bf16.mxu0 %v10389_v23  ;;  %v12720_v63 = vld [vmem:[#allocation11] sm:$0x7] }
 0x3e4   : > { %v9020_v28 = vpop.f32.mrf.mxu0  ;;  %v9083_v27 = vadd.f32 %v9082_v34, %v9081_v43  ;;  %13690 = vst [vmem:[#allocation53_spill] sm:$0xff] %v12720_v63  ;;  %v13691_v43 = vld [vmem:[#allocation49_spill] sm:$0xff]  ;;  %v13692_v2 = vld [vmem:[#allocation50_spill] sm:$0xff]  ;;  %v13693_v34 = vld [vmem:[#allocation51_spill] sm:$0xff] }
 0x3e5   : > { %v9084_v8 = vpop.f32.mrf.mxu1  ;;  %10567 = vtanh.f32 %v5759_v44  ;;  %v5667_v20 = vadd.f32 %v9019_v36, %v12645_v4  ;;  %7002 = vmatmul.mubr.bf16.gmra.mxu0 %v5880_v9  ;;  %9360 = vmatprep.mubr.bf16.mxu1 %v5880_v9  ;;  %v5492_v35 = vadd.f32 %v8906_v11, %v13691_v43  ;;  %v13695_v36 = vld [vmem:[#allocation118_spill] sm:$0xff] }
 0x3e6   : > { %v9021_v37 = vpop.f32.mrf.mxu0  ;;  %7011 = vmatprep.mubr.bf16.mxu0 %v13685_v60  ;;  %9172 = vmatpush3.bf16.msra.mxu0 %v10390_v38  ;;  %v10562_v4 = vpop.eup %10561  ;;  %v8970_v38 = vadd.f32 %v13693_v34, %v13692_v2  ;;  %v12728_v9 = vrot.slane %v12720_v63, %v13695_v36  ;;  %v10416_v36 = vld [vmem:[#allocation12 + $0xa0] sm:$0xff]  }
 0x3e7   : > { %v9085_v62 = vpop.f32.mrf.mxu1  ;;  %v9022_v46 = vadd.f32 %v9021_v37, %v9020_v28  ;;  %9173 = vmatprep.subr.bf16.mxu0 %v10391_v53  ;;  %v5764_v22 = vadd.f32 %v9083_v27, %v5667_v20 }
 0x3e8   : > { %v9023_v41 = vpop.f32.mrf.mxu0  ;;  %v9086_v57 = vadd.f32 %v9085_v62, %v9084_v8  ;;  %v5589_v50 = vadd.f32 %v8970_v38, %v5492_v35 }
 0x3e9   : > { %v9087_v58 = vpop.f32.mrf.mxu1  ;;  %v5670_v51 = vadd.f32 %v9022_v46, %v5573_v40  ;;  %10569 = vtanh.f32 %v5764_v22 }
 0x3ea   : > { %v10564_v48 = vpop.eup %10563  ;;  %v9024_v31 = vpop.f32.mrf.mxu0  ;;  %9174 = vmatpush3.bf16.msra.mxu0 %v10392_v19 }
 0x3eb   : > { %v9088_v14 = vpop.f32.mrf.mxu1  ;;  %v5767_v21 = vadd.f32 %v9086_v57, %v5670_v51  ;;  %v9025_v10 = vadd.f32 %v9024_v31, %v9023_v41  ;;  %v5885_v7 = vpack.c.bf16 %v10564_v48, %v10562_v4  ;;  %9175 = vmatprep.subr.bf16.mxu0 %v10393_v6  ;;  %v10397_v41 = vld [vmem:[#allocation12 + $0x78] sm:$0xff]   ;;  %v10399_v31 = vld [vmem:[#allocation12 + $0x70] sm:$0xff]  }
 0x3ec   : > { %v9026_v1 = vpop.f32.mrf.mxu0  ;;  %v9089_v54 = vadd.f32 %v9088_v14, %v9087_v58  ;;  %v10398_v58 = vld [vmem:[#allocation12 + $0x38] sm:$0xff]   ;;  %9243 = vmatprep.subr.bf16.mxu1 %v10397_v41  ;;  %v10404_v41 = vld [vmem:[#allocation12 + $0x20] sm:$0xff]  }
 0x3ed   : > { %v9090_v33 = vpop.f32.mrf.mxu1  ;;  %10571 = vtanh.f32 %v5767_v21  ;;  %v5675_v24 = vadd.f32 %v9025_v10, %v12658_v55  ;;  %7012 = vmatmul.mubr.bf16.gmra.mxu0 %v5885_v7  ;;  %9361 = vmatmul.mubr.bf16.gmra.mxu1 %v5885_v7  ;;  %v10400_v21 = vld [vmem:[#allocation12 + $0x30] sm:$0xff]  }
 0x3ee   : > { %v9027_v26 = vpop.f32.mrf.mxu0  ;;  %7021 = vmatprep.mubr.bf16.mxu0 %v13685_v60  ;;  %9176 = vmatpush3.bf16.msra.mxu0 %v10394_v52  ;;  %v10566_v30 = vpop.eup %10565 }
 0x3ef   : > { %v9091_v17 = vpop.f32.mrf.mxu1  ;;  %v9028_v42 = vadd.f32 %v9027_v26, %v9026_v1  ;;  %9177 = vmatprep.subr.bf16.mxu0 %v10395_v12  ;;  %v5772_v25 = vadd.f32 %v9089_v54, %v5675_v24  ;;  %9244 = vmatpush3.bf16.msra.mxu1 %v10398_v58 }
 0x3f0   : > { %v9029_v16 = vpop.f32.mrf.mxu0  ;;  %v9092_v3 = vadd.f32 %v9091_v17, %v9090_v33  ;;  %9245 = vmatprep.subr.bf16.mxu1 %v10399_v31 }
 0x3f1   : > { %v9093_v13 = vpop.f32.mrf.mxu1  ;;  %v5678_v55 = vadd.f32 %v9028_v42, %v5581_v5  ;;  %10573 = vtanh.f32 %v5772_v25 }
 0x3f2   : > { %v10568_v61 = vpop.eup %10567  ;;  %v9030_v23 = vpop.f32.mrf.mxu0  ;;  %9178 = vmatpush3.bf16.msra.mxu0 %v10396_v59 }
 0x3f3   : > { %v9094_v18 = vpop.f32.mrf.mxu1  ;;  %v5775_v47 = vadd.f32 %v9092_v3, %v5678_v55  ;;  %v9031_v32 = vadd.f32 %v9030_v23, %v9029_v16  ;;  %v5890_v39 = vpack.c.bf16 %v10568_v61, %v10566_v30  ;;  %9246 = vmatpush3.bf16.msra.mxu1 %v10400_v21  ;;  %v13700_v21 = vld [vmem:[#allocation38_spill] sm:$0xff] }
 0x3f4   : > { %v9032_v49 = vpop.f32.mrf.mxu0  ;;  %v9095_v53 = vadd.f32 %v9094_v18, %v9093_v13 }
 0x3f5   : > { %v9096_v29 = vpop.f32.mrf.mxu1  ;;  %10575 = vtanh.f32 %v5775_v47  ;;  %v5683_v44 = vadd.f32 %v9031_v32, %v13694_v0  ;;  %7022 = vmatmul.mubr.bf16.gmra.mxu0 %v5890_v39  ;;  %9364 = vmatprep.mubr.bf16.mxu1 %v5890_v39  ;;  %v13696_v47 = vld [vmem:[#allocation34_spill] sm:$0xff] }
 0x3f6   : > { %v9033_v28 = vpop.f32.mrf.mxu0  ;;  %7031 = vmatprep.mubr.bf16.mxu0 %v13685_v60  ;;  %v10570_v62 = vpop.eup %10569 }
 0x3f7   : > { %v9097_v8 = vpop.f32.mrf.mxu1  ;;  %v9034_v20 = vadd.f32 %v9033_v28, %v9032_v49  ;;  %v5780_v27 = vadd.f32 %v9095_v53, %v5683_v44  ;;  %v13697_v53 = vld [vmem:[#allocation33_spill] sm:$0xff] }
 0x3f8   : > { %v6757_v37 = vpop.f32.mrf.mxu0  ;;  %v9098_v40 = vadd.f32 %v9097_v8, %v9096_v29  ;;  %v13698_v8 = vld [vmem:[#allocation36_spill] sm:$0xff] }
 0x3f9   : > { %v5686_v19 = vadd.f32 %v9034_v20, %v5589_v50  ;;  %v6758_v15 = vadd.f32 %v6757_v37, %v12728_v9  ;;  %v6870_v46 = vpop.f32.mrf.mxu1  ;;  %10577 = vtanh.f32 %v5780_v27  ;;  %v10401_v50 = vld [vmem:[#allocation12 + $0x68] sm:$0xff]  }
 0x3fa   : > { %v10572_v6 = vpop.eup %10571  ;;  %v12732_v22 = vpop.f32.mrf.mxu0  ;;  %v10402_v27 = vld [vmem:[#allocation12 + $0x28] sm:$0xff]   ;;  %9247 = vmatprep.subr.bf16.mxu1 %v10401_v50 }
 0x3fb   : > { %v5783_v4 = vadd.f32 %v9098_v40, %v5686_v19  ;;  %v12734_v51 = vadd.f32 %v6870_v46, %v6758_v15  ;;  %v12736_v57 = vpop.f32.mrf.mxu1  ;;  %v5895_v48 = vpack.c.bf16 %v10572_v6, %v10570_v62  ;;  %9248 = vmatpush3.bf16.msra.mxu1 %v10402_v27  ;;  %v10403_v15 = vld [vmem:[#allocation12 + $0x60] sm:$0xff]   ;;  %v10410_v50 = vld [vmem:[#allocation12 + $0x8] sm:$0xff]  }
 0x3fc   : > { %v12738_v14 = vpop.f32.mrf.mxu0  ;;  %9249 = vmatprep.subr.bf16.mxu1 %v10403_v15  ;;  %v10411_v15 = vld [vmem:[#allocation12 + $0x40] sm:$0xff]  }
 0x3fd   : > { %10579 = vtanh.f32 %v5783_v4  ;;  %v12740_v52 = vpop.f32.mrf.mxu1  ;;  %7032 = vmatmul.mubr.bf16.gmra.mxu0 %v5895_v48  ;;  %9365 = vmatmul.mubr.bf16.gmra.mxu1 %v5895_v48  ;;  %v13699_v48 = vld [vmem:[#allocation35_spill] sm:$0xff] }
 0x3fe   : > { %v12742_v45 = vpop.f32.mrf.mxu0  ;;  %7041 = vmatprep.mubr.bf16.mxu0 %v13685_v60  ;;  %v10574_v12 = vpop.eup %10573 }
 0x3ff   : > { %v12745_v10 = vpop.f32.mrf.mxu1  ;;  %9250 = vmatpush3.bf16.msra.mxu1 %v10404_v41 }
 0x400   : > { %v6767_v7 = vpop.f32.mrf.mxu0 }
 0x401   : > { %v6768_v1 = vadd.f32 %v6767_v7, %v12728_v9  ;;  %v6880_v33 = vpop.f32.mrf.mxu1  ;;  %v10405_v7 = vld [vmem:[#allocation12 + $0x58] sm:$0xff]  }
 0x402   : > { %v10576_v56 = vpop.eup %10575  ;;  %v12748_v24 = vpop.f32.mrf.mxu0  ;;  %9251 = vmatprep.subr.bf16.mxu1 %v10405_v7 }
 0x403   : > { %v12750_v54 = vadd.f32 %v6880_v33, %v6768_v1  ;;  %v12752_v26 = vpop.f32.mrf.mxu1  ;;  %v5900_v17 = vpack.c.bf16 %v10576_v56, %v10574_v12  ;;  %v10406_v1 = vld [vmem:[#allocation12 + $0x18] sm:$0xff]  }
 0x404   : > { %v12754_v59 = vpop.f32.mrf.mxu0  ;;  %9252 = vmatpush3.bf16.msra.mxu1 %v10406_v1 }
 0x405   : > { %v12756_v5 = vpop.f32.mrf.mxu1  ;;  %7042 = vmatmul.mubr.bf16.gmra.mxu0 %v5900_v17  ;;  %9368 = vmatprep.mubr.bf16.mxu1 %v5900_v17 }
 0x406   : > { %v12758_v11 = vpop.f32.mrf.mxu0  ;;  %7051 = vmatprep.mubr.bf16.mxu0 %v13685_v60  ;;  %v10578_v16 = vpop.eup %10577 }
 0x407   : > { %v12761_v42 = vpop.f32.mrf.mxu1 }
 0x408   : > { %v6777_v25 = vpop.f32.mrf.mxu0 }
 0x409   : > { %v6778_v13 = vadd.f32 %v6777_v25, %v12728_v9  ;;  %v6890_v30 = vpop.f32.mrf.mxu1 }
 0x40a   : > { %v10580_v55 = vpop.eup %10579  ;;  %v12764_v3 = vpop.f32.mrf.mxu0 }
 0x40b   : > { %v12766_v61 = vadd.f32 %v6890_v30, %v6778_v13  ;;  %v12768_v23 = vpop.f32.mrf.mxu1  ;;  %v5905_v18 = vpack.c.bf16 %v10580_v55, %v10578_v16  ;;  %v10407_v16 = vld [vmem:[#allocation12 + $0x50] sm:$0xff]  }
 0x40c   : > { %v12770_v43 = vpop.f32.mrf.mxu0  ;;  %v10408_v55 = vld [vmem:[#allocation12 + $0x10] sm:$0xff]   ;;  %9253 = vmatprep.subr.bf16.mxu1 %v10407_v16 }
 0x40d   : > { %v12772_v35 = vpop.f32.mrf.mxu1  ;;  %7052 = vmatmul.mubr.bf16.gmra.mxu0 %v5905_v18  ;;  %9369 = vmatmul.mubr.bf16.gmra.mxu1 %v5905_v18 }
 0x40e   : > { %v12774_v60 = vpop.f32.mrf.mxu0  ;;  %7191 = vmatprep.mubr.bf16.mxu0 %v13696_v47  ;;  %9254 = vmatpush3.bf16.msra.mxu1 %v10408_v55 }
 0x40f   : > { %v12777_v32 = vpop.f32.mrf.mxu1 }
 0x410   : > { %v6787_v39 = vpop.f32.mrf.mxu0 }
 0x411   : > { %v6788_v49 = vadd.f32 %v6787_v39, %v12728_v9  ;;  %v6900_v29 = vpop.f32.mrf.mxu1  ;;  %v13701_v39 = vld [vmem:[#allocation37_spill] sm:$0xff] }
 0x412   : > { %v12780_v2 = vpop.f32.mrf.mxu0 }
 0x413   : > { %v12782_v34 = vadd.f32 %v6900_v29, %v6788_v49  ;;  %v12784_v38 = vpop.f32.mrf.mxu1  ;;  %v13702_v29 = vld [vmem:[#allocation40_spill] sm:$0xff] }
 0x414   : > { %v12786_v0 = vpop.f32.mrf.mxu0 }
 0x415   : > { %v12788_v44 = vpop.f32.mrf.mxu1  ;;  %7192 = vmatmul.mubr.bf16.vlgmr.msra.gmra.mxu0 %v13697_v53  ;;  %v10409_v53 = vld [vmem:[#allocation12 + $0x48] sm:$0xff]  }
 0x416   : > { %v12791_v28 = vpop.f32.mrf.mxu0  ;;  %7199 = vmatprep.mubr.bf16.mxu0 %v13698_v8  ;;  %9255 = vmatprep.subr.bf16.mxu1 %v10409_v53 }
 0x417   : > { %v12794_v20 = vpop.f32.mrf.mxu1  ;;  %9256 = vmatpush3.bf16.msra.mxu1 %v10410_v50  ;;  %v13707_v50 = vld [vmem:[#allocation41_spill] sm:$0xff] }
 0x418   : > { %v6797_v37 = vpop.f32.mrf.mxu0  ;;  %9257 = vmatprep.subr.bf16.mxu1 %v10411_v15  ;;  %v13711_v15 = vld [vmem:[#allocation45_spill] sm:$0xff] }
 0x419   : > { %v6798_v62 = vadd.f32 %v6797_v37, %v12728_v9  ;;  %v6910_v19 = vpop.f32.mrf.mxu1 }
 0x41a   : > { %v12797_v40 = vpop.f32.mrf.mxu0 }
 0x41b   : > { %v12799_v46 = vadd.f32 %v6910_v19, %v6798_v62  ;;  %v12801_v6 = vpop.f32.mrf.mxu1 }
 0x41c   : > { %v12803_v58 = vpop.f32.mrf.mxu0 }
 0x41d   : > { %v12805_v4 = vpop.f32.mrf.mxu1  ;;  %7200 = vmatmul.mubr.bf16.gmra.mxu0 %v13699_v48 }
 0x41e   : > { %v12808_v31 = vpop.f32.mrf.mxu0  ;;  %7207 = vmatprep.mubr.bf16.mxu0 %v13700_v21  ;;  %v10412_v21 = vld [vmem:[#allocation12] sm:$0xff]  }
 0x41f   : > { %v12811_v12 = vpop.f32.mrf.mxu1  ;;  %9258 = vmatpush3.bf16.msra.mxu1 %v10412_v21  ;;  %v13712_v21 = vld [vmem:[#allocation48_spill] sm:$0xff] }
 0x420   : > { %v6807_v33 = vpop.f32.mrf.mxu0 }
 0x421   : > { %v6808_v56 = vadd.f32 %v6807_v33, %v12728_v9  ;;  %v6920_v17 = vpop.f32.mrf.mxu1  ;;  %v13704_v33 = vld [vmem:[#allocation39_spill] sm:$0xff] }
 0x422   : > { %v12814_v25 = vpop.f32.mrf.mxu0 }
 0x423   : > { %v12816_v13 = vadd.f32 %v6920_v17, %v6808_v56  ;;  %v12818_v30 = vpop.f32.mrf.mxu1  ;;  %v13705_v17 = vld [vmem:[#allocation42_spill] sm:$0xff] }
 0x424   : > { %v12820_v18 = vpop.f32.mrf.mxu0 }
 0x425   : > { %v12822_v47 = vpop.f32.mrf.mxu1  ;;  %7208 = vmatmul.mubr.bf16.gmra.mxu0 %v13701_v39 }
 0x426   : > { %v12825_v49 = vpop.f32.mrf.mxu0  ;;  %7215 = vmatprep.mubr.bf16.mxu0 %v13702_v29 }
 0x427   : > { %v12828_v8 = vpop.f32.mrf.mxu1 }
 0x428   : > { %v6817_v27 = vpop.f32.mrf.mxu0 }
 0x429   : > { %v6818_v37 = vadd.f32 %v6817_v27, %v12728_v9  ;;  %v6930_v62 = vpop.f32.mrf.mxu1  ;;  %v13708_v27 = vld [vmem:[#allocation44_spill] sm:$0xff] }
 0x42a   : > { %v12831_v19 = vpop.f32.mrf.mxu0 }
 0x42b   : > { %v12833_v41 = vadd.f32 %v6930_v62, %v6818_v37  ;;  %v12835_v48 = vpop.f32.mrf.mxu1  ;;  %v13709_v37 = vld [vmem:[#allocation43_spill] sm:$0xff]  ;;  %v13710_v62 = vld [vmem:[#allocation46_spill] sm:$0xff] }
 0x42c   : > { %v12837_v7 = vpop.f32.mrf.mxu0 }
 0x42d   : > { %13703 = vst [vmem:[#allocation54_spill] sm:$0xff] %v12833_v41  ;;  %v12839_v1 = vpop.f32.mrf.mxu1  ;;  %7216 = vmatmul.mubr.bf16.gmra.mxu0 %v13704_v33 }
 0x42e   : > { %v12842_v56 = vpop.f32.mrf.mxu0  ;;  %7223 = vmatprep.mubr.bf16.mxu0 %v13705_v17 }
 0x42f   : > { %v12845_v16 = vpop.f32.mrf.mxu1 }
 0x430   : > { %v6827_v55 = vpop.f32.mrf.mxu0 }
 0x431   : > { %v6828_v39 = vadd.f32 %v6827_v55, %v12728_v9  ;;  %v6940_v29 = vpop.f32.mrf.mxu1  ;;  %v13715_v55 = vld [vmem:[#allocation47_spill] sm:$0xff] }
 0x433   : > { %v12848_v53 = vadd.f32 %v6940_v29, %v6828_v39  ;;  %v12856_v33 = vpop.f32.mrf.mxu1  ;;  %v10413_v29 = vld [vmem:[#allocation12 + $0xb8] sm:$0xff]  }
 0x434   : > { %13713 = vst [vmem:[#allocation56_spill] sm:$0xff] %v12856_v33  ;;  %9372 = vmatprep.subr.bf16.mxu0 %v10413_v29 }
 0x435   : > { %13706 = vst [vmem:[#allocation55_spill] sm:$0xff] %v12848_v53  ;;  %7224 = vmatmul.mubr.bf16.gmra.mxu0 %v13707_v50  ;;  %v12858_v17 = vpop.f32.mrf.mxu1 }
 0x436   : > { %7231 = vmatprep.mubr.bf16.mxu0 %v13708_v27  ;;  %13714 = vst [vmem:[#allocation57_spill] sm:$0xff] %v12858_v17  ;;  %9373 = vmatpush3.bf16.msra.mxu0 %v10413_v29  ;;  %v10417_v29 = vld [vmem:[#allocation12 + $0x98] sm:$0xff]  }
 0x437   : > { %v12861_v39 = vpop.f32.mrf.mxu1 }
 0x438   : > { %13716 = vst [vmem:[#allocation58_spill] sm:$0xff] %v12861_v39 }
 0x439   : > { %v12863_v50 = vpop.f32.mrf.mxu1 }
 0x43a   : > { %13717 = vst [vmem:[#allocation59_spill] sm:$0xff] %v12863_v50 }
 0x43b   : > { %v12865_v27 = vpop.f32.mrf.mxu1 }
 0x43c   : > { %13718 = vst [vmem:[#allocation60_spill] sm:$0xff] %v12865_v27 }
 0x43d   : > { %7232 = vmatmul.mubr.bf16.gmra.mxu0 %v13709_v37  ;;  %v12867_v37 = vpop.f32.mrf.mxu1 }
 0x43e   : > { %7239 = vmatprep.mubr.bf16.mxu0 %v13710_v62  ;;  %13719 = vst [vmem:[#allocation61_spill] sm:$0xff] %v12867_v37  ;;  %v10414_v62 = vld [vmem:[#allocation12 + $0xb0] sm:$0xff]  }
 0x43f   : > { %9374 = vmatprep.subr.bf16.mxu0 %v10414_v62  ;;  %v10418_v37 = vld [vmem:[#allocation12 + $0x90] sm:$0xff]  }
 0x440   : > { %9375 = vmatpush3.bf16.msra.mxu0 %v10414_v62 }
 0x445   : > { %7240 = vmatmul.mubr.bf16.gmra.mxu0 %v13711_v15  ;;  %v12869_v15 = vpop.f32.mrf.mxu1 }
 0x446   : > { %7247 = vmatprep.mubr.bf16.mxu0 %v13712_v21  ;;  %13720 = vst [vmem:[#allocation62_spill] sm:$0xff] %v12869_v15  ;;  %v10415_v21 = vld [vmem:[#allocation12 + $0xa8] sm:$0xff]  }
 0x447   : > { %9376 = vmatprep.subr.bf16.mxu0 %v10415_v21  ;;  %v10419_v15 = vld [vmem:[#allocation12 + $0x88] sm:$0xff]  }
 0x448   : > { %9377 = vmatpush3.bf16.msra.mxu0 %v10415_v21 }
 0x449   : > { %9378 = vmatprep.subr.bf16.mxu0 %v10416_v36 }
 0x44c   : > { %9379 = vmatpush3.bf16.msra.mxu0 %v10416_v36 }
 0x44d   : > { %7248 = vmatmul.mubr.bf16.gmra.mxu0 %v13715_v55  ;;  %v12871_v55 = vpop.f32.mrf.mxu1  ;;  %9380 = vmatprep.subr.bf16.mxu0 %v10417_v29 }
 0x44e   : > { %13721 = vst [vmem:[#allocation63_spill] sm:$0xff] %v12871_v55  ;;  %v10420_v55 = vld [vmem:[#allocation12 + $0x80] sm:$0xff]  }
 0x44f   : > { %v12873_v50 = vpop.f32.mrf.mxu1 }
 0x450   : > { %13722 = vst [vmem:[#allocation64_spill] sm:$0xff] %v12873_v50  ;;  %9381 = vmatpush3.bf16.msra.mxu0 %v10417_v29 }
 0x451   : > { %v12875_v27 = vpop.f32.mrf.mxu1  ;;  %9382 = vmatprep.subr.bf16.mxu0 %v10418_v37 }
 0x452   : > { %13723 = vst [vmem:[#allocation65_spill] sm:$0xff] %v12875_v27 }
 0x453   : > { %v12877_v62 = vpop.f32.mrf.mxu1 }
 0x454   : > { %9383 = vmatpush3.bf16.msra.mxu0 %v10418_v37  ;;  %13724 = vst [vmem:[#allocation66_spill] sm:$0xff] %v12877_v62  ;;  %v12891_v37 = vpop.f32.mrf.mxu0 }
 0x455   : > { %9384 = vmatprep.subr.bf16.mxu0 %v10419_v15  ;;  %v12879_v21 = vpop.f32.mrf.mxu1 }
 0x456   : > { %13725 = vst [vmem:[#allocation67_spill] sm:$0xff] %v12879_v21 }
 0x457   : > { %v12881_v36 = vpop.f32.mrf.mxu1 }
 0x458   : > { %9385 = vmatpush3.bf16.msra.mxu0 %v10419_v15  ;;  %13726 = vst [vmem:[#allocation68_spill] sm:$0xff] %v12881_v36  ;;  %v13732_v15 = vld [vmem:[#allocation117_spill] sm:$0xff] }
 0x459   : > { %9386 = vmatprep.subr.bf16.mxu0 %v10420_v55  ;;  %v12883_v50 = vpop.f32.mrf.mxu1  ;;  %v13733_v39 = vsub.s32 1, %v13732_v15 }
 0x45a   : > { %13727 = vst [vmem:[#allocation69_spill] sm:$0xff] %v12883_v50 }
 0x45b   : > { %v12885_v29 = vpop.f32.mrf.mxu1  ;;  %v12898_v21 = vrot.slane %v12720_v63, %v13733_v39 }
 0x45c   : > { %9387 = vmatpush3.bf16.msra.mxu0 %v10420_v55  ;;  %13728 = vst [vmem:[#allocation70_spill] sm:$0xff] %v12885_v29  ;;  %v12900_v55 = vpop.f32.mrf.mxu0 }
 0x45d   : > { %v12887_v27 = vpop.f32.mrf.mxu1  ;;  %13734 = vst [vmem:[#allocation74_spill] sm:$0xff] %v12900_v55  ;;  %v6760_v29 = vadd.f32 %v12732_v22, %v12898_v21  ;;  %v6764_v39 = vadd.f32 %v12742_v45, %v12898_v21 }
 0x45e   : > { %13729 = vst [vmem:[#allocation71_spill] sm:$0xff] %v12887_v27  ;;  %v12906_v50 = vpop.f32.mrf.mxu0 }
 0x45f   : > { %v12889_v53 = vpop.f32.mrf.mxu1  ;;  %13736 = vst [vmem:[#allocation76_spill] sm:$0xff] %v12906_v50  ;;  %v6873_v15 = vadd.f32 %v12736_v57, %v6760_v29  ;;  %v6877_v50 = vadd.f32 %v12745_v10, %v6764_v39  ;;  %v6772_v57 = vadd.f32 %v12754_v59, %v12728_v9  ;;  %v6774_v10 = vadd.f32 %v12758_v11, %v12898_v21 }
 0x460   : > { %13730 = vst [vmem:[#allocation72_spill] sm:$0xff] %v12889_v53  ;;  %v6762_v53 = vadd.f32 %v12738_v14, %v12728_v9  ;;  %v6770_v14 = vadd.f32 %v12748_v24, %v12898_v21  ;;  %v6782_v11 = vadd.f32 %v12770_v43, %v12728_v9 }
 0x461   : > { %v12893_v62 = vpop.f32.mrf.mxu1 }
 0x462   : > { %13731 = vst [vmem:[#allocation73_spill] sm:$0xff] %v12893_v62  ;;  %v6875_v17 = vadd.f32 %v12740_v52, %v6762_v53  ;;  %v6883_v52 = vadd.f32 %v12752_v26, %v6770_v14 }
 0x463   : > { %v12902_v36 = vpop.f32.mrf.mxu1 }
 0x464   : > { %13735 = vst [vmem:[#allocation75_spill] sm:$0xff] %v12902_v36 }
 0x465   : > { %v12910_v27 = vpop.f32.mrf.mxu1 }
 0x466   : > { %13737 = vst [vmem:[#allocation77_spill] sm:$0xff] %v12910_v27 }
 0x467   : > { %v12916_v33 = vpop.f32.mrf.mxu1 }
 0x469   : > { %v12924_v29 = vpop.f32.mrf.mxu1 }
 0x495   : > { %v6983_v62 = vpop.f32.mrf.mxu0 }
 0x496   : > { %v6984_v27 = vadd.f32 %v6983_v62, %v12734_v51  ;;  %v6885_v51 = vadd.f32 %v12756_v5, %v6772_v57 }
 0x497   : > { %v6985_v63 = vpop.f32.mrf.mxu0 }
 0x498   : > { %v6986_v36 = vadd.f32 %v6985_v63, %v6873_v15 }
 0x499   : > { %v6987_v22 = vpop.f32.mrf.mxu0 }
 0x49a   : > { %v6988_v55 = vadd.f32 %v6987_v22, %v6875_v17  ;;  %10581 = vtanh.f32 %v6986_v36  ;;  %v12930_v17 = vpop.f32.mrf.mxu1 }
 0x49b   : > { %v6989_v41 = vpop.f32.mrf.mxu0 }
 0x49c   : > { %v6990_v45 = vadd.f32 %v6989_v41, %v6877_v50  ;;  %10583 = vtanh.f32 %v6988_v55  ;;  %v6887_v41 = vadd.f32 %v12761_v42, %v6774_v10  ;;  %v6780_v50 = vadd.f32 %v12764_v3, %v12898_v21  ;;  %v12938_v15 = vpop.f32.mrf.mxu1 }
 0x49d   : > { %v6993_v63 = vpop.f32.mrf.mxu0  ;;  %v6784_v42 = vadd.f32 %v12774_v60, %v12898_v21 }
 0x49e   : > { %10585 = vtanh.f32 %v6990_v45  ;;  %v6994_v26 = vadd.f32 %v6993_v63, %v12750_v54  ;;  %v6893_v55 = vadd.f32 %v12768_v23, %v6780_v50  ;;  %v6895_v54 = vadd.f32 %v12772_v35, %v6782_v11  ;;  %v12944_v14 = vpop.f32.mrf.mxu1 }
 0x49f   : > { %10587 = vtanh.f32 %v6984_v27  ;;  %v6995_v24 = vpop.f32.mrf.mxu0  ;;  %v6897_v45 = vadd.f32 %v12777_v32, %v6784_v42  ;;  %v6790_v63 = vadd.f32 %v12780_v2, %v12898_v21  ;;  %v6792_v35 = vadd.f32 %v12786_v0, %v12728_v9 }
 0x4a0   : > { %v6996_v53 = vadd.f32 %v6995_v24, %v6883_v52  ;;  %v6794_v2 = vadd.f32 %v12791_v28, %v12898_v21 }
 0x4a1   : > { %v6997_v59 = vpop.f32.mrf.mxu0  ;;  %v6903_v50 = vadd.f32 %v12784_v38, %v6790_v63  ;;  %v6905_v0 = vadd.f32 %v12788_v44, %v6792_v35  ;;  %v6800_v38 = vadd.f32 %v12797_v40, %v12898_v21  ;;  %v6802_v44 = vadd.f32 %v12803_v58, %v12728_v9 }
 0x4a2   : > { %v6998_v62 = vadd.f32 %v6997_v59, %v6885_v51  ;;  %10589 = vtanh.f32 %v6996_v53  ;;  %v12952_v59 = vpop.f32.mrf.mxu1  ;;  %v6804_v40 = vadd.f32 %v12808_v31, %v12898_v21 }
 0x4a3   : > { %v6999_v36 = vpop.f32.mrf.mxu0  ;;  %v6915_v58 = vadd.f32 %v12805_v4, %v6802_v44  ;;  %v6812_v4 = vadd.f32 %v12820_v18, %v12728_v9 }
 0x4a4   : > { %v7000_v27 = vadd.f32 %v6999_v36, %v6887_v41  ;;  %10591 = vtanh.f32 %v6998_v62  ;;  %v12958_v36 = vpop.f32.mrf.mxu1 }
 0x4a5   : > { %v7003_v5 = vpop.f32.mrf.mxu0  ;;  %v6925_v18 = vadd.f32 %v12822_v47, %v6812_v4  ;;  %v6822_v47 = vadd.f32 %v12837_v7, %v12728_v9  ;;  %v13740_v4 = vld [vmem:[#allocation56_spill] sm:$0xff] }
 0x4a6   : > { %10593 = vtanh.f32 %v7000_v27  ;;  %v7004_v60 = vadd.f32 %v7003_v5, %v12766_v61  ;;  %v6907_v5 = vadd.f32 %v12794_v20, %v6794_v2 }
 0x4a7   : > { %10595 = vtanh.f32 %v6994_v26  ;;  %v7005_v3 = vpop.f32.mrf.mxu0  ;;  %v10582_v22 = vpop.eup %10581  ;;  %v6935_v7 = vadd.f32 %v12839_v1, %v6822_v47 }
 0x4a8   : > { %v7006_v39 = vadd.f32 %v7005_v3, %v6893_v55 }
 0x4a9   : > { %v7007_v43 = vpop.f32.mrf.mxu0  ;;  %v10584_v57 = vpop.eup %10583 }
 0x4aa   : > { %v7008_v23 = vadd.f32 %v7007_v43, %v6895_v54  ;;  %10597 = vtanh.f32 %v7006_v39  ;;  %v12966_v43 = vpop.f32.mrf.mxu1 }
 0x4ab   : > { %v10586_v52 = vpop.eup %10585  ;;  %v7009_v10 = vpop.f32.mrf.mxu0 }
 0x4ac   : > { %v10588_v24 = vpop.eup %10587  ;;  %v7010_v51 = vadd.f32 %v7009_v10, %v6897_v45  ;;  %v7402_v53 = vpack.c.bf16 %v10586_v52, %v10582_v22  ;;  %10599 = vtanh.f32 %v7008_v23  ;;  %v6913_v45 = vadd.f32 %v12801_v6, %v6800_v38  ;;  %v12972_v52 = vpop.f32.mrf.mxu1 }
 0x4ad   : > { %v7401_v41 = vpack.c.bf16 %v10584_v57, %v10588_v24  ;;  %v7013_v32 = vpop.f32.mrf.mxu0  ;;  %v6917_v24 = vadd.f32 %v12811_v12, %v6804_v40  ;;  %v6810_v6 = vadd.f32 %v12814_v25, %v12898_v21  ;;  %v6814_v25 = vadd.f32 %v12825_v49, %v12898_v21 }
 0x4ae   : > { %10601 = vtanh.f32 %v7010_v51  ;;  %7656 = vmatprep.mubr.bf16.mxu1 %v7402_v53  ;;  %v7014_v42 = vadd.f32 %v7013_v32, %v12782_v34  ;;  %v12980_v2 = vpop.f32.mrf.mxu1 }
 0x4af   : > { %10603 = vtanh.f32 %v7004_v60  ;;  %v7015_v61 = vpop.f32.mrf.mxu0  ;;  %7657 = vmatmul.mubr.bf16.vlgmr.msra.gmra.mxu1 %v7401_v41  ;;  %v10590_v26 = vpop.eup %10589  ;;  %v6927_v38 = vadd.f32 %v12828_v8, %v6814_v25 }
 0x4b0   : > { %v7016_v62 = vadd.f32 %v7015_v61, %v6903_v50 }
 0x4b1   : > { %v7017_v11 = vpop.f32.mrf.mxu0  ;;  %v10592_v27 = vpop.eup %10591 }
 0x4b2   : > { %v7018_v55 = vadd.f32 %v7017_v11, %v6905_v0  ;;  %10605 = vtanh.f32 %v7016_v62  ;;  %v6923_v0 = vadd.f32 %v12818_v30, %v6810_v6  ;;  %v12986_v11 = vpop.f32.mrf.mxu1  ;;  %v6820_v30 = vadd.f32 %v12831_v19, %v12898_v21 }
 0x4b3   : > { %v10594_v28 = vpop.eup %10593  ;;  %v7019_v3 = vpop.f32.mrf.mxu0  ;;  %v6824_v19 = vadd.f32 %v12842_v56, %v12898_v21 }
 0x4b4   : > { %v10596_v54 = vpop.eup %10595  ;;  %v7020_v39 = vadd.f32 %v7019_v3, %v6907_v5  ;;  %v7405_v22 = vpack.c.bf16 %v10594_v28, %v10590_v26  ;;  %10607 = vtanh.f32 %v7018_v55 }
 0x4b5   : > { %v7023_v57 = vpop.f32.mrf.mxu0  ;;  %v7404_v20 = vpack.c.bf16 %v10592_v27, %v10596_v54 }
 0x4b6   : > { %10609 = vtanh.f32 %v7020_v39  ;;  %7664 = vmatprep.mubr.bf16.mxu1 %v7405_v22  ;;  %v7024_v51 = vadd.f32 %v7023_v57, %v12799_v46  ;;  %v12994_v39 = vpop.f32.mrf.mxu1  ;;  %v6933_v57 = vadd.f32 %v12835_v48, %v6820_v30  ;;  %v6830_v48 = vadd.f32 %v12891_v37, %v12898_v21  ;;  %v13741_v37 = vld [vmem:[#allocation76_spill] sm:$0xff]  ;;  %v13744_v30 = vld [vmem:[#allocation117_spill] sm:$0xff] }
 0x4b7   : > { %10611 = vtanh.f32 %v7014_v42  ;;  %v7025_v34 = vpop.f32.mrf.mxu0  ;;  %7665 = vmatmul.mubr.bf16.gmra.mxu1 %v7404_v20  ;;  %v10598_v23 = vpop.eup %10597 }
 0x4b8   : > { %v7026_v63 = vadd.f32 %v7025_v34, %v6913_v45  ;;  %v13000_v40 = vpop.f32.mrf.mxu1 }
 0x4b9   : > { %v7027_v60 = vpop.f32.mrf.mxu0  ;;  %v10600_v10 = vpop.eup %10599 }
 0x4ba   : > { %v7028_v35 = vadd.f32 %v7027_v60, %v6915_v58  ;;  %10613 = vtanh.f32 %v7026_v63  ;;  %v6937_v63 = vadd.f32 %v12845_v16, %v6824_v19  ;;  %v13738_v60 = vld [vmem:[#allocation54_spill] sm:$0xff] }
 0x4bb   : > { %v10602_v31 = vpop.eup %10601  ;;  %v7029_v53 = vpop.f32.mrf.mxu0 }
 0x4bc   : > { %v10604_v41 = vpop.eup %10603  ;;  %v7030_v32 = vadd.f32 %v7029_v53, %v6917_v24  ;;  %v7408_v50 = vpack.c.bf16 %v10602_v31, %v10598_v23  ;;  %10615 = vtanh.f32 %v7028_v35  ;;  %v13739_v35 = vld [vmem:[#allocation74_spill] sm:$0xff]  ;;  %v13008_v53 = vpop.f32.mrf.mxu1 }
 0x4bd   : > { %v7033_v61 = vpop.f32.mrf.mxu0  ;;  %v7407_v12 = vpack.c.bf16 %v10600_v10, %v10604_v41  ;;  %v6832_v1 = vadd.f32 %v13739_v35, %v12728_v9 }
 0x4be   : > { %10617 = vtanh.f32 %v7030_v32  ;;  %7672 = vmatprep.mubr.bf16.mxu1 %v7408_v50  ;;  %v7034_v28 = vadd.f32 %v7033_v61, %v12816_v13  ;;  %v6943_v32 = vadd.f32 %v13740_v4, %v6830_v48  ;;  %v6834_v50 = vadd.f32 %v13741_v37, %v12898_v21  ;;  %v13746_v21 = vld [vmem:[#allocation53_spill] sm:$0xff] }
 0x4bf   : > { %10619 = vtanh.f32 %v7024_v51  ;;  %v7035_v46 = vpop.f32.mrf.mxu0  ;;  %7673 = vmatmul.mubr.bf16.gmra.mxu1 %v7407_v12  ;;  %v10606_v26 = vpop.eup %10605  ;;  %v13742_v12 = vld [vmem:[#allocation57_spill] sm:$0xff] }
 0x4c0   : > { %v7036_v62 = vadd.f32 %v7035_v46, %v6923_v0  ;;  %v6945_v9 = vadd.f32 %v13742_v12, %v6832_v1  ;;  %v13014_v46 = vpop.f32.mrf.mxu1 }
 0x4c1   : > { %v7037_v27 = vpop.f32.mrf.mxu0  ;;  %v10608_v5 = vpop.eup %10607 }
 0x4c2   : > { %v7038_v55 = vadd.f32 %v7037_v27, %v6925_v18  ;;  %10621 = vtanh.f32 %v7036_v62 }
 0x4c3   : > { %v10610_v49 = vpop.eup %10609  ;;  %v7039_v42 = vpop.f32.mrf.mxu0 }
 0x4c4   : > { %v10612_v3 = vpop.eup %10611  ;;  %v7040_v54 = vadd.f32 %v7039_v42, %v6927_v38  ;;  %v7411_v44 = vpack.c.bf16 %v10610_v49, %v10606_v26  ;;  %10623 = vtanh.f32 %v7038_v55  ;;  %v13743_v26 = vld [vmem:[#allocation58_spill] sm:$0xff]  ;;  %v13745_v55 = vsub.s32 2, %v13744_v30  ;;  %v13747_v42 = vld [vmem:[#allocation55_spill] sm:$0xff] }
 0x4c5   : > { %v7043_v22 = vpop.f32.mrf.mxu0  ;;  %v7410_v8 = vpack.c.bf16 %v10608_v5, %v10612_v3  ;;  %v6947_v27 = vadd.f32 %v13743_v26, %v6834_v50  ;;  %v13755_v26 = vld [vmem:[#allocation66_spill] sm:$0xff] }
 0x4c6   : > { %10625 = vtanh.f32 %v7040_v54  ;;  %7680 = vmatprep.mubr.bf16.mxu1 %v7411_v44  ;;  %v7044_v10 = vadd.f32 %v7043_v22, %v13738_v60  ;;  %v13020_v49 = vrot.slane %v13746_v21, %v13745_v55  ;;  %v13748_v44 = vld [vmem:[#allocation59_spill] sm:$0xff]  ;;  %v13749_v22 = vld [vmem:[#allocation60_spill] sm:$0xff] }
 0x4c7   : > { %10627 = vtanh.f32 %v7034_v28  ;;  %v7045_v13 = vpop.f32.mrf.mxu0  ;;  %7681 = vmatmul.mubr.bf16.gmra.mxu1 %v7410_v8  ;;  %v10614_v45 = vpop.eup %10613  ;;  %v9117_v8 = vadd.f32 %v13749_v22, %v13748_v44 }
 0x4c8   : > { %v7046_v20 = vadd.f32 %v7045_v13, %v6933_v57  ;;  %v9358_v28 = vpop.f32.mrf.mxu1 }
 0x4c9   : > { %v7047_v34 = vpop.f32.mrf.mxu0  ;;  %v10616_v58 = vpop.eup %10615 }
 0x4ca   : > { %v7048_v23 = vadd.f32 %v7047_v34, %v6935_v7  ;;  %10629 = vtanh.f32 %v7046_v20  ;;  %v7290_v20 = vpop.f32.mrf.mxu1  ;;  %v7097_v34 = vadd.f32 %v9117_v8, %v13020_v49  ;;  %v13756_v8 = vld [vmem:[#allocation67_spill] sm:$0xff] }
 0x4cb   : > { %v10618_v56 = vpop.eup %10617  ;;  %v7049_v24 = vpop.f32.mrf.mxu0 }
 0x4cc   : > { %v10620_v6 = vpop.eup %10619  ;;  %v7050_v31 = vadd.f32 %v7049_v24, %v6937_v63  ;;  %v7414_v51 = vpack.c.bf16 %v10618_v56, %v10614_v45  ;;  %10631 = vtanh.f32 %v7048_v23  ;;  %v13751_v63 = vld [vmem:[#allocation62_spill] sm:$0xff]  ;;  %v9359_v35 = vpop.f32.mrf.mxu1 }
 0x4cd   : > { %v7053_v41 = vpop.f32.mrf.mxu0  ;;  %v7413_v16 = vpack.c.bf16 %v10616_v58, %v10620_v6  ;;  %v13750_v58 = vld [vmem:[#allocation61_spill] sm:$0xff] }
 0x4ce   : > { %10633 = vtanh.f32 %v7050_v31  ;;  %7688 = vmatprep.mubr.bf16.mxu1 %v7414_v51  ;;  %v7054_v3 = vadd.f32 %v7053_v41, %v13747_v42  ;;  %v9120_v48 = vadd.f32 %v13751_v63, %v13750_v58  ;;  %v13752_v41 = vld [vmem:[#allocation63_spill] sm:$0xff] }
 0x4cf   : > { %10635 = vtanh.f32 %v7044_v10  ;;  %v7055_v61 = vpop.f32.mrf.mxu0  ;;  %7689 = vmatmul.mubr.bf16.gmra.mxu1 %v7413_v16  ;;  %v10622_v25 = vpop.eup %10621  ;;  %v13753_v16 = vld [vmem:[#allocation64_spill] sm:$0xff] }
 0x4d0   : > { %v7056_v0 = vadd.f32 %v7055_v61, %v6943_v32  ;;  %v7100_v51 = vadd.f32 %v9120_v48, %v13020_v49  ;;  %v9123_v4 = vadd.f32 %v13753_v16, %v13752_v41 }
 0x4d1   : > { %v7057_v18 = vpop.f32.mrf.mxu0  ;;  %v10624_v62 = vpop.eup %10623 }
 0x4d2   : > { %v7058_v5 = vadd.f32 %v7057_v18, %v6945_v9  ;;  %10637 = vtanh.f32 %v7056_v0  ;;  %v7293_v0 = vpop.f32.mrf.mxu1  ;;  %v7105_v18 = vadd.f32 %v9123_v4, %v13020_v49 }
 0x4d3   : > { %v10626_v38 = vpop.eup %10625  ;;  %v7059_v47 = vpop.f32.mrf.mxu0 }
 0x4d4   : > { %v10628_v54 = vpop.eup %10627  ;;  %v7060_v57 = vadd.f32 %v7059_v47, %v6947_v27  ;;  %v7417_v19 = vpack.c.bf16 %v10626_v38, %v10622_v25  ;;  %10639 = vtanh.f32 %v7058_v5  ;;  %v9362_v47 = vpop.f32.mrf.mxu1 }
 0x4d5   : > { %v9179_v13 = vpop.f32.mrf.mxu0  ;;  %v7416_v7 = vpack.c.bf16 %v10624_v62, %v10628_v54  ;;  %v13754_v62 = vld [vmem:[#allocation65_spill] sm:$0xff] }
 0x4d6   : > { %10641 = vtanh.f32 %v7060_v57  ;;  %7696 = vmatprep.mubr.bf16.mxu1 %v7417_v19  ;;  %v9126_v27 = vadd.f32 %v13755_v26, %v13754_v62  ;;  %v13757_v57 = vld [vmem:[#allocation68_spill] sm:$0xff]  ;;  %v7306_v63 = vpop.f32.mrf.mxu1  ;;  %v13762_v62 = vld [vmem:[#allocation73_spill] sm:$0xff]  ;;  %v13763_v26 = vld [vmem:[#allocation75_spill] sm:$0xff] }
 0x4d7   : > { %10643 = vtanh.f32 %v7054_v3  ;;  %v9180_v45 = vpop.f32.mrf.mxu0  ;;  %7697 = vmatmul.mubr.bf16.gmra.mxu1 %v7416_v7  ;;  %v10630_v56 = vpop.eup %10629  ;;  %v9129_v19 = vadd.f32 %v13757_v57, %v13756_v8 }
 0x4d8   : > { %v9181_v23 = vadd.f32 %v9180_v45, %v9179_v13  ;;  %v7108_v22 = vadd.f32 %v9126_v27, %v13020_v49  ;;  %v9363_v16 = vpop.f32.mrf.mxu1  ;;  %v9138_v27 = vadd.f32 %v13763_v26, %v13762_v62 }
 0x4d9   : > { %v9182_v60 = vpop.f32.mrf.mxu0  ;;  %v10632_v10 = vpop.eup %10631 }
 0x4da   : > { %v7194_v24 = vadd.f32 %v9181_v23, %v7097_v34  ;;  %v7113_v23 = vadd.f32 %v9129_v19, %v13020_v49 }
 0x4db   : > { %v10634_v6 = vpop.eup %10633  ;;  %v9183_v1 = vpop.f32.mrf.mxu0 }
 0x4dc   : > { %v10636_v31 = vpop.eup %10635  ;;  %v9184_v32 = vadd.f32 %v9183_v1, %v9182_v60  ;;  %v7420_v37 = vpack.c.bf16 %v10634_v6, %v10630_v56  ;;  %v7291_v50 = vadd.f32 %v7290_v20, %v7194_v24  ;;  %v13758_v56 = vld [vmem:[#allocation69_spill] sm:$0xff]  ;;  %v13759_v60 = vld [vmem:[#allocation70_spill] sm:$0xff] }
 0x4dd   : > { %v9185_v61 = vpop.f32.mrf.mxu0  ;;  %v7419_v12 = vpack.c.bf16 %v10632_v10, %v10636_v31  ;;  %v9132_v10 = vadd.f32 %v13759_v60, %v13758_v56 }
 0x4de   : > { %v7197_v9 = vadd.f32 %v9184_v32, %v7100_v51  ;;  %7704 = vmatprep.mubr.bf16.mxu1 %v7420_v37  ;;  %10645 = vtanh.f32 %v7291_v50  ;;  %v13760_v51 = vld [vmem:[#allocation71_spill] sm:$0xff] }
 0x4df   : > { %v9186_v25 = vpop.f32.mrf.mxu0  ;;  %7705 = vmatmul.mubr.bf16.gmra.mxu1 %v7419_v12  ;;  %v10638_v30 = vpop.eup %10637  ;;  %v7116_v32 = vadd.f32 %v9132_v10, %v13020_v49 }
 0x4e0   : > { %v7294_v5 = vadd.f32 %v7293_v0, %v7197_v9  ;;  %v9187_v38 = vadd.f32 %v9186_v25, %v9185_v61  ;;  %v7309_v25 = vpop.f32.mrf.mxu1 }
 0x4e1   : > { %v9188_v55 = vpop.f32.mrf.mxu0  ;;  %v10640_v21 = vpop.eup %10639 }
 0x4e2   : > { %10647 = vtanh.f32 %v7294_v5  ;;  %v7202_v42 = vadd.f32 %v9187_v38, %v7105_v18 }
 0x4e3   : > { %v10642_v3 = vpop.eup %10641  ;;  %v9189_v54 = vpop.f32.mrf.mxu0 }
 0x4e4   : > { %v10644_v44 = vpop.eup %10643  ;;  %v9190_v13 = vadd.f32 %v9189_v54, %v9188_v55  ;;  %v7423_v7 = vpack.c.bf16 %v10642_v3, %v10638_v30  ;;  %v7299_v20 = vadd.f32 %v9358_v28, %v7202_v42  ;;  %v13761_v28 = vld [vmem:[#allocation72_spill] sm:$0xff]  ;;  %v13764_v42 = vld [vmem:[#allocation77_spill] sm:$0xff]  ;;  %v9366_v54 = vpop.f32.mrf.mxu1 }
 0x4e5   : > { %v9191_v45 = vpop.f32.mrf.mxu0  ;;  %v7422_v34 = vpack.c.bf16 %v10640_v21, %v10644_v44  ;;  %v9135_v41 = vadd.f32 %v13761_v28, %v13760_v51  ;;  %v9141_v3 = vadd.f32 %v12916_v33, %v13764_v42 }
 0x4e6   : > { %v7205_v58 = vadd.f32 %v9190_v13, %v7108_v22  ;;  %7712 = vmatprep.mubr.bf16.mxu1 %v7423_v7  ;;  %10649 = vtanh.f32 %v7299_v20  ;;  %v7124_v22 = vadd.f32 %v9138_v27, %v13020_v49 }
 0x4e7   : > { %v9192_v48 = vpop.f32.mrf.mxu0  ;;  %7713 = vmatmul.mubr.bf16.gmra.mxu1 %v7422_v34  ;;  %v7322_v34 = vpop.f32.mrf.mxu1 }
 0x4e8   : > { %v7302_v24 = vadd.f32 %v9359_v35, %v7205_v58  ;;  %v9193_v6 = vadd.f32 %v9192_v48, %v9191_v45  ;;  %v7121_v35 = vadd.f32 %v9135_v41, %v13020_v49  ;;  %v7129_v45 = vadd.f32 %v9141_v3, %v13020_v49 }
 0x4e9   : > { %v9194_v1 = vpop.f32.mrf.mxu0  ;;  %v9367_v10 = vpop.f32.mrf.mxu1  ;;  %v9159_v3 = vadd.f32 %v13000_v40, %v12994_v39 }
 0x4ea   : > { %10651 = vtanh.f32 %v7302_v24  ;;  %v7210_v31 = vadd.f32 %v9193_v6, %v7113_v23 }
 0x4eb   : > { %v9195_v4 = vpop.f32.mrf.mxu0  ;;  %v10646_v12 = vpop.eup %10645 }
 0x4ec   : > { %v9196_v37 = vadd.f32 %v9195_v4, %v9194_v1  ;;  %v7307_v50 = vadd.f32 %v7306_v63, %v7210_v31  ;;  %v9144_v63 = vadd.f32 %v12930_v17, %v12924_v29 }
 0x4ed   : > { %v9197_v61 = vpop.f32.mrf.mxu0 }
 0x4ee   : > { %v7213_v9 = vadd.f32 %v9196_v37, %v7116_v32  ;;  %10653 = vtanh.f32 %v7307_v50  ;;  %v7132_v6 = vadd.f32 %v9144_v63, %v13020_v49  ;;  %v9150_v32 = vadd.f32 %v12958_v36, %v12952_v59 }
 0x4ef   : > { %v10648_v0 = vpop.eup %10647  ;;  %v9198_v18 = vpop.f32.mrf.mxu0 }
 0x4f0   : > { %v7310_v5 = vadd.f32 %v7309_v25, %v7213_v9  ;;  %v9199_v38 = vadd.f32 %v9198_v18, %v9197_v61  ;;  %v7403_v30 = vpack.c.bf16 %v10648_v0, %v10646_v12  ;;  %v9153_v12 = vadd.f32 %v12972_v52, %v12966_v43 }
 0x4f1   : > { %v9200_v55 = vpop.f32.mrf.mxu0 }
 0x4f2   : > { %10655 = vtanh.f32 %v7310_v5  ;;  %v7218_v21 = vadd.f32 %v9199_v38, %v7121_v35  ;;  %9388 = vmatprep.mubr.bf16.mxu0 %v7403_v30  ;;  %v7140_v35 = vadd.f32 %v9150_v32, %v13020_v49  ;;  %v7145_v27 = vadd.f32 %v9153_v12, %v13020_v49 }
 0x4f3   : > { %v9201_v44 = vpop.f32.mrf.mxu0  ;;  %v10650_v13 = vpop.eup %10649  ;;  %v9156_v30 = vadd.f32 %v12986_v11, %v12980_v2 }
 0x4f4   : > { %v9202_v8 = vadd.f32 %v9201_v44, %v9200_v55  ;;  %v7315_v57 = vadd.f32 %v9362_v47, %v7218_v21  ;;  %v9147_v47 = vadd.f32 %v12944_v14, %v12938_v15 }
 0x4f5   : > { %v9203_v19 = vpop.f32.mrf.mxu0 }
 0x4f6   : > { %v7221_v7 = vadd.f32 %v9202_v8, %v7124_v22  ;;  %10657 = vtanh.f32 %v7315_v57  ;;  %v7137_v41 = vadd.f32 %v9147_v47, %v13020_v49  ;;  %v7148_v22 = vadd.f32 %v9156_v30, %v13020_v49 }
 0x4f7   : > { %v10652_v20 = vpop.eup %10651  ;;  %v9204_v58 = vpop.f32.mrf.mxu0 }
 0x4f8   : > { %v7318_v48 = vadd.f32 %v9363_v16, %v7221_v7  ;;  %v9205_v23 = vadd.f32 %v9204_v58, %v9203_v19  ;;  %v7406_v33 = vpack.c.bf16 %v10652_v20, %v10650_v13  ;;  %v7325_v16 = vpop.f32.mrf.mxu1  ;;  %v7153_v7 = vadd.f32 %v9159_v3, %v13020_v49 }
 0x4f9   : > { %v9206_v56 = vpop.f32.mrf.mxu0 }
 0x4fa   : > { %10659 = vtanh.f32 %v7318_v48  ;;  %v7226_v60 = vadd.f32 %v9205_v23, %v7129_v45  ;;  %9389 = vmatmul.mubr.bf16.vlgmr.msra.gmra.mxu0 %v7406_v33  ;;  %v9370_v9 = vpop.f32.mrf.mxu1 }
 0x4fb   : > { %v9207_v24 = vpop.f32.mrf.mxu0  ;;  %v10654_v28 = vpop.eup %10653 }
 0x4fc   : > { %v9208_v1 = vadd.f32 %v9207_v24, %v9206_v56  ;;  %v7323_v31 = vadd.f32 %v7322_v34, %v7226_v60  ;;  %v7338_v5 = vpop.f32.mrf.mxu1  ;;  %v9162_v34 = vadd.f32 %v13014_v46, %v13008_v53 }
 0x4fd   : > { %v9209_v51 = vpop.f32.mrf.mxu0 }
 0x4fe   : > { %v7229_v29 = vadd.f32 %v9208_v1, %v7132_v6  ;;  %10661 = vtanh.f32 %v7323_v31  ;;  %v7156_v33 = vadd.f32 %v9162_v34, %v13020_v49 }
 0x4ff   : > { %v10656_v17 = vpop.eup %10655  ;;  %v9210_v4 = vpop.f32.mrf.mxu0 }
 0x500   : > { %v7326_v37 = vadd.f32 %v7325_v16, %v7229_v29  ;;  %v9211_v50 = vadd.f32 %v9210_v4, %v9209_v51  ;;  %v7409_v15 = vpack.c.bf16 %v10656_v17, %v10654_v28  ;;  %v11018_v4 = vmov 0.0  }
 0x501   : > { %v9212_v14 = vpop.f32.mrf.mxu0  ;;  %9404 = vmatprep.subr.mxu1 %v11018_v4  ;;  %9436 = vmatprep.mubr.msk.f32.mxu1 %vm11019_vm0, %v11018_v4 }
 0x502   : > { %10663 = vtanh.f32 %v7326_v37  ;;  %v7234_v61 = vadd.f32 %v9211_v50, %v7137_v41  ;;  %9392 = vmatprep.mubr.bf16.mxu0 %v7409_v15 }
 0x503   : > { %v9213_v0 = vpop.f32.mrf.mxu0  ;;  %v10658_v26 = vpop.eup %10657 }
 0x504   : > { %v9214_v25 = vadd.f32 %v9213_v0, %v9212_v14  ;;  %v7331_v18 = vadd.f32 %v9366_v54, %v7234_v61  ;;  %v9371_v54 = vpop.f32.mrf.mxu1 }
 0x505   : > { %v9215_v62 = vpop.f32.mrf.mxu0 }
 0x506   : > { %v7237_v59 = vadd.f32 %v9214_v25, %v7140_v35  ;;  %10665 = vtanh.f32 %v7331_v18  ;;  %v7341_v20 = vpop.f32.mrf.mxu1 }
 0x507   : > { %v10660_v36 = vpop.eup %10659  ;;  %v9216_v38 = vpop.f32.mrf.mxu0 }
 0x508   : > { %v7334_v55 = vadd.f32 %v9367_v10, %v7237_v59  ;;  %v9217_v21 = vadd.f32 %v9216_v38, %v9215_v62  ;;  %v7412_v43 = vpack.c.bf16 %v10660_v36, %v10658_v26 }
 0x509   : > { %v9218_v52 = vpop.f32.mrf.mxu0 }
 0x50a   : > { %10667 = vtanh.f32 %v7334_v55  ;;  %v7242_v42 = vadd.f32 %v9217_v21, %v7145_v27  ;;  %9393 = vmatmul.mubr.bf16.gmra.mxu0 %v7412_v43 }
 0x50b   : > { %v9219_v44 = vpop.f32.mrf.mxu0  ;;  %v10662_v13 = vpop.eup %10661 }
 0x50c   : > { %v9220_v8 = vadd.f32 %v9219_v44, %v9218_v52  ;;  %v7339_v57 = vadd.f32 %v7338_v5, %v7242_v42  ;;  %v13088_v42 = vld [vmem:[#allocation14] ss:$0 sm:$0xff] }
 0x50d   : > { %v9221_v19 = vpop.f32.mrf.mxu0 }
 0x50e   : > { %v7245_v2 = vadd.f32 %v9220_v8, %v7148_v22  ;;  %10669 = vtanh.f32 %v7339_v57 }
 0x50f   : > { %v10664_v11 = vpop.eup %10663  ;;  %v9222_v45 = vpop.f32.mrf.mxu0 }
 0x510   : > { %v7342_v58 = vadd.f32 %v7341_v20, %v7245_v2  ;;  %v9223_v63 = vadd.f32 %v9222_v45, %v9221_v19  ;;  %v7415_v39 = vpack.c.bf16 %v10664_v11, %v10662_v13 }
 0x511   : > { %v9224_v40 = vpop.f32.mrf.mxu0 }
 0x512   : > { %10671 = vtanh.f32 %v7342_v58  ;;  %v7250_v48 = vadd.f32 %v9223_v63, %v7153_v7  ;;  %9396 = vmatprep.mubr.bf16.mxu0 %v7415_v39  ;;  %v7835_v7 = vld [vmem:[#allocation2] sm:$0x1] }
 0x513   : > { %v9225_v23 = vpop.f32.mrf.mxu0  ;;  %v10666_v47 = vpop.eup %10665  ;;  %7838 = vperm.xlu0 %9564, %v7835_v7  }
 0x514   : > { %v9226_v56 = vadd.f32 %v9225_v23, %v9224_v40  ;;  %v7347_v60 = vadd.f32 %v9370_v9, %v7250_v48 }
 0x516   : > { %v7253_v10 = vadd.f32 %v9226_v56, %v7156_v33  ;;  %10673 = vtanh.f32 %v7347_v60 }
 0x517   : > { %v10668_v24 = vpop.eup %10667 }
 0x518   : > { %v7350_v6 = vadd.f32 %v9371_v54, %v7253_v10  ;;  %v7418_v1 = vpack.c.bf16 %v10668_v24, %v10666_v47 }
 0x51a   : > { %10675 = vtanh.f32 %v7350_v6  ;;  %9397 = vmatmul.mubr.bf16.gmra.mxu0 %v7418_v1 }
 0x51b   : > { %v10670_v53 = vpop.eup %10669 }
 0x51f   : > { %v10672_v46 = vpop.eup %10671 }
 0x520   : > { %v7421_v31 = vpack.c.bf16 %v10672_v46, %v10670_v53 }
 0x522   : > { %9400 = vmatprep.mubr.bf16.mxu0 %v7421_v31 }
 0x523   : > { %v10674_v51 = vpop.eup %10673 }
 0x527   : > { %v10676_v28 = vpop.eup %10675 }
 0x528   : > { %v7424_v29 = vpack.c.bf16 %v10676_v28, %v10674_v51 }
 0x52a   : > { %9401 = vmatmul.mubr.bf16.gmra.mxu0 %v7424_v29 }
 0x56f   : > { %v9259_v17 = vpop.f32.mrf.mxu1 }
 0x571   : > { %v9260_v49 = vpop.f32.mrf.mxu1 }
 0x572   : > { %v9261_v41 = vadd.f32 %v9260_v49, %v9259_v17 }
 0x573   : > { %v9262_v16 = vpop.f32.mrf.mxu1 }
 0x574   : > { %v7659_v8 = vadd.f32 %v9261_v41, %v13088_v42 }
 0x575   : > { %v9263_v32 = vpop.f32.mrf.mxu1 }
 0x576   : > { %v9264_v37 = vadd.f32 %v9263_v32, %v9262_v16 }
 0x577   : > { %v9265_v50 = vpop.f32.mrf.mxu1 }
 0x578   : > { %v7662_v45 = vadd.f32 %v9264_v37, %v13088_v42 }
 0x579   : > { %v9266_v15 = vpop.f32.mrf.mxu1 }
 0x57a   : > { %v9267_v14 = vadd.f32 %v9266_v15, %v9265_v50 }
 0x57b   : > { %v9268_v61 = vpop.f32.mrf.mxu1 }
 0x57c   : > { %v7667_v3 = vadd.f32 %v9267_v14, %v13088_v42 }
 0x57d   : > { %v9269_v12 = vpop.f32.mrf.mxu1 }
 0x57e   : > { %v9270_v9 = vadd.f32 %v9269_v12, %v9268_v61 }
 0x57f   : > { %v9271_v0 = vpop.f32.mrf.mxu1 }
 0x580   : > { %v7670_v13 = vadd.f32 %v9270_v9, %v13088_v42 }
 0x581   : > { %v9272_v35 = vpop.f32.mrf.mxu1 }
 0x582   : > { %v13072_v25 = vadd.f32 %v9272_v35, %v9271_v0 }
 0x583   : > { %v9274_v18 = vpop.f32.mrf.mxu1 }
 0x585   : > { %v9275_v62 = vpop.f32.mrf.mxu1 }
 0x586   : > { %v13074_v26 = vadd.f32 %v9275_v62, %v9274_v18 }
 0x587   : > { %v9277_v59 = vpop.f32.mrf.mxu1 }
 0x589   : > { %v9278_v36 = vpop.f32.mrf.mxu1 }
 0x58a   : > { %v13076_v27 = vadd.f32 %v9278_v36, %v9277_v59 }
 0x58b   : > { %v9280_v5 = vpop.f32.mrf.mxu1 }
 0x58d   : > { %v9281_v38 = vpop.f32.mrf.mxu1 }
 0x58e   : > { %v13078_v30 = vadd.f32 %v9281_v38, %v9280_v5 }
 0x58f   : > { %v13080_v55 = vpop.f32.mrf.mxu1 }
 0x591   : > { %v13082_v21 = vpop.f32.mrf.mxu1 }
 0x593   : > { %v13084_v43 = vpop.f32.mrf.mxu1 }
 0x595   : > { %v13086_v52 = vpop.f32.mrf.mxu1 }
 0x597   : > { %v9289_v54 = vpop.f32.mrf.mxu1 }
 0x599   : > { %v9290_v2 = vpop.f32.mrf.mxu1 }
 0x59a   : > { %v9291_v59 = vadd.f32 %v9290_v2, %v9289_v54 }
 0x59b   : > { %v9292_v63 = vpop.f32.mrf.mxu1 }
 0x59d   : > { %v9293_v39 = vpop.f32.mrf.mxu1 }
 0x59e   : > { %v9294_v35 = vadd.f32 %v9293_v39, %v9292_v63 }
 0x59f   : > { %v9295_v40 = vpop.f32.mrf.mxu1 }
 0x5a0   : > { %v7702_v36 = vadd.f32 %v9294_v35, %v13088_v42 }
 0x5a1   : > { %v9296_v48 = vpop.f32.mrf.mxu1 }
 0x5a2   : > { %v9297_v12 = vadd.f32 %v9296_v48, %v9295_v40  ;;  %v7678_v40 = vadd.f32 %v13074_v26, %v13088_v42 }
 0x5a3   : > { %v9298_v33 = vpop.f32.mrf.mxu1 }
 0x5a4   : > { %v7707_v18 = vadd.f32 %v9297_v12, %v13088_v42 }
 0x5a5   : > { %v9299_v60 = vpop.f32.mrf.mxu1 }
 0x5a6   : > { %v9300_v37 = vadd.f32 %v9299_v60, %v9298_v33 }
 0x5a7   : > { %v9301_v10 = vpop.f32.mrf.mxu1 }
 0x5a8   : > { %v7710_v9 = vadd.f32 %v9300_v37, %v13088_v42 }
 0x5a9   : > { %v9302_v1 = vpop.f32.mrf.mxu1 }
 0x5aa   : > { %v9303_v49 = vadd.f32 %v9302_v1, %v9301_v10  ;;  %v13765_v10 = vld [vmem:[#allocation118_spill] sm:$0xff] }
 0x5ab   : > { %v9304_v46 = vpop.f32.mrf.mxu1 }
 0x5ac   : > { %v7715_v50 = vadd.f32 %v9303_v49, %v13088_v42 }
 0x5ad   : > { %v9305_v51 = vpop.f32.mrf.mxu1 }
 0x5ae   : > { %v9306_v29 = vadd.f32 %v9305_v51, %v9304_v46 }
 0x5b0   : > { %v7718_v16 = vadd.f32 %v9306_v29, %v13088_v42 }
 0x5ba   : > { %v9390_v44 = vpop.f32.mrf.mxu0 }
 0x5bb   : > { %v13091_v22 = vadd.f32 %v9390_v44, %v7667_v3  ;;  %v9288_v3 = vadd.f32 %v13086_v52, %v13084_v43  ;;  %v7699_v44 = vadd.f32 %v9291_v59, %v13088_v42 }
 0x5bc   : > { %v7755_v57 = vpop.f32.mrf.mxu0 }
 0x5bd   : > { %v13095_v19 = vadd.f32 %v7755_v57, %v7659_v8  ;;  %v7694_v54 = vadd.f32 %v9288_v3, %v13088_v42 }
 0x5be   : > { %v9391_v11 = vpop.f32.mrf.mxu0 }
 0x5bf   : > { %v13098_v20 = vadd.f32 %v9391_v11, %v7670_v13  ;;  %v9285_v13 = vadd.f32 %v13082_v21, %v13080_v55 }
 0x5c0   : > { %v7758_v34 = vpop.f32.mrf.mxu0 }
 0x5c1   : > { %v13101_v58 = vadd.f32 %v7758_v34, %v7662_v45  ;;  %v7691_v43 = vadd.f32 %v9285_v13, %v13088_v42  ;;  %v7686_v45 = vadd.f32 %v13078_v30, %v13088_v42  ;;  %v7683_v34 = vadd.f32 %v13076_v27, %v13088_v42 }
 0x5c2   : > { %v7675_v27 = vadd.f32 %v13072_v25, %v13088_v42 }
 0x5ca   : > { %v13103_v23 = vpop.f32.mrf.mxu0 }
 0x5cb   : > { %v7780_v63 = vadd.f32 %v13103_v23, %v7683_v34 }
 0x5cc   : > { %v13105_v56 = vpop.f32.mrf.mxu0 }
 0x5cd   : > { %v7772_v23 = vadd.f32 %v13105_v56, %v7675_v27 }
 0x5ce   : > { %v9395_v47 = vpop.f32.mrf.mxu0 }
 0x5cf   : > { %v7783_v55 = vadd.f32 %v9395_v47, %v7686_v45  ;;  %v7834_v47 = vld [vmem:[#allocation15] sm:$0x1] }
 0x5d0   : > { %v13107_v24 = vpop.f32.mrf.mxu0 }
 0x5d1   : > { %v7775_v30 = vadd.f32 %v13107_v24, %v7678_v40 }
 0x5da   : > { %v9398_v6 = vpop.f32.mrf.mxu0 }
 0x5db   : > { %v7796_v8 = vadd.f32 %v9398_v6, %v7699_v44 }
 0x5dc   : > { %v7787_v53 = vpop.f32.mrf.mxu0 }
 0x5dd   : > { %v7788_v52 = vadd.f32 %v7787_v53, %v7691_v43 }
 0x5de   : > { %v9399_v31 = vpop.f32.mrf.mxu0 }
 0x5df   : > { %v7799_v5 = vadd.f32 %v9399_v31, %v7702_v36 }
 0x5e0   : > { %v7790_v28 = vpop.f32.mrf.mxu0 }
 0x5e1   : > { %v7791_v2 = vadd.f32 %v7790_v28, %v7694_v54 }
 0x5ea   : > { %v9402_v17 = vpop.f32.mrf.mxu0 }
 0x5eb   : > { %v7812_v14 = vadd.f32 %v9402_v17, %v7715_v50 }
 0x5ec   : > { %v7803_v41 = vpop.f32.mrf.mxu0 }
 0x5ed   : > { %v7804_v62 = vadd.f32 %v7803_v41, %v7707_v18 }
 0x5ee   : > { %v9403_v32 = vpop.f32.mrf.mxu0 }
 0x5ef   : > { %v7815_v15 = vadd.f32 %v9403_v32, %v7718_v16 }
 0x5f0   : > { %v7806_v61 = vpop.f32.mrf.mxu0 }
 0x5f1   : > { %10677 = vtanh.f32 %v7815_v15  ;;  %v7807_v0 = vadd.f32 %v7806_v61, %v7710_v9 }
 0x5f2   : > { %10679 = vtanh.f32 %v7812_v14 }
 0x5f3   : > { %10681 = vtanh.f32 %v7807_v0 }
 0x5f4   : > { %10683 = vtanh.f32 %v7804_v62 }
 0x5f5   : > { %10685 = vtanh.f32 %v7799_v5 }
 0x5f6   : > { %10687 = vtanh.f32 %v7796_v8 }
 0x5f7   : > { %10689 = vtanh.f32 %v7791_v2 }
 0x5f8   : > { %10691 = vtanh.f32 %v7788_v52 }
 0x5f9   : > { %10693 = vtanh.f32 %v7783_v55 }
 0x5fa   : > { %10695 = vtanh.f32 %v7780_v63 }
 0x5fb   : > { %10697 = vtanh.f32 %v7775_v30 }
 0x5fc   : > { %10699 = vtanh.f32 %v7772_v23 }
 0x5fd   : > { %10701 = vtanh.f32 %v13098_v20 }
 0x5fe   : > { %v10678_v38 = vpop.eup %10677  ;;  %10703 = vtanh.f32 %v13091_v22 }
 0x5ff   : > { %9405 = vmatpush3.xpose.msra.mxu1 %v10678_v38  ;;  %v10680_v57 = vpop.eup %10679  ;;  %10705 = vtanh.f32 %v13101_v58 }
 0x600   : > { %9406 = vmatprep.subr.mxu1 %v11018_v4  ;;  %v10682_v11 = vpop.eup %10681  ;;  %10707 = vtanh.f32 %v13095_v19  ;;  %v7839_v19 = vpop.permute.xlu0 %7838 }
 0x601   : > { %v10684_v7 = vpop.eup %10683  ;;  %v7844_v24 = vrot.slane %v7839_v19, %v13765_v10 }
 0x602   : > { %v10686_v21 = vpop.eup %10685 }
 0x603   : > { %9407 = vmatpush3.xpose.msra.mxu1 %v10680_v57  ;;  %v10688_v39 = vpop.eup %10687 }
 0x604   : > { %9408 = vmatprep.subr.mxu1 %v11018_v4  ;;  %v10690_v48 = vpop.eup %10689 }
 0x605   : > { %v10692_v33 = vpop.eup %10691 }
 0x606   : > { %v10694_v26 = vpop.eup %10693 }
 0x607   : > { %9409 = vmatpush3.xpose.msra.mxu1 %v10682_v11  ;;  %v10696_v60 = vpop.eup %10695 }
 0x608   : > { %9410 = vmatprep.subr.mxu1 %v11018_v4  ;;  %v10698_v25 = vpop.eup %10697 }
 0x609   : > { %v10700_v42 = vpop.eup %10699 }
 0x60a   : > { %v10702_v20 = vpop.eup %10701 }
 0x60b   : > { %9411 = vmatpush3.xpose.msra.mxu1 %v10684_v7  ;;  %v10704_v56 = vpop.eup %10703 }
 0x60c   : > { %9412 = vmatprep.subr.mxu1 %v11018_v4  ;;  %v10706_v22 = vpop.eup %10705 }
 0x60d   : > { %v10708_v58 = vpop.eup %10707 }
 0x60f   : > { %9413 = vmatpush3.xpose.msra.mxu1 %v10686_v21 }
 0x610   : > { %9414 = vmatprep.subr.mxu1 %v11018_v4 }
 0x613   : > { %9415 = vmatpush3.xpose.msra.mxu1 %v10688_v39 }
 0x614   : > { %9416 = vmatprep.subr.mxu1 %v11018_v4 }
 0x617   : > { %9417 = vmatpush3.xpose.msra.mxu1 %v10690_v48 }
 0x618   : > { %9418 = vmatprep.subr.mxu1 %v11018_v4 }
 0x61b   : > { %9419 = vmatpush3.xpose.msra.mxu1 %v10692_v33 }
 0x61c   : > { %9420 = vmatprep.subr.mxu1 %v11018_v4 }
 0x61f   : > { %9421 = vmatpush3.xpose.msra.mxu1 %v10694_v26 }
 0x620   : > { %9422 = vmatprep.subr.mxu1 %v11018_v4 }
 0x623   : > { %9423 = vmatpush3.xpose.msra.mxu1 %v10696_v60 }
 0x624   : > { %9424 = vmatprep.subr.mxu1 %v11018_v4 }
 0x627   : > { %9425 = vmatpush3.xpose.msra.mxu1 %v10698_v25 }
 0x628   : > { %9426 = vmatprep.subr.mxu1 %v11018_v4 }
 0x62b   : > { %9427 = vmatpush3.xpose.msra.mxu1 %v10700_v42 }
 0x62c   : > { %9428 = vmatprep.subr.mxu1 %v11018_v4 }
 0x62f   : > { %9429 = vmatpush3.xpose.msra.mxu1 %v10702_v20 }
 0x630   : > { %9430 = vmatprep.subr.mxu1 %v11018_v4 }
 0x633   : > { %9431 = vmatpush3.xpose.msra.mxu1 %v10704_v56 }
 0x634   : > { %9432 = vmatprep.subr.mxu1 %v11018_v4 }
 0x637   : > { %9433 = vmatpush3.xpose.msra.mxu1 %v10706_v22 }
 0x638   : > { %9434 = vmatprep.subr.mxu1 %v11018_v4 }
 0x63b   : > { %9435 = vmatpush3.xpose.msra.mxu1 %v10708_v58 }
 0x63e   : > { %9437 = vmatmul.mubr.f32.vlgmr.msra.gmra.mxu1 %v7834_v47 }
 0x6fe   : > { %v7911_v6 = vpop.f32.mrf.mxu1 }
 0x6ff   : > { %v7912_v1 = vadd.f32 %v7911_v6, %v7844_v24 }
 0x700   : > { %v9438_v4 = vpop.f32.mrf.mxu1 }
 0x701   : > { %7915 = vst [vmem:[%s453_s24] sm:$0x1] %v7912_v1 }
 0x702   : > { %10932 = shalt.err (!%p10929_p13)
}
 0x703   : > { %s10933_s28 = scalar_lea.hbm %s13157_s23, 16  ;;  %s10937_s26 = scalar_lea.hbm %s13202_s9, 48 }
 0x704   : > { %p10934_p8 = scmp.ne.s32.totalorder %s13157_s23, %s10933_s28  ;;  %p10938_p3 = scmp.lt.s32.totalorder %s13157_s23, %s13202_s9 }
 0x705   : > { %p10939_p7 = scmp.lt.s32.totalorder %s10937_s26, %s10933_s28 }
 0x706   : > { %p10935_p10 = pnand %p10934_p8, %p13766_p5 }
 0x707   : > { %p10940_p9 = por %p10939_p7, %p10938_p3 }
 0x708   : > { %p10936_p1 = pneg %p10935_p10 }
 0x70a   : > { %p10941_p4 = pnand %p10940_p9, %p10936_p1 }
 0x70c   : > { %10944 = shalt.err (!%p10941_p4)
}
 0x70d   : > { %9471 = dma.vmem_to_hbm [thread:$0]  (%p13766_p5), %s7930_s18, 16, %s13157_s23, %s7917_s17  }
 0x70e PF: > { %s13767_s21 = sld [smem:[#allocation26_spill]]  ;;  %p9513_p0 = scmp.ge.s32.totalorder %s10999_s14, 2 }
 0x70f   : > { %s7941_s24 = sand.u32 1, %s10987_s11  }
 0x710   : > { %s7942_s10 = scalar_lea.sflag [#allocation5], %s7941_s24 }
 0x714   : > { %p13768_p11 = scmp.ne.s32.totalorder %s13767_s21, 0 }
 0x716   : > { %p9496_p12 = pnand %p9513_p0, %p13768_p11 }
 0x718   : > { %p9497_p6 = pneg %p9496_p12 }
 0x71a   : > { %10982 = dma.done.wait (%p9497_p6), %s7942_s10, 16  }
 0x71b   : > { %10984 = vsyncadd (%p9497_p6), %s7942_s10, 4294967280  ;;  %s13769_s14 = sld [smem:[#allocation24_spill]]  ;;  %s13771_s11 = smov %s10991_s12 }
 0x71c   : > { %s13770_s25 = sld [smem:[#allocation25_spill]]  ;;  %s13772_s12 = smov %s10995_s13 }
 0x721   : > { %p28_p2 = scmp.ge.s32.totalorder %s13769_s14, 5  }
 0x722   : > { %s13773_s13 = smov %s13770_s25 }
 0x723   :  { %30 = sbr.rel (!%p28_p2) target bundleno = 12 (0xc), region = 129 }
 0x728   :  { %7946 = vsyncpa [#allocation4], 1 }
 0x729   :  { %7948 = vsyncpa [#allocation4 + $0x1], 1 }
 0x72a   :  { %7949 = vsyncpa [#allocation7], 1 }
 0x72b   :  { %7950 = vsyncpa [#allocation10], 1 }
 0x72c   :  { %7951 = vsyncpa [#allocation13], 1 }
 0x72d   :  { %7952 = vsyncpa [#allocation16], 1 }
 0x72e   :  { %7953 = vsyncpa [#allocation5], 1 }
 0x72f   :  { %7955 = vsyncpa [#allocation5 + $0x1], 1 }

</bundles_post_ra>
